<compile_context>
chip_gen: v5e
topology: v5e:2x2
jax: 0.10.0
libtpu: 0.0.40
codegen_flags: <defaults>
</compile_context>

<pallas_src>
import jax
import jax.numpy as jnp
from jax.experimental import pallas as pl
from jax.experimental.pallas import tpu as pltpu

# Small, deterministic hyperparameters consistent with the module's forward.
VOCAB = 128
EMBED_DIM = 64
HIDDEN_DIM = 128           # per-direction LSTM hidden size
NUM_LAYERS = 2
OUTPUT_DIM = 2
BIDIR_DIM = 2 * HIDDEN_DIM


# ---------------------------------------------------------------------------
# Fused forward kernel: 2-layer bi-LSTM + soft attention + MLP + softmax.
# ---------------------------------------------------------------------------
def _fused_forward_kernel(
    x_ref,                                      # (T, B, E)  f32 embedded input
    wih_f0_ref, whh_f0_ref, b_f0_ref,           # layer 0 fwd: (E,4H) bf16, (H,4H) bf16, (1,4H) f32
    wih_b0_ref, whh_b0_ref, b_b0_ref,           # layer 0 bwd
    wih_f1_ref, whh_f1_ref, b_f1_ref,           # layer 1 fwd: (2H,4H) bf16, (H,4H) bf16, (1,4H) f32
    wih_b1_ref, whh_b1_ref, b_b1_ref,           # layer 1 bwd
    attn_ref,                                   # (1, 2H) f32
    fc1_w_ref, fc1_b_ref,                       # (2H, H) bf16, (1, H) f32
    fc2_w_ref, fc2_b_ref,                       # (H, O) bf16, (1, O) f32
    out_ref,                                    # (B, O) f32
    gx_sc,                                      # (T, B, 4H) f32  hoisted input-projection scratch
    l1_sc,                                      # (T, B, 2H) f32  layer-1 bidirectional output
    l2_sc,                                      # (T, B, 2H) f32  layer-2 bidirectional output
):
    T, B, E = x_ref.shape
    H = whh_f0_ref.shape[0]
    H2 = 2 * H

    def run_direction(x_all, din, wih_ref, whh_ref, b_ref, out_sc, col_off, reverse):
        """One LSTM direction over the whole sequence (PyTorch gate order i,f,g,o).

        x_all: (T, B, din) f32 value. Hidden states are written to
        out_sc[:, :, col_off:col_off+H].
        """
        # Hoisted input projection: one (T*B, din) @ (din, 4H) MXU matmul + bias,
        # staged into VMEM scratch; removes T tiny matmuls and the per-step bias
        # broadcast from the serial recurrence.
        x2d = x_all.reshape(T * B, din).astype(jnp.bfloat16)
        gx = jnp.dot(x2d, wih_ref[...], preferred_element_type=jnp.float32) + b_ref[...]
        gx_sc[...] = gx.reshape(T, B, 4 * H)

        whh = whh_ref[...]                          # (H, 4H) bf16, loaded once

        def step(s, carry):
            h, c = carry
            t = (T - 1 - s) if reverse else s       # in-kernel reversal, no HBM flips
            gates = gx_sc[t] + jnp.dot(h.astype(jnp.bfloat16), whh,
                                       preferred_element_type=jnp.float32)   # (B, 4H) f32
            i = jax.nn.sigmoid(gates[:, 0:H])
            f = jax.nn.sigmoid(gates[:, H:2 * H])
            g = jnp.tanh(gates[:, 2 * H:3 * H])
            o = jax.nn.sigmoid(gates[:, 3 * H:4 * H])
            c_new = f * c + i * g                   # cell state kept in f32
            h_new = o * jnp.tanh(c_new)
            out_sc[t, :, col_off:col_off + H] = h_new
            return (h_new, c_new)

        zeros = jnp.zeros((B, H), jnp.float32)
        jax.lax.fori_loop(0, T, step, (zeros, zeros), unroll=True)  # T is static

    # ---- layer 0 (input: embeddings) --------------------------------------
    x0 = x_ref[...]                                                  # (T, B, E) f32
    run_direction(x0, E, wih_f0_ref, whh_f0_ref, b_f0_ref, l1_sc, 0, False)
    run_direction(x0, E, wih_b0_ref, whh_b0_ref, b_b0_ref, l1_sc, H, True)

    # ---- layer 1 (input: layer-0 bidirectional output, VMEM-resident) -----
    x1 = l1_sc[...]                                                  # (T, B, 2H) f32
    run_direction(x1, H2, wih_f1_ref, whh_f1_ref, b_f1_ref, l2_sc, 0, False)
    run_direction(x1, H2, wih_b1_ref, whh_b1_ref, b_b1_ref, l2_sc, H, True)

    # ---- soft attention over time + Linear/ReLU/Linear + softmax ----------
    lstm_out = l2_sc[...]                                            # (T, B, 2H) f32
    a = attn_ref[...].reshape(1, 1, H2)                              # hoisted broadcast
    scores = jnp.sum(lstm_out * a, axis=-1, keepdims=True)           # (T, B, 1)
    scores = scores - jnp.max(scores, axis=0, keepdims=True)
    e = jnp.exp(scores)
    attn_w = e * pl.reciprocal(jnp.sum(e, axis=0, keepdims=True), approx=True)
    weighted_sum = jnp.sum(lstm_out * attn_w, axis=0)                # (B, 2H)

    h1 = jnp.dot(weighted_sum.astype(jnp.bfloat16), fc1_w_ref[...],
                 preferred_element_type=jnp.float32) + fc1_b_ref[...]
    h1 = jnp.maximum(h1, 0.0)
    logits = jnp.dot(h1.astype(jnp.bfloat16), fc2_w_ref[...],
                     preferred_element_type=jnp.float32) + fc2_b_ref[...]
    logits = logits - jnp.max(logits, axis=1, keepdims=True)
    el = jnp.exp(logits)
    out_ref[...] = el / jnp.sum(el, axis=1, keepdims=True)           # softmax(dim=1)


# ---------------------------------------------------------------------------
# Parameters (deterministic init, PyTorch-like shapes, pre-transposed/packed).
# ---------------------------------------------------------------------------
def _uniform(key, shape, bound):
    return jax.random.uniform(key, shape, jnp.float32, -bound, bound)


def init_params(key):
    keys = iter(jax.random.split(key, 64))
    bound_l = 1.0 / float(jnp.sqrt(HIDDEN_DIM))
    bound_a = 1.0 / float(jnp.sqrt(BIDIR_DIM))
    params = {"embedding": jax.random.normal(next(keys), (VOCAB, EMBED_DIM), jnp.float32)}
    lstm = []
    in_dim = EMBED_DIM
    for _ in range(NUM_LAYERS):
        layer_p = {}
        for d in ("fwd", "bwd"):
            w_ih = _uniform(next(keys), (4 * HIDDEN_DIM, in_dim), bound_l)
            w_hh = _uniform(next(keys), (4 * HIDDEN_DIM, HIDDEN_DIM), bound_l)
            b_ih = _uniform(next(keys), (4 * HIDDEN_DIM,), bound_l)
            b_hh = _uniform(next(keys), (4 * HIDDEN_DIM,), bound_l)
            # bf16 weights for the MXU; combined bias kept in f32.
            layer_p[d] = (w_ih.T.astype(jnp.bfloat16),
                          w_hh.T.astype(jnp.bfloat16),
                          (b_ih + b_hh)[None, :])
        lstm.append(layer_p)
        in_dim = BIDIR_DIM
    params["lstm"] = lstm
    params["attn_w"] = _uniform(next(keys), (1, BIDIR_DIM), bound_a)
    params["fc1_w"] = _uniform(next(keys), (HIDDEN_DIM, BIDIR_DIM), bound_a).T.astype(jnp.bfloat16)
    params["fc1_b"] = _uniform(next(keys), (HIDDEN_DIM,), bound_a)[None, :]
    params["fc2_w"] = _uniform(next(keys), (OUTPUT_DIM, HIDDEN_DIM), bound_l).T.astype(jnp.bfloat16)
    params["fc2_b"] = _uniform(next(keys), (OUTPUT_DIM,), bound_l)[None, :]
    return params


def _flat_params(params):
    flat = []
    for layer in range(NUM_LAYERS):
        for d in ("fwd", "bwd"):
            flat.extend(params["lstm"][layer][d])
    flat.extend([params["attn_w"], params["fc1_w"], params["fc1_b"],
                 params["fc2_w"], params["fc2_b"]])
    return flat


# ---------------------------------------------------------------------------
# Forward pass: embedding gather (glue) + one fused Pallas kernel.
# ---------------------------------------------------------------------------
@jax.jit
def forward(params, input_ids):
    B, T = input_ids.shape
    pad = (-B) % 8                                   # fill whole sublanes
    ids = jnp.pad(input_ids, ((0, pad), (0, 0))) if pad else input_ids
    Bp = B + pad
    # Embedding lookup (glue), gathered directly in time-major layout (no transpose).
    x = params["embedding"][ids.T]                   # (T, Bp, E) f32
    flat = _flat_params(params)
    out = pl.pallas_call(
        _fused_forward_kernel,
        out_shape=jax.ShapeDtypeStruct((Bp, OUTPUT_DIM), jnp.float32),
        in_specs=[pl.BlockSpec(memory_space=pltpu.MemorySpace.VMEM)] * (1 + len(flat)),
        out_specs=pl.BlockSpec(memory_space=pltpu.MemorySpace.VMEM),
        scratch_shapes=[
            pltpu.VMEM((T, Bp, 4 * HIDDEN_DIM), jnp.float32),   # hoisted gate projections
            pltpu.VMEM((T, Bp, BIDIR_DIM), jnp.float32),        # layer-1 output
            pltpu.VMEM((T, Bp, BIDIR_DIM), jnp.float32),        # layer-2 output
        ],
        compiler_params=pltpu.CompilerParams(vmem_limit_bytes=32 * 1024 * 1024),
    )(x, *flat)
    return out[:B]


# ---------------------------------------------------------------------------
# Pure-JAX reference (same bf16 matmul operands / f32 accumulation) for checking.
# ---------------------------------------------------------------------------
def _lstm_dir_ref(x_tbd_bf16, wih_t, whh_t, b, H):
    B = x_tbd_bf16.shape[1]

    def step(carry, x_t):
        h, c = carry
        gates = (jnp.dot(x_t, wih_t, preferred_element_type=jnp.float32)
                 + jnp.dot(h.astype(jnp.bfloat16), whh_t, preferred_element_type=jnp.float32)
                 + b)
        i = jax.nn.sigmoid(gates[:, :H])
        f = jax.nn.sigmoid(gates[:, H:2 * H])
        g = jnp.tanh(gates[:, 2 * H:3 * H])
        o = jax.nn.sigmoid(gates[:, 3 * H:])
        c = f * c + i * g
        h = o * jnp.tanh(c)
        return (h, c), h

    init = (jnp.zeros((B, H), jnp.float32), jnp.zeros((B, H), jnp.float32))
    _, out = jax.lax.scan(step, init, x_tbd_bf16)
    return out


def forward_ref(params, input_ids):
    emb = params["embedding"][input_ids]                         # (B, T, E) f32
    layer_out = jnp.transpose(emb, (1, 0, 2))                    # (T, B, E) f32
    for layer in range(NUM_LAYERS):
        pf = params["lstm"][layer]["fwd"]
        pb = params["lstm"][layer]["bwd"]
        h_in = layer_out.astype(jnp.bfloat16)
        out_f = _lstm_dir_ref(h_in, *pf, HIDDEN_DIM)
        out_b = _lstm_dir_ref(h_in[::-1], *pb, HIDDEN_DIM)[::-1]
        layer_out = jnp.concatenate([out_f, out_b], axis=-1)     # (T, B, 2H) f32
    lstm_out = layer_out
    scores = jnp.sum(lstm_out * params["attn_w"][0], axis=-1)    # (T, B)
    attn = jax.nn.softmax(scores, axis=0)                        # softmax over time
    ws = jnp.sum(lstm_out * attn[:, :, None], axis=0)            # (B, 2H)
    h1 = jnp.maximum(jnp.dot(ws.astype(jnp.bfloat16), params["fc1_w"],
                             preferred_element_type=jnp.float32) + params["fc1_b"], 0.0)
    logits = jnp.dot(h1.astype(jnp.bfloat16), params["fc2_w"],
                     preferred_element_type=jnp.float32) + params["fc2_b"]
    return jax.nn.softmax(logits, axis=1)


if __name__ == "__main__":
    key = jax.random.PRNGKey(0)
    pkey, ikey = jax.random.split(key)
    params = init_params(pkey)

    B, T = 2, 8
    input_ids = jax.random.randint(ikey, (B, T), 0, VOCAB, dtype=jnp.int32)

    out = forward(params, input_ids)
    out = jax.block_until_ready(out)

    ref = forward_ref(params, input_ids)
    assert out.shape == (B, OUTPUT_DIM)
    # Tolerance accounts for the approximate EUP reciprocal in the attention softmax
    # and minor transcendental-implementation differences vs plain XLA.
    assert bool(jnp.allclose(out, ref, atol=5e-3, rtol=5e-3)), "mismatch vs pure-JAX reference"
    print("KERNEL_OK")
</pallas_src>

<mosaic_0001>
module attributes {stable_mosaic.version = 11 : i64} {
  func.func @_fused_forward_kernel(%arg0: memref<8x8x64xf32, #tpu.memory_space<vmem>>, %arg1: memref<64x512xbf16, #tpu.memory_space<vmem>>, %arg2: memref<128x512xbf16, #tpu.memory_space<vmem>>, %arg3: memref<1x512xf32, #tpu.memory_space<vmem>>, %arg4: memref<64x512xbf16, #tpu.memory_space<vmem>>, %arg5: memref<128x512xbf16, #tpu.memory_space<vmem>>, %arg6: memref<1x512xf32, #tpu.memory_space<vmem>>, %arg7: memref<256x512xbf16, #tpu.memory_space<vmem>>, %arg8: memref<128x512xbf16, #tpu.memory_space<vmem>>, %arg9: memref<1x512xf32, #tpu.memory_space<vmem>>, %arg10: memref<256x512xbf16, #tpu.memory_space<vmem>>, %arg11: memref<128x512xbf16, #tpu.memory_space<vmem>>, %arg12: memref<1x512xf32, #tpu.memory_space<vmem>>, %arg13: memref<1x256xf32, #tpu.memory_space<vmem>>, %arg14: memref<256x128xbf16, #tpu.memory_space<vmem>>, %arg15: memref<1x128xf32, #tpu.memory_space<vmem>>, %arg16: memref<128x2xbf16, #tpu.memory_space<vmem>>, %arg17: memref<1x2xf32, #tpu.memory_space<vmem>>, %arg18: memref<8x2xf32, #tpu.memory_space<vmem>>, %arg19: memref<8x8x512xf32, #tpu.memory_space<vmem>>, %arg20: memref<8x8x256xf32, #tpu.memory_space<vmem>>, %arg21: memref<8x8x256xf32, #tpu.memory_space<vmem>>) attributes {dimension_semantics = [], scalar_prefetch = 0 : i64, scratch_operands = 3 : i64, tpu.core_type = #tpu.core_type<tc>} {
    %c0 = arith.constant 0 : index
    %c0_0 = arith.constant 0 : index
    %c0_1 = arith.constant 0 : index
    %0 = vector.load %arg0[%c0, %c0_0, %c0_1] : memref<8x8x64xf32, #tpu.memory_space<vmem>>, vector<8x8x64xf32>
    %1 = vector.shape_cast %0 : vector<8x8x64xf32> to vector<64x64xf32>
    %2 = arith.truncf %1 : vector<64x64xf32> to vector<64x64xbf16>
    %c0_2 = arith.constant 0 : index
    %c0_3 = arith.constant 0 : index
    %3 = vector.load %arg1[%c0_2, %c0_3] : memref<64x512xbf16, #tpu.memory_space<vmem>>, vector<64x512xbf16>
    %cst = arith.constant dense<0.000000e+00> : vector<64x512xf32>
    %4 = tpu.matmul %2, %3, %cst {dimension_numbers = #tpu.dot_dimension_numbers<[1], [0], [0], [1], [0, 0, 1, 1], [], []>} : vector<64x64xbf16>, vector<64x512xbf16>, vector<64x512xf32> -> vector<64x512xf32>
    %c0_4 = arith.constant 0 : index
    %c0_5 = arith.constant 0 : index
    %5 = vector.load %arg3[%c0_4, %c0_5] : memref<1x512xf32, #tpu.memory_space<vmem>>, vector<1x512xf32>
    %6 = vector.broadcast %5 : vector<1x512xf32> to vector<64x512xf32>
    %7 = arith.addf %4, %6 : vector<64x512xf32>
    %8 = vector.shape_cast %7 : vector<64x512xf32> to vector<8x8x512xf32>
    %c0_6 = arith.constant 0 : index
    %c0_7 = arith.constant 0 : index
    %c0_8 = arith.constant 0 : index
    %9 = vector.load %arg19[%c0_6, %c0_7, %c0_8] : memref<8x8x512xf32, #tpu.memory_space<vmem>>, vector<8x8x512xf32>
    tpu.vector_store %arg19[%c0_6, %c0_7, %c0_8], %8 {strides = array<i32>} : memref<8x8x512xf32, #tpu.memory_space<vmem>>, vector<8x8x512xf32>,
    %c0_9 = arith.constant 0 : index
    %c0_10 = arith.constant 0 : index
    %10 = vector.load %arg2[%c0_9, %c0_10] : memref<128x512xbf16, #tpu.memory_space<vmem>>, vector<128x512xbf16>
    %cst_11 = arith.constant 0.000000e+00 : f32
    %11 = vector.broadcast %cst_11 : f32 to vector<8x128xf32>
    %c0_i32 = arith.constant 0 : i32
    %12 = arith.index_cast %c0_i32 : i32 to index
    %c0_12 = arith.constant 0 : index
    %c0_13 = arith.constant 0 : index
    %13 = vector.load %arg19[%12, %c0_12, %c0_13] : memref<8x8x512xf32, #tpu.memory_space<vmem>>, vector<1x8x512xf32>
    %14 = vector.shape_cast %13 : vector<1x8x512xf32> to vector<8x512xf32>
    %15 = arith.truncf %11 : vector<8x128xf32> to vector<8x128xbf16>
    %cst_14 = arith.constant dense<0.000000e+00> : vector<8x512xf32>
    %16 = tpu.matmul %15, %10, %cst_14 {dimension_numbers = #tpu.dot_dimension_numbers<[1], [0], [0], [1], [0, 0, 1, 1], [], []>} : vector<8x128xbf16>, vector<128x512xbf16>, vector<8x512xf32> -> vector<8x512xf32>
    %17 = arith.addf %14, %16 : vector<8x512xf32>
    %18 = vector.extract_strided_slice %17 {offsets = [0, 0], sizes = [8, 128], strides = [1, 1]} : vector<8x512xf32> to vector<8x128xf32>
    %19 = arith.negf %18 : vector<8x128xf32>
    %20 = math.exp %19 : vector<8x128xf32>
    %cst_15 = arith.constant 1.000000e+00 : f32
    %21 = vector.broadcast %cst_15 : f32 to vector<8x128xf32>
    %22 = arith.addf %21, %20 : vector<8x128xf32>
    %23 = arith.divf %21, %22 : vector<8x128xf32>
    %24 = vector.extract_strided_slice %17 {offsets = [0, 128], sizes = [8, 128], strides = [1, 1]} : vector<8x512xf32> to vector<8x128xf32>
    %25 = arith.negf %24 : vector<8x128xf32>
    %26 = math.exp %25 : vector<8x128xf32>
    %cst_16 = arith.constant 1.000000e+00 : f32
    %27 = vector.broadcast %cst_16 : f32 to vector<8x128xf32>
    %28 = arith.addf %27, %26 : vector<8x128xf32>
    %29 = arith.divf %27, %28 : vector<8x128xf32>
    %30 = vector.extract_strided_slice %17 {offsets = [0, 256], sizes = [8, 128], strides = [1, 1]} : vector<8x512xf32> to vector<8x128xf32>
    %31 = math.tanh %30 : vector<8x128xf32>
    %32 = vector.extract_strided_slice %17 {offsets = [0, 384], sizes = [8, 128], strides = [1, 1]} : vector<8x512xf32> to vector<8x128xf32>
    %33 = arith.negf %32 : vector<8x128xf32>
    %34 = math.exp %33 : vector<8x128xf32>
    %cst_17 = arith.constant 1.000000e+00 : f32
    %35 = vector.broadcast %cst_17 : f32 to vector<8x128xf32>
    %36 = arith.addf %35, %34 : vector<8x128xf32>
    %37 = arith.divf %35, %36 : vector<8x128xf32>
    %38 = arith.mulf %29, %11 : vector<8x128xf32>
    %39 = arith.mulf %23, %31 : vector<8x128xf32>
    %40 = arith.addf %38, %39 : vector<8x128xf32>
    %41 = math.tanh %40 : vector<8x128xf32>
    %42 = arith.mulf %37, %41 : vector<8x128xf32>
    %43 = arith.index_cast %c0_i32 : i32 to index
    %c0_18 = arith.constant 0 : index
    %c0_19 = arith.constant 0 : index
    %44 = vector.load %arg20[%43, %c0_18, %c0_19] : memref<8x8x256xf32, #tpu.memory_space<vmem>>, vector<1x8x128xf32>
    %45 = vector.shape_cast %44 : vector<1x8x128xf32> to vector<8x128xf32>
    %46 = vector.shape_cast %42 : vector<8x128xf32> to vector<1x8x128xf32>
    tpu.vector_store %arg20[%43, %c0_18, %c0_19], %46 {strides = array<i32>} : memref<8x8x256xf32, #tpu.memory_space<vmem>>, vector<1x8x128xf32>,
    %c1_i32 = arith.constant 1 : i32
    %47 = arith.index_cast %c1_i32 : i32 to index
    %c0_20 = arith.constant 0 : index
    %c0_21 = arith.constant 0 : index
    %48 = vector.load %arg19[%47, %c0_20, %c0_21] : memref<8x8x512xf32, #tpu.memory_space<vmem>>, vector<1x8x512xf32>
    %49 = vector.shape_cast %48 : vector<1x8x512xf32> to vector<8x512xf32>
    %50 = arith.truncf %42 : vector<8x128xf32> to vector<8x128xbf16>
    %cst_22 = arith.constant dense<0.000000e+00> : vector<8x512xf32>
    %51 = tpu.matmul %50, %10, %cst_22 {dimension_numbers = #tpu.dot_dimension_numbers<[1], [0], [0], [1], [0, 0, 1, 1], [], []>} : vector<8x128xbf16>, vector<128x512xbf16>, vector<8x512xf32> -> vector<8x512xf32>
    %52 = arith.addf %49, %51 : vector<8x512xf32>
    %53 = vector.extract_strided_slice %52 {offsets = [0, 0], sizes = [8, 128], strides = [1, 1]} : vector<8x512xf32> to vector<8x128xf32>
    %54 = arith.negf %53 : vector<8x128xf32>
    %55 = math.exp %54 : vector<8x128xf32>
    %cst_23 = arith.constant 1.000000e+00 : f32
    %56 = vector.broadcast %cst_23 : f32 to vector<8x128xf32>
    %57 = arith.addf %56, %55 : vector<8x128xf32>
    %58 = arith.divf %56, %57 : vector<8x128xf32>
    %59 = vector.extract_strided_slice %52 {offsets = [0, 128], sizes = [8, 128], strides = [1, 1]} : vector<8x512xf32> to vector<8x128xf32>
    %60 = arith.negf %59 : vector<8x128xf32>
    %61 = math.exp %60 : vector<8x128xf32>
    %cst_24 = arith.constant 1.000000e+00 : f32
    %62 = vector.broadcast %cst_24 : f32 to vector<8x128xf32>
    %63 = arith.addf %62, %61 : vector<8x128xf32>
    %64 = arith.divf %62, %63 : vector<8x128xf32>
    %65 = vector.extract_strided_slice %52 {offsets = [0, 256], sizes = [8, 128], strides = [1, 1]} : vector<8x512xf32> to vector<8x128xf32>
    %66 = math.tanh %65 : vector<8x128xf32>
    %67 = vector.extract_strided_slice %52 {offsets = [0, 384], sizes = [8, 128], strides = [1, 1]} : vector<8x512xf32> to vector<8x128xf32>
    %68 = arith.negf %67 : vector<8x128xf32>
    %69 = math.exp %68 : vector<8x128xf32>
    %cst_25 = arith.constant 1.000000e+00 : f32
    %70 = vector.broadcast %cst_25 : f32 to vector<8x128xf32>
    %71 = arith.addf %70, %69 : vector<8x128xf32>
    %72 = arith.divf %70, %71 : vector<8x128xf32>
    %73 = arith.mulf %64, %40 : vector<8x128xf32>
    %74 = arith.mulf %58, %66 : vector<8x128xf32>
    %75 = arith.addf %73, %74 : vector<8x128xf32>
    %76 = math.tanh %75 : vector<8x128xf32>
    %77 = arith.mulf %72, %76 : vector<8x128xf32>
    %78 = arith.index_cast %c1_i32 : i32 to index
    %c0_26 = arith.constant 0 : index
    %c0_27 = arith.constant 0 : index
    %79 = vector.load %arg20[%78, %c0_26, %c0_27] : memref<8x8x256xf32, #tpu.memory_space<vmem>>, vector<1x8x128xf32>
    %80 = vector.shape_cast %79 : vector<1x8x128xf32> to vector<8x128xf32>
    %81 = vector.shape_cast %77 : vector<8x128xf32> to vector<1x8x128xf32>
    tpu.vector_store %arg20[%78, %c0_26, %c0_27], %81 {strides = array<i32>} : memref<8x8x256xf32, #tpu.memory_space<vmem>>, vector<1x8x128xf32>,
    %c2_i32 = arith.constant 2 : i32
    %82 = arith.index_cast %c2_i32 : i32 to index
    %c0_28 = arith.constant 0 : index
    %c0_29 = arith.constant 0 : index
    %83 = vector.load %arg19[%82, %c0_28, %c0_29] : memref<8x8x512xf32, #tpu.memory_space<vmem>>, vector<1x8x512xf32>
    %84 = vector.shape_cast %83 : vector<1x8x512xf32> to vector<8x512xf32>
    %85 = arith.truncf %77 : vector<8x128xf32> to vector<8x128xbf16>
    %cst_30 = arith.constant dense<0.000000e+00> : vector<8x512xf32>
    %86 = tpu.matmul %85, %10, %cst_30 {dimension_numbers = #tpu.dot_dimension_numbers<[1], [0], [0], [1], [0, 0, 1, 1], [], []>} : vector<8x128xbf16>, vector<128x512xbf16>, vector<8x512xf32> -> vector<8x512xf32>
    %87 = arith.addf %84, %86 : vector<8x512xf32>
    %88 = vector.extract_strided_slice %87 {offsets = [0, 0], sizes = [8, 128], strides = [1, 1]} : vector<8x512xf32> to vector<8x128xf32>
    %89 = arith.negf %88 : vector<8x128xf32>
    %90 = math.exp %89 : vector<8x128xf32>
    %cst_31 = arith.constant 1.000000e+00 : f32
    %91 = vector.broadcast %cst_31 : f32 to vector<8x128xf32>
    %92 = arith.addf %91, %90 : vector<8x128xf32>
    %93 = arith.divf %91, %92 : vector<8x128xf32>
    %94 = vector.extract_strided_slice %87 {offsets = [0, 128], sizes = [8, 128], strides = [1, 1]} : vector<8x512xf32> to vector<8x128xf32>
    %95 = arith.negf %94 : vector<8x128xf32>
    %96 = math.exp %95 : vector<8x128xf32>
    %cst_32 = arith.constant 1.000000e+00 : f32
    %97 = vector.broadcast %cst_32 : f32 to vector<8x128xf32>
    %98 = arith.addf %97, %96 : vector<8x128xf32>
    %99 = arith.divf %97, %98 : vector<8x128xf32>
    %100 = vector.extract_strided_slice %87 {offsets = [0, 256], sizes = [8, 128], strides = [1, 1]} : vector<8x512xf32> to vector<8x128xf32>
    %101 = math.tanh %100 : vector<8x128xf32>
    %102 = vector.extract_strided_slice %87 {offsets = [0, 384], sizes = [8, 128], strides = [1, 1]} : vector<8x512xf32> to vector<8x128xf32>
    %103 = arith.negf %102 : vector<8x128xf32>
    %104 = math.exp %103 : vector<8x128xf32>
    %cst_33 = arith.constant 1.000000e+00 : f32
    %105 = vector.broadcast %cst_33 : f32 to vector<8x128xf32>
    %106 = arith.addf %105, %104 : vector<8x128xf32>
    %107 = arith.divf %105, %106 : vector<8x128xf32>
    %108 = arith.mulf %99, %75 : vector<8x128xf32>
    %109 = arith.mulf %93, %101 : vector<8x128xf32>
    %110 = arith.addf %108, %109 : vector<8x128xf32>
    %111 = math.tanh %110 : vector<8x128xf32>
    %112 = arith.mulf %107, %111 : vector<8x128xf32>
    %113 = arith.index_cast %c2_i32 : i32 to index
    %c0_34 = arith.constant 0 : index
    %c0_35 = arith.constant 0 : index
    %114 = vector.load %arg20[%113, %c0_34, %c0_35] : memref<8x8x256xf32, #tpu.memory_space<vmem>>, vector<1x8x128xf32>
    %115 = vector.shape_cast %114 : vector<1x8x128xf32> to vector<8x128xf32>
    %116 = vector.shape_cast %112 : vector<8x128xf32> to vector<1x8x128xf32>
    tpu.vector_store %arg20[%113, %c0_34, %c0_35], %116 {strides = array<i32>} : memref<8x8x256xf32, #tpu.memory_space<vmem>>, vector<1x8x128xf32>,
    %c3_i32 = arith.constant 3 : i32
    %117 = arith.index_cast %c3_i32 : i32 to index
    %c0_36 = arith.constant 0 : index
    %c0_37 = arith.constant 0 : index
    %118 = vector.load %arg19[%117, %c0_36, %c0_37] : memref<8x8x512xf32, #tpu.memory_space<vmem>>, vector<1x8x512xf32>
    %119 = vector.shape_cast %118 : vector<1x8x512xf32> to vector<8x512xf32>
    %120 = arith.truncf %112 : vector<8x128xf32> to vector<8x128xbf16>
    %cst_38 = arith.constant dense<0.000000e+00> : vector<8x512xf32>
    %121 = tpu.matmul %120, %10, %cst_38 {dimension_numbers = #tpu.dot_dimension_numbers<[1], [0], [0], [1], [0, 0, 1, 1], [], []>} : vector<8x128xbf16>, vector<128x512xbf16>, vector<8x512xf32> -> vector<8x512xf32>
    %122 = arith.addf %119, %121 : vector<8x512xf32>
    %123 = vector.extract_strided_slice %122 {offsets = [0, 0], sizes = [8, 128], strides = [1, 1]} : vector<8x512xf32> to vector<8x128xf32>
    %124 = arith.negf %123 : vector<8x128xf32>
    %125 = math.exp %124 : vector<8x128xf32>
    %cst_39 = arith.constant 1.000000e+00 : f32
    %126 = vector.broadcast %cst_39 : f32 to vector<8x128xf32>
    %127 = arith.addf %126, %125 : vector<8x128xf32>
    %128 = arith.divf %126, %127 : vector<8x128xf32>
    %129 = vector.extract_strided_slice %122 {offsets = [0, 128], sizes = [8, 128], strides = [1, 1]} : vector<8x512xf32> to vector<8x128xf32>
    %130 = arith.negf %129 : vector<8x128xf32>
    %131 = math.exp %130 : vector<8x128xf32>
    %cst_40 = arith.constant 1.000000e+00 : f32
    %132 = vector.broadcast %cst_40 : f32 to vector<8x128xf32>
    %133 = arith.addf %132, %131 : vector<8x128xf32>
    %134 = arith.divf %132, %133 : vector<8x128xf32>
    %135 = vector.extract_strided_slice %122 {offsets = [0, 256], sizes = [8, 128], strides = [1, 1]} : vector<8x512xf32> to vector<8x128xf32>
    %136 = math.tanh %135 : vector<8x128xf32>
    %137 = vector.extract_strided_slice %122 {offsets = [0, 384], sizes = [8, 128], strides = [1, 1]} : vector<8x512xf32> to vector<8x128xf32>
    %138 = arith.negf %137 : vector<8x128xf32>
    %139 = math.exp %138 : vector<8x128xf32>
    %cst_41 = arith.constant 1.000000e+00 : f32
    %140 = vector.broadcast %cst_41 : f32 to vector<8x128xf32>
    %141 = arith.addf %140, %139 : vector<8x128xf32>
    %142 = arith.divf %140, %141 : vector<8x128xf32>
    %143 = arith.mulf %134, %110 : vector<8x128xf32>
    %144 = arith.mulf %128, %136 : vector<8x128xf32>
    %145 = arith.addf %143, %144 : vector<8x128xf32>
    %146 = math.tanh %145 : vector<8x128xf32>
    %147 = arith.mulf %142, %146 : vector<8x128xf32>
    %148 = arith.index_cast %c3_i32 : i32 to index
    %c0_42 = arith.constant 0 : index
    %c0_43 = arith.constant 0 : index
    %149 = vector.load %arg20[%148, %c0_42, %c0_43] : memref<8x8x256xf32, #tpu.memory_space<vmem>>, vector<1x8x128xf32>
    %150 = vector.shape_cast %149 : vector<1x8x128xf32> to vector<8x128xf32>
    %151 = vector.shape_cast %147 : vector<8x128xf32> to vector<1x8x128xf32>
    tpu.vector_store %arg20[%148, %c0_42, %c0_43], %151 {strides = array<i32>} : memref<8x8x256xf32, #tpu.memory_space<vmem>>, vector<1x8x128xf32>,
    %c4_i32 = arith.constant 4 : i32
    %152 = arith.index_cast %c4_i32 : i32 to index
    %c0_44 = arith.constant 0 : index
    %c0_45 = arith.constant 0 : index
    %153 = vector.load %arg19[%152, %c0_44, %c0_45] : memref<8x8x512xf32, #tpu.memory_space<vmem>>, vector<1x8x512xf32>
    %154 = vector.shape_cast %153 : vector<1x8x512xf32> to vector<8x512xf32>
    %155 = arith.truncf %147 : vector<8x128xf32> to vector<8x128xbf16>
    %cst_46 = arith.constant dense<0.000000e+00> : vector<8x512xf32>
    %156 = tpu.matmul %155, %10, %cst_46 {dimension_numbers = #tpu.dot_dimension_numbers<[1], [0], [0], [1], [0, 0, 1, 1], [], []>} : vector<8x128xbf16>, vector<128x512xbf16>, vector<8x512xf32> -> vector<8x512xf32>
    %157 = arith.addf %154, %156 : vector<8x512xf32>
    %158 = vector.extract_strided_slice %157 {offsets = [0, 0], sizes = [8, 128], strides = [1, 1]} : vector<8x512xf32> to vector<8x128xf32>
    %159 = arith.negf %158 : vector<8x128xf32>
    %160 = math.exp %159 : vector<8x128xf32>
    %cst_47 = arith.constant 1.000000e+00 : f32
    %161 = vector.broadcast %cst_47 : f32 to vector<8x128xf32>
    %162 = arith.addf %161, %160 : vector<8x128xf32>
    %163 = arith.divf %161, %162 : vector<8x128xf32>
    %164 = vector.extract_strided_slice %157 {offsets = [0, 128], sizes = [8, 128], strides = [1, 1]} : vector<8x512xf32> to vector<8x128xf32>
    %165 = arith.negf %164 : vector<8x128xf32>
    %166 = math.exp %165 : vector<8x128xf32>
    %cst_48 = arith.constant 1.000000e+00 : f32
    %167 = vector.broadcast %cst_48 : f32 to vector<8x128xf32>
    %168 = arith.addf %167, %166 : vector<8x128xf32>
    %169 = arith.divf %167, %168 : vector<8x128xf32>
    %170 = vector.extract_strided_slice %157 {offsets = [0, 256], sizes = [8, 128], strides = [1, 1]} : vector<8x512xf32> to vector<8x128xf32>
    %171 = math.tanh %170 : vector<8x128xf32>
    %172 = vector.extract_strided_slice %157 {offsets = [0, 384], sizes = [8, 128], strides = [1, 1]} : vector<8x512xf32> to vector<8x128xf32>
    %173 = arith.negf %172 : vector<8x128xf32>
    %174 = math.exp %173 : vector<8x128xf32>
    %cst_49 = arith.constant 1.000000e+00 : f32
    %175 = vector.broadcast %cst_49 : f32 to vector<8x128xf32>
    %176 = arith.addf %175, %174 : vector<8x128xf32>
    %177 = arith.divf %175, %176 : vector<8x128xf32>
    %178 = arith.mulf %169, %145 : vector<8x128xf32>
    %179 = arith.mulf %163, %171 : vector<8x128xf32>
    %180 = arith.addf %178, %179 : vector<8x128xf32>
    %181 = math.tanh %180 : vector<8x128xf32>
    %182 = arith.mulf %177, %181 : vector<8x128xf32>
    %183 = arith.index_cast %c4_i32 : i32 to index
    %c0_50 = arith.constant 0 : index
    %c0_51 = arith.constant 0 : index
    %184 = vector.load %arg20[%183, %c0_50, %c0_51] : memref<8x8x256xf32, #tpu.memory_space<vmem>>, vector<1x8x128xf32>
    %185 = vector.shape_cast %184 : vector<1x8x128xf32> to vector<8x128xf32>
    %186 = vector.shape_cast %182 : vector<8x128xf32> to vector<1x8x128xf32>
    tpu.vector_store %arg20[%183, %c0_50, %c0_51], %186 {strides = array<i32>} : memref<8x8x256xf32, #tpu.memory_space<vmem>>, vector<1x8x128xf32>,
    %c5_i32 = arith.constant 5 : i32
    %187 = arith.index_cast %c5_i32 : i32 to index
    %c0_52 = arith.constant 0 : index
    %c0_53 = arith.constant 0 : index
    %188 = vector.load %arg19[%187, %c0_52, %c0_53] : memref<8x8x512xf32, #tpu.memory_space<vmem>>, vector<1x8x512xf32>
    %189 = vector.shape_cast %188 : vector<1x8x512xf32> to vector<8x512xf32>
    %190 = arith.truncf %182 : vector<8x128xf32> to vector<8x128xbf16>
    %cst_54 = arith.constant dense<0.000000e+00> : vector<8x512xf32>
    %191 = tpu.matmul %190, %10, %cst_54 {dimension_numbers = #tpu.dot_dimension_numbers<[1], [0], [0], [1], [0, 0, 1, 1], [], []>} : vector<8x128xbf16>, vector<128x512xbf16>, vector<8x512xf32> -> vector<8x512xf32>
    %192 = arith.addf %189, %191 : vector<8x512xf32>
    %193 = vector.extract_strided_slice %192 {offsets = [0, 0], sizes = [8, 128], strides = [1, 1]} : vector<8x512xf32> to vector<8x128xf32>
    %194 = arith.negf %193 : vector<8x128xf32>
    %195 = math.exp %194 : vector<8x128xf32>
    %cst_55 = arith.constant 1.000000e+00 : f32
    %196 = vector.broadcast %cst_55 : f32 to vector<8x128xf32>
    %197 = arith.addf %196, %195 : vector<8x128xf32>
    %198 = arith.divf %196, %197 : vector<8x128xf32>
    %199 = vector.extract_strided_slice %192 {offsets = [0, 128], sizes = [8, 128], strides = [1, 1]} : vector<8x512xf32> to vector<8x128xf32>
    %200 = arith.negf %199 : vector<8x128xf32>
    %201 = math.exp %200 : vector<8x128xf32>
    %cst_56 = arith.constant 1.000000e+00 : f32
    %202 = vector.broadcast %cst_56 : f32 to vector<8x128xf32>
    %203 = arith.addf %202, %201 : vector<8x128xf32>
    %204 = arith.divf %202, %203 : vector<8x128xf32>
    %205 = vector.extract_strided_slice %192 {offsets = [0, 256], sizes = [8, 128], strides = [1, 1]} : vector<8x512xf32> to vector<8x128xf32>
    %206 = math.tanh %205 : vector<8x128xf32>
    %207 = vector.extract_strided_slice %192 {offsets = [0, 384], sizes = [8, 128], strides = [1, 1]} : vector<8x512xf32> to vector<8x128xf32>
    %208 = arith.negf %207 : vector<8x128xf32>
    %209 = math.exp %208 : vector<8x128xf32>
    %cst_57 = arith.constant 1.000000e+00 : f32
    %210 = vector.broadcast %cst_57 : f32 to vector<8x128xf32>
    %211 = arith.addf %210, %209 : vector<8x128xf32>
    %212 = arith.divf %210, %211 : vector<8x128xf32>
    %213 = arith.mulf %204, %180 : vector<8x128xf32>
    %214 = arith.mulf %198, %206 : vector<8x128xf32>
    %215 = arith.addf %213, %214 : vector<8x128xf32>
    %216 = math.tanh %215 : vector<8x128xf32>
    %217 = arith.mulf %212, %216 : vector<8x128xf32>
    %218 = arith.index_cast %c5_i32 : i32 to index
    %c0_58 = arith.constant 0 : index
    %c0_59 = arith.constant 0 : index
    %219 = vector.load %arg20[%218, %c0_58, %c0_59] : memref<8x8x256xf32, #tpu.memory_space<vmem>>, vector<1x8x128xf32>
    %220 = vector.shape_cast %219 : vector<1x8x128xf32> to vector<8x128xf32>
    %221 = vector.shape_cast %217 : vector<8x128xf32> to vector<1x8x128xf32>
    tpu.vector_store %arg20[%218, %c0_58, %c0_59], %221 {strides = array<i32>} : memref<8x8x256xf32, #tpu.memory_space<vmem>>, vector<1x8x128xf32>,
    %c6_i32 = arith.constant 6 : i32
    %222 = arith.index_cast %c6_i32 : i32 to index
    %c0_60 = arith.constant 0 : index
    %c0_61 = arith.constant 0 : index
    %223 = vector.load %arg19[%222, %c0_60, %c0_61] : memref<8x8x512xf32, #tpu.memory_space<vmem>>, vector<1x8x512xf32>
    %224 = vector.shape_cast %223 : vector<1x8x512xf32> to vector<8x512xf32>
    %225 = arith.truncf %217 : vector<8x128xf32> to vector<8x128xbf16>
    %cst_62 = arith.constant dense<0.000000e+00> : vector<8x512xf32>
    %226 = tpu.matmul %225, %10, %cst_62 {dimension_numbers = #tpu.dot_dimension_numbers<[1], [0], [0], [1], [0, 0, 1, 1], [], []>} : vector<8x128xbf16>, vector<128x512xbf16>, vector<8x512xf32> -> vector<8x512xf32>
    %227 = arith.addf %224, %226 : vector<8x512xf32>
    %228 = vector.extract_strided_slice %227 {offsets = [0, 0], sizes = [8, 128], strides = [1, 1]} : vector<8x512xf32> to vector<8x128xf32>
    %229 = arith.negf %228 : vector<8x128xf32>
    %230 = math.exp %229 : vector<8x128xf32>
    %cst_63 = arith.constant 1.000000e+00 : f32
    %231 = vector.broadcast %cst_63 : f32 to vector<8x128xf32>
    %232 = arith.addf %231, %230 : vector<8x128xf32>
    %233 = arith.divf %231, %232 : vector<8x128xf32>
    %234 = vector.extract_strided_slice %227 {offsets = [0, 128], sizes = [8, 128], strides = [1, 1]} : vector<8x512xf32> to vector<8x128xf32>
    %235 = arith.negf %234 : vector<8x128xf32>
    %236 = math.exp %235 : vector<8x128xf32>
    %cst_64 = arith.constant 1.000000e+00 : f32
    %237 = vector.broadcast %cst_64 : f32 to vector<8x128xf32>
    %238 = arith.addf %237, %236 : vector<8x128xf32>
    %239 = arith.divf %237, %238 : vector<8x128xf32>
    %240 = vector.extract_strided_slice %227 {offsets = [0, 256], sizes = [8, 128], strides = [1, 1]} : vector<8x512xf32> to vector<8x128xf32>
    %241 = math.tanh %240 : vector<8x128xf32>
    %242 = vector.extract_strided_slice %227 {offsets = [0, 384], sizes = [8, 128], strides = [1, 1]} : vector<8x512xf32> to vector<8x128xf32>
    %243 = arith.negf %242 : vector<8x128xf32>
    %244 = math.exp %243 : vector<8x128xf32>
    %cst_65 = arith.constant 1.000000e+00 : f32
    %245 = vector.broadcast %cst_65 : f32 to vector<8x128xf32>
    %246 = arith.addf %245, %244 : vector<8x128xf32>
    %247 = arith.divf %245, %246 : vector<8x128xf32>
    %248 = arith.mulf %239, %215 : vector<8x128xf32>
    %249 = arith.mulf %233, %241 : vector<8x128xf32>
    %250 = arith.addf %248, %249 : vector<8x128xf32>
    %251 = math.tanh %250 : vector<8x128xf32>
    %252 = arith.mulf %247, %251 : vector<8x128xf32>
    %253 = arith.index_cast %c6_i32 : i32 to index
    %c0_66 = arith.constant 0 : index
    %c0_67 = arith.constant 0 : index
    %254 = vector.load %arg20[%253, %c0_66, %c0_67] : memref<8x8x256xf32, #tpu.memory_space<vmem>>, vector<1x8x128xf32>
    %255 = vector.shape_cast %254 : vector<1x8x128xf32> to vector<8x128xf32>
    %256 = vector.shape_cast %252 : vector<8x128xf32> to vector<1x8x128xf32>
    tpu.vector_store %arg20[%253, %c0_66, %c0_67], %256 {strides = array<i32>} : memref<8x8x256xf32, #tpu.memory_space<vmem>>, vector<1x8x128xf32>,
    %c7_i32 = arith.constant 7 : i32
    %257 = arith.index_cast %c7_i32 : i32 to index
    %c0_68 = arith.constant 0 : index
    %c0_69 = arith.constant 0 : index
    %258 = vector.load %arg19[%257, %c0_68, %c0_69] : memref<8x8x512xf32, #tpu.memory_space<vmem>>, vector<1x8x512xf32>
    %259 = vector.shape_cast %258 : vector<1x8x512xf32> to vector<8x512xf32>
    %260 = arith.truncf %252 : vector<8x128xf32> to vector<8x128xbf16>
    %cst_70 = arith.constant dense<0.000000e+00> : vector<8x512xf32>
    %261 = tpu.matmul %260, %10, %cst_70 {dimension_numbers = #tpu.dot_dimension_numbers<[1], [0], [0], [1], [0, 0, 1, 1], [], []>} : vector<8x128xbf16>, vector<128x512xbf16>, vector<8x512xf32> -> vector<8x512xf32>
    %262 = arith.addf %259, %261 : vector<8x512xf32>
    %263 = vector.extract_strided_slice %262 {offsets = [0, 0], sizes = [8, 128], strides = [1, 1]} : vector<8x512xf32> to vector<8x128xf32>
    %264 = arith.negf %263 : vector<8x128xf32>
    %265 = math.exp %264 : vector<8x128xf32>
    %cst_71 = arith.constant 1.000000e+00 : f32
    %266 = vector.broadcast %cst_71 : f32 to vector<8x128xf32>
    %267 = arith.addf %266, %265 : vector<8x128xf32>
    %268 = arith.divf %266, %267 : vector<8x128xf32>
    %269 = vector.extract_strided_slice %262 {offsets = [0, 128], sizes = [8, 128], strides = [1, 1]} : vector<8x512xf32> to vector<8x128xf32>
    %270 = arith.negf %269 : vector<8x128xf32>
    %271 = math.exp %270 : vector<8x128xf32>
    %cst_72 = arith.constant 1.000000e+00 : f32
    %272 = vector.broadcast %cst_72 : f32 to vector<8x128xf32>
    %273 = arith.addf %272, %271 : vector<8x128xf32>
    %274 = arith.divf %272, %273 : vector<8x128xf32>
    %275 = vector.extract_strided_slice %262 {offsets = [0, 256], sizes = [8, 128], strides = [1, 1]} : vector<8x512xf32> to vector<8x128xf32>
    %276 = math.tanh %275 : vector<8x128xf32>
    %277 = vector.extract_strided_slice %262 {offsets = [0, 384], sizes = [8, 128], strides = [1, 1]} : vector<8x512xf32> to vector<8x128xf32>
    %278 = arith.negf %277 : vector<8x128xf32>
    %279 = math.exp %278 : vector<8x128xf32>
    %cst_73 = arith.constant 1.000000e+00 : f32
    %280 = vector.broadcast %cst_73 : f32 to vector<8x128xf32>
    %281 = arith.addf %280, %279 : vector<8x128xf32>
    %282 = arith.divf %280, %281 : vector<8x128xf32>
    %283 = arith.mulf %274, %250 : vector<8x128xf32>
    %284 = arith.mulf %268, %276 : vector<8x128xf32>
    %285 = arith.addf %283, %284 : vector<8x128xf32>
    %286 = math.tanh %285 : vector<8x128xf32>
    %287 = arith.mulf %282, %286 : vector<8x128xf32>
    %288 = arith.index_cast %c7_i32 : i32 to index
    %c0_74 = arith.constant 0 : index
    %c0_75 = arith.constant 0 : index
    %289 = vector.load %arg20[%288, %c0_74, %c0_75] : memref<8x8x256xf32, #tpu.memory_space<vmem>>, vector<1x8x128xf32>
    %290 = vector.shape_cast %289 : vector<1x8x128xf32> to vector<8x128xf32>
    %291 = vector.shape_cast %287 : vector<8x128xf32> to vector<1x8x128xf32>
    tpu.vector_store %arg20[%288, %c0_74, %c0_75], %291 {strides = array<i32>} : memref<8x8x256xf32, #tpu.memory_space<vmem>>, vector<1x8x128xf32>,
    %c8_i32 = arith.constant 8 : i32
    %292 = vector.shape_cast %0 : vector<8x8x64xf32> to vector<64x64xf32>
    %293 = arith.truncf %292 : vector<64x64xf32> to vector<64x64xbf16>
    %c0_76 = arith.constant 0 : index
    %c0_77 = arith.constant 0 : index
    %294 = vector.load %arg4[%c0_76, %c0_77] : memref<64x512xbf16, #tpu.memory_space<vmem>>, vector<64x512xbf16>
    %cst_78 = arith.constant dense<0.000000e+00> : vector<64x512xf32>
    %295 = tpu.matmul %293, %294, %cst_78 {dimension_numbers = #tpu.dot_dimension_numbers<[1], [0], [0], [1], [0, 0, 1, 1], [], []>} : vector<64x64xbf16>, vector<64x512xbf16>, vector<64x512xf32> -> vector<64x512xf32>
    %c0_79 = arith.constant 0 : index
    %c0_80 = arith.constant 0 : index
    %296 = vector.load %arg6[%c0_79, %c0_80] : memref<1x512xf32, #tpu.memory_space<vmem>>, vector<1x512xf32>
    %297 = vector.broadcast %296 : vector<1x512xf32> to vector<64x512xf32>
    %298 = arith.addf %295, %297 : vector<64x512xf32>
    %299 = vector.shape_cast %298 : vector<64x512xf32> to vector<8x8x512xf32>
    %c0_81 = arith.constant 0 : index
    %c0_82 = arith.constant 0 : index
    %c0_83 = arith.constant 0 : index
    %300 = vector.load %arg19[%c0_81, %c0_82, %c0_83] : memref<8x8x512xf32, #tpu.memory_space<vmem>>, vector<8x8x512xf32>
    tpu.vector_store %arg19[%c0_81, %c0_82, %c0_83], %299 {strides = array<i32>} : memref<8x8x512xf32, #tpu.memory_space<vmem>>, vector<8x8x512xf32>,
    %c0_84 = arith.constant 0 : index
    %c0_85 = arith.constant 0 : index
    %301 = vector.load %arg5[%c0_84, %c0_85] : memref<128x512xbf16, #tpu.memory_space<vmem>>, vector<128x512xbf16>
    %cst_86 = arith.constant 0.000000e+00 : f32
    %302 = vector.broadcast %cst_86 : f32 to vector<8x128xf32>
    %c0_i32_87 = arith.constant 0 : i32
    %c7_i32_88 = arith.constant 7 : i32
    %303 = arith.subi %c7_i32_88, %c0_i32_87 : i32
    %304 = arith.index_cast %303 : i32 to index
    %c0_89 = arith.constant 0 : index
    %c0_90 = arith.constant 0 : index
    %305 = vector.load %arg19[%304, %c0_89, %c0_90] : memref<8x8x512xf32, #tpu.memory_space<vmem>>, vector<1x8x512xf32>
    %306 = vector.shape_cast %305 : vector<1x8x512xf32> to vector<8x512xf32>
    %307 = arith.truncf %302 : vector<8x128xf32> to vector<8x128xbf16>
    %cst_91 = arith.constant dense<0.000000e+00> : vector<8x512xf32>
    %308 = tpu.matmul %307, %301, %cst_91 {dimension_numbers = #tpu.dot_dimension_numbers<[1], [0], [0], [1], [0, 0, 1, 1], [], []>} : vector<8x128xbf16>, vector<128x512xbf16>, vector<8x512xf32> -> vector<8x512xf32>
    %309 = arith.addf %306, %308 : vector<8x512xf32>
    %310 = vector.extract_strided_slice %309 {offsets = [0, 0], sizes = [8, 128], strides = [1, 1]} : vector<8x512xf32> to vector<8x128xf32>
    %311 = arith.negf %310 : vector<8x128xf32>
    %312 = math.exp %311 : vector<8x128xf32>
    %cst_92 = arith.constant 1.000000e+00 : f32
    %313 = vector.broadcast %cst_92 : f32 to vector<8x128xf32>
    %314 = arith.addf %313, %312 : vector<8x128xf32>
    %315 = arith.divf %313, %314 : vector<8x128xf32>
    %316 = vector.extract_strided_slice %309 {offsets = [0, 128], sizes = [8, 128], strides = [1, 1]} : vector<8x512xf32> to vector<8x128xf32>
    %317 = arith.negf %316 : vector<8x128xf32>
    %318 = math.exp %317 : vector<8x128xf32>
    %cst_93 = arith.constant 1.000000e+00 : f32
    %319 = vector.broadcast %cst_93 : f32 to vector<8x128xf32>
    %320 = arith.addf %319, %318 : vector<8x128xf32>
    %321 = arith.divf %319, %320 : vector<8x128xf32>
    %322 = vector.extract_strided_slice %309 {offsets = [0, 256], sizes = [8, 128], strides = [1, 1]} : vector<8x512xf32> to vector<8x128xf32>
    %323 = math.tanh %322 : vector<8x128xf32>
    %324 = vector.extract_strided_slice %309 {offsets = [0, 384], sizes = [8, 128], strides = [1, 1]} : vector<8x512xf32> to vector<8x128xf32>
    %325 = arith.negf %324 : vector<8x128xf32>
    %326 = math.exp %325 : vector<8x128xf32>
    %cst_94 = arith.constant 1.000000e+00 : f32
    %327 = vector.broadcast %cst_94 : f32 to vector<8x128xf32>
    %328 = arith.addf %327, %326 : vector<8x128xf32>
    %329 = arith.divf %327, %328 : vector<8x128xf32>
    %330 = arith.mulf %321, %302 : vector<8x128xf32>
    %331 = arith.mulf %315, %323 : vector<8x128xf32>
    %332 = arith.addf %330, %331 : vector<8x128xf32>
    %333 = math.tanh %332 : vector<8x128xf32>
    %334 = arith.mulf %329, %333 : vector<8x128xf32>
    %335 = arith.index_cast %303 : i32 to index
    %c0_95 = arith.constant 0 : index
    %c128 = arith.constant 128 : index
    %336 = vector.load %arg20[%335, %c0_95, %c128] : memref<8x8x256xf32, #tpu.memory_space<vmem>>, vector<1x8x128xf32>
    %337 = vector.shape_cast %336 : vector<1x8x128xf32> to vector<8x128xf32>
    %338 = vector.shape_cast %334 : vector<8x128xf32> to vector<1x8x128xf32>
    tpu.vector_store %arg20[%335, %c0_95, %c128], %338 {strides = array<i32>} : memref<8x8x256xf32, #tpu.memory_space<vmem>>, vector<1x8x128xf32>,
    %c1_i32_96 = arith.constant 1 : i32
    %c7_i32_97 = arith.constant 7 : i32
    %339 = arith.subi %c7_i32_97, %c1_i32_96 : i32
    %340 = arith.index_cast %339 : i32 to index
    %c0_98 = arith.constant 0 : index
    %c0_99 = arith.constant 0 : index
    %341 = vector.load %arg19[%340, %c0_98, %c0_99] : memref<8x8x512xf32, #tpu.memory_space<vmem>>, vector<1x8x512xf32>
    %342 = vector.shape_cast %341 : vector<1x8x512xf32> to vector<8x512xf32>
    %343 = arith.truncf %334 : vector<8x128xf32> to vector<8x128xbf16>
    %cst_100 = arith.constant dense<0.000000e+00> : vector<8x512xf32>
    %344 = tpu.matmul %343, %301, %cst_100 {dimension_numbers = #tpu.dot_dimension_numbers<[1], [0], [0], [1], [0, 0, 1, 1], [], []>} : vector<8x128xbf16>, vector<128x512xbf16>, vector<8x512xf32> -> vector<8x512xf32>
    %345 = arith.addf %342, %344 : vector<8x512xf32>
    %346 = vector.extract_strided_slice %345 {offsets = [0, 0], sizes = [8, 128], strides = [1, 1]} : vector<8x512xf32> to vector<8x128xf32>
    %347 = arith.negf %346 : vector<8x128xf32>
    %348 = math.exp %347 : vector<8x128xf32>
    %cst_101 = arith.constant 1.000000e+00 : f32
    %349 = vector.broadcast %cst_101 : f32 to vector<8x128xf32>
    %350 = arith.addf %349, %348 : vector<8x128xf32>
    %351 = arith.divf %349, %350 : vector<8x128xf32>
    %352 = vector.extract_strided_slice %345 {offsets = [0, 128], sizes = [8, 128], strides = [1, 1]} : vector<8x512xf32> to vector<8x128xf32>
    %353 = arith.negf %352 : vector<8x128xf32>
    %354 = math.exp %353 : vector<8x128xf32>
    %cst_102 = arith.constant 1.000000e+00 : f32
    %355 = vector.broadcast %cst_102 : f32 to vector<8x128xf32>
    %356 = arith.addf %355, %354 : vector<8x128xf32>
    %357 = arith.divf %355, %356 : vector<8x128xf32>
    %358 = vector.extract_strided_slice %345 {offsets = [0, 256], sizes = [8, 128], strides = [1, 1]} : vector<8x512xf32> to vector<8x128xf32>
    %359 = math.tanh %358 : vector<8x128xf32>
    %360 = vector.extract_strided_slice %345 {offsets = [0, 384], sizes = [8, 128], strides = [1, 1]} : vector<8x512xf32> to vector<8x128xf32>
    %361 = arith.negf %360 : vector<8x128xf32>
    %362 = math.exp %361 : vector<8x128xf32>
    %cst_103 = arith.constant 1.000000e+00 : f32
    %363 = vector.broadcast %cst_103 : f32 to vector<8x128xf32>
    %364 = arith.addf %363, %362 : vector<8x128xf32>
    %365 = arith.divf %363, %364 : vector<8x128xf32>
    %366 = arith.mulf %357, %332 : vector<8x128xf32>
    %367 = arith.mulf %351, %359 : vector<8x128xf32>
    %368 = arith.addf %366, %367 : vector<8x128xf32>
    %369 = math.tanh %368 : vector<8x128xf32>
    %370 = arith.mulf %365, %369 : vector<8x128xf32>
    %371 = arith.index_cast %339 : i32 to index
    %c0_104 = arith.constant 0 : index
    %c128_105 = arith.constant 128 : index
    %372 = vector.load %arg20[%371, %c0_104, %c128_105] : memref<8x8x256xf32, #tpu.memory_space<vmem>>, vector<1x8x128xf32>
    %373 = vector.shape_cast %372 : vector<1x8x128xf32> to vector<8x128xf32>
    %374 = vector.shape_cast %370 : vector<8x128xf32> to vector<1x8x128xf32>
    tpu.vector_store %arg20[%371, %c0_104, %c128_105], %374 {strides = array<i32>} : memref<8x8x256xf32, #tpu.memory_space<vmem>>, vector<1x8x128xf32>,
    %c2_i32_106 = arith.constant 2 : i32
    %c7_i32_107 = arith.constant 7 : i32
    %375 = arith.subi %c7_i32_107, %c2_i32_106 : i32
    %376 = arith.index_cast %375 : i32 to index
    %c0_108 = arith.constant 0 : index
    %c0_109 = arith.constant 0 : index
    %377 = vector.load %arg19[%376, %c0_108, %c0_109] : memref<8x8x512xf32, #tpu.memory_space<vmem>>, vector<1x8x512xf32>
    %378 = vector.shape_cast %377 : vector<1x8x512xf32> to vector<8x512xf32>
    %379 = arith.truncf %370 : vector<8x128xf32> to vector<8x128xbf16>
    %cst_110 = arith.constant dense<0.000000e+00> : vector<8x512xf32>
    %380 = tpu.matmul %379, %301, %cst_110 {dimension_numbers = #tpu.dot_dimension_numbers<[1], [0], [0], [1], [0, 0, 1, 1], [], []>} : vector<8x128xbf16>, vector<128x512xbf16>, vector<8x512xf32> -> vector<8x512xf32>
    %381 = arith.addf %378, %380 : vector<8x512xf32>
    %382 = vector.extract_strided_slice %381 {offsets = [0, 0], sizes = [8, 128], strides = [1, 1]} : vector<8x512xf32> to vector<8x128xf32>
    %383 = arith.negf %382 : vector<8x128xf32>
    %384 = math.exp %383 : vector<8x128xf32>
    %cst_111 = arith.constant 1.000000e+00 : f32
    %385 = vector.broadcast %cst_111 : f32 to vector<8x128xf32>
    %386 = arith.addf %385, %384 : vector<8x128xf32>
    %387 = arith.divf %385, %386 : vector<8x128xf32>
    %388 = vector.extract_strided_slice %381 {offsets = [0, 128], sizes = [8, 128], strides = [1, 1]} : vector<8x512xf32> to vector<8x128xf32>
    %389 = arith.negf %388 : vector<8x128xf32>
    %390 = math.exp %389 : vector<8x128xf32>
    %cst_112 = arith.constant 1.000000e+00 : f32
    %391 = vector.broadcast %cst_112 : f32 to vector<8x128xf32>
    %392 = arith.addf %391, %390 : vector<8x128xf32>
    %393 = arith.divf %391, %392 : vector<8x128xf32>
    %394 = vector.extract_strided_slice %381 {offsets = [0, 256], sizes = [8, 128], strides = [1, 1]} : vector<8x512xf32> to vector<8x128xf32>
    %395 = math.tanh %394 : vector<8x128xf32>
    %396 = vector.extract_strided_slice %381 {offsets = [0, 384], sizes = [8, 128], strides = [1, 1]} : vector<8x512xf32> to vector<8x128xf32>
    %397 = arith.negf %396 : vector<8x128xf32>
    %398 = math.exp %397 : vector<8x128xf32>
    %cst_113 = arith.constant 1.000000e+00 : f32
    %399 = vector.broadcast %cst_113 : f32 to vector<8x128xf32>
    %400 = arith.addf %399, %398 : vector<8x128xf32>
    %401 = arith.divf %399, %400 : vector<8x128xf32>
    %402 = arith.mulf %393, %368 : vector<8x128xf32>
    %403 = arith.mulf %387, %395 : vector<8x128xf32>
    %404 = arith.addf %402, %403 : vector<8x128xf32>
    %405 = math.tanh %404 : vector<8x128xf32>
    %406 = arith.mulf %401, %405 : vector<8x128xf32>
    %407 = arith.index_cast %375 : i32 to index
    %c0_114 = arith.constant 0 : index
    %c128_115 = arith.constant 128 : index
    %408 = vector.load %arg20[%407, %c0_114, %c128_115] : memref<8x8x256xf32, #tpu.memory_space<vmem>>, vector<1x8x128xf32>
    %409 = vector.shape_cast %408 : vector<1x8x128xf32> to vector<8x128xf32>
    %410 = vector.shape_cast %406 : vector<8x128xf32> to vector<1x8x128xf32>
    tpu.vector_store %arg20[%407, %c0_114, %c128_115], %410 {strides = array<i32>} : memref<8x8x256xf32, #tpu.memory_space<vmem>>, vector<1x8x128xf32>,
    %c3_i32_116 = arith.constant 3 : i32
    %c7_i32_117 = arith.constant 7 : i32
    %411 = arith.subi %c7_i32_117, %c3_i32_116 : i32
    %412 = arith.index_cast %411 : i32 to index
    %c0_118 = arith.constant 0 : index
    %c0_119 = arith.constant 0 : index
    %413 = vector.load %arg19[%412, %c0_118, %c0_119] : memref<8x8x512xf32, #tpu.memory_space<vmem>>, vector<1x8x512xf32>
    %414 = vector.shape_cast %413 : vector<1x8x512xf32> to vector<8x512xf32>
    %415 = arith.truncf %406 : vector<8x128xf32> to vector<8x128xbf16>
    %cst_120 = arith.constant dense<0.000000e+00> : vector<8x512xf32>
    %416 = tpu.matmul %415, %301, %cst_120 {dimension_numbers = #tpu.dot_dimension_numbers<[1], [0], [0], [1], [0, 0, 1, 1], [], []>} : vector<8x128xbf16>, vector<128x512xbf16>, vector<8x512xf32> -> vector<8x512xf32>
    %417 = arith.addf %414, %416 : vector<8x512xf32>
    %418 = vector.extract_strided_slice %417 {offsets = [0, 0], sizes = [8, 128], strides = [1, 1]} : vector<8x512xf32> to vector<8x128xf32>
    %419 = arith.negf %418 : vector<8x128xf32>
    %420 = math.exp %419 : vector<8x128xf32>
    %cst_121 = arith.constant 1.000000e+00 : f32
    %421 = vector.broadcast %cst_121 : f32 to vector<8x128xf32>
    %422 = arith.addf %421, %420 : vector<8x128xf32>
    %423 = arith.divf %421, %422 : vector<8x128xf32>
    %424 = vector.extract_strided_slice %417 {offsets = [0, 128], sizes = [8, 128], strides = [1, 1]} : vector<8x512xf32> to vector<8x128xf32>
    %425 = arith.negf %424 : vector<8x128xf32>
    %426 = math.exp %425 : vector<8x128xf32>
    %cst_122 = arith.constant 1.000000e+00 : f32
    %427 = vector.broadcast %cst_122 : f32 to vector<8x128xf32>
    %428 = arith.addf %427, %426 : vector<8x128xf32>
    %429 = arith.divf %427, %428 : vector<8x128xf32>
    %430 = vector.extract_strided_slice %417 {offsets = [0, 256], sizes = [8, 128], strides = [1, 1]} : vector<8x512xf32> to vector<8x128xf32>
    %431 = math.tanh %430 : vector<8x128xf32>
    %432 = vector.extract_strided_slice %417 {offsets = [0, 384], sizes = [8, 128], strides = [1, 1]} : vector<8x512xf32> to vector<8x128xf32>
    %433 = arith.negf %432 : vector<8x128xf32>
    %434 = math.exp %433 : vector<8x128xf32>
    %cst_123 = arith.constant 1.000000e+00 : f32
    %435 = vector.broadcast %cst_123 : f32 to vector<8x128xf32>
    %436 = arith.addf %435, %434 : vector<8x128xf32>
    %437 = arith.divf %435, %436 : vector<8x128xf32>
    %438 = arith.mulf %429, %404 : vector<8x128xf32>
    %439 = arith.mulf %423, %431 : vector<8x128xf32>
    %440 = arith.addf %438, %439 : vector<8x128xf32>
    %441 = math.tanh %440 : vector<8x128xf32>
    %442 = arith.mulf %437, %441 : vector<8x128xf32>
    %443 = arith.index_cast %411 : i32 to index
    %c0_124 = arith.constant 0 : index
    %c128_125 = arith.constant 128 : index
    %444 = vector.load %arg20[%443, %c0_124, %c128_125] : memref<8x8x256xf32, #tpu.memory_space<vmem>>, vector<1x8x128xf32>
    %445 = vector.shape_cast %444 : vector<1x8x128xf32> to vector<8x128xf32>
    %446 = vector.shape_cast %442 : vector<8x128xf32> to vector<1x8x128xf32>
    tpu.vector_store %arg20[%443, %c0_124, %c128_125], %446 {strides = array<i32>} : memref<8x8x256xf32, #tpu.memory_space<vmem>>, vector<1x8x128xf32>,
    %c4_i32_126 = arith.constant 4 : i32
    %c7_i32_127 = arith.constant 7 : i32
    %447 = arith.subi %c7_i32_127, %c4_i32_126 : i32
    %448 = arith.index_cast %447 : i32 to index
    %c0_128 = arith.constant 0 : index
    %c0_129 = arith.constant 0 : index
    %449 = vector.load %arg19[%448, %c0_128, %c0_129] : memref<8x8x512xf32, #tpu.memory_space<vmem>>, vector<1x8x512xf32>
    %450 = vector.shape_cast %449 : vector<1x8x512xf32> to vector<8x512xf32>
    %451 = arith.truncf %442 : vector<8x128xf32> to vector<8x128xbf16>
    %cst_130 = arith.constant dense<0.000000e+00> : vector<8x512xf32>
    %452 = tpu.matmul %451, %301, %cst_130 {dimension_numbers = #tpu.dot_dimension_numbers<[1], [0], [0], [1], [0, 0, 1, 1], [], []>} : vector<8x128xbf16>, vector<128x512xbf16>, vector<8x512xf32> -> vector<8x512xf32>
    %453 = arith.addf %450, %452 : vector<8x512xf32>
    %454 = vector.extract_strided_slice %453 {offsets = [0, 0], sizes = [8, 128], strides = [1, 1]} : vector<8x512xf32> to vector<8x128xf32>
    %455 = arith.negf %454 : vector<8x128xf32>
    %456 = math.exp %455 : vector<8x128xf32>
    %cst_131 = arith.constant 1.000000e+00 : f32
    %457 = vector.broadcast %cst_131 : f32 to vector<8x128xf32>
    %458 = arith.addf %457, %456 : vector<8x128xf32>
    %459 = arith.divf %457, %458 : vector<8x128xf32>
    %460 = vector.extract_strided_slice %453 {offsets = [0, 128], sizes = [8, 128], strides = [1, 1]} : vector<8x512xf32> to vector<8x128xf32>
    %461 = arith.negf %460 : vector<8x128xf32>
    %462 = math.exp %461 : vector<8x128xf32>
    %cst_132 = arith.constant 1.000000e+00 : f32
    %463 = vector.broadcast %cst_132 : f32 to vector<8x128xf32>
    %464 = arith.addf %463, %462 : vector<8x128xf32>
    %465 = arith.divf %463, %464 : vector<8x128xf32>
    %466 = vector.extract_strided_slice %453 {offsets = [0, 256], sizes = [8, 128], strides = [1, 1]} : vector<8x512xf32> to vector<8x128xf32>
    %467 = math.tanh %466 : vector<8x128xf32>
    %468 = vector.extract_strided_slice %453 {offsets = [0, 384], sizes = [8, 128], strides = [1, 1]} : vector<8x512xf32> to vector<8x128xf32>
    %469 = arith.negf %468 : vector<8x128xf32>
    %470 = math.exp %469 : vector<8x128xf32>
    %cst_133 = arith.constant 1.000000e+00 : f32
    %471 = vector.broadcast %cst_133 : f32 to vector<8x128xf32>
    %472 = arith.addf %471, %470 : vector<8x128xf32>
    %473 = arith.divf %471, %472 : vector<8x128xf32>
    %474 = arith.mulf %465, %440 : vector<8x128xf32>
    %475 = arith.mulf %459, %467 : vector<8x128xf32>
    %476 = arith.addf %474, %475 : vector<8x128xf32>
    %477 = math.tanh %476 : vector<8x128xf32>
    %478 = arith.mulf %473, %477 : vector<8x128xf32>
    %479 = arith.index_cast %447 : i32 to index
    %c0_134 = arith.constant 0 : index
    %c128_135 = arith.constant 128 : index
    %480 = vector.load %arg20[%479, %c0_134, %c128_135] : memref<8x8x256xf32, #tpu.memory_space<vmem>>, vector<1x8x128xf32>
    %481 = vector.shape_cast %480 : vector<1x8x128xf32> to vector<8x128xf32>
    %482 = vector.shape_cast %478 : vector<8x128xf32> to vector<1x8x128xf32>
    tpu.vector_store %arg20[%479, %c0_134, %c128_135], %482 {strides = array<i32>} : memref<8x8x256xf32, #tpu.memory_space<vmem>>, vector<1x8x128xf32>,
    %c5_i32_136 = arith.constant 5 : i32
    %c7_i32_137 = arith.constant 7 : i32
    %483 = arith.subi %c7_i32_137, %c5_i32_136 : i32
    %484 = arith.index_cast %483 : i32 to index
    %c0_138 = arith.constant 0 : index
    %c0_139 = arith.constant 0 : index
    %485 = vector.load %arg19[%484, %c0_138, %c0_139] : memref<8x8x512xf32, #tpu.memory_space<vmem>>, vector<1x8x512xf32>
    %486 = vector.shape_cast %485 : vector<1x8x512xf32> to vector<8x512xf32>
    %487 = arith.truncf %478 : vector<8x128xf32> to vector<8x128xbf16>
    %cst_140 = arith.constant dense<0.000000e+00> : vector<8x512xf32>
    %488 = tpu.matmul %487, %301, %cst_140 {dimension_numbers = #tpu.dot_dimension_numbers<[1], [0], [0], [1], [0, 0, 1, 1], [], []>} : vector<8x128xbf16>, vector<128x512xbf16>, vector<8x512xf32> -> vector<8x512xf32>
    %489 = arith.addf %486, %488 : vector<8x512xf32>
    %490 = vector.extract_strided_slice %489 {offsets = [0, 0], sizes = [8, 128], strides = [1, 1]} : vector<8x512xf32> to vector<8x128xf32>
    %491 = arith.negf %490 : vector<8x128xf32>
    %492 = math.exp %491 : vector<8x128xf32>
    %cst_141 = arith.constant 1.000000e+00 : f32
    %493 = vector.broadcast %cst_141 : f32 to vector<8x128xf32>
    %494 = arith.addf %493, %492 : vector<8x128xf32>
    %495 = arith.divf %493, %494 : vector<8x128xf32>
    %496 = vector.extract_strided_slice %489 {offsets = [0, 128], sizes = [8, 128], strides = [1, 1]} : vector<8x512xf32> to vector<8x128xf32>
    %497 = arith.negf %496 : vector<8x128xf32>
    %498 = math.exp %497 : vector<8x128xf32>
    %cst_142 = arith.constant 1.000000e+00 : f32
    %499 = vector.broadcast %cst_142 : f32 to vector<8x128xf32>
    %500 = arith.addf %499, %498 : vector<8x128xf32>
    %501 = arith.divf %499, %500 : vector<8x128xf32>
    %502 = vector.extract_strided_slice %489 {offsets = [0, 256], sizes = [8, 128], strides = [1, 1]} : vector<8x512xf32> to vector<8x128xf32>
    %503 = math.tanh %502 : vector<8x128xf32>
    %504 = vector.extract_strided_slice %489 {offsets = [0, 384], sizes = [8, 128], strides = [1, 1]} : vector<8x512xf32> to vector<8x128xf32>
    %505 = arith.negf %504 : vector<8x128xf32>
    %506 = math.exp %505 : vector<8x128xf32>
    %cst_143 = arith.constant 1.000000e+00 : f32
    %507 = vector.broadcast %cst_143 : f32 to vector<8x128xf32>
    %508 = arith.addf %507, %506 : vector<8x128xf32>
    %509 = arith.divf %507, %508 : vector<8x128xf32>
    %510 = arith.mulf %501, %476 : vector<8x128xf32>
    %511 = arith.mulf %495, %503 : vector<8x128xf32>
    %512 = arith.addf %510, %511 : vector<8x128xf32>
    %513 = math.tanh %512 : vector<8x128xf32>
    %514 = arith.mulf %509, %513 : vector<8x128xf32>
    %515 = arith.index_cast %483 : i32 to index
    %c0_144 = arith.constant 0 : index
    %c128_145 = arith.constant 128 : index
    %516 = vector.load %arg20[%515, %c0_144, %c128_145] : memref<8x8x256xf32, #tpu.memory_space<vmem>>, vector<1x8x128xf32>
    %517 = vector.shape_cast %516 : vector<1x8x128xf32> to vector<8x128xf32>
    %518 = vector.shape_cast %514 : vector<8x128xf32> to vector<1x8x128xf32>
    tpu.vector_store %arg20[%515, %c0_144, %c128_145], %518 {strides = array<i32>} : memref<8x8x256xf32, #tpu.memory_space<vmem>>, vector<1x8x128xf32>,
    %c6_i32_146 = arith.constant 6 : i32
    %c7_i32_147 = arith.constant 7 : i32
    %519 = arith.subi %c7_i32_147, %c6_i32_146 : i32
    %520 = arith.index_cast %519 : i32 to index
    %c0_148 = arith.constant 0 : index
    %c0_149 = arith.constant 0 : index
    %521 = vector.load %arg19[%520, %c0_148, %c0_149] : memref<8x8x512xf32, #tpu.memory_space<vmem>>, vector<1x8x512xf32>
    %522 = vector.shape_cast %521 : vector<1x8x512xf32> to vector<8x512xf32>
    %523 = arith.truncf %514 : vector<8x128xf32> to vector<8x128xbf16>
    %cst_150 = arith.constant dense<0.000000e+00> : vector<8x512xf32>
    %524 = tpu.matmul %523, %301, %cst_150 {dimension_numbers = #tpu.dot_dimension_numbers<[1], [0], [0], [1], [0, 0, 1, 1], [], []>} : vector<8x128xbf16>, vector<128x512xbf16>, vector<8x512xf32> -> vector<8x512xf32>
    %525 = arith.addf %522, %524 : vector<8x512xf32>
    %526 = vector.extract_strided_slice %525 {offsets = [0, 0], sizes = [8, 128], strides = [1, 1]} : vector<8x512xf32> to vector<8x128xf32>
    %527 = arith.negf %526 : vector<8x128xf32>
    %528 = math.exp %527 : vector<8x128xf32>
    %cst_151 = arith.constant 1.000000e+00 : f32
    %529 = vector.broadcast %cst_151 : f32 to vector<8x128xf32>
    %530 = arith.addf %529, %528 : vector<8x128xf32>
    %531 = arith.divf %529, %530 : vector<8x128xf32>
    %532 = vector.extract_strided_slice %525 {offsets = [0, 128], sizes = [8, 128], strides = [1, 1]} : vector<8x512xf32> to vector<8x128xf32>
    %533 = arith.negf %532 : vector<8x128xf32>
    %534 = math.exp %533 : vector<8x128xf32>
    %cst_152 = arith.constant 1.000000e+00 : f32
    %535 = vector.broadcast %cst_152 : f32 to vector<8x128xf32>
    %536 = arith.addf %535, %534 : vector<8x128xf32>
    %537 = arith.divf %535, %536 : vector<8x128xf32>
    %538 = vector.extract_strided_slice %525 {offsets = [0, 256], sizes = [8, 128], strides = [1, 1]} : vector<8x512xf32> to vector<8x128xf32>
    %539 = math.tanh %538 : vector<8x128xf32>
    %540 = vector.extract_strided_slice %525 {offsets = [0, 384], sizes = [8, 128], strides = [1, 1]} : vector<8x512xf32> to vector<8x128xf32>
    %541 = arith.negf %540 : vector<8x128xf32>
    %542 = math.exp %541 : vector<8x128xf32>
    %cst_153 = arith.constant 1.000000e+00 : f32
    %543 = vector.broadcast %cst_153 : f32 to vector<8x128xf32>
    %544 = arith.addf %543, %542 : vector<8x128xf32>
    %545 = arith.divf %543, %544 : vector<8x128xf32>
    %546 = arith.mulf %537, %512 : vector<8x128xf32>
    %547 = arith.mulf %531, %539 : vector<8x128xf32>
    %548 = arith.addf %546, %547 : vector<8x128xf32>
    %549 = math.tanh %548 : vector<8x128xf32>
    %550 = arith.mulf %545, %549 : vector<8x128xf32>
    %551 = arith.index_cast %519 : i32 to index
    %c0_154 = arith.constant 0 : index
    %c128_155 = arith.constant 128 : index
    %552 = vector.load %arg20[%551, %c0_154, %c128_155] : memref<8x8x256xf32, #tpu.memory_space<vmem>>, vector<1x8x128xf32>
    %553 = vector.shape_cast %552 : vector<1x8x128xf32> to vector<8x128xf32>
    %554 = vector.shape_cast %550 : vector<8x128xf32> to vector<1x8x128xf32>
    tpu.vector_store %arg20[%551, %c0_154, %c128_155], %554 {strides = array<i32>} : memref<8x8x256xf32, #tpu.memory_space<vmem>>, vector<1x8x128xf32>,
    %c7_i32_156 = arith.constant 7 : i32
    %c7_i32_157 = arith.constant 7 : i32
    %555 = arith.subi %c7_i32_157, %c7_i32_156 : i32
    %556 = arith.index_cast %555 : i32 to index
    %c0_158 = arith.constant 0 : index
    %c0_159 = arith.constant 0 : index
    %557 = vector.load %arg19[%556, %c0_158, %c0_159] : memref<8x8x512xf32, #tpu.memory_space<vmem>>, vector<1x8x512xf32>
    %558 = vector.shape_cast %557 : vector<1x8x512xf32> to vector<8x512xf32>
    %559 = arith.truncf %550 : vector<8x128xf32> to vector<8x128xbf16>
    %cst_160 = arith.constant dense<0.000000e+00> : vector<8x512xf32>
    %560 = tpu.matmul %559, %301, %cst_160 {dimension_numbers = #tpu.dot_dimension_numbers<[1], [0], [0], [1], [0, 0, 1, 1], [], []>} : vector<8x128xbf16>, vector<128x512xbf16>, vector<8x512xf32> -> vector<8x512xf32>
    %561 = arith.addf %558, %560 : vector<8x512xf32>
    %562 = vector.extract_strided_slice %561 {offsets = [0, 0], sizes = [8, 128], strides = [1, 1]} : vector<8x512xf32> to vector<8x128xf32>
    %563 = arith.negf %562 : vector<8x128xf32>
    %564 = math.exp %563 : vector<8x128xf32>
    %cst_161 = arith.constant 1.000000e+00 : f32
    %565 = vector.broadcast %cst_161 : f32 to vector<8x128xf32>
    %566 = arith.addf %565, %564 : vector<8x128xf32>
    %567 = arith.divf %565, %566 : vector<8x128xf32>
    %568 = vector.extract_strided_slice %561 {offsets = [0, 128], sizes = [8, 128], strides = [1, 1]} : vector<8x512xf32> to vector<8x128xf32>
    %569 = arith.negf %568 : vector<8x128xf32>
    %570 = math.exp %569 : vector<8x128xf32>
    %cst_162 = arith.constant 1.000000e+00 : f32
    %571 = vector.broadcast %cst_162 : f32 to vector<8x128xf32>
    %572 = arith.addf %571, %570 : vector<8x128xf32>
    %573 = arith.divf %571, %572 : vector<8x128xf32>
    %574 = vector.extract_strided_slice %561 {offsets = [0, 256], sizes = [8, 128], strides = [1, 1]} : vector<8x512xf32> to vector<8x128xf32>
    %575 = math.tanh %574 : vector<8x128xf32>
    %576 = vector.extract_strided_slice %561 {offsets = [0, 384], sizes = [8, 128], strides = [1, 1]} : vector<8x512xf32> to vector<8x128xf32>
    %577 = arith.negf %576 : vector<8x128xf32>
    %578 = math.exp %577 : vector<8x128xf32>
    %cst_163 = arith.constant 1.000000e+00 : f32
    %579 = vector.broadcast %cst_163 : f32 to vector<8x128xf32>
    %580 = arith.addf %579, %578 : vector<8x128xf32>
    %581 = arith.divf %579, %580 : vector<8x128xf32>
    %582 = arith.mulf %573, %548 : vector<8x128xf32>
    %583 = arith.mulf %567, %575 : vector<8x128xf32>
    %584 = arith.addf %582, %583 : vector<8x128xf32>
    %585 = math.tanh %584 : vector<8x128xf32>
    %586 = arith.mulf %581, %585 : vector<8x128xf32>
    %587 = arith.index_cast %555 : i32 to index
    %c0_164 = arith.constant 0 : index
    %c128_165 = arith.constant 128 : index
    %588 = vector.load %arg20[%587, %c0_164, %c128_165] : memref<8x8x256xf32, #tpu.memory_space<vmem>>, vector<1x8x128xf32>
    %589 = vector.shape_cast %588 : vector<1x8x128xf32> to vector<8x128xf32>
    %590 = vector.shape_cast %586 : vector<8x128xf32> to vector<1x8x128xf32>
    tpu.vector_store %arg20[%587, %c0_164, %c128_165], %590 {strides = array<i32>} : memref<8x8x256xf32, #tpu.memory_space<vmem>>, vector<1x8x128xf32>,
    %c8_i32_166 = arith.constant 8 : i32
    %c0_167 = arith.constant 0 : index
    %c0_168 = arith.constant 0 : index
    %c0_169 = arith.constant 0 : index
    %591 = vector.load %arg20[%c0_167, %c0_168, %c0_169] : memref<8x8x256xf32, #tpu.memory_space<vmem>>, vector<8x8x256xf32>
    %592 = vector.shape_cast %591 : vector<8x8x256xf32> to vector<64x256xf32>
    %593 = arith.truncf %592 : vector<64x256xf32> to vector<64x256xbf16>
    %c0_170 = arith.constant 0 : index
    %c0_171 = arith.constant 0 : index
    %594 = vector.load %arg7[%c0_170, %c0_171] : memref<256x512xbf16, #tpu.memory_space<vmem>>, vector<256x512xbf16>
    %cst_172 = arith.constant dense<0.000000e+00> : vector<64x512xf32>
    %595 = tpu.matmul %593, %594, %cst_172 {dimension_numbers = #tpu.dot_dimension_numbers<[1], [0], [0], [1], [0, 0, 1, 1], [], []>} : vector<64x256xbf16>, vector<256x512xbf16>, vector<64x512xf32> -> vector<64x512xf32>
    %c0_173 = arith.constant 0 : index
    %c0_174 = arith.constant 0 : index
    %596 = vector.load %arg9[%c0_173, %c0_174] : memref<1x512xf32, #tpu.memory_space<vmem>>, vector<1x512xf32>
    %597 = vector.broadcast %596 : vector<1x512xf32> to vector<64x512xf32>
    %598 = arith.addf %595, %597 : vector<64x512xf32>
    %599 = vector.shape_cast %598 : vector<64x512xf32> to vector<8x8x512xf32>
    %c0_175 = arith.constant 0 : index
    %c0_176 = arith.constant 0 : index
    %c0_177 = arith.constant 0 : index
    %600 = vector.load %arg19[%c0_175, %c0_176, %c0_177] : memref<8x8x512xf32, #tpu.memory_space<vmem>>, vector<8x8x512xf32>
    tpu.vector_store %arg19[%c0_175, %c0_176, %c0_177], %599 {strides = array<i32>} : memref<8x8x512xf32, #tpu.memory_space<vmem>>, vector<8x8x512xf32>,
    %c0_178 = arith.constant 0 : index
    %c0_179 = arith.constant 0 : index
    %601 = vector.load %arg8[%c0_178, %c0_179] : memref<128x512xbf16, #tpu.memory_space<vmem>>, vector<128x512xbf16>
    %cst_180 = arith.constant 0.000000e+00 : f32
    %602 = vector.broadcast %cst_180 : f32 to vector<8x128xf32>
    %c0_i32_181 = arith.constant 0 : i32
    %603 = arith.index_cast %c0_i32_181 : i32 to index
    %c0_182 = arith.constant 0 : index
    %c0_183 = arith.constant 0 : index
    %604 = vector.load %arg19[%603, %c0_182, %c0_183] : memref<8x8x512xf32, #tpu.memory_space<vmem>>, vector<1x8x512xf32>
    %605 = vector.shape_cast %604 : vector<1x8x512xf32> to vector<8x512xf32>
    %606 = arith.truncf %602 : vector<8x128xf32> to vector<8x128xbf16>
    %cst_184 = arith.constant dense<0.000000e+00> : vector<8x512xf32>
    %607 = tpu.matmul %606, %601, %cst_184 {dimension_numbers = #tpu.dot_dimension_numbers<[1], [0], [0], [1], [0, 0, 1, 1], [], []>} : vector<8x128xbf16>, vector<128x512xbf16>, vector<8x512xf32> -> vector<8x512xf32>
    %608 = arith.addf %605, %607 : vector<8x512xf32>
    %609 = vector.extract_strided_slice %608 {offsets = [0, 0], sizes = [8, 128], strides = [1, 1]} : vector<8x512xf32> to vector<8x128xf32>
    %610 = arith.negf %609 : vector<8x128xf32>
    %611 = math.exp %610 : vector<8x128xf32>
    %cst_185 = arith.constant 1.000000e+00 : f32
    %612 = vector.broadcast %cst_185 : f32 to vector<8x128xf32>
    %613 = arith.addf %612, %611 : vector<8x128xf32>
    %614 = arith.divf %612, %613 : vector<8x128xf32>
    %615 = vector.extract_strided_slice %608 {offsets = [0, 128], sizes = [8, 128], strides = [1, 1]} : vector<8x512xf32> to vector<8x128xf32>
    %616 = arith.negf %615 : vector<8x128xf32>
    %617 = math.exp %616 : vector<8x128xf32>
    %cst_186 = arith.constant 1.000000e+00 : f32
    %618 = vector.broadcast %cst_186 : f32 to vector<8x128xf32>
    %619 = arith.addf %618, %617 : vector<8x128xf32>
    %620 = arith.divf %618, %619 : vector<8x128xf32>
    %621 = vector.extract_strided_slice %608 {offsets = [0, 256], sizes = [8, 128], strides = [1, 1]} : vector<8x512xf32> to vector<8x128xf32>
    %622 = math.tanh %621 : vector<8x128xf32>
    %623 = vector.extract_strided_slice %608 {offsets = [0, 384], sizes = [8, 128], strides = [1, 1]} : vector<8x512xf32> to vector<8x128xf32>
    %624 = arith.negf %623 : vector<8x128xf32>
    %625 = math.exp %624 : vector<8x128xf32>
    %cst_187 = arith.constant 1.000000e+00 : f32
    %626 = vector.broadcast %cst_187 : f32 to vector<8x128xf32>
    %627 = arith.addf %626, %625 : vector<8x128xf32>
    %628 = arith.divf %626, %627 : vector<8x128xf32>
    %629 = arith.mulf %620, %602 : vector<8x128xf32>
    %630 = arith.mulf %614, %622 : vector<8x128xf32>
    %631 = arith.addf %629, %630 : vector<8x128xf32>
    %632 = math.tanh %631 : vector<8x128xf32>
    %633 = arith.mulf %628, %632 : vector<8x128xf32>
    %634 = arith.index_cast %c0_i32_181 : i32 to index
    %c0_188 = arith.constant 0 : index
    %c0_189 = arith.constant 0 : index
    %635 = vector.load %arg21[%634, %c0_188, %c0_189] : memref<8x8x256xf32, #tpu.memory_space<vmem>>, vector<1x8x128xf32>
    %636 = vector.shape_cast %635 : vector<1x8x128xf32> to vector<8x128xf32>
    %637 = vector.shape_cast %633 : vector<8x128xf32> to vector<1x8x128xf32>
    tpu.vector_store %arg21[%634, %c0_188, %c0_189], %637 {strides = array<i32>} : memref<8x8x256xf32, #tpu.memory_space<vmem>>, vector<1x8x128xf32>,
    %c1_i32_190 = arith.constant 1 : i32
    %638 = arith.index_cast %c1_i32_190 : i32 to index
    %c0_191 = arith.constant 0 : index
    %c0_192 = arith.constant 0 : index
    %639 = vector.load %arg19[%638, %c0_191, %c0_192] : memref<8x8x512xf32, #tpu.memory_space<vmem>>, vector<1x8x512xf32>
    %640 = vector.shape_cast %639 : vector<1x8x512xf32> to vector<8x512xf32>
    %641 = arith.truncf %633 : vector<8x128xf32> to vector<8x128xbf16>
    %cst_193 = arith.constant dense<0.000000e+00> : vector<8x512xf32>
    %642 = tpu.matmul %641, %601, %cst_193 {dimension_numbers = #tpu.dot_dimension_numbers<[1], [0], [0], [1], [0, 0, 1, 1], [], []>} : vector<8x128xbf16>, vector<128x512xbf16>, vector<8x512xf32> -> vector<8x512xf32>
    %643 = arith.addf %640, %642 : vector<8x512xf32>
    %644 = vector.extract_strided_slice %643 {offsets = [0, 0], sizes = [8, 128], strides = [1, 1]} : vector<8x512xf32> to vector<8x128xf32>
    %645 = arith.negf %644 : vector<8x128xf32>
    %646 = math.exp %645 : vector<8x128xf32>
    %cst_194 = arith.constant 1.000000e+00 : f32
    %647 = vector.broadcast %cst_194 : f32 to vector<8x128xf32>
    %648 = arith.addf %647, %646 : vector<8x128xf32>
    %649 = arith.divf %647, %648 : vector<8x128xf32>
    %650 = vector.extract_strided_slice %643 {offsets = [0, 128], sizes = [8, 128], strides = [1, 1]} : vector<8x512xf32> to vector<8x128xf32>
    %651 = arith.negf %650 : vector<8x128xf32>
    %652 = math.exp %651 : vector<8x128xf32>
    %cst_195 = arith.constant 1.000000e+00 : f32
    %653 = vector.broadcast %cst_195 : f32 to vector<8x128xf32>
    %654 = arith.addf %653, %652 : vector<8x128xf32>
    %655 = arith.divf %653, %654 : vector<8x128xf32>
    %656 = vector.extract_strided_slice %643 {offsets = [0, 256], sizes = [8, 128], strides = [1, 1]} : vector<8x512xf32> to vector<8x128xf32>
    %657 = math.tanh %656 : vector<8x128xf32>
    %658 = vector.extract_strided_slice %643 {offsets = [0, 384], sizes = [8, 128], strides = [1, 1]} : vector<8x512xf32> to vector<8x128xf32>
    %659 = arith.negf %658 : vector<8x128xf32>
    %660 = math.exp %659 : vector<8x128xf32>
    %cst_196 = arith.constant 1.000000e+00 : f32
    %661 = vector.broadcast %cst_196 : f32 to vector<8x128xf32>
    %662 = arith.addf %661, %660 : vector<8x128xf32>
    %663 = arith.divf %661, %662 : vector<8x128xf32>
    %664 = arith.mulf %655, %631 : vector<8x128xf32>
    %665 = arith.mulf %649, %657 : vector<8x128xf32>
    %666 = arith.addf %664, %665 : vector<8x128xf32>
    %667 = math.tanh %666 : vector<8x128xf32>
    %668 = arith.mulf %663, %667 : vector<8x128xf32>
    %669 = arith.index_cast %c1_i32_190 : i32 to index
    %c0_197 = arith.constant 0 : index
    %c0_198 = arith.constant 0 : index
    %670 = vector.load %arg21[%669, %c0_197, %c0_198] : memref<8x8x256xf32, #tpu.memory_space<vmem>>, vector<1x8x128xf32>
    %671 = vector.shape_cast %670 : vector<1x8x128xf32> to vector<8x128xf32>
    %672 = vector.shape_cast %668 : vector<8x128xf32> to vector<1x8x128xf32>
    tpu.vector_store %arg21[%669, %c0_197, %c0_198], %672 {strides = array<i32>} : memref<8x8x256xf32, #tpu.memory_space<vmem>>, vector<1x8x128xf32>,
    %c2_i32_199 = arith.constant 2 : i32
    %673 = arith.index_cast %c2_i32_199 : i32 to index
    %c0_200 = arith.constant 0 : index
    %c0_201 = arith.constant 0 : index
    %674 = vector.load %arg19[%673, %c0_200, %c0_201] : memref<8x8x512xf32, #tpu.memory_space<vmem>>, vector<1x8x512xf32>
    %675 = vector.shape_cast %674 : vector<1x8x512xf32> to vector<8x512xf32>
    %676 = arith.truncf %668 : vector<8x128xf32> to vector<8x128xbf16>
    %cst_202 = arith.constant dense<0.000000e+00> : vector<8x512xf32>
    %677 = tpu.matmul %676, %601, %cst_202 {dimension_numbers = #tpu.dot_dimension_numbers<[1], [0], [0], [1], [0, 0, 1, 1], [], []>} : vector<8x128xbf16>, vector<128x512xbf16>, vector<8x512xf32> -> vector<8x512xf32>
    %678 = arith.addf %675, %677 : vector<8x512xf32>
    %679 = vector.extract_strided_slice %678 {offsets = [0, 0], sizes = [8, 128], strides = [1, 1]} : vector<8x512xf32> to vector<8x128xf32>
    %680 = arith.negf %679 : vector<8x128xf32>
    %681 = math.exp %680 : vector<8x128xf32>
    %cst_203 = arith.constant 1.000000e+00 : f32
    %682 = vector.broadcast %cst_203 : f32 to vector<8x128xf32>
    %683 = arith.addf %682, %681 : vector<8x128xf32>
    %684 = arith.divf %682, %683 : vector<8x128xf32>
    %685 = vector.extract_strided_slice %678 {offsets = [0, 128], sizes = [8, 128], strides = [1, 1]} : vector<8x512xf32> to vector<8x128xf32>
    %686 = arith.negf %685 : vector<8x128xf32>
    %687 = math.exp %686 : vector<8x128xf32>
    %cst_204 = arith.constant 1.000000e+00 : f32
    %688 = vector.broadcast %cst_204 : f32 to vector<8x128xf32>
    %689 = arith.addf %688, %687 : vector<8x128xf32>
    %690 = arith.divf %688, %689 : vector<8x128xf32>
    %691 = vector.extract_strided_slice %678 {offsets = [0, 256], sizes = [8, 128], strides = [1, 1]} : vector<8x512xf32> to vector<8x128xf32>
    %692 = math.tanh %691 : vector<8x128xf32>
    %693 = vector.extract_strided_slice %678 {offsets = [0, 384], sizes = [8, 128], strides = [1, 1]} : vector<8x512xf32> to vector<8x128xf32>
    %694 = arith.negf %693 : vector<8x128xf32>
    %695 = math.exp %694 : vector<8x128xf32>
    %cst_205 = arith.constant 1.000000e+00 : f32
    %696 = vector.broadcast %cst_205 : f32 to vector<8x128xf32>
    %697 = arith.addf %696, %695 : vector<8x128xf32>
    %698 = arith.divf %696, %697 : vector<8x128xf32>
    %699 = arith.mulf %690, %666 : vector<8x128xf32>
    %700 = arith.mulf %684, %692 : vector<8x128xf32>
    %701 = arith.addf %699, %700 : vector<8x128xf32>
    %702 = math.tanh %701 : vector<8x128xf32>
    %703 = arith.mulf %698, %702 : vector<8x128xf32>
    %704 = arith.index_cast %c2_i32_199 : i32 to index
    %c0_206 = arith.constant 0 : index
    %c0_207 = arith.constant 0 : index
    %705 = vector.load %arg21[%704, %c0_206, %c0_207] : memref<8x8x256xf32, #tpu.memory_space<vmem>>, vector<1x8x128xf32>
    %706 = vector.shape_cast %705 : vector<1x8x128xf32> to vector<8x128xf32>
    %707 = vector.shape_cast %703 : vector<8x128xf32> to vector<1x8x128xf32>
    tpu.vector_store %arg21[%704, %c0_206, %c0_207], %707 {strides = array<i32>} : memref<8x8x256xf32, #tpu.memory_space<vmem>>, vector<1x8x128xf32>,
    %c3_i32_208 = arith.constant 3 : i32
    %708 = arith.index_cast %c3_i32_208 : i32 to index
    %c0_209 = arith.constant 0 : index
    %c0_210 = arith.constant 0 : index
    %709 = vector.load %arg19[%708, %c0_209, %c0_210] : memref<8x8x512xf32, #tpu.memory_space<vmem>>, vector<1x8x512xf32>
    %710 = vector.shape_cast %709 : vector<1x8x512xf32> to vector<8x512xf32>
    %711 = arith.truncf %703 : vector<8x128xf32> to vector<8x128xbf16>
    %cst_211 = arith.constant dense<0.000000e+00> : vector<8x512xf32>
    %712 = tpu.matmul %711, %601, %cst_211 {dimension_numbers = #tpu.dot_dimension_numbers<[1], [0], [0], [1], [0, 0, 1, 1], [], []>} : vector<8x128xbf16>, vector<128x512xbf16>, vector<8x512xf32> -> vector<8x512xf32>
    %713 = arith.addf %710, %712 : vector<8x512xf32>
    %714 = vector.extract_strided_slice %713 {offsets = [0, 0], sizes = [8, 128], strides = [1, 1]} : vector<8x512xf32> to vector<8x128xf32>
    %715 = arith.negf %714 : vector<8x128xf32>
    %716 = math.exp %715 : vector<8x128xf32>
    %cst_212 = arith.constant 1.000000e+00 : f32
    %717 = vector.broadcast %cst_212 : f32 to vector<8x128xf32>
    %718 = arith.addf %717, %716 : vector<8x128xf32>
    %719 = arith.divf %717, %718 : vector<8x128xf32>
    %720 = vector.extract_strided_slice %713 {offsets = [0, 128], sizes = [8, 128], strides = [1, 1]} : vector<8x512xf32> to vector<8x128xf32>
    %721 = arith.negf %720 : vector<8x128xf32>
    %722 = math.exp %721 : vector<8x128xf32>
    %cst_213 = arith.constant 1.000000e+00 : f32
    %723 = vector.broadcast %cst_213 : f32 to vector<8x128xf32>
    %724 = arith.addf %723, %722 : vector<8x128xf32>
    %725 = arith.divf %723, %724 : vector<8x128xf32>
    %726 = vector.extract_strided_slice %713 {offsets = [0, 256], sizes = [8, 128], strides = [1, 1]} : vector<8x512xf32> to vector<8x128xf32>
    %727 = math.tanh %726 : vector<8x128xf32>
    %728 = vector.extract_strided_slice %713 {offsets = [0, 384], sizes = [8, 128], strides = [1, 1]} : vector<8x512xf32> to vector<8x128xf32>
    %729 = arith.negf %728 : vector<8x128xf32>
    %730 = math.exp %729 : vector<8x128xf32>
    %cst_214 = arith.constant 1.000000e+00 : f32
    %731 = vector.broadcast %cst_214 : f32 to vector<8x128xf32>
    %732 = arith.addf %731, %730 : vector<8x128xf32>
    %733 = arith.divf %731, %732 : vector<8x128xf32>
    %734 = arith.mulf %725, %701 : vector<8x128xf32>
    %735 = arith.mulf %719, %727 : vector<8x128xf32>
    %736 = arith.addf %734, %735 : vector<8x128xf32>
    %737 = math.tanh %736 : vector<8x128xf32>
    %738 = arith.mulf %733, %737 : vector<8x128xf32>
    %739 = arith.index_cast %c3_i32_208 : i32 to index
    %c0_215 = arith.constant 0 : index
    %c0_216 = arith.constant 0 : index
    %740 = vector.load %arg21[%739, %c0_215, %c0_216] : memref<8x8x256xf32, #tpu.memory_space<vmem>>, vector<1x8x128xf32>
    %741 = vector.shape_cast %740 : vector<1x8x128xf32> to vector<8x128xf32>
    %742 = vector.shape_cast %738 : vector<8x128xf32> to vector<1x8x128xf32>
    tpu.vector_store %arg21[%739, %c0_215, %c0_216], %742 {strides = array<i32>} : memref<8x8x256xf32, #tpu.memory_space<vmem>>, vector<1x8x128xf32>,
    %c4_i32_217 = arith.constant 4 : i32
    %743 = arith.index_cast %c4_i32_217 : i32 to index
    %c0_218 = arith.constant 0 : index
    %c0_219 = arith.constant 0 : index
    %744 = vector.load %arg19[%743, %c0_218, %c0_219] : memref<8x8x512xf32, #tpu.memory_space<vmem>>, vector<1x8x512xf32>
    %745 = vector.shape_cast %744 : vector<1x8x512xf32> to vector<8x512xf32>
    %746 = arith.truncf %738 : vector<8x128xf32> to vector<8x128xbf16>
    %cst_220 = arith.constant dense<0.000000e+00> : vector<8x512xf32>
    %747 = tpu.matmul %746, %601, %cst_220 {dimension_numbers = #tpu.dot_dimension_numbers<[1], [0], [0], [1], [0, 0, 1, 1], [], []>} : vector<8x128xbf16>, vector<128x512xbf16>, vector<8x512xf32> -> vector<8x512xf32>
    %748 = arith.addf %745, %747 : vector<8x512xf32>
    %749 = vector.extract_strided_slice %748 {offsets = [0, 0], sizes = [8, 128], strides = [1, 1]} : vector<8x512xf32> to vector<8x128xf32>
    %750 = arith.negf %749 : vector<8x128xf32>
    %751 = math.exp %750 : vector<8x128xf32>
    %cst_221 = arith.constant 1.000000e+00 : f32
    %752 = vector.broadcast %cst_221 : f32 to vector<8x128xf32>
    %753 = arith.addf %752, %751 : vector<8x128xf32>
    %754 = arith.divf %752, %753 : vector<8x128xf32>
    %755 = vector.extract_strided_slice %748 {offsets = [0, 128], sizes = [8, 128], strides = [1, 1]} : vector<8x512xf32> to vector<8x128xf32>
    %756 = arith.negf %755 : vector<8x128xf32>
    %757 = math.exp %756 : vector<8x128xf32>
    %cst_222 = arith.constant 1.000000e+00 : f32
    %758 = vector.broadcast %cst_222 : f32 to vector<8x128xf32>
    %759 = arith.addf %758, %757 : vector<8x128xf32>
    %760 = arith.divf %758, %759 : vector<8x128xf32>
    %761 = vector.extract_strided_slice %748 {offsets = [0, 256], sizes = [8, 128], strides = [1, 1]} : vector<8x512xf32> to vector<8x128xf32>
    %762 = math.tanh %761 : vector<8x128xf32>
    %763 = vector.extract_strided_slice %748 {offsets = [0, 384], sizes = [8, 128], strides = [1, 1]} : vector<8x512xf32> to vector<8x128xf32>
    %764 = arith.negf %763 : vector<8x128xf32>
    %765 = math.exp %764 : vector<8x128xf32>
    %cst_223 = arith.constant 1.000000e+00 : f32
    %766 = vector.broadcast %cst_223 : f32 to vector<8x128xf32>
    %767 = arith.addf %766, %765 : vector<8x128xf32>
    %768 = arith.divf %766, %767 : vector<8x128xf32>
    %769 = arith.mulf %760, %736 : vector<8x128xf32>
    %770 = arith.mulf %754, %762 : vector<8x128xf32>
    %771 = arith.addf %769, %770 : vector<8x128xf32>
    %772 = math.tanh %771 : vector<8x128xf32>
    %773 = arith.mulf %768, %772 : vector<8x128xf32>
    %774 = arith.index_cast %c4_i32_217 : i32 to index
    %c0_224 = arith.constant 0 : index
    %c0_225 = arith.constant 0 : index
    %775 = vector.load %arg21[%774, %c0_224, %c0_225] : memref<8x8x256xf32, #tpu.memory_space<vmem>>, vector<1x8x128xf32>
    %776 = vector.shape_cast %775 : vector<1x8x128xf32> to vector<8x128xf32>
    %777 = vector.shape_cast %773 : vector<8x128xf32> to vector<1x8x128xf32>
    tpu.vector_store %arg21[%774, %c0_224, %c0_225], %777 {strides = array<i32>} : memref<8x8x256xf32, #tpu.memory_space<vmem>>, vector<1x8x128xf32>,
    %c5_i32_226 = arith.constant 5 : i32
    %778 = arith.index_cast %c5_i32_226 : i32 to index
    %c0_227 = arith.constant 0 : index
    %c0_228 = arith.constant 0 : index
    %779 = vector.load %arg19[%778, %c0_227, %c0_228] : memref<8x8x512xf32, #tpu.memory_space<vmem>>, vector<1x8x512xf32>
    %780 = vector.shape_cast %779 : vector<1x8x512xf32> to vector<8x512xf32>
    %781 = arith.truncf %773 : vector<8x128xf32> to vector<8x128xbf16>
    %cst_229 = arith.constant dense<0.000000e+00> : vector<8x512xf32>
    %782 = tpu.matmul %781, %601, %cst_229 {dimension_numbers = #tpu.dot_dimension_numbers<[1], [0], [0], [1], [0, 0, 1, 1], [], []>} : vector<8x128xbf16>, vector<128x512xbf16>, vector<8x512xf32> -> vector<8x512xf32>
    %783 = arith.addf %780, %782 : vector<8x512xf32>
    %784 = vector.extract_strided_slice %783 {offsets = [0, 0], sizes = [8, 128], strides = [1, 1]} : vector<8x512xf32> to vector<8x128xf32>
    %785 = arith.negf %784 : vector<8x128xf32>
    %786 = math.exp %785 : vector<8x128xf32>
    %cst_230 = arith.constant 1.000000e+00 : f32
    %787 = vector.broadcast %cst_230 : f32 to vector<8x128xf32>
    %788 = arith.addf %787, %786 : vector<8x128xf32>
    %789 = arith.divf %787, %788 : vector<8x128xf32>
    %790 = vector.extract_strided_slice %783 {offsets = [0, 128], sizes = [8, 128], strides = [1, 1]} : vector<8x512xf32> to vector<8x128xf32>
    %791 = arith.negf %790 : vector<8x128xf32>
    %792 = math.exp %791 : vector<8x128xf32>
    %cst_231 = arith.constant 1.000000e+00 : f32
    %793 = vector.broadcast %cst_231 : f32 to vector<8x128xf32>
    %794 = arith.addf %793, %792 : vector<8x128xf32>
    %795 = arith.divf %793, %794 : vector<8x128xf32>
    %796 = vector.extract_strided_slice %783 {offsets = [0, 256], sizes = [8, 128], strides = [1, 1]} : vector<8x512xf32> to vector<8x128xf32>
    %797 = math.tanh %796 : vector<8x128xf32>
    %798 = vector.extract_strided_slice %783 {offsets = [0, 384], sizes = [8, 128], strides = [1, 1]} : vector<8x512xf32> to vector<8x128xf32>
    %799 = arith.negf %798 : vector<8x128xf32>
    %800 = math.exp %799 : vector<8x128xf32>
    %cst_232 = arith.constant 1.000000e+00 : f32
    %801 = vector.broadcast %cst_232 : f32 to vector<8x128xf32>
    %802 = arith.addf %801, %800 : vector<8x128xf32>
    %803 = arith.divf %801, %802 : vector<8x128xf32>
    %804 = arith.mulf %795, %771 : vector<8x128xf32>
    %805 = arith.mulf %789, %797 : vector<8x128xf32>
    %806 = arith.addf %804, %805 : vector<8x128xf32>
    %807 = math.tanh %806 : vector<8x128xf32>
    %808 = arith.mulf %803, %807 : vector<8x128xf32>
    %809 = arith.index_cast %c5_i32_226 : i32 to index
    %c0_233 = arith.constant 0 : index
    %c0_234 = arith.constant 0 : index
    %810 = vector.load %arg21[%809, %c0_233, %c0_234] : memref<8x8x256xf32, #tpu.memory_space<vmem>>, vector<1x8x128xf32>
    %811 = vector.shape_cast %810 : vector<1x8x128xf32> to vector<8x128xf32>
    %812 = vector.shape_cast %808 : vector<8x128xf32> to vector<1x8x128xf32>
    tpu.vector_store %arg21[%809, %c0_233, %c0_234], %812 {strides = array<i32>} : memref<8x8x256xf32, #tpu.memory_space<vmem>>, vector<1x8x128xf32>,
    %c6_i32_235 = arith.constant 6 : i32
    %813 = arith.index_cast %c6_i32_235 : i32 to index
    %c0_236 = arith.constant 0 : index
    %c0_237 = arith.constant 0 : index
    %814 = vector.load %arg19[%813, %c0_236, %c0_237] : memref<8x8x512xf32, #tpu.memory_space<vmem>>, vector<1x8x512xf32>
    %815 = vector.shape_cast %814 : vector<1x8x512xf32> to vector<8x512xf32>
    %816 = arith.truncf %808 : vector<8x128xf32> to vector<8x128xbf16>
    %cst_238 = arith.constant dense<0.000000e+00> : vector<8x512xf32>
    %817 = tpu.matmul %816, %601, %cst_238 {dimension_numbers = #tpu.dot_dimension_numbers<[1], [0], [0], [1], [0, 0, 1, 1], [], []>} : vector<8x128xbf16>, vector<128x512xbf16>, vector<8x512xf32> -> vector<8x512xf32>
    %818 = arith.addf %815, %817 : vector<8x512xf32>
    %819 = vector.extract_strided_slice %818 {offsets = [0, 0], sizes = [8, 128], strides = [1, 1]} : vector<8x512xf32> to vector<8x128xf32>
    %820 = arith.negf %819 : vector<8x128xf32>
    %821 = math.exp %820 : vector<8x128xf32>
    %cst_239 = arith.constant 1.000000e+00 : f32
    %822 = vector.broadcast %cst_239 : f32 to vector<8x128xf32>
    %823 = arith.addf %822, %821 : vector<8x128xf32>
    %824 = arith.divf %822, %823 : vector<8x128xf32>
    %825 = vector.extract_strided_slice %818 {offsets = [0, 128], sizes = [8, 128], strides = [1, 1]} : vector<8x512xf32> to vector<8x128xf32>
    %826 = arith.negf %825 : vector<8x128xf32>
    %827 = math.exp %826 : vector<8x128xf32>
    %cst_240 = arith.constant 1.000000e+00 : f32
    %828 = vector.broadcast %cst_240 : f32 to vector<8x128xf32>
    %829 = arith.addf %828, %827 : vector<8x128xf32>
    %830 = arith.divf %828, %829 : vector<8x128xf32>
    %831 = vector.extract_strided_slice %818 {offsets = [0, 256], sizes = [8, 128], strides = [1, 1]} : vector<8x512xf32> to vector<8x128xf32>
    %832 = math.tanh %831 : vector<8x128xf32>
    %833 = vector.extract_strided_slice %818 {offsets = [0, 384], sizes = [8, 128], strides = [1, 1]} : vector<8x512xf32> to vector<8x128xf32>
    %834 = arith.negf %833 : vector<8x128xf32>
    %835 = math.exp %834 : vector<8x128xf32>
    %cst_241 = arith.constant 1.000000e+00 : f32
    %836 = vector.broadcast %cst_241 : f32 to vector<8x128xf32>
    %837 = arith.addf %836, %835 : vector<8x128xf32>
    %838 = arith.divf %836, %837 : vector<8x128xf32>
    %839 = arith.mulf %830, %806 : vector<8x128xf32>
    %840 = arith.mulf %824, %832 : vector<8x128xf32>
    %841 = arith.addf %839, %840 : vector<8x128xf32>
    %842 = math.tanh %841 : vector<8x128xf32>
    %843 = arith.mulf %838, %842 : vector<8x128xf32>
    %844 = arith.index_cast %c6_i32_235 : i32 to index
    %c0_242 = arith.constant 0 : index
    %c0_243 = arith.constant 0 : index
    %845 = vector.load %arg21[%844, %c0_242, %c0_243] : memref<8x8x256xf32, #tpu.memory_space<vmem>>, vector<1x8x128xf32>
    %846 = vector.shape_cast %845 : vector<1x8x128xf32> to vector<8x128xf32>
    %847 = vector.shape_cast %843 : vector<8x128xf32> to vector<1x8x128xf32>
    tpu.vector_store %arg21[%844, %c0_242, %c0_243], %847 {strides = array<i32>} : memref<8x8x256xf32, #tpu.memory_space<vmem>>, vector<1x8x128xf32>,
    %c7_i32_244 = arith.constant 7 : i32
    %848 = arith.index_cast %c7_i32_244 : i32 to index
    %c0_245 = arith.constant 0 : index
    %c0_246 = arith.constant 0 : index
    %849 = vector.load %arg19[%848, %c0_245, %c0_246] : memref<8x8x512xf32, #tpu.memory_space<vmem>>, vector<1x8x512xf32>
    %850 = vector.shape_cast %849 : vector<1x8x512xf32> to vector<8x512xf32>
    %851 = arith.truncf %843 : vector<8x128xf32> to vector<8x128xbf16>
    %cst_247 = arith.constant dense<0.000000e+00> : vector<8x512xf32>
    %852 = tpu.matmul %851, %601, %cst_247 {dimension_numbers = #tpu.dot_dimension_numbers<[1], [0], [0], [1], [0, 0, 1, 1], [], []>} : vector<8x128xbf16>, vector<128x512xbf16>, vector<8x512xf32> -> vector<8x512xf32>
    %853 = arith.addf %850, %852 : vector<8x512xf32>
    %854 = vector.extract_strided_slice %853 {offsets = [0, 0], sizes = [8, 128], strides = [1, 1]} : vector<8x512xf32> to vector<8x128xf32>
    %855 = arith.negf %854 : vector<8x128xf32>
    %856 = math.exp %855 : vector<8x128xf32>
    %cst_248 = arith.constant 1.000000e+00 : f32
    %857 = vector.broadcast %cst_248 : f32 to vector<8x128xf32>
    %858 = arith.addf %857, %856 : vector<8x128xf32>
    %859 = arith.divf %857, %858 : vector<8x128xf32>
    %860 = vector.extract_strided_slice %853 {offsets = [0, 128], sizes = [8, 128], strides = [1, 1]} : vector<8x512xf32> to vector<8x128xf32>
    %861 = arith.negf %860 : vector<8x128xf32>
    %862 = math.exp %861 : vector<8x128xf32>
    %cst_249 = arith.constant 1.000000e+00 : f32
    %863 = vector.broadcast %cst_249 : f32 to vector<8x128xf32>
    %864 = arith.addf %863, %862 : vector<8x128xf32>
    %865 = arith.divf %863, %864 : vector<8x128xf32>
    %866 = vector.extract_strided_slice %853 {offsets = [0, 256], sizes = [8, 128], strides = [1, 1]} : vector<8x512xf32> to vector<8x128xf32>
    %867 = math.tanh %866 : vector<8x128xf32>
    %868 = vector.extract_strided_slice %853 {offsets = [0, 384], sizes = [8, 128], strides = [1, 1]} : vector<8x512xf32> to vector<8x128xf32>
    %869 = arith.negf %868 : vector<8x128xf32>
    %870 = math.exp %869 : vector<8x128xf32>
    %cst_250 = arith.constant 1.000000e+00 : f32
    %871 = vector.broadcast %cst_250 : f32 to vector<8x128xf32>
    %872 = arith.addf %871, %870 : vector<8x128xf32>
    %873 = arith.divf %871, %872 : vector<8x128xf32>
    %874 = arith.mulf %865, %841 : vector<8x128xf32>
    %875 = arith.mulf %859, %867 : vector<8x128xf32>
    %876 = arith.addf %874, %875 : vector<8x128xf32>
    %877 = math.tanh %876 : vector<8x128xf32>
    %878 = arith.mulf %873, %877 : vector<8x128xf32>
    %879 = arith.index_cast %c7_i32_244 : i32 to index
    %c0_251 = arith.constant 0 : index
    %c0_252 = arith.constant 0 : index
    %880 = vector.load %arg21[%879, %c0_251, %c0_252] : memref<8x8x256xf32, #tpu.memory_space<vmem>>, vector<1x8x128xf32>
    %881 = vector.shape_cast %880 : vector<1x8x128xf32> to vector<8x128xf32>
    %882 = vector.shape_cast %878 : vector<8x128xf32> to vector<1x8x128xf32>
    tpu.vector_store %arg21[%879, %c0_251, %c0_252], %882 {strides = array<i32>} : memref<8x8x256xf32, #tpu.memory_space<vmem>>, vector<1x8x128xf32>,
    %c8_i32_253 = arith.constant 8 : i32
    %883 = vector.shape_cast %591 : vector<8x8x256xf32> to vector<64x256xf32>
    %884 = arith.truncf %883 : vector<64x256xf32> to vector<64x256xbf16>
    %c0_254 = arith.constant 0 : index
    %c0_255 = arith.constant 0 : index
    %885 = vector.load %arg10[%c0_254, %c0_255] : memref<256x512xbf16, #tpu.memory_space<vmem>>, vector<256x512xbf16>
    %cst_256 = arith.constant dense<0.000000e+00> : vector<64x512xf32>
    %886 = tpu.matmul %884, %885, %cst_256 {dimension_numbers = #tpu.dot_dimension_numbers<[1], [0], [0], [1], [0, 0, 1, 1], [], []>} : vector<64x256xbf16>, vector<256x512xbf16>, vector<64x512xf32> -> vector<64x512xf32>
    %c0_257 = arith.constant 0 : index
    %c0_258 = arith.constant 0 : index
    %887 = vector.load %arg12[%c0_257, %c0_258] : memref<1x512xf32, #tpu.memory_space<vmem>>, vector<1x512xf32>
    %888 = vector.broadcast %887 : vector<1x512xf32> to vector<64x512xf32>
    %889 = arith.addf %886, %888 : vector<64x512xf32>
    %890 = vector.shape_cast %889 : vector<64x512xf32> to vector<8x8x512xf32>
    %c0_259 = arith.constant 0 : index
    %c0_260 = arith.constant 0 : index
    %c0_261 = arith.constant 0 : index
    %891 = vector.load %arg19[%c0_259, %c0_260, %c0_261] : memref<8x8x512xf32, #tpu.memory_space<vmem>>, vector<8x8x512xf32>
    tpu.vector_store %arg19[%c0_259, %c0_260, %c0_261], %890 {strides = array<i32>} : memref<8x8x512xf32, #tpu.memory_space<vmem>>, vector<8x8x512xf32>,
    %c0_262 = arith.constant 0 : index
    %c0_263 = arith.constant 0 : index
    %892 = vector.load %arg11[%c0_262, %c0_263] : memref<128x512xbf16, #tpu.memory_space<vmem>>, vector<128x512xbf16>
    %cst_264 = arith.constant 0.000000e+00 : f32
    %893 = vector.broadcast %cst_264 : f32 to vector<8x128xf32>
    %c0_i32_265 = arith.constant 0 : i32
    %c7_i32_266 = arith.constant 7 : i32
    %894 = arith.subi %c7_i32_266, %c0_i32_265 : i32
    %895 = arith.index_cast %894 : i32 to index
    %c0_267 = arith.constant 0 : index
    %c0_268 = arith.constant 0 : index
    %896 = vector.load %arg19[%895, %c0_267, %c0_268] : memref<8x8x512xf32, #tpu.memory_space<vmem>>, vector<1x8x512xf32>
    %897 = vector.shape_cast %896 : vector<1x8x512xf32> to vector<8x512xf32>
    %898 = arith.truncf %893 : vector<8x128xf32> to vector<8x128xbf16>
    %cst_269 = arith.constant dense<0.000000e+00> : vector<8x512xf32>
    %899 = tpu.matmul %898, %892, %cst_269 {dimension_numbers = #tpu.dot_dimension_numbers<[1], [0], [0], [1], [0, 0, 1, 1], [], []>} : vector<8x128xbf16>, vector<128x512xbf16>, vector<8x512xf32> -> vector<8x512xf32>
    %900 = arith.addf %897, %899 : vector<8x512xf32>
    %901 = vector.extract_strided_slice %900 {offsets = [0, 0], sizes = [8, 128], strides = [1, 1]} : vector<8x512xf32> to vector<8x128xf32>
    %902 = arith.negf %901 : vector<8x128xf32>
    %903 = math.exp %902 : vector<8x128xf32>
    %cst_270 = arith.constant 1.000000e+00 : f32
    %904 = vector.broadcast %cst_270 : f32 to vector<8x128xf32>
    %905 = arith.addf %904, %903 : vector<8x128xf32>
    %906 = arith.divf %904, %905 : vector<8x128xf32>
    %907 = vector.extract_strided_slice %900 {offsets = [0, 128], sizes = [8, 128], strides = [1, 1]} : vector<8x512xf32> to vector<8x128xf32>
    %908 = arith.negf %907 : vector<8x128xf32>
    %909 = math.exp %908 : vector<8x128xf32>
    %cst_271 = arith.constant 1.000000e+00 : f32
    %910 = vector.broadcast %cst_271 : f32 to vector<8x128xf32>
    %911 = arith.addf %910, %909 : vector<8x128xf32>
    %912 = arith.divf %910, %911 : vector<8x128xf32>
    %913 = vector.extract_strided_slice %900 {offsets = [0, 256], sizes = [8, 128], strides = [1, 1]} : vector<8x512xf32> to vector<8x128xf32>
    %914 = math.tanh %913 : vector<8x128xf32>
    %915 = vector.extract_strided_slice %900 {offsets = [0, 384], sizes = [8, 128], strides = [1, 1]} : vector<8x512xf32> to vector<8x128xf32>
    %916 = arith.negf %915 : vector<8x128xf32>
    %917 = math.exp %916 : vector<8x128xf32>
    %cst_272 = arith.constant 1.000000e+00 : f32
    %918 = vector.broadcast %cst_272 : f32 to vector<8x128xf32>
    %919 = arith.addf %918, %917 : vector<8x128xf32>
    %920 = arith.divf %918, %919 : vector<8x128xf32>
    %921 = arith.mulf %912, %893 : vector<8x128xf32>
    %922 = arith.mulf %906, %914 : vector<8x128xf32>
    %923 = arith.addf %921, %922 : vector<8x128xf32>
    %924 = math.tanh %923 : vector<8x128xf32>
    %925 = arith.mulf %920, %924 : vector<8x128xf32>
    %926 = arith.index_cast %894 : i32 to index
    %c0_273 = arith.constant 0 : index
    %c128_274 = arith.constant 128 : index
    %927 = vector.load %arg21[%926, %c0_273, %c128_274] : memref<8x8x256xf32, #tpu.memory_space<vmem>>, vector<1x8x128xf32>
    %928 = vector.shape_cast %927 : vector<1x8x128xf32> to vector<8x128xf32>
    %929 = vector.shape_cast %925 : vector<8x128xf32> to vector<1x8x128xf32>
    tpu.vector_store %arg21[%926, %c0_273, %c128_274], %929 {strides = array<i32>} : memref<8x8x256xf32, #tpu.memory_space<vmem>>, vector<1x8x128xf32>,
    %c1_i32_275 = arith.constant 1 : i32
    %c7_i32_276 = arith.constant 7 : i32
    %930 = arith.subi %c7_i32_276, %c1_i32_275 : i32
    %931 = arith.index_cast %930 : i32 to index
    %c0_277 = arith.constant 0 : index
    %c0_278 = arith.constant 0 : index
    %932 = vector.load %arg19[%931, %c0_277, %c0_278] : memref<8x8x512xf32, #tpu.memory_space<vmem>>, vector<1x8x512xf32>
    %933 = vector.shape_cast %932 : vector<1x8x512xf32> to vector<8x512xf32>
    %934 = arith.truncf %925 : vector<8x128xf32> to vector<8x128xbf16>
    %cst_279 = arith.constant dense<0.000000e+00> : vector<8x512xf32>
    %935 = tpu.matmul %934, %892, %cst_279 {dimension_numbers = #tpu.dot_dimension_numbers<[1], [0], [0], [1], [0, 0, 1, 1], [], []>} : vector<8x128xbf16>, vector<128x512xbf16>, vector<8x512xf32> -> vector<8x512xf32>
    %936 = arith.addf %933, %935 : vector<8x512xf32>
    %937 = vector.extract_strided_slice %936 {offsets = [0, 0], sizes = [8, 128], strides = [1, 1]} : vector<8x512xf32> to vector<8x128xf32>
    %938 = arith.negf %937 : vector<8x128xf32>
    %939 = math.exp %938 : vector<8x128xf32>
    %cst_280 = arith.constant 1.000000e+00 : f32
    %940 = vector.broadcast %cst_280 : f32 to vector<8x128xf32>
    %941 = arith.addf %940, %939 : vector<8x128xf32>
    %942 = arith.divf %940, %941 : vector<8x128xf32>
    %943 = vector.extract_strided_slice %936 {offsets = [0, 128], sizes = [8, 128], strides = [1, 1]} : vector<8x512xf32> to vector<8x128xf32>
    %944 = arith.negf %943 : vector<8x128xf32>
    %945 = math.exp %944 : vector<8x128xf32>
    %cst_281 = arith.constant 1.000000e+00 : f32
    %946 = vector.broadcast %cst_281 : f32 to vector<8x128xf32>
    %947 = arith.addf %946, %945 : vector<8x128xf32>
    %948 = arith.divf %946, %947 : vector<8x128xf32>
    %949 = vector.extract_strided_slice %936 {offsets = [0, 256], sizes = [8, 128], strides = [1, 1]} : vector<8x512xf32> to vector<8x128xf32>
    %950 = math.tanh %949 : vector<8x128xf32>
    %951 = vector.extract_strided_slice %936 {offsets = [0, 384], sizes = [8, 128], strides = [1, 1]} : vector<8x512xf32> to vector<8x128xf32>
    %952 = arith.negf %951 : vector<8x128xf32>
    %953 = math.exp %952 : vector<8x128xf32>
    %cst_282 = arith.constant 1.000000e+00 : f32
    %954 = vector.broadcast %cst_282 : f32 to vector<8x128xf32>
    %955 = arith.addf %954, %953 : vector<8x128xf32>
    %956 = arith.divf %954, %955 : vector<8x128xf32>
    %957 = arith.mulf %948, %923 : vector<8x128xf32>
    %958 = arith.mulf %942, %950 : vector<8x128xf32>
    %959 = arith.addf %957, %958 : vector<8x128xf32>
    %960 = math.tanh %959 : vector<8x128xf32>
    %961 = arith.mulf %956, %960 : vector<8x128xf32>
    %962 = arith.index_cast %930 : i32 to index
    %c0_283 = arith.constant 0 : index
    %c128_284 = arith.constant 128 : index
    %963 = vector.load %arg21[%962, %c0_283, %c128_284] : memref<8x8x256xf32, #tpu.memory_space<vmem>>, vector<1x8x128xf32>
    %964 = vector.shape_cast %963 : vector<1x8x128xf32> to vector<8x128xf32>
    %965 = vector.shape_cast %961 : vector<8x128xf32> to vector<1x8x128xf32>
    tpu.vector_store %arg21[%962, %c0_283, %c128_284], %965 {strides = array<i32>} : memref<8x8x256xf32, #tpu.memory_space<vmem>>, vector<1x8x128xf32>,
    %c2_i32_285 = arith.constant 2 : i32
    %c7_i32_286 = arith.constant 7 : i32
    %966 = arith.subi %c7_i32_286, %c2_i32_285 : i32
    %967 = arith.index_cast %966 : i32 to index
    %c0_287 = arith.constant 0 : index
    %c0_288 = arith.constant 0 : index
    %968 = vector.load %arg19[%967, %c0_287, %c0_288] : memref<8x8x512xf32, #tpu.memory_space<vmem>>, vector<1x8x512xf32>
    %969 = vector.shape_cast %968 : vector<1x8x512xf32> to vector<8x512xf32>
    %970 = arith.truncf %961 : vector<8x128xf32> to vector<8x128xbf16>
    %cst_289 = arith.constant dense<0.000000e+00> : vector<8x512xf32>
    %971 = tpu.matmul %970, %892, %cst_289 {dimension_numbers = #tpu.dot_dimension_numbers<[1], [0], [0], [1], [0, 0, 1, 1], [], []>} : vector<8x128xbf16>, vector<128x512xbf16>, vector<8x512xf32> -> vector<8x512xf32>
    %972 = arith.addf %969, %971 : vector<8x512xf32>
    %973 = vector.extract_strided_slice %972 {offsets = [0, 0], sizes = [8, 128], strides = [1, 1]} : vector<8x512xf32> to vector<8x128xf32>
    %974 = arith.negf %973 : vector<8x128xf32>
    %975 = math.exp %974 : vector<8x128xf32>
    %cst_290 = arith.constant 1.000000e+00 : f32
    %976 = vector.broadcast %cst_290 : f32 to vector<8x128xf32>
    %977 = arith.addf %976, %975 : vector<8x128xf32>
    %978 = arith.divf %976, %977 : vector<8x128xf32>
    %979 = vector.extract_strided_slice %972 {offsets = [0, 128], sizes = [8, 128], strides = [1, 1]} : vector<8x512xf32> to vector<8x128xf32>
    %980 = arith.negf %979 : vector<8x128xf32>
    %981 = math.exp %980 : vector<8x128xf32>
    %cst_291 = arith.constant 1.000000e+00 : f32
    %982 = vector.broadcast %cst_291 : f32 to vector<8x128xf32>
    %983 = arith.addf %982, %981 : vector<8x128xf32>
    %984 = arith.divf %982, %983 : vector<8x128xf32>
    %985 = vector.extract_strided_slice %972 {offsets = [0, 256], sizes = [8, 128], strides = [1, 1]} : vector<8x512xf32> to vector<8x128xf32>
    %986 = math.tanh %985 : vector<8x128xf32>
    %987 = vector.extract_strided_slice %972 {offsets = [0, 384], sizes = [8, 128], strides = [1, 1]} : vector<8x512xf32> to vector<8x128xf32>
    %988 = arith.negf %987 : vector<8x128xf32>
    %989 = math.exp %988 : vector<8x128xf32>
    %cst_292 = arith.constant 1.000000e+00 : f32
    %990 = vector.broadcast %cst_292 : f32 to vector<8x128xf32>
    %991 = arith.addf %990, %989 : vector<8x128xf32>
    %992 = arith.divf %990, %991 : vector<8x128xf32>
    %993 = arith.mulf %984, %959 : vector<8x128xf32>
    %994 = arith.mulf %978, %986 : vector<8x128xf32>
    %995 = arith.addf %993, %994 : vector<8x128xf32>
    %996 = math.tanh %995 : vector<8x128xf32>
    %997 = arith.mulf %992, %996 : vector<8x128xf32>
    %998 = arith.index_cast %966 : i32 to index
    %c0_293 = arith.constant 0 : index
    %c128_294 = arith.constant 128 : index
    %999 = vector.load %arg21[%998, %c0_293, %c128_294] : memref<8x8x256xf32, #tpu.memory_space<vmem>>, vector<1x8x128xf32>
    %1000 = vector.shape_cast %999 : vector<1x8x128xf32> to vector<8x128xf32>
    %1001 = vector.shape_cast %997 : vector<8x128xf32> to vector<1x8x128xf32>
    tpu.vector_store %arg21[%998, %c0_293, %c128_294], %1001 {strides = array<i32>} : memref<8x8x256xf32, #tpu.memory_space<vmem>>, vector<1x8x128xf32>,
    %c3_i32_295 = arith.constant 3 : i32
    %c7_i32_296 = arith.constant 7 : i32
    %1002 = arith.subi %c7_i32_296, %c3_i32_295 : i32
    %1003 = arith.index_cast %1002 : i32 to index
    %c0_297 = arith.constant 0 : index
    %c0_298 = arith.constant 0 : index
    %1004 = vector.load %arg19[%1003, %c0_297, %c0_298] : memref<8x8x512xf32, #tpu.memory_space<vmem>>, vector<1x8x512xf32>
    %1005 = vector.shape_cast %1004 : vector<1x8x512xf32> to vector<8x512xf32>
    %1006 = arith.truncf %997 : vector<8x128xf32> to vector<8x128xbf16>
    %cst_299 = arith.constant dense<0.000000e+00> : vector<8x512xf32>
    %1007 = tpu.matmul %1006, %892, %cst_299 {dimension_numbers = #tpu.dot_dimension_numbers<[1], [0], [0], [1], [0, 0, 1, 1], [], []>} : vector<8x128xbf16>, vector<128x512xbf16>, vector<8x512xf32> -> vector<8x512xf32>
    %1008 = arith.addf %1005, %1007 : vector<8x512xf32>
    %1009 = vector.extract_strided_slice %1008 {offsets = [0, 0], sizes = [8, 128], strides = [1, 1]} : vector<8x512xf32> to vector<8x128xf32>
    %1010 = arith.negf %1009 : vector<8x128xf32>
    %1011 = math.exp %1010 : vector<8x128xf32>
    %cst_300 = arith.constant 1.000000e+00 : f32
    %1012 = vector.broadcast %cst_300 : f32 to vector<8x128xf32>
    %1013 = arith.addf %1012, %1011 : vector<8x128xf32>
    %1014 = arith.divf %1012, %1013 : vector<8x128xf32>
    %1015 = vector.extract_strided_slice %1008 {offsets = [0, 128], sizes = [8, 128], strides = [1, 1]} : vector<8x512xf32> to vector<8x128xf32>
    %1016 = arith.negf %1015 : vector<8x128xf32>
    %1017 = math.exp %1016 : vector<8x128xf32>
    %cst_301 = arith.constant 1.000000e+00 : f32
    %1018 = vector.broadcast %cst_301 : f32 to vector<8x128xf32>
    %1019 = arith.addf %1018, %1017 : vector<8x128xf32>
    %1020 = arith.divf %1018, %1019 : vector<8x128xf32>
    %1021 = vector.extract_strided_slice %1008 {offsets = [0, 256], sizes = [8, 128], strides = [1, 1]} : vector<8x512xf32> to vector<8x128xf32>
    %1022 = math.tanh %1021 : vector<8x128xf32>
    %1023 = vector.extract_strided_slice %1008 {offsets = [0, 384], sizes = [8, 128], strides = [1, 1]} : vector<8x512xf32> to vector<8x128xf32>
    %1024 = arith.negf %1023 : vector<8x128xf32>
    %1025 = math.exp %1024 : vector<8x128xf32>
    %cst_302 = arith.constant 1.000000e+00 : f32
    %1026 = vector.broadcast %cst_302 : f32 to vector<8x128xf32>
    %1027 = arith.addf %1026, %1025 : vector<8x128xf32>
    %1028 = arith.divf %1026, %1027 : vector<8x128xf32>
    %1029 = arith.mulf %1020, %995 : vector<8x128xf32>
    %1030 = arith.mulf %1014, %1022 : vector<8x128xf32>
    %1031 = arith.addf %1029, %1030 : vector<8x128xf32>
    %1032 = math.tanh %1031 : vector<8x128xf32>
    %1033 = arith.mulf %1028, %1032 : vector<8x128xf32>
    %1034 = arith.index_cast %1002 : i32 to index
    %c0_303 = arith.constant 0 : index
    %c128_304 = arith.constant 128 : index
    %1035 = vector.load %arg21[%1034, %c0_303, %c128_304] : memref<8x8x256xf32, #tpu.memory_space<vmem>>, vector<1x8x128xf32>
    %1036 = vector.shape_cast %1035 : vector<1x8x128xf32> to vector<8x128xf32>
    %1037 = vector.shape_cast %1033 : vector<8x128xf32> to vector<1x8x128xf32>
    tpu.vector_store %arg21[%1034, %c0_303, %c128_304], %1037 {strides = array<i32>} : memref<8x8x256xf32, #tpu.memory_space<vmem>>, vector<1x8x128xf32>,
    %c4_i32_305 = arith.constant 4 : i32
    %c7_i32_306 = arith.constant 7 : i32
    %1038 = arith.subi %c7_i32_306, %c4_i32_305 : i32
    %1039 = arith.index_cast %1038 : i32 to index
    %c0_307 = arith.constant 0 : index
    %c0_308 = arith.constant 0 : index
    %1040 = vector.load %arg19[%1039, %c0_307, %c0_308] : memref<8x8x512xf32, #tpu.memory_space<vmem>>, vector<1x8x512xf32>
    %1041 = vector.shape_cast %1040 : vector<1x8x512xf32> to vector<8x512xf32>
    %1042 = arith.truncf %1033 : vector<8x128xf32> to vector<8x128xbf16>
    %cst_309 = arith.constant dense<0.000000e+00> : vector<8x512xf32>
    %1043 = tpu.matmul %1042, %892, %cst_309 {dimension_numbers = #tpu.dot_dimension_numbers<[1], [0], [0], [1], [0, 0, 1, 1], [], []>} : vector<8x128xbf16>, vector<128x512xbf16>, vector<8x512xf32> -> vector<8x512xf32>
    %1044 = arith.addf %1041, %1043 : vector<8x512xf32>
    %1045 = vector.extract_strided_slice %1044 {offsets = [0, 0], sizes = [8, 128], strides = [1, 1]} : vector<8x512xf32> to vector<8x128xf32>
    %1046 = arith.negf %1045 : vector<8x128xf32>
    %1047 = math.exp %1046 : vector<8x128xf32>
    %cst_310 = arith.constant 1.000000e+00 : f32
    %1048 = vector.broadcast %cst_310 : f32 to vector<8x128xf32>
    %1049 = arith.addf %1048, %1047 : vector<8x128xf32>
    %1050 = arith.divf %1048, %1049 : vector<8x128xf32>
    %1051 = vector.extract_strided_slice %1044 {offsets = [0, 128], sizes = [8, 128], strides = [1, 1]} : vector<8x512xf32> to vector<8x128xf32>
    %1052 = arith.negf %1051 : vector<8x128xf32>
    %1053 = math.exp %1052 : vector<8x128xf32>
    %cst_311 = arith.constant 1.000000e+00 : f32
    %1054 = vector.broadcast %cst_311 : f32 to vector<8x128xf32>
    %1055 = arith.addf %1054, %1053 : vector<8x128xf32>
    %1056 = arith.divf %1054, %1055 : vector<8x128xf32>
    %1057 = vector.extract_strided_slice %1044 {offsets = [0, 256], sizes = [8, 128], strides = [1, 1]} : vector<8x512xf32> to vector<8x128xf32>
    %1058 = math.tanh %1057 : vector<8x128xf32>
    %1059 = vector.extract_strided_slice %1044 {offsets = [0, 384], sizes = [8, 128], strides = [1, 1]} : vector<8x512xf32> to vector<8x128xf32>
    %1060 = arith.negf %1059 : vector<8x128xf32>
    %1061 = math.exp %1060 : vector<8x128xf32>
    %cst_312 = arith.constant 1.000000e+00 : f32
    %1062 = vector.broadcast %cst_312 : f32 to vector<8x128xf32>
    %1063 = arith.addf %1062, %1061 : vector<8x128xf32>
    %1064 = arith.divf %1062, %1063 : vector<8x128xf32>
    %1065 = arith.mulf %1056, %1031 : vector<8x128xf32>
    %1066 = arith.mulf %1050, %1058 : vector<8x128xf32>
    %1067 = arith.addf %1065, %1066 : vector<8x128xf32>
    %1068 = math.tanh %1067 : vector<8x128xf32>
    %1069 = arith.mulf %1064, %1068 : vector<8x128xf32>
    %1070 = arith.index_cast %1038 : i32 to index
    %c0_313 = arith.constant 0 : index
    %c128_314 = arith.constant 128 : index
    %1071 = vector.load %arg21[%1070, %c0_313, %c128_314] : memref<8x8x256xf32, #tpu.memory_space<vmem>>, vector<1x8x128xf32>
    %1072 = vector.shape_cast %1071 : vector<1x8x128xf32> to vector<8x128xf32>
    %1073 = vector.shape_cast %1069 : vector<8x128xf32> to vector<1x8x128xf32>
    tpu.vector_store %arg21[%1070, %c0_313, %c128_314], %1073 {strides = array<i32>} : memref<8x8x256xf32, #tpu.memory_space<vmem>>, vector<1x8x128xf32>,
    %c5_i32_315 = arith.constant 5 : i32
    %c7_i32_316 = arith.constant 7 : i32
    %1074 = arith.subi %c7_i32_316, %c5_i32_315 : i32
    %1075 = arith.index_cast %1074 : i32 to index
    %c0_317 = arith.constant 0 : index
    %c0_318 = arith.constant 0 : index
    %1076 = vector.load %arg19[%1075, %c0_317, %c0_318] : memref<8x8x512xf32, #tpu.memory_space<vmem>>, vector<1x8x512xf32>
    %1077 = vector.shape_cast %1076 : vector<1x8x512xf32> to vector<8x512xf32>
    %1078 = arith.truncf %1069 : vector<8x128xf32> to vector<8x128xbf16>
    %cst_319 = arith.constant dense<0.000000e+00> : vector<8x512xf32>
    %1079 = tpu.matmul %1078, %892, %cst_319 {dimension_numbers = #tpu.dot_dimension_numbers<[1], [0], [0], [1], [0, 0, 1, 1], [], []>} : vector<8x128xbf16>, vector<128x512xbf16>, vector<8x512xf32> -> vector<8x512xf32>
    %1080 = arith.addf %1077, %1079 : vector<8x512xf32>
    %1081 = vector.extract_strided_slice %1080 {offsets = [0, 0], sizes = [8, 128], strides = [1, 1]} : vector<8x512xf32> to vector<8x128xf32>
    %1082 = arith.negf %1081 : vector<8x128xf32>
    %1083 = math.exp %1082 : vector<8x128xf32>
    %cst_320 = arith.constant 1.000000e+00 : f32
    %1084 = vector.broadcast %cst_320 : f32 to vector<8x128xf32>
    %1085 = arith.addf %1084, %1083 : vector<8x128xf32>
    %1086 = arith.divf %1084, %1085 : vector<8x128xf32>
    %1087 = vector.extract_strided_slice %1080 {offsets = [0, 128], sizes = [8, 128], strides = [1, 1]} : vector<8x512xf32> to vector<8x128xf32>
    %1088 = arith.negf %1087 : vector<8x128xf32>
    %1089 = math.exp %1088 : vector<8x128xf32>
    %cst_321 = arith.constant 1.000000e+00 : f32
    %1090 = vector.broadcast %cst_321 : f32 to vector<8x128xf32>
    %1091 = arith.addf %1090, %1089 : vector<8x128xf32>
    %1092 = arith.divf %1090, %1091 : vector<8x128xf32>
    %1093 = vector.extract_strided_slice %1080 {offsets = [0, 256], sizes = [8, 128], strides = [1, 1]} : vector<8x512xf32> to vector<8x128xf32>
    %1094 = math.tanh %1093 : vector<8x128xf32>
    %1095 = vector.extract_strided_slice %1080 {offsets = [0, 384], sizes = [8, 128], strides = [1, 1]} : vector<8x512xf32> to vector<8x128xf32>
    %1096 = arith.negf %1095 : vector<8x128xf32>
    %1097 = math.exp %1096 : vector<8x128xf32>
    %cst_322 = arith.constant 1.000000e+00 : f32
    %1098 = vector.broadcast %cst_322 : f32 to vector<8x128xf32>
    %1099 = arith.addf %1098, %1097 : vector<8x128xf32>
    %1100 = arith.divf %1098, %1099 : vector<8x128xf32>
    %1101 = arith.mulf %1092, %1067 : vector<8x128xf32>
    %1102 = arith.mulf %1086, %1094 : vector<8x128xf32>
    %1103 = arith.addf %1101, %1102 : vector<8x128xf32>
    %1104 = math.tanh %1103 : vector<8x128xf32>
    %1105 = arith.mulf %1100, %1104 : vector<8x128xf32>
    %1106 = arith.index_cast %1074 : i32 to index
    %c0_323 = arith.constant 0 : index
    %c128_324 = arith.constant 128 : index
    %1107 = vector.load %arg21[%1106, %c0_323, %c128_324] : memref<8x8x256xf32, #tpu.memory_space<vmem>>, vector<1x8x128xf32>
    %1108 = vector.shape_cast %1107 : vector<1x8x128xf32> to vector<8x128xf32>
    %1109 = vector.shape_cast %1105 : vector<8x128xf32> to vector<1x8x128xf32>
    tpu.vector_store %arg21[%1106, %c0_323, %c128_324], %1109 {strides = array<i32>} : memref<8x8x256xf32, #tpu.memory_space<vmem>>, vector<1x8x128xf32>,
    %c6_i32_325 = arith.constant 6 : i32
    %c7_i32_326 = arith.constant 7 : i32
    %1110 = arith.subi %c7_i32_326, %c6_i32_325 : i32
    %1111 = arith.index_cast %1110 : i32 to index
    %c0_327 = arith.constant 0 : index
    %c0_328 = arith.constant 0 : index
    %1112 = vector.load %arg19[%1111, %c0_327, %c0_328] : memref<8x8x512xf32, #tpu.memory_space<vmem>>, vector<1x8x512xf32>
    %1113 = vector.shape_cast %1112 : vector<1x8x512xf32> to vector<8x512xf32>
    %1114 = arith.truncf %1105 : vector<8x128xf32> to vector<8x128xbf16>
    %cst_329 = arith.constant dense<0.000000e+00> : vector<8x512xf32>
    %1115 = tpu.matmul %1114, %892, %cst_329 {dimension_numbers = #tpu.dot_dimension_numbers<[1], [0], [0], [1], [0, 0, 1, 1], [], []>} : vector<8x128xbf16>, vector<128x512xbf16>, vector<8x512xf32> -> vector<8x512xf32>
    %1116 = arith.addf %1113, %1115 : vector<8x512xf32>
    %1117 = vector.extract_strided_slice %1116 {offsets = [0, 0], sizes = [8, 128], strides = [1, 1]} : vector<8x512xf32> to vector<8x128xf32>
    %1118 = arith.negf %1117 : vector<8x128xf32>
    %1119 = math.exp %1118 : vector<8x128xf32>
    %cst_330 = arith.constant 1.000000e+00 : f32
    %1120 = vector.broadcast %cst_330 : f32 to vector<8x128xf32>
    %1121 = arith.addf %1120, %1119 : vector<8x128xf32>
    %1122 = arith.divf %1120, %1121 : vector<8x128xf32>
    %1123 = vector.extract_strided_slice %1116 {offsets = [0, 128], sizes = [8, 128], strides = [1, 1]} : vector<8x512xf32> to vector<8x128xf32>
    %1124 = arith.negf %1123 : vector<8x128xf32>
    %1125 = math.exp %1124 : vector<8x128xf32>
    %cst_331 = arith.constant 1.000000e+00 : f32
    %1126 = vector.broadcast %cst_331 : f32 to vector<8x128xf32>
    %1127 = arith.addf %1126, %1125 : vector<8x128xf32>
    %1128 = arith.divf %1126, %1127 : vector<8x128xf32>
    %1129 = vector.extract_strided_slice %1116 {offsets = [0, 256], sizes = [8, 128], strides = [1, 1]} : vector<8x512xf32> to vector<8x128xf32>
    %1130 = math.tanh %1129 : vector<8x128xf32>
    %1131 = vector.extract_strided_slice %1116 {offsets = [0, 384], sizes = [8, 128], strides = [1, 1]} : vector<8x512xf32> to vector<8x128xf32>
    %1132 = arith.negf %1131 : vector<8x128xf32>
    %1133 = math.exp %1132 : vector<8x128xf32>
    %cst_332 = arith.constant 1.000000e+00 : f32
    %1134 = vector.broadcast %cst_332 : f32 to vector<8x128xf32>
    %1135 = arith.addf %1134, %1133 : vector<8x128xf32>
    %1136 = arith.divf %1134, %1135 : vector<8x128xf32>
    %1137 = arith.mulf %1128, %1103 : vector<8x128xf32>
    %1138 = arith.mulf %1122, %1130 : vector<8x128xf32>
    %1139 = arith.addf %1137, %1138 : vector<8x128xf32>
    %1140 = math.tanh %1139 : vector<8x128xf32>
    %1141 = arith.mulf %1136, %1140 : vector<8x128xf32>
    %1142 = arith.index_cast %1110 : i32 to index
    %c0_333 = arith.constant 0 : index
    %c128_334 = arith.constant 128 : index
    %1143 = vector.load %arg21[%1142, %c0_333, %c128_334] : memref<8x8x256xf32, #tpu.memory_space<vmem>>, vector<1x8x128xf32>
    %1144 = vector.shape_cast %1143 : vector<1x8x128xf32> to vector<8x128xf32>
    %1145 = vector.shape_cast %1141 : vector<8x128xf32> to vector<1x8x128xf32>
    tpu.vector_store %arg21[%1142, %c0_333, %c128_334], %1145 {strides = array<i32>} : memref<8x8x256xf32, #tpu.memory_space<vmem>>, vector<1x8x128xf32>,
    %c7_i32_335 = arith.constant 7 : i32
    %c7_i32_336 = arith.constant 7 : i32
    %1146 = arith.subi %c7_i32_336, %c7_i32_335 : i32
    %1147 = arith.index_cast %1146 : i32 to index
    %c0_337 = arith.constant 0 : index
    %c0_338 = arith.constant 0 : index
    %1148 = vector.load %arg19[%1147, %c0_337, %c0_338] : memref<8x8x512xf32, #tpu.memory_space<vmem>>, vector<1x8x512xf32>
    %1149 = vector.shape_cast %1148 : vector<1x8x512xf32> to vector<8x512xf32>
    %1150 = arith.truncf %1141 : vector<8x128xf32> to vector<8x128xbf16>
    %cst_339 = arith.constant dense<0.000000e+00> : vector<8x512xf32>
    %1151 = tpu.matmul %1150, %892, %cst_339 {dimension_numbers = #tpu.dot_dimension_numbers<[1], [0], [0], [1], [0, 0, 1, 1], [], []>} : vector<8x128xbf16>, vector<128x512xbf16>, vector<8x512xf32> -> vector<8x512xf32>
    %1152 = arith.addf %1149, %1151 : vector<8x512xf32>
    %1153 = vector.extract_strided_slice %1152 {offsets = [0, 0], sizes = [8, 128], strides = [1, 1]} : vector<8x512xf32> to vector<8x128xf32>
    %1154 = arith.negf %1153 : vector<8x128xf32>
    %1155 = math.exp %1154 : vector<8x128xf32>
    %cst_340 = arith.constant 1.000000e+00 : f32
    %1156 = vector.broadcast %cst_340 : f32 to vector<8x128xf32>
    %1157 = arith.addf %1156, %1155 : vector<8x128xf32>
    %1158 = arith.divf %1156, %1157 : vector<8x128xf32>
    %1159 = vector.extract_strided_slice %1152 {offsets = [0, 128], sizes = [8, 128], strides = [1, 1]} : vector<8x512xf32> to vector<8x128xf32>
    %1160 = arith.negf %1159 : vector<8x128xf32>
    %1161 = math.exp %1160 : vector<8x128xf32>
    %cst_341 = arith.constant 1.000000e+00 : f32
    %1162 = vector.broadcast %cst_341 : f32 to vector<8x128xf32>
    %1163 = arith.addf %1162, %1161 : vector<8x128xf32>
    %1164 = arith.divf %1162, %1163 : vector<8x128xf32>
    %1165 = vector.extract_strided_slice %1152 {offsets = [0, 256], sizes = [8, 128], strides = [1, 1]} : vector<8x512xf32> to vector<8x128xf32>
    %1166 = math.tanh %1165 : vector<8x128xf32>
    %1167 = vector.extract_strided_slice %1152 {offsets = [0, 384], sizes = [8, 128], strides = [1, 1]} : vector<8x512xf32> to vector<8x128xf32>
    %1168 = arith.negf %1167 : vector<8x128xf32>
    %1169 = math.exp %1168 : vector<8x128xf32>
    %cst_342 = arith.constant 1.000000e+00 : f32
    %1170 = vector.broadcast %cst_342 : f32 to vector<8x128xf32>
    %1171 = arith.addf %1170, %1169 : vector<8x128xf32>
    %1172 = arith.divf %1170, %1171 : vector<8x128xf32>
    %1173 = arith.mulf %1164, %1139 : vector<8x128xf32>
    %1174 = arith.mulf %1158, %1166 : vector<8x128xf32>
    %1175 = arith.addf %1173, %1174 : vector<8x128xf32>
    %1176 = math.tanh %1175 : vector<8x128xf32>
    %1177 = arith.mulf %1172, %1176 : vector<8x128xf32>
    %1178 = arith.index_cast %1146 : i32 to index
    %c0_343 = arith.constant 0 : index
    %c128_344 = arith.constant 128 : index
    %1179 = vector.load %arg21[%1178, %c0_343, %c128_344] : memref<8x8x256xf32, #tpu.memory_space<vmem>>, vector<1x8x128xf32>
    %1180 = vector.shape_cast %1179 : vector<1x8x128xf32> to vector<8x128xf32>
    %1181 = vector.shape_cast %1177 : vector<8x128xf32> to vector<1x8x128xf32>
    tpu.vector_store %arg21[%1178, %c0_343, %c128_344], %1181 {strides = array<i32>} : memref<8x8x256xf32, #tpu.memory_space<vmem>>, vector<1x8x128xf32>,
    %c8_i32_345 = arith.constant 8 : i32
    %c0_346 = arith.constant 0 : index
    %c0_347 = arith.constant 0 : index
    %c0_348 = arith.constant 0 : index
    %1182 = vector.load %arg21[%c0_346, %c0_347, %c0_348] : memref<8x8x256xf32, #tpu.memory_space<vmem>>, vector<8x8x256xf32>
    %c0_349 = arith.constant 0 : index
    %c0_350 = arith.constant 0 : index
    %1183 = vector.load %arg13[%c0_349, %c0_350] : memref<1x256xf32, #tpu.memory_space<vmem>>, vector<1x256xf32>
    %1184 = vector.shape_cast %1183 : vector<1x256xf32> to vector<1x1x256xf32>
    %1185 = vector.broadcast %1184 : vector<1x1x256xf32> to vector<8x8x256xf32>
    %1186 = arith.mulf %1182, %1185 : vector<8x8x256xf32>
    %cst_351 = arith.constant dense<0.000000e+00> : vector<8x8xf32>
    %1187 = vector.multi_reduction <add>, %1186, %cst_351 [2] : vector<8x8x256xf32> to vector<8x8xf32>
    %1188 = vector.shape_cast %1187 : vector<8x8xf32> to vector<8x8x1xf32>
    %cst_352 = arith.constant dense<0xFF800000> : vector<8x1xf32>
    %1189 = vector.multi_reduction <maximumf>, %1188, %cst_352 [0] : vector<8x8x1xf32> to vector<8x1xf32>
    %1190 = vector.shape_cast %1189 : vector<8x1xf32> to vector<1x8x1xf32>
    %1191 = vector.broadcast %1190 : vector<1x8x1xf32> to vector<8x8x1xf32>
    %1192 = arith.subf %1188, %1191 : vector<8x8x1xf32>
    %1193 = math.exp %1192 : vector<8x8x1xf32>
    %cst_353 = arith.constant dense<0.000000e+00> : vector<8x1xf32>
    %1194 = vector.multi_reduction <add>, %1193, %cst_353 [0] : vector<8x8x1xf32> to vector<8x1xf32>
    %1195 = vector.shape_cast %1194 : vector<8x1xf32> to vector<1x8x1xf32>
    %1196 = tpu.reciprocal %1195 {approx = true} : vector<1x8x1xf32> -> vector<1x8x1xf32>
    %1197 = vector.broadcast %1196 : vector<1x8x1xf32> to vector<8x8x1xf32>
    %1198 = arith.mulf %1193, %1197 : vector<8x8x1xf32>
    %1199 = vector.broadcast %1198 : vector<8x8x1xf32> to vector<8x8x256xf32>
    %1200 = arith.mulf %1182, %1199 : vector<8x8x256xf32>
    %cst_354 = arith.constant dense<0.000000e+00> : vector<8x256xf32>
    %1201 = vector.multi_reduction <add>, %1200, %cst_354 [0] : vector<8x8x256xf32> to vector<8x256xf32>
    %1202 = arith.truncf %1201 : vector<8x256xf32> to vector<8x256xbf16>
    %c0_355 = arith.constant 0 : index
    %c0_356 = arith.constant 0 : index
    %1203 = vector.load %arg14[%c0_355, %c0_356] : memref<256x128xbf16, #tpu.memory_space<vmem>>, vector<256x128xbf16>
    %cst_357 = arith.constant dense<0.000000e+00> : vector<8x128xf32>
    %1204 = tpu.matmul %1202, %1203, %cst_357 {dimension_numbers = #tpu.dot_dimension_numbers<[1], [0], [0], [1], [0, 0, 1, 1], [], []>} : vector<8x256xbf16>, vector<256x128xbf16>, vector<8x128xf32> -> vector<8x128xf32>
    %c0_358 = arith.constant 0 : index
    %c0_359 = arith.constant 0 : index
    %1205 = vector.load %arg15[%c0_358, %c0_359] : memref<1x128xf32, #tpu.memory_space<vmem>>, vector<1x128xf32>
    %1206 = vector.broadcast %1205 : vector<1x128xf32> to vector<8x128xf32>
    %1207 = arith.addf %1204, %1206 : vector<8x128xf32>
    %cst_360 = arith.constant 0.000000e+00 : f32
    %1208 = vector.broadcast %cst_360 : f32 to vector<8x128xf32>
    %1209 = arith.maximumf %1207, %1208 : vector<8x128xf32>
    %1210 = arith.truncf %1209 : vector<8x128xf32> to vector<8x128xbf16>
    %c0_361 = arith.constant 0 : index
    %c0_362 = arith.constant 0 : index
    %1211 = vector.load %arg16[%c0_361, %c0_362] : memref<128x2xbf16, #tpu.memory_space<vmem>>, vector<128x2xbf16>
    %cst_363 = arith.constant dense<0.000000e+00> : vector<8x2xf32>
    %1212 = tpu.matmul %1210, %1211, %cst_363 {dimension_numbers = #tpu.dot_dimension_numbers<[1], [0], [0], [1], [0, 0, 1, 1], [], []>} : vector<8x128xbf16>, vector<128x2xbf16>, vector<8x2xf32> -> vector<8x2xf32>
    %c0_364 = arith.constant 0 : index
    %c0_365 = arith.constant 0 : index
    %1213 = vector.load %arg17[%c0_364, %c0_365] : memref<1x2xf32, #tpu.memory_space<vmem>>, vector<1x2xf32>
    %1214 = vector.broadcast %1213 : vector<1x2xf32> to vector<8x2xf32>
    %1215 = arith.addf %1212, %1214 : vector<8x2xf32>
    %cst_366 = arith.constant dense<0xFF800000> : vector<8xf32>
    %1216 = vector.multi_reduction <maximumf>, %1215, %cst_366 [1] : vector<8x2xf32> to vector<8xf32>
    %1217 = vector.shape_cast %1216 : vector<8xf32> to vector<8x1xf32>
    %1218 = vector.broadcast %1217 : vector<8x1xf32> to vector<8x2xf32>
    %1219 = arith.subf %1215, %1218 : vector<8x2xf32>
    %1220 = math.exp %1219 : vector<8x2xf32>
    %cst_367 = arith.constant dense<0.000000e+00> : vector<8xf32>
    %1221 = vector.multi_reduction <add>, %1220, %cst_367 [1] : vector<8x2xf32> to vector<8xf32>
    %1222 = vector.shape_cast %1221 : vector<8xf32> to vector<8x1xf32>
    %1223 = vector.broadcast %1222 : vector<8x1xf32> to vector<8x2xf32>
    %1224 = arith.divf %1220, %1223 : vector<8x2xf32>
    %c0_368 = arith.constant 0 : index
    %c0_369 = arith.constant 0 : index
    %1225 = vector.load %arg18[%c0_368, %c0_369] : memref<8x2xf32, #tpu.memory_space<vmem>>, vector<8x2xf32>
    tpu.vector_store %arg18[%c0_368, %c0_369], %1224 {strides = array<i32>} : memref<8x2xf32, #tpu.memory_space<vmem>>, vector<8x2xf32>,
    return
  }
}

</mosaic_0001>

<bundles_post_ra>
// kernel: forward.1
= control target key start
LH: loop header
LB: loop body
LE: loop exit
PB: predicated region body
PF: predicated region fallthrough
CT: control target
= control target key end

     0   :  { %s13024_s0 = inlined_call_operand.vmem [shape: f32[8,8,64], index: 0, kind: input, shape index: {}]   ;;  %s13025_s1 = inlined_call_operand.hbm [shape: bf16[64,512], index: 1, kind: input, shape index: {}]   ;;  %s13026_s2 = inlined_call_operand.vmem [shape: bf16[128,512], index: 2, kind: input, shape index: {}]   ;;  %s13027_s3 = inlined_call_operand.vmem [shape: f32[1,512], index: 3, kind: input, shape index: {}]   ;;  %s13028_s4 = inlined_call_operand.hbm [shape: bf16[64,512], index: 4, kind: input, shape index: {}]   ;;  %s13029_s5 = inlined_call_operand.hbm [shape: bf16[128,512], index: 5, kind: input, shape index: {}]   ;;  %s13030_s6 = inlined_call_operand.vmem [shape: f32[1,512], index: 6, kind: input, shape index: {}]   ;;  %s13031_s7 = inlined_call_operand.vmem [shape: bf16[256,512], index: 7, kind: input, shape index: {}]   ;;  %s13032_s8 = inlined_call_operand.hbm [shape: bf16[128,512], index: 8, kind: input, shape index: {}]   ;;  %s13033_s9 = inlined_call_operand.vmem [shape: f32[1,512], index: 9, kind: input, shape index: {}]   ;;  %s13034_s10 = inlined_call_operand.hbm [shape: bf16[256,512], index: 10, kind: input, shape index: {}]   ;;  %s13035_s11 = inlined_call_operand.hbm [shape: bf16[128,512], index: 11, kind: input, shape index: {}]   ;;  %s13036_s12 = inlined_call_operand.vmem [shape: f32[1,512], index: 12, kind: input, shape index: {}]   ;;  %s13037_s13 = inlined_call_operand.vmem [shape: f32[1,256], index: 13, kind: input, shape index: {}]   ;;  %s13038_s14 = inlined_call_operand.hbm [shape: bf16[256,128], index: 14, kind: input, shape index: {}]   ;;  %s13039_s15 = inlined_call_operand.vmem [shape: f32[1,128], index: 15, kind: input, shape index: {}]   ;;  %s13040_s16 = inlined_call_operand.vmem [shape: bf16[128,2], index: 16, kind: input, shape index: {}]   ;;  %s13041_s17 = inlined_call_operand.vmem [shape: f32[1,2], index: 17, kind: input, shape index: {}]   ;;  %s13042_s18 = inlined_call_operand.vmem [shape: f32[8,2], index: 18, kind: output, shape index: {}]  }
   0x1   :  { %13110 = sst [smem:[#allocation68_spill]] %s13024_s0 }
   0x2   :  { %13111 = sst [smem:[#allocation69_spill]] %s13025_s1 }
   0x3   :  { %13112 = sst [smem:[#allocation70_spill]] %s13026_s2 }
   0x4   :  { %23 = vsyncpa [#allocation6], 0 }
   0x5   :  { %24 = vsyncpa [#allocation8], 0 }
   0x6   :  { %25 = vsyncpa [#allocation11], 0 }
   0x7   :  { %26 = vsyncpa [#allocation14], 0  ;;  %s50_s29 = sshll.u32 %s13028_s4, 4  ;;  %s9655_s30 = smov [#allocation7]   ;;  %s51_s29 = int_to_ptr.hbm [resolvable:$true] %s50_s29 }
   0x8   :  { %s52_s0 = sshll.u32 %s9655_s30, 4  ;;  %s80_s20 = sshll.u32 %s13032_s8, 4  ;;  %s53_s0 = int_to_ptr.vmem [resolvable:$true] %s52_s0  ;;  %s81_s20 = int_to_ptr.hbm [resolvable:$true] %s80_s20 }
   0x9   :  { %s9656_s21 = smov 256   ;;  %s9657_s22 = smov 16  }
   0xa   :  { %58 = dma.hbm_to_vmem [thread:$0]  %s51_s29, 2048, %s53_s0, [#allocation8], %s9656_s21, %s9656_s21, %s9657_s22  }
   0xb   :  { %s9658_s2 = smov [#allocation10]   ;;  %s108_s4 = sshll.u32 %s13035_s11, 4  ;;  %s109_s4 = int_to_ptr.hbm [resolvable:$true] %s108_s4 }
   0xc   :  { %s82_s23 = sshll.u32 %s9658_s2, 4  ;;  %s13113_s27 = sld [smem:[#allocation69_spill]]  ;;  %s83_s23 = int_to_ptr.vmem [resolvable:$true] %s82_s23 }
   0xd   :  { %88 = dma.hbm_to_vmem [thread:$0]  %s81_s20, 4096, %s83_s23, [#allocation11], %s9656_s21, %s9656_s21, %s9657_s22  }
   0xe   :  { %s9659_s30 = smov [#allocation13]   ;;  %s9660_s29 = smov [#allocation5]  }
   0xf   :  { %s110_s19 = sshll.u32 %s9659_s30, 4  ;;  %s35_s11 = sshll.u32 %s9660_s29, 4  ;;  %s111_s19 = int_to_ptr.vmem [resolvable:$true] %s110_s19  ;;  %s36_s11 = int_to_ptr.vmem [resolvable:$true] %s35_s11 }
  0x10   :  { %116 = dma.hbm_to_vmem [thread:$0]  %s109_s4, 4096, %s111_s19, [#allocation14], %s9656_s21, %s9656_s21, %s9657_s22  }
  0x11   :  { %s63_s2 = sshll.u32 %s13029_s5, 4  ;;  %s95_s24 = sshll.u32 %s13034_s10, 4  ;;  %s64_s2 = int_to_ptr.hbm [resolvable:$true] %s63_s2  ;;  %s96_s24 = int_to_ptr.hbm [resolvable:$true] %s95_s24 }
  0x12   :  { %s33_s28 = sshll.u32 %s13113_s27, 4  ;;  %s9661_s25 = smov [#allocation9]   ;;  %s34_s28 = int_to_ptr.hbm [resolvable:$true] %s33_s28 }
  0x13   :  { %41 = dma.hbm_to_vmem [thread:$0]  %s34_s28, 2048, %s36_s11, [#allocation6], %s9656_s21, %s9656_s21, %s9657_s22  }
  0x14   :  { %s65_s8 = sshll.u32 %s9661_s25, 4  ;;  %s9662_s4 = smov [#allocation12]   ;;  %s66_s8 = int_to_ptr.vmem [resolvable:$true] %s65_s8 }
  0x15   :  { %71 = dma.hbm_to_vmem [thread:$0]  %s64_s2, 4096, %s66_s8, [#allocation8], %s9656_s21, %s9656_s21, %s9657_s22  }
  0x16   :  { %s97_s5 = sshll.u32 %s9662_s4, 4  ;;  %s125_s30 = sshll.u32 %s13038_s14, 4  ;;  %s98_s5 = int_to_ptr.vmem [resolvable:$true] %s97_s5  ;;  %s126_s30 = int_to_ptr.hbm [resolvable:$true] %s125_s30 }
  0x17   :  { %103 = dma.hbm_to_vmem [thread:$0]  %s96_s24, 8192, %s98_s5, [#allocation11], %s9656_s21, %s9656_s21, %s9657_s22  }
  0x18   :  { %s9663_s10 = smov [#allocation15]   ;;  %s9664_s19 = smov 64  }
  0x19   :  { %s127_s28 = sshll.u32 %s9663_s10, 4  ;;  %s9665_s29 = smov 4   ;;  %s128_s28 = int_to_ptr.vmem [resolvable:$true] %s127_s28 }
  0x1a   :  { %133 = dma.hbm_to_vmem [thread:$0]  %s126_s30, 2048, %s128_s28, [#allocation14], %s9664_s19, %s9664_s19, %s9665_s29  }
  0x1b   :  { %9647 = dma.done.wait [#allocation6], 2048  }
  0x1c   :  { %9648 = vsyncadd [#allocation6], 4294965248 }
  0x1d   :  { %9649 = dma.done.wait [#allocation8], 6144  }
  0x1e   :  { %9650 = vsyncadd [#allocation8], 4294961152 }
  0x1f   :  { %9651 = dma.done.wait [#allocation11], 12288  }
  0x20   :  { %9652 = vsyncadd [#allocation11], 4294955008 }
  0x21   :  { %9653 = dma.done.wait [#allocation14], 6144  }
  0x22   :  { %9654 = vsyncadd [#allocation14], 4294961152  ;;  %v7293_v0 = vld [vmem:[#allocation5 + $0x60] sm:$0xf]  ;;  %v8633_v1 = vld [vmem:[#allocation5 + $0x6c] sm:$0xf0] }
  0x23   :  { %v8631_v2 = vld [vmem:[#allocation5 + $0x64] sm:$0xf]  ;;  %v7294_v3 = vor.u32 %v8633_v1, %v7293_v0  ;;  %v7295_v4 = vld [vmem:[#allocation5 + $0x70] sm:$0xf0]  ;;  %v7301_v5 = vld [vmem:[#allocation5 + $0x68] sm:$0xf] }
  0x24   :  { %v8634_v6 = vld [vmem:[#allocation5 + $0x74] sm:$0xf0]  ;;  %v7298_v7 = vor.u32 %v8631_v2, %v7295_v4  ;;  %v8632_v9 = vld [vmem:[#allocation5 + $0x6c] sm:$0xf]  ;;  %v7303_v10 = vld [vmem:[#allocation5 + $0x78] sm:$0xf0] }
  0x25   :  { %v7302_v8 = vor.u32 %v8634_v6, %v7301_v5  ;;  %v7277_v11 = vld [vmem:[#allocation5 + $0x40] sm:$0xf]  ;;  %304 = vmatpush.bf16.msra.mxu0 %v7294_v3  ;;  %v7306_v12 = vor.u32 %v8632_v9, %v7303_v10  ;;  %v8629_v13 = vld [vmem:[#allocation5 + $0x4c] sm:$0xf0]  ;;  %v8627_v14 = vld [vmem:[#allocation5 + $0x44] sm:$0xf] }
  0x26   :  { %v7279_v15 = vld [vmem:[#allocation5 + $0x50] sm:$0xf0]  ;;  %333 = vmatpush.bf16.msra.mxu1 %v7298_v7  ;;  %v7278_v16 = vor.u32 %v8629_v13, %v7277_v11  ;;  %v7285_v18 = vld [vmem:[#allocation5 + $0x48] sm:$0xf]  ;;  %v8630_v19 = vld [vmem:[#allocation5 + $0x54] sm:$0xf0] }
  0x27   :  { %362 = vmatpush.bf16.msra.mxu2 %v7302_v8  ;;  %v7282_v17 = vor.u32 %v8627_v14, %v7279_v15  ;;  %v8628_v20 = vld [vmem:[#allocation5 + $0x4c] sm:$0xf]  ;;  %391 = vmatpush.bf16.msra.mxu3 %v7306_v12  ;;  %v7286_v21 = vor.u32 %v8630_v19, %v7285_v18  ;;  %v7287_v22 = vld [vmem:[#allocation5 + $0x58] sm:$0xf0]  ;;  %v7261_v23 = vld [vmem:[#allocation5 + $0x20] sm:$0xf] }
  0x28   :  { %v8625_v24 = vld [vmem:[#allocation5 + $0x2c] sm:$0xf0]  ;;  %v7290_v25 = vor.u32 %v8628_v20, %v7287_v22  ;;  %v8623_v26 = vld [vmem:[#allocation5 + $0x24] sm:$0xf]  ;;  %v7263_v27 = vld [vmem:[#allocation5 + $0x30] sm:$0xf0] }
  0x29   :  { %v7269_v28 = vld [vmem:[#allocation5 + $0x28] sm:$0xf]  ;;  %305 = vmatpush.bf16.msra.mxu0 %v7278_v16  ;;  %v7262_v29 = vor.u32 %v8625_v24, %v7261_v23  ;;  %v8626_v30 = vld [vmem:[#allocation5 + $0x34] sm:$0xf0]  ;;  %v8624_v31 = vld [vmem:[#allocation5 + $0x2c] sm:$0xf]  ;;  %v7266_v33 = vor.u32 %v8623_v26, %v7263_v27 }
  0x2a   :  { %v7271_v32 = vld [vmem:[#allocation5 + $0x38] sm:$0xf0]  ;;  %334 = vmatpush.bf16.msra.mxu1 %v7282_v17  ;;  %v7270_v34 = vor.u32 %v8626_v30, %v7269_v28  ;;  %v7245_v35 = vld [vmem:[#allocation5] sm:$0xf]  ;;  %v8621_v36 = vld [vmem:[#allocation5 + $0xc] sm:$0xf0] }
  0x2b   :  { %363 = vmatpush.bf16.msra.mxu2 %v7286_v21  ;;  %v8619_v37 = vld [vmem:[#allocation5 + $0x4] sm:$0xf]  ;;  %392 = vmatpush.bf16.msra.mxu3 %v7290_v25  ;;  %v7274_v38 = vor.u32 %v8624_v31, %v7271_v32  ;;  %v7247_v39 = vld [vmem:[#allocation5 + $0x10] sm:$0xf0]  ;;  %v7253_v40 = vld [vmem:[#allocation5 + $0x8] sm:$0xf]  ;;  %v7246_v45 = vor.u32 %v8621_v36, %v7245_v35 }
  0x2c   :  { %v8622_v41 = vld [vmem:[#allocation5 + $0x14] sm:$0xf0]  ;;  %v8620_v42 = vld [vmem:[#allocation5 + $0xc] sm:$0xf]  ;;  %v7255_v43 = vld [vmem:[#allocation5 + $0x18] sm:$0xf0]  ;;  %v7250_v49 = vor.u32 %v8619_v37, %v7247_v39 }
  0x2d   :  { %s13114_s22 = sld [smem:[#allocation68_spill]]  ;;  %306 = vmatpush.bf16.msra.mxu0 %v7262_v29  ;;  %v7254_v50 = vor.u32 %v8622_v41, %v7253_v40  ;;  %v7258_v53 = vor.u32 %v8620_v42, %v7255_v43  ;;  %vm287_vm0 = vcmask 523264  }
  0x2e   :  { %s13115_s20 = sld [smem:[#allocation70_spill]]  ;;  %335 = vmatpush.bf16.msra.mxu1 %v7266_v33 }
  0x2f   :  { %364 = vmatpush.bf16.msra.mxu2 %v7270_v34  ;;  %393 = vmatpush.bf16.msra.mxu3 %v7274_v38 }
  0x31   :  { %307 = vmatpush.bf16.msra.mxu0 %v7246_v45 }
  0x32   :  { %336 = vmatpush.bf16.msra.mxu1 %v7250_v49 }
  0x33   :  { %v169_v44 = vld [vmem:[%s13114_s22] sm:$0xff]  ;;  %v170_v46 = vld [vmem:[%s13114_s22 + $0x8] sm:$0xff]  ;;  %365 = vmatpush.bf16.msra.mxu2 %v7254_v50  ;;  %394 = vmatpush.bf16.msra.mxu3 %v7258_v53  ;;  %v171_v26 = vld [vmem:[%s13114_s22 + $0x10] sm:$0xff] }
  0x34   :  { %v7437_v47 = vld [vmem:[%s13115_s20 + $0xe0] sm:$0xf]  ;;  %v8665_v48 = vld [vmem:[%s13115_s20 + $0xec] sm:$0xf0]  ;;  %v8663_v51 = vld [vmem:[%s13115_s20 + $0xe4] sm:$0xf]  ;;  %v9827_v57 = vpack.c.bf16 %v170_v46, %v169_v44 }
  0x35   :  { %v7439_v52 = vld [vmem:[%s13115_s20 + $0xf0] sm:$0xf0]  ;;  %v9819_v54 = vor.u32 %v8665_v48, %v7437_v47  ;;  %v8664_v55 = vld [vmem:[%s13115_s20 + $0xec] sm:$0xf]  ;;  %v7447_v56 = vld [vmem:[%s13115_s20 + $0xf8] sm:$0xf0] }
  0x36   :  { %13116 = vst [vmem:[#allocation20_spill] sm:$0xff] %v9827_v57  ;;  %v9829_v58 = vor.u32 %v8663_v51, %v7439_v52  ;;  %v7421_v59 = vld [vmem:[%s13115_s20 + $0xc0] sm:$0xf]  ;;  %v8661_v60 = vld [vmem:[%s13115_s20 + $0xcc] sm:$0xf0]  ;;  %v9852_v2 = vor.u32 %v8664_v55, %v7447_v56  ;;  %7307 = vmatmul.msk.bf16.vlgmr.msra.gmra.mxu0 %vm287_vm0, %v9827_v57  ;;  %7311 = vmatmul.msk.bf16.vlgmr.msra.gmra.mxu1 %vm287_vm0, %v9827_v57  ;;  %v172_v36 = vld [vmem:[%s13114_s22 + $0x18] sm:$0xff] }
  0x37   :  { %v8659_v61 = vld [vmem:[%s13115_s20 + $0xc4] sm:$0xf]  ;;  %v7423_v62 = vld [vmem:[%s13115_s20 + $0xd0] sm:$0xf0]  ;;  %v7445_v63 = vld [vmem:[%s13115_s20 + $0xe8] sm:$0xf]  ;;  %644 = vmatpush.bf16.msrb.mxu0 %v9819_v54  ;;  %v9854_v3 = vor.u32 %v8661_v60, %v7421_v59  ;;  %7315 = vmatmul.msk.bf16.vlgmr.msra.gmra.mxu2 %vm287_vm0, %v9827_v57  ;;  %v9987_v45 = vpack.c.bf16 %v172_v36, %v171_v26 }
  0x38   :  { %v8666_v0 = vld [vmem:[%s13115_s20 + $0xf4] sm:$0xf0]  ;;  %v8660_v4 = vld [vmem:[%s13115_s20 + $0xcc] sm:$0xf]  ;;  %v7431_v5 = vld [vmem:[%s13115_s20 + $0xd8] sm:$0xf0]  ;;  %657 = vmatpush.bf16.msrb.mxu1 %v9829_v58  ;;  %v9865_v6 = vor.u32 %v8659_v61, %v7423_v62  ;;  %7319 = vmatmul.msk.bf16.vlgmr.msra.gmra.mxu3 %vm287_vm0, %v9827_v57 }
  0x39   :  { %v9849_v1 = vor.u32 %v8666_v0, %v7445_v63  ;;  %v7405_v7 = vld [vmem:[%s13115_s20 + $0xa0] sm:$0xf]  ;;  %v8657_v8 = vld [vmem:[%s13115_s20 + $0xac] sm:$0xf0]  ;;  %v7429_v9 = vld [vmem:[%s13115_s20 + $0xc8] sm:$0xf]  ;;  %683 = vmatpush.bf16.msrb.mxu3 %v9852_v2  ;;  %v9896_v14 = vor.u32 %v8660_v4, %v7431_v5 }
  0x3a   :  { %v8655_v10 = vld [vmem:[%s13115_s20 + $0xa4] sm:$0xf]  ;;  %v7407_v11 = vld [vmem:[%s13115_s20 + $0xb0] sm:$0xf0]  ;;  %v8662_v12 = vld [vmem:[%s13115_s20 + $0xd4] sm:$0xf0]  ;;  %v9898_v15 = vor.u32 %v8657_v8, %v7405_v7 }
  0x3b   :  { %670 = vmatpush.bf16.msrb.mxu2 %v9849_v1  ;;  %v9892_v13 = vor.u32 %v8662_v12, %v7429_v9  ;;  %645 = vmatpush.bf16.msrb.mxu0 %v9854_v3  ;;  %v8656_v16 = vld [vmem:[%s13115_s20 + $0xac] sm:$0xf]  ;;  %v7413_v17 = vld [vmem:[%s13115_s20 + $0xa8] sm:$0xf]  ;;  %v8658_v18 = vld [vmem:[%s13115_s20 + $0xb4] sm:$0xf0]  ;;  %v9910_v19 = vor.u32 %v8655_v10, %v7407_v11 }
  0x3c   :  { %658 = vmatpush.bf16.msrb.mxu1 %v9865_v6  ;;  %v7415_v20 = vld [vmem:[%s13115_s20 + $0xb8] sm:$0xf0]  ;;  %v7389_v21 = vld [vmem:[%s13115_s20 + $0x80] sm:$0xf]  ;;  %v8653_v22 = vld [vmem:[%s13115_s20 + $0x8c] sm:$0xf0]  ;;  %v9928_v25 = vor.u32 %v8658_v18, %v7413_v17 }
  0x3d   :  { %v8651_v23 = vld [vmem:[%s13115_s20 + $0x84] sm:$0xf]  ;;  %v7391_v24 = vld [vmem:[%s13115_s20 + $0x90] sm:$0xf0]  ;;  %684 = vmatpush.bf16.msrb.mxu3 %v9896_v14  ;;  %v9935_v27 = vor.u32 %v8656_v16, %v7415_v20  ;;  %v9937_v28 = vor.u32 %v8653_v22, %v7389_v21  ;;  %v8652_v29 = vld [vmem:[%s13115_s20 + $0x8c] sm:$0xf] }
  0x3e   :  { %v7397_v30 = vld [vmem:[%s13115_s20 + $0x88] sm:$0xf]  ;;  %v8654_v31 = vld [vmem:[%s13115_s20 + $0x94] sm:$0xf0]  ;;  %v9949_v32 = vor.u32 %v8651_v23, %v7391_v24  ;;  %v7399_v33 = vld [vmem:[%s13115_s20 + $0x98] sm:$0xf0] }
  0x3f   :  { %671 = vmatpush.bf16.msrb.mxu2 %v9892_v13  ;;  %646 = vmatpush.bf16.msrb.mxu0 %v9898_v15  ;;  %v7373_v34 = vld [vmem:[%s13115_s20 + $0x60] sm:$0xf]  ;;  %v8649_v35 = vld [vmem:[%s13115_s20 + $0x6c] sm:$0xf0]  ;;  %v8647_v37 = vld [vmem:[%s13115_s20 + $0x64] sm:$0xf]  ;;  %v9973_v40 = vor.u32 %v8654_v31, %v7397_v30  ;;  %v9977_v41 = vor.u32 %v8652_v29, %v7399_v33 }
  0x40   :  { %659 = vmatpush.bf16.msrb.mxu1 %v9910_v19  ;;  %v7375_v38 = vld [vmem:[%s13115_s20 + $0x70] sm:$0xf0]  ;;  %v8648_v39 = vld [vmem:[%s13115_s20 + $0x6c] sm:$0xf]  ;;  %v9979_v42 = vor.u32 %v8649_v35, %v7373_v34  ;;  %v7381_v43 = vld [vmem:[%s13115_s20 + $0x68] sm:$0xf] }
  0x41   :  { %685 = vmatpush.bf16.msrb.mxu3 %v9935_v27  ;;  %v8650_v44 = vld [vmem:[%s13115_s20 + $0x74] sm:$0xf0]  ;;  %13117 = vst [vmem:[#allocation21_spill] sm:$0xff] %v9987_v45  ;;  %v9990_v46 = vor.u32 %v8647_v37, %v7375_v38  ;;  %v7383_v47 = vld [vmem:[%s13115_s20 + $0x78] sm:$0xf0]  ;;  %v173_v35 = vld [vmem:[%s13114_s22 + $0x20] sm:$0xff] }
  0x42   :  { %v7357_v48 = vld [vmem:[%s13115_s20 + $0x40] sm:$0xf]  ;;  %v8645_v49 = vld [vmem:[%s13115_s20 + $0x4c] sm:$0xf0]  ;;  %v8643_v50 = vld [vmem:[%s13115_s20 + $0x44] sm:$0xf]  ;;  %v10008_v52 = vor.u32 %v8650_v44, %v7381_v43  ;;  %v10012_v53 = vor.u32 %v8648_v39, %v7383_v47 }
  0x43   :  { %672 = vmatpush.bf16.msrb.mxu2 %v9928_v25  ;;  %647 = vmatpush.bf16.msrb.mxu0 %v9937_v28  ;;  %v7359_v51 = vld [vmem:[%s13115_s20 + $0x50] sm:$0xf0]  ;;  %v10014_v55 = vor.u32 %v8645_v49, %v7357_v48  ;;  %v8644_v59 = vld [vmem:[%s13115_s20 + $0x4c] sm:$0xf]  ;;  %v7367_v60 = vld [vmem:[%s13115_s20 + $0x58] sm:$0xf0] }
  0x44   :  { %660 = vmatpush.bf16.msrb.mxu1 %v9949_v32  ;;  %v10019_v56 = vor.u32 %v8643_v50, %v7359_v51  ;;  %v7341_v61 = vld [vmem:[%s13115_s20 + $0x20] sm:$0xf]  ;;  %v8641_v62 = vld [vmem:[%s13115_s20 + $0x2c] sm:$0xf0]  ;;  %v8639_v63 = vld [vmem:[%s13115_s20 + $0x24] sm:$0xf]  ;;  %v10045_v0 = vor.u32 %v8644_v59, %v7367_v60 }
  0x45   :  { %686 = vmatpush.bf16.msrb.mxu3 %v9977_v41  ;;  %v10047_v4 = vor.u32 %v8641_v62, %v7341_v61  ;;  %v7343_v5 = vld [vmem:[%s13115_s20 + $0x30] sm:$0xf0]  ;;  %v7365_v7 = vld [vmem:[%s13115_s20 + $0x48] sm:$0xf]  ;;  %v8646_v8 = vld [vmem:[%s13115_s20 + $0x54] sm:$0xf0] }
  0x46   :  { %7308 = vmatmul.msk.bf16.gmra.mxu0 %vm287_vm0, %v9987_v45  ;;  %7312 = vmatmul.msk.bf16.gmra.mxu1 %vm287_vm0, %v9987_v45  ;;  %v10059_v9 = vor.u32 %v8639_v63, %v7343_v5  ;;  %v10061_v10 = vor.u32 %v8646_v8, %v7365_v7  ;;  %v8640_v11 = vld [vmem:[%s13115_s20 + $0x2c] sm:$0xf]  ;;  %v7351_v12 = vld [vmem:[%s13115_s20 + $0x38] sm:$0xf0]  ;;  %v7325_v16 = vld [vmem:[%s13115_s20] sm:$0xf] }
  0x47   :  { %673 = vmatpush.bf16.msrb.mxu2 %v9973_v40  ;;  %648 = vmatpush.bf16.msrb.mxu0 %v9979_v42  ;;  %v8637_v17 = vld [vmem:[%s13115_s20 + $0xc] sm:$0xf0]  ;;  %v8635_v18 = vld [vmem:[%s13115_s20 + $0x4] sm:$0xf]  ;;  %v7327_v20 = vld [vmem:[%s13115_s20 + $0x10] sm:$0xf0]  ;;  %v10090_v23 = vor.u32 %v8640_v11, %v7351_v12 }
  0x48   :  { %661 = vmatpush.bf16.msrb.mxu1 %v9990_v46  ;;  %7316 = vmatmul.msk.bf16.gmra.mxu2 %vm287_vm0, %v9987_v45  ;;  %v7349_v21 = vld [vmem:[%s13115_s20 + $0x28] sm:$0xf]  ;;  %v8642_v22 = vld [vmem:[%s13115_s20 + $0x34] sm:$0xf0]  ;;  %v10092_v24 = vor.u32 %v8637_v17, %v7325_v16  ;;  %v10103_v31 = vor.u32 %v8635_v18, %v7327_v20  ;;  %v8636_v33 = vld [vmem:[%s13115_s20 + $0xc] sm:$0xf] }
  0x49   :  { %7320 = vmatmul.msk.bf16.gmra.mxu3 %vm287_vm0, %v9987_v45  ;;  %v10094_v26 = vor.u32 %v8642_v22, %v7349_v21  ;;  %v7333_v29 = vld [vmem:[%s13115_s20 + $0x8] sm:$0xf]  ;;  %v8638_v30 = vld [vmem:[%s13115_s20 + $0x14] sm:$0xf0]  ;;  %v7335_v34 = vld [vmem:[%s13115_s20 + $0x18] sm:$0xf0] }
  0x4a   :  { %687 = vmatpush.bf16.msrb.mxu3 %v10012_v53  ;;  %v174_v36 = vld [vmem:[%s13114_s22 + $0x28] sm:$0xff]  ;;  %v10118_v37 = vor.u32 %v8638_v30, %v7333_v29  ;;  %v10122_v38 = vor.u32 %v8636_v33, %v7335_v34  ;;  %v175_v43 = vld [vmem:[%s13114_s22 + $0x30] sm:$0xff]  ;;  %v176_v44 = vld [vmem:[%s13114_s22 + $0x38] sm:$0xff]  ;;  %v13045_v48 = vmov 0  }
  0x4b   :  { %674 = vmatpush.bf16.msrb.mxu2 %v10008_v52  ;;  %649 = vmatpush.bf16.msrb.mxu0 %v10014_v55  ;;  %v10124_v39 = vpack.c.bf16 %v174_v36, %v173_v35  ;;  %v10158_v47 = vpack.c.bf16 %v176_v44, %v175_v43  ;;  %v197_v62 = vld [vmem:[%s13027_s3] sm:$0xf] }
  0x4c   :  { %662 = vmatpush.bf16.msrb.mxu1 %v10019_v56  ;;  %v10230_v63 = vperm.slane %v197_v62, 0  ;;  %v10234_v7 = vperm.slane %v197_v62, 1  ;;  %v10244_v18 = vperm.slane %v197_v62, 2  ;;  %v10246_v20 = vperm.slane %v197_v62, 3 }
  0x4d   :  { %13118 = vst [vmem:[#allocation22_spill] sm:$0xff] %v10124_v39 }
  0x4e   :  { %688 = vmatpush.bf16.msrb.mxu3 %v10045_v0  ;;  %13119 = vst [vmem:[#allocation23_spill] sm:$0xff] %v10158_v47 }
  0x4f   :  { %675 = vmatpush.bf16.msrb.mxu2 %v10061_v10  ;;  %650 = vmatpush.bf16.msrb.mxu0 %v10047_v4 }
  0x50   :  { %663 = vmatpush.bf16.msrb.mxu1 %v10059_v9 }
  0x52   :  { %689 = vmatpush.bf16.msrb.mxu3 %v10090_v23 }
  0x53   :  { %676 = vmatpush.bf16.msrb.mxu2 %v10094_v26  ;;  %651 = vmatpush.bf16.msrb.mxu0 %v10092_v24 }
  0x54   :  { %664 = vmatpush.bf16.msrb.mxu1 %v10103_v31 }
  0x56   :  { %690 = vmatpush.bf16.msrb.mxu3 %v10122_v38  ;;  %7309 = vmatmul.msk.bf16.gmra.mxu0 %vm287_vm0, %v10124_v39 }
  0x57   :  { %770 = vmatpush.bf16.msra.mxu0 %v9819_v54  ;;  %677 = vmatpush.bf16.msrb.mxu2 %v10118_v37 }
  0x58   :  { %783 = vmatpush.bf16.msra.mxu1 %v9829_v58  ;;  %7317 = vmatmul.msk.bf16.gmra.mxu2 %vm287_vm0, %v10124_v39 }
  0x59   :  { %7313 = vmatmul.msk.bf16.gmra.mxu1 %vm287_vm0, %v10124_v39  ;;  %7321 = vmatmul.msk.bf16.gmra.mxu3 %vm287_vm0, %v10124_v39 }
  0x5a   :  { %809 = vmatpush.bf16.msra.mxu3 %v9852_v2 }
  0x5b   :  { %796 = vmatpush.bf16.msra.mxu2 %v9849_v1  ;;  %771 = vmatpush.bf16.msra.mxu0 %v9854_v3 }
  0x5c   :  { %784 = vmatpush.bf16.msra.mxu1 %v9865_v6 }
  0x5e   :  { %810 = vmatpush.bf16.msra.mxu3 %v9896_v14 }
  0x5f   :  { %797 = vmatpush.bf16.msra.mxu2 %v9892_v13  ;;  %772 = vmatpush.bf16.msra.mxu0 %v9898_v15 }
  0x60   :  { %785 = vmatpush.bf16.msra.mxu1 %v9910_v19 }
  0x62   :  { %811 = vmatpush.bf16.msra.mxu3 %v9935_v27 }
  0x63   :  { %798 = vmatpush.bf16.msra.mxu2 %v9928_v25  ;;  %773 = vmatpush.bf16.msra.mxu0 %v9937_v28 }
  0x64   :  { %786 = vmatpush.bf16.msra.mxu1 %v9949_v32 }
  0x66   :  { %812 = vmatpush.bf16.msra.mxu3 %v9977_v41  ;;  %7310 = vmatmul.msk.bf16.gmra.mxu0 %vm287_vm0, %v10158_v47 }
  0x67   :  { %799 = vmatpush.bf16.msra.mxu2 %v9973_v40  ;;  %774 = vmatpush.bf16.msra.mxu0 %v9979_v42 }
  0x68   :  { %787 = vmatpush.bf16.msra.mxu1 %v9990_v46  ;;  %7318 = vmatmul.msk.bf16.gmra.mxu2 %vm287_vm0, %v10158_v47 }
  0x69   :  { %7314 = vmatmul.msk.bf16.gmra.mxu1 %vm287_vm0, %v10158_v47  ;;  %7322 = vmatmul.msk.bf16.gmra.mxu3 %vm287_vm0, %v10158_v47 }
  0x6a   :  { %813 = vmatpush.bf16.msra.mxu3 %v10012_v53 }
  0x6b   :  { %800 = vmatpush.bf16.msra.mxu2 %v10008_v52  ;;  %775 = vmatpush.bf16.msra.mxu0 %v10014_v55 }
  0x6c   :  { %788 = vmatpush.bf16.msra.mxu1 %v10019_v56 }
  0x6e   :  { %814 = vmatpush.bf16.msra.mxu3 %v10045_v0 }
  0x6f   :  { %801 = vmatpush.bf16.msra.mxu2 %v10061_v10  ;;  %776 = vmatpush.bf16.msra.mxu0 %v10047_v4 }
  0x70   :  { %789 = vmatpush.bf16.msra.mxu1 %v10059_v9 }
  0x72   :  { %815 = vmatpush.bf16.msra.mxu3 %v10090_v23 }
  0x73   :  { %802 = vmatpush.bf16.msra.mxu2 %v10094_v26  ;;  %777 = vmatpush.bf16.msra.mxu0 %v10092_v24 }
  0x74   :  { %790 = vmatpush.bf16.msra.mxu1 %v10103_v31 }
  0x76   :  { %816 = vmatpush.bf16.msra.mxu3 %v10122_v38  ;;  %652 = vmatmul.bf16.vlgmr.msrb.gmra.mxu0 %v13045_v48 }
  0x77   :  { %803 = vmatpush.bf16.msra.mxu2 %v10118_v37  ;;  %897 = vmatpush.bf16.msrb.mxu0 %v9819_v54 }
  0x78   :  { %678 = vmatmul.bf16.vlgmr.msrb.gmra.mxu2 %v13045_v48 }
  0x79   :  { %665 = vmatmul.bf16.vlgmr.msrb.gmra.mxu1 %v13045_v48  ;;  %691 = vmatmul.bf16.vlgmr.msrb.gmra.mxu3 %v13045_v48 }
  0x7a   :  { %910 = vmatpush.bf16.msrb.mxu1 %v9829_v58  ;;  %936 = vmatpush.bf16.msrb.mxu3 %v9852_v2 }
  0x7b   :  { %923 = vmatpush.bf16.msrb.mxu2 %v9849_v1  ;;  %898 = vmatpush.bf16.msrb.mxu0 %v9854_v3 }
  0x7e   :  { %911 = vmatpush.bf16.msrb.mxu1 %v9865_v6  ;;  %937 = vmatpush.bf16.msrb.mxu3 %v9896_v14 }
  0x7f   :  { %924 = vmatpush.bf16.msrb.mxu2 %v9892_v13  ;;  %899 = vmatpush.bf16.msrb.mxu0 %v9898_v15 }
  0x82   :  { %912 = vmatpush.bf16.msrb.mxu1 %v9910_v19  ;;  %938 = vmatpush.bf16.msrb.mxu3 %v9935_v27 }
  0x83   :  { %925 = vmatpush.bf16.msrb.mxu2 %v9928_v25  ;;  %900 = vmatpush.bf16.msrb.mxu0 %v9937_v28 }
  0x86   :  { %913 = vmatpush.bf16.msrb.mxu1 %v9949_v32  ;;  %939 = vmatpush.bf16.msrb.mxu3 %v9977_v41 }
  0x87   :  { %926 = vmatpush.bf16.msrb.mxu2 %v9973_v40  ;;  %901 = vmatpush.bf16.msrb.mxu0 %v9979_v42 }
  0x8a   :  { %914 = vmatpush.bf16.msrb.mxu1 %v9990_v46  ;;  %940 = vmatpush.bf16.msrb.mxu3 %v10012_v53 }
  0x8b   :  { %927 = vmatpush.bf16.msrb.mxu2 %v10008_v52  ;;  %902 = vmatpush.bf16.msrb.mxu0 %v10014_v55 }
  0x8e   :  { %915 = vmatpush.bf16.msrb.mxu1 %v10019_v56  ;;  %941 = vmatpush.bf16.msrb.mxu3 %v10045_v0 }
  0x8f   :  { %928 = vmatpush.bf16.msrb.mxu2 %v10061_v10  ;;  %903 = vmatpush.bf16.msrb.mxu0 %v10047_v4 }
  0x92   :  { %916 = vmatpush.bf16.msrb.mxu1 %v10059_v9  ;;  %942 = vmatpush.bf16.msrb.mxu3 %v10090_v23 }
  0x93   :  { %929 = vmatpush.bf16.msrb.mxu2 %v10094_v26  ;;  %904 = vmatpush.bf16.msrb.mxu0 %v10092_v24 }
  0x96   :  { %917 = vmatpush.bf16.msrb.mxu1 %v10103_v31  ;;  %943 = vmatpush.bf16.msrb.mxu3 %v10122_v38 }
  0x97   :  { %930 = vmatpush.bf16.msrb.mxu2 %v10118_v37 }
  0xb3   :  { %v309_v49 = vpop.f32.mrf.mxu0  ;;  %v338_v50 = vpop.f32.mrf.mxu1 }
  0xba   :  { %v10221_v51 = vpop.f32.mrf.mxu2 }
  0xbb   :  { %v396_v59 = vpop.f32.mrf.mxu3  ;;  %v10223_v60 = vpop.f32.mrf.mxu0 }
  0xbc   :  { %v10225_v61 = vpop.f32.mrf.mxu1 }
  0xc2   :  { %v10232_v5 = vpop.f32.mrf.mxu2 }
  0xc3   :  { %13120 = vst [vmem:[#allocation24_spill] sm:$0xff] %v10232_v5  ;;  %v10236_v8 = vpop.f32.mrf.mxu3  ;;  %v314_v11 = vpop.f32.mrf.mxu0 }
  0xc4   :  { %v10239_v12 = vadd.f32 %v314_v11, %v10230_v63  ;;  %v343_v16 = vpop.f32.mrf.mxu1 }
  0xc5   :  { %v10242_v17 = vadd.f32 %v343_v16, %v10234_v7 }
  0xc6   :  { %13121 = vst [vmem:[#allocation25_spill] sm:$0xff] %v10239_v12 }
  0xc7   :  { %13122 = vst [vmem:[#allocation26_spill] sm:$0xff] %v10242_v17 }
  0xcb   :  { %v372_v21 = vpop.f32.mrf.mxu2  ;;  %v10251_v30 = vpop.f32.mrf.mxu0 }
  0xcc   :  { %v10249_v22 = vadd.f32 %v372_v21, %v10244_v18  ;;  %v401_v29 = vpop.f32.mrf.mxu3  ;;  %13124 = vst [vmem:[#allocation28_spill] sm:$0xff] %v10251_v30  ;;  %v10256_v34 = vpop.f32.mrf.mxu1 }
  0xcd   :  { %v10254_v33 = vadd.f32 %v401_v29, %v10246_v20  ;;  %13126 = vst [vmem:[#allocation30_spill] sm:$0xff] %v10256_v34 }
  0xce   :  { %13123 = vst [vmem:[#allocation27_spill] sm:$0xff] %v10249_v22 }
  0xcf   :  { %13125 = vst [vmem:[#allocation29_spill] sm:$0xff] %v10254_v33 }
  0xd3   :  { %v10258_v35 = vpop.f32.mrf.mxu2  ;;  %v319_v43 = vpop.f32.mrf.mxu0 }
  0xd4   :  { %13127 = vst [vmem:[#allocation31_spill] sm:$0xff] %v10258_v35  ;;  %v10260_v36 = vpop.f32.mrf.mxu3  ;;  %v10263_v44 = vadd.f32 %v319_v43, %v10230_v63 }
  0xd5   :  { %13128 = vst [vmem:[#allocation32_spill] sm:$0xff] %v10260_v36 }
  0xd6   :  { %13129 = vst [vmem:[#allocation33_spill] sm:$0xff] %v10263_v44  ;;  %v348_v62 = vpop.f32.mrf.mxu1 }
  0xd7   :  { %v10266_v11 = vadd.f32 %v348_v62, %v10234_v7 }
  0xd9   :  { %13130 = vst [vmem:[#allocation34_spill] sm:$0xff] %v10266_v11 }
  0xdb   :  { %v377_v16 = vpop.f32.mrf.mxu2  ;;  %v10271_v48 = vpop.f32.mrf.mxu0 }
  0xdc   :  { %v10269_v21 = vadd.f32 %v377_v16, %v10244_v18  ;;  %v406_v29 = vpop.f32.mrf.mxu3  ;;  %13132 = vst [vmem:[#allocation36_spill] sm:$0xff] %v10271_v48 }
  0xdd   :  { %v10274_v47 = vadd.f32 %v406_v29, %v10246_v20 }
  0xde   :  { %13131 = vst [vmem:[#allocation35_spill] sm:$0xff] %v10269_v21  ;;  %v10276_v39 = vpop.f32.mrf.mxu1 }
  0xdf   :  { %13133 = vst [vmem:[#allocation37_spill] sm:$0xff] %v10274_v47 }
  0xe0   :  { %13134 = vst [vmem:[#allocation38_spill] sm:$0xff] %v10276_v39 }
  0xe3   :  { %v10278_v45 = vpop.f32.mrf.mxu2  ;;  %v324_v57 = vpop.f32.mrf.mxu0 }
  0xe4   :  { %13135 = vst [vmem:[#allocation39_spill] sm:$0xff] %v10278_v45  ;;  %v10280_v43 = vpop.f32.mrf.mxu3  ;;  %v10283_v62 = vadd.f32 %v324_v57, %v10230_v63 }
  0xe5   :  { %13136 = vst [vmem:[#allocation40_spill] sm:$0xff] %v10280_v43  ;;  %v310_v43 = vadd.f32 %v309_v49, %v10230_v63 }
  0xe6   :  { %13137 = vst [vmem:[#allocation41_spill] sm:$0xff] %v10283_v62  ;;  %v353_v11 = vpop.f32.mrf.mxu1  ;;  %v339_v62 = vadd.f32 %v338_v50, %v10234_v7 }
  0xe7   :  { %v10286_v16 = vadd.f32 %v353_v11, %v10234_v7 }
  0xe9   :  { %13138 = vst [vmem:[#allocation42_spill] sm:$0xff] %v10286_v16 }
  0xeb   :  { %v382_v21 = vpop.f32.mrf.mxu2  ;;  %v10291_v47 = vpop.f32.mrf.mxu0 }
  0xec   :  { %v10289_v48 = vadd.f32 %v382_v21, %v10244_v18  ;;  %v411_v29 = vpop.f32.mrf.mxu3  ;;  %13140 = vst [vmem:[#allocation44_spill] sm:$0xff] %v10291_v47 }
  0xed   :  { %v10294_v39 = vadd.f32 %v411_v29, %v10246_v20  ;;  %v397_v29 = vadd.f32 %v396_v59, %v10246_v20 }
  0xee   :  { %13139 = vst [vmem:[#allocation43_spill] sm:$0xff] %v10289_v48  ;;  %v10296_v45 = vpop.f32.mrf.mxu1 }
  0xef   :  { %13141 = vst [vmem:[#allocation45_spill] sm:$0xff] %v10294_v39 }
  0xf0   :  { %13142 = vst [vmem:[#allocation46_spill] sm:$0xff] %v10296_v45 }
  0xf3   :  { %v10299_v57 = vpop.f32.mrf.mxu2  ;;  %v653_v16 = vpop.f32.mrf.mxu0 }
  0xf4   :  { %13143 = vst [vmem:[#allocation47_spill] sm:$0xff] %v10299_v57  ;;  %v10302_v11 = vpop.f32.mrf.mxu3  ;;  %v696_v44 = vadd.f32 %v653_v16, %v310_v43 }
  0xf5   :  { %13144 = vst [vmem:[#allocation48_spill] sm:$0xff] %v10302_v11 }
  0xf6   :  { %v666_v21 = vpop.f32.mrf.mxu1  ;;  %v7451_v35 = vmul.f32 -1.442695, %v696_v44 }
  0xf7   :  { %v697_v48 = vadd.f32 %v666_v21, %v339_v62 }
  0xf8   :  { %8945 = vpow2.f32 %v7451_v35 }
  0xf9   :  { %v7452_v36 = vmul.f32 -1.442695, %v697_v48  ;;  %v368_v48 = vadd.f32 %v10221_v51, %v10244_v18 }
  0xfb   :  { %8947 = vpow2.f32 %v7452_v36  ;;  %v679_v47 = vpop.f32.mrf.mxu2  ;;  %v655_v39 = vpop.f32.mrf.mxu0 }
  0xfc   :  { %v692_v45 = vpop.f32.mrf.mxu3  ;;  %v698_v36 = vadd.f32 %v679_v47, %v368_v48 }
  0xfd   :  { %v699_v49 = vadd.f32 %v692_v45, %v397_v29 }
  0xfe   :  { %v668_v34 = vpop.f32.mrf.mxu1  ;;  %v8946_v57 = vpop.eup %8945 }
  0xff   :  { %v7453_v30 = vmul.f32 -1.442695, %v699_v49  ;;  %v703_v22 = vadd.f32 1.0, %v8946_v57 }
 0x101   :  { %v8948_v50 = vpop.eup %8947  ;;  %8949 = vpow2.f32 %v7453_v30  ;;  %v715_v57 = vand.u32 2147483648, %v703_v22  ;;  %v713_v49 = vand.u32 2147483647, %v703_v22  ;;  %vm709_vm3 = vweird.f32 %v703_v22 }
 0x102   :  { %v722_v11 = vadd.f32 1.0, %v8948_v50  ;;  %8951 = vrcp.f32 %v703_v22 }
 0x103   :  { %v681_v43 = vpop.f32.mrf.mxu2  ;;  %v716_v47 = vor.u32 1.1754944e-38, %v715_v57  ;;  %vm714_vm6 = vcmp.eq.f32.partialorder %v713_v49, 8.507059e+37 }
 0x104   :  { %8953 = vrcp.f32 %v722_v11  ;;  %v694_v44 = vpop.f32.mrf.mxu3  ;;  %v734_v30 = vand.u32 2147483648, %v722_v11  ;;  %v732_v43 = vand.u32 2147483647, %v722_v11  ;;  %vm728_vm4 = vweird.f32 %v722_v11 }
 0x106   :  { %vm733_vm8 = vcmp.eq.f32.partialorder %v732_v43, 8.507059e+37 }
 0x107   :  { %v8950_v35 = vpop.eup %8949 }
 0x108   :  { %v8952_v59 = vpop.eup %8951  ;;  %v742_v62 = vadd.f32 1.0, %v8950_v35  ;;  %v735_v35 = vor.u32 1.1754944e-38, %v734_v30 }
 0x109   :  { %v705_v45 = vmul.f32 %v8952_v59, %v703_v22  ;;  %vm710_vm1 = vweird.f32 %v8952_v59 }
 0x10a   :  { %v8954_v39 = vpop.eup %8953  ;;  %8955 = vrcp.f32 %v742_v62  ;;  %vm711_vm5 = vmor %vm709_vm3, %vm710_vm1  ;;  %v754_v57 = vand.u32 2147483648, %v742_v62  ;;  %vm748_vm10 = vweird.f32 %v742_v62 }
 0x10b   :  { %v724_v34 = vmul.f32 %v8954_v39, %v722_v11  ;;  %v706_v16 = vsub.f32 1.0, %v705_v45  ;;  %8957 = vtanh.f32 %v698_v36  ;;  %vm729_vm2 = vweird.f32 %v8954_v39 }
 0x10c   :  { %vm730_vm7 = vmor %vm728_vm4, %vm729_vm2  ;;  %v755_v49 = vor.u32 1.1754944e-38, %v754_v57 }
 0x10d   :  { %v725_v21 = vsub.f32 1.0, %v724_v34  ;;  %v707_v29 = vmul.f32 %v8952_v59, %v706_v16 }
 0x10f   :  { %v726_v50 = vmul.f32 %v8954_v39, %v725_v21  ;;  %v708_v51 = vadd.f32 %v8952_v59, %v707_v29 }
 0x110   :  { %v8956_v44 = vpop.eup %8955 }
 0x111   :  { %v727_v48 = vadd.f32 %v8954_v39, %v726_v50  ;;  %v712_v33 = vsel %vm711_vm5, %v8952_v59, %v708_v51  ;;  %v744_v45 = vmul.f32 %v8956_v44, %v742_v62  ;;  %v8958_v36 = vpop.eup %8957  ;;  %vm749_vm9 = vweird.f32 %v8956_v44 }
 0x112   :  { %v717_v34 = vsel %vm714_vm6, %v716_v47, %v712_v33  ;;  %v752_v59 = vand.u32 2147483647, %v742_v62  ;;  %vm750_vm11 = vmor %vm748_vm10, %vm749_vm9 }
 0x113   :  { %v731_v16 = vsel %vm730_vm7, %v8954_v39, %v727_v48  ;;  %v759_v21 = vmul.f32 %v8958_v36, %v717_v34  ;;  %v745_v12 = vsub.f32 1.0, %v744_v45 }
 0x114   :  { %v736_v17 = vsel %vm733_vm8, %v735_v35, %v731_v16  ;;  %vm753_vm12 = vcmp.eq.f32.partialorder %v752_v59, 8.507059e+37  ;;  %v399_v35 = vadd.f32 %v10236_v8, %v10246_v20 }
 0x115   :  { %v758_v5 = vmul.f32 0.0, %v736_v17  ;;  %v746_v29 = vmul.f32 %v8956_v44, %v745_v12  ;;  %v341_v17 = vadd.f32 %v10225_v61, %v10234_v7 }
 0x117   :  { %v10307_v22 = vadd.f32 %v759_v21, %v758_v5  ;;  %v747_v11 = vadd.f32 %v8956_v44, %v746_v29  ;;  %v312_v5 = vadd.f32 %v10223_v60, %v10230_v63 }
 0x119   :  { %8959 = vtanh.f32 %v10307_v22  ;;  %v751_v30 = vsel %vm750_vm11, %v8956_v44, %v747_v11 }
 0x11a   :  { %v756_v39 = vsel %vm753_vm12, %v755_v49, %v751_v30 }
 0x11f   :  { %v8960_v33 = vpop.eup %8959 }
 0x120   :  { %v10310_v50 = vmul.f32 %v8960_v33, %v756_v39  ;;  %v13146_v33 = vld [vmem:[#allocation24_spill] sm:$0xff] }
 0x121   :  { %v370_v8 = vadd.f32 %v13146_v33, %v10244_v18 }
 0x122   :  { %13145 = vst [vmem:[#allocation49_spill] sm:$0xff] %v10310_v50  ;;  %v769_v12 = vpack.c.bf16 %v10310_v50, %v10310_v50 }
 0x124   :  { %778 = vmatmul.bf16.vlgmr.msra.gmra.mxu0 %v769_v12  ;;  %791 = vmatmul.bf16.vlgmr.msra.gmra.mxu1 %v769_v12 }
 0x125   :  { %804 = vmatmul.bf16.vlgmr.msra.gmra.mxu2 %v769_v12  ;;  %817 = vmatmul.bf16.vlgmr.msra.gmra.mxu3 %v769_v12 }
 0x126   :  { %1024 = vmatpush.bf16.msra.mxu0 %v9819_v54  ;;  %1037 = vmatpush.bf16.msra.mxu1 %v9829_v58 }
 0x127   :  { %1050 = vmatpush.bf16.msra.mxu2 %v9849_v1  ;;  %1063 = vmatpush.bf16.msra.mxu3 %v9852_v2 }
 0x12a   :  { %1025 = vmatpush.bf16.msra.mxu0 %v9854_v3  ;;  %1038 = vmatpush.bf16.msra.mxu1 %v9865_v6 }
 0x12b   :  { %1051 = vmatpush.bf16.msra.mxu2 %v9892_v13  ;;  %1064 = vmatpush.bf16.msra.mxu3 %v9896_v14 }
 0x12e   :  { %1026 = vmatpush.bf16.msra.mxu0 %v9898_v15  ;;  %1039 = vmatpush.bf16.msra.mxu1 %v9910_v19 }
 0x12f   :  { %1052 = vmatpush.bf16.msra.mxu2 %v9928_v25  ;;  %1065 = vmatpush.bf16.msra.mxu3 %v9935_v27 }
 0x132   :  { %1027 = vmatpush.bf16.msra.mxu0 %v9937_v28  ;;  %1040 = vmatpush.bf16.msra.mxu1 %v9949_v32 }
 0x133   :  { %1053 = vmatpush.bf16.msra.mxu2 %v9973_v40  ;;  %1066 = vmatpush.bf16.msra.mxu3 %v9977_v41 }
 0x136   :  { %1028 = vmatpush.bf16.msra.mxu0 %v9979_v42  ;;  %1041 = vmatpush.bf16.msra.mxu1 %v9990_v46 }
 0x137   :  { %1054 = vmatpush.bf16.msra.mxu2 %v10008_v52  ;;  %1067 = vmatpush.bf16.msra.mxu3 %v10012_v53 }
 0x13a   :  { %1029 = vmatpush.bf16.msra.mxu0 %v10014_v55  ;;  %1042 = vmatpush.bf16.msra.mxu1 %v10019_v56 }
 0x13b   :  { %1055 = vmatpush.bf16.msra.mxu2 %v10061_v10  ;;  %1068 = vmatpush.bf16.msra.mxu3 %v10045_v0 }
 0x13e   :  { %1030 = vmatpush.bf16.msra.mxu0 %v10047_v4  ;;  %1043 = vmatpush.bf16.msra.mxu1 %v10059_v9 }
 0x13f   :  { %1056 = vmatpush.bf16.msra.mxu2 %v10094_v26  ;;  %1069 = vmatpush.bf16.msra.mxu3 %v10090_v23 }
 0x142   :  { %1031 = vmatpush.bf16.msra.mxu0 %v10092_v24  ;;  %1044 = vmatpush.bf16.msra.mxu1 %v10103_v31 }
 0x143   :  { %1057 = vmatpush.bf16.msra.mxu2 %v10118_v37  ;;  %1070 = vmatpush.bf16.msra.mxu3 %v10122_v38 }
 0x1a1   :  { %v779_v62 = vpop.f32.mrf.mxu0  ;;  %v792_v43 = vpop.f32.mrf.mxu1 }
 0x1a2   :  { %v822_v51 = vadd.f32 %v779_v62, %v312_v5  ;;  %v823_v44 = vadd.f32 %v792_v43, %v341_v17 }
 0x1a4   :  { %v7454_v47 = vmul.f32 -1.442695, %v822_v51  ;;  %v7455_v48 = vmul.f32 -1.442695, %v823_v44 }
 0x1a6   :  { %8961 = vpow2.f32 %v7454_v47 }
 0x1a7   :  { %8963 = vpow2.f32 %v7455_v48 }
 0x1a8   :  { %v805_v45 = vpop.f32.mrf.mxu2  ;;  %v818_v36 = vpop.f32.mrf.mxu3 }
 0x1a9   :  { %v825_v34 = vadd.f32 %v818_v36, %v399_v35  ;;  %v781_v16 = vpop.f32.mrf.mxu0  ;;  %v794_v21 = vpop.f32.mrf.mxu1  ;;  %v824_v5 = vadd.f32 %v805_v45, %v370_v8 }
 0x1ab   :  { %v7456_v60 = vmul.f32 -1.442695, %v825_v34 }
 0x1ac   :  { %v8962_v29 = vpop.eup %8961 }
 0x1ad   :  { %v8964_v11 = vpop.eup %8963  ;;  %v829_v61 = vadd.f32 1.0, %v8962_v29  ;;  %8965 = vpow2.f32 %v7456_v60 }
 0x1ae   :  { %v848_v57 = vadd.f32 1.0, %v8964_v11 }
 0x1af   :  { %8967 = vrcp.f32 %v829_v61  ;;  %v841_v47 = vand.u32 2147483648, %v829_v61  ;;  %v839_v36 = vand.u32 2147483647, %v829_v61  ;;  %vm835_vm15 = vweird.f32 %v829_v61 }
 0x1b0   :  { %8969 = vrcp.f32 %v848_v57  ;;  %v807_v59 = vpop.f32.mrf.mxu2  ;;  %v820_v30 = vpop.f32.mrf.mxu3  ;;  %v860_v48 = vand.u32 2147483648, %v848_v57  ;;  %v858_v16 = vand.u32 2147483647, %v848_v57  ;;  %vm854_vm1 = vweird.f32 %v848_v57 }
 0x1b1   :  { %v842_v45 = vor.u32 1.1754944e-38, %v841_v47  ;;  %vm840_vm4 = vcmp.eq.f32.partialorder %v839_v36, 8.507059e+37 }
 0x1b2   :  { %v861_v59 = vor.u32 1.1754944e-38, %v860_v48  ;;  %vm859_vm5 = vcmp.eq.f32.partialorder %v858_v16, 8.507059e+37 }
 0x1b3   :  { %v8966_v49 = vpop.eup %8965 }
 0x1b4   :  { %v868_v39 = vadd.f32 1.0, %v8966_v49 }
 0x1b5   :  { %v8968_v12 = vpop.eup %8967 }
 0x1b6   :  { %v8970_v17 = vpop.eup %8969  ;;  %v831_v62 = vmul.f32 %v8968_v12, %v829_v61  ;;  %8971 = vrcp.f32 %v868_v39  ;;  %vm836_vm13 = vweird.f32 %v8968_v12  ;;  %v880_v47 = vand.u32 2147483648, %v868_v39 }
 0x1b7   :  { %v850_v43 = vmul.f32 %v8970_v17, %v848_v57  ;;  %8973 = vtanh.f32 %v824_v5  ;;  %vm855_vm14 = vweird.f32 %v8970_v17  ;;  %vm837_vm2 = vmor %vm835_vm15, %vm836_vm13  ;;  %vm874_vm7 = vweird.f32 %v868_v39 }
 0x1b8   :  { %v832_v51 = vsub.f32 1.0, %v831_v62  ;;  %vm856_vm3 = vmor %vm854_vm1, %vm855_vm14 }
 0x1b9   :  { %v851_v44 = vsub.f32 1.0, %v850_v43 }
 0x1ba   :  { %v833_v35 = vmul.f32 %v8968_v12, %v832_v51 }
 0x1bb   :  { %v852_v34 = vmul.f32 %v8970_v17, %v851_v44 }
 0x1bc   :  { %v8972_v21 = vpop.eup %8971  ;;  %v834_v60 = vadd.f32 %v8968_v12, %v833_v35  ;;  %v881_v35 = vor.u32 1.1754944e-38, %v880_v47 }
 0x1bd   :  { %v853_v29 = vadd.f32 %v8970_v17, %v852_v34  ;;  %v870_v11 = vmul.f32 %v8972_v21, %v868_v39  ;;  %v8974_v49 = vpop.eup %8973  ;;  %vm875_vm6 = vweird.f32 %v8972_v21 }
 0x1be   :  { %v838_v30 = vsel %vm837_vm2, %v8968_v12, %v834_v60  ;;  %v878_v12 = vand.u32 2147483647, %v868_v39  ;;  %vm876_vm8 = vmor %vm874_vm7, %vm875_vm6 }
 0x1bf   :  { %v843_v33 = vsel %vm840_vm4, %v842_v45, %v838_v30  ;;  %v857_v8 = vsel %vm856_vm3, %v8970_v17, %v853_v29  ;;  %v871_v5 = vsub.f32 1.0, %v870_v11  ;;  %v13149_v45 = vld [vmem:[#allocation26_spill] sm:$0xff] }
 0x1c0   :  { %v862_v62 = vsel %vm859_vm5, %v861_v59, %v857_v8  ;;  %v885_v43 = vmul.f32 %v8974_v49, %v843_v33  ;;  %vm879_vm9 = vcmp.eq.f32.partialorder %v878_v12, 8.507059e+37  ;;  %v13150_v33 = vld [vmem:[#allocation29_spill] sm:$0xff] }
 0x1c1   :  { %v884_v51 = vmul.f32 %v862_v62, %v10307_v22  ;;  %v872_v44 = vmul.f32 %v8972_v21, %v871_v5 }
 0x1c3   :  { %v10355_v61 = vadd.f32 %v885_v43, %v884_v51  ;;  %v873_v57 = vadd.f32 %v8972_v21, %v872_v44 }
 0x1c5   :  { %8975 = vtanh.f32 %v10355_v61  ;;  %v877_v48 = vsel %vm876_vm8, %v8972_v21, %v873_v57  ;;  %v13148_v21 = vld [vmem:[#allocation25_spill] sm:$0xff] }
 0x1c6   :  { %v882_v36 = vsel %vm879_vm9, %v881_v35, %v877_v48 }
 0x1cb   :  { %v8976_v17 = vpop.eup %8975 }
 0x1cc   :  { %v10358_v34 = vmul.f32 %v8976_v17, %v882_v36 }
 0x1ce   :  { %13147 = vst [vmem:[#allocation24_spill] sm:$0xff] %v10358_v34  ;;  %v896_v22 = vpack.c.bf16 %v10358_v34, %v10358_v34 }
 0x1d0   :  { %905 = vmatmul.bf16.vlgmr.msrb.gmra.mxu0 %v896_v22  ;;  %918 = vmatmul.bf16.vlgmr.msrb.gmra.mxu1 %v896_v22 }
 0x1d1   :  { %931 = vmatmul.bf16.vlgmr.msrb.gmra.mxu2 %v896_v22  ;;  %944 = vmatmul.bf16.vlgmr.msrb.gmra.mxu3 %v896_v22  ;;  %v13151_v22 = vld [vmem:[#allocation27_spill] sm:$0xff] }
 0x1d2   :  { %1151 = vmatpush.bf16.msrb.mxu0 %v9819_v54  ;;  %1164 = vmatpush.bf16.msrb.mxu1 %v9829_v58 }
 0x1d3   :  { %1177 = vmatpush.bf16.msrb.mxu2 %v9849_v1  ;;  %1190 = vmatpush.bf16.msrb.mxu3 %v9852_v2 }
 0x1d6   :  { %1152 = vmatpush.bf16.msrb.mxu0 %v9854_v3  ;;  %1165 = vmatpush.bf16.msrb.mxu1 %v9865_v6 }
 0x1d7   :  { %1178 = vmatpush.bf16.msrb.mxu2 %v9892_v13  ;;  %1191 = vmatpush.bf16.msrb.mxu3 %v9896_v14 }
 0x1da   :  { %1153 = vmatpush.bf16.msrb.mxu0 %v9898_v15  ;;  %1166 = vmatpush.bf16.msrb.mxu1 %v9910_v19 }
 0x1db   :  { %1179 = vmatpush.bf16.msrb.mxu2 %v9928_v25  ;;  %1192 = vmatpush.bf16.msrb.mxu3 %v9935_v27 }
 0x1de   :  { %1154 = vmatpush.bf16.msrb.mxu0 %v9937_v28  ;;  %1167 = vmatpush.bf16.msrb.mxu1 %v9949_v32 }
 0x1df   :  { %1180 = vmatpush.bf16.msrb.mxu2 %v9973_v40  ;;  %1193 = vmatpush.bf16.msrb.mxu3 %v9977_v41 }
 0x1e2   :  { %1155 = vmatpush.bf16.msrb.mxu0 %v9979_v42  ;;  %1168 = vmatpush.bf16.msrb.mxu1 %v9990_v46 }
 0x1e3   :  { %1181 = vmatpush.bf16.msrb.mxu2 %v10008_v52  ;;  %1194 = vmatpush.bf16.msrb.mxu3 %v10012_v53 }
 0x1e6   :  { %1156 = vmatpush.bf16.msrb.mxu0 %v10014_v55  ;;  %1169 = vmatpush.bf16.msrb.mxu1 %v10019_v56 }
 0x1e7   :  { %1182 = vmatpush.bf16.msrb.mxu2 %v10061_v10  ;;  %1195 = vmatpush.bf16.msrb.mxu3 %v10045_v0 }
 0x1ea   :  { %1157 = vmatpush.bf16.msrb.mxu0 %v10047_v4  ;;  %1170 = vmatpush.bf16.msrb.mxu1 %v10059_v9 }
 0x1eb   :  { %1183 = vmatpush.bf16.msrb.mxu2 %v10094_v26  ;;  %1196 = vmatpush.bf16.msrb.mxu3 %v10090_v23 }
 0x1ee   :  { %1158 = vmatpush.bf16.msrb.mxu0 %v10092_v24  ;;  %1171 = vmatpush.bf16.msrb.mxu1 %v10103_v31 }
 0x1ef   :  { %1184 = vmatpush.bf16.msrb.mxu2 %v10118_v37  ;;  %1197 = vmatpush.bf16.msrb.mxu3 %v10122_v38 }
 0x24d   :  { %v906_v39 = vpop.f32.mrf.mxu0  ;;  %v919_v16 = vpop.f32.mrf.mxu1 }
 0x24e   :  { %v949_v60 = vadd.f32 %v906_v39, %v13148_v21  ;;  %v950_v29 = vadd.f32 %v919_v16, %v13149_v45 }
 0x250   :  { %v7457_v11 = vmul.f32 -1.442695, %v949_v60  ;;  %v7458_v59 = vmul.f32 -1.442695, %v950_v29 }
 0x252   :  { %8977 = vpow2.f32 %v7457_v11 }
 0x253   :  { %8979 = vpow2.f32 %v7458_v59 }
 0x254   :  { %v932_v30 = vpop.f32.mrf.mxu2  ;;  %v945_v49 = vpop.f32.mrf.mxu3 }
 0x255   :  { %v952_v8 = vadd.f32 %v945_v49, %v13150_v33  ;;  %v908_v5 = vpop.f32.mrf.mxu0  ;;  %v921_v62 = vpop.f32.mrf.mxu1  ;;  %v951_v39 = vadd.f32 %v932_v30, %v13151_v22 }
 0x257   :  { %v7459_v43 = vmul.f32 -1.442695, %v952_v8 }
 0x258   :  { %v8978_v51 = vpop.eup %8977 }
 0x259   :  { %v8980_v44 = vpop.eup %8979  ;;  %v956_v57 = vadd.f32 1.0, %v8978_v51  ;;  %8981 = vpow2.f32 %v7459_v43 }
 0x25a   :  { %v975_v47 = vadd.f32 1.0, %v8980_v44 }
 0x25b   :  { %8983 = vrcp.f32 %v956_v57  ;;  %v968_v11 = vand.u32 2147483648, %v956_v57  ;;  %v966_v33 = vand.u32 2147483647, %v956_v57  ;;  %vm962_vm12 = vweird.f32 %v956_v57 }
 0x25c   :  { %8985 = vrcp.f32 %v975_v47  ;;  %v934_v12 = vpop.f32.mrf.mxu2  ;;  %v947_v48 = vpop.f32.mrf.mxu3  ;;  %v987_v59 = vand.u32 2147483648, %v975_v47  ;;  %v985_v5 = vand.u32 2147483647, %v975_v47  ;;  %vm981_vm13 = vweird.f32 %v975_v47 }
 0x25d   :  { %v969_v30 = vor.u32 1.1754944e-38, %v968_v11  ;;  %vm967_vm1 = vcmp.eq.f32.partialorder %v966_v33, 8.507059e+37 }
 0x25e   :  { %v988_v12 = vor.u32 1.1754944e-38, %v987_v59  ;;  %vm986_vm2 = vcmp.eq.f32.partialorder %v985_v5, 8.507059e+37 }
 0x25f   :  { %v8982_v35 = vpop.eup %8981 }
 0x260   :  { %v995_v17 = vadd.f32 1.0, %v8982_v35 }
 0x261   :  { %v8984_v36 = vpop.eup %8983 }
 0x262   :  { %v8986_v16 = vpop.eup %8985  ;;  %v958_v21 = vmul.f32 %v8984_v36, %v956_v57  ;;  %8987 = vrcp.f32 %v995_v17  ;;  %vm963_vm10 = vweird.f32 %v8984_v36  ;;  %v1007_v11 = vand.u32 2147483648, %v995_v17 }
 0x263   :  { %v977_v60 = vmul.f32 %v8986_v16, %v975_v47  ;;  %8989 = vtanh.f32 %v951_v39  ;;  %vm982_vm11 = vweird.f32 %v8986_v16  ;;  %vm964_vm14 = vmor %vm962_vm12, %vm963_vm10  ;;  %vm1001_vm4 = vweird.f32 %v995_v17 }
 0x264   :  { %v959_v45 = vsub.f32 1.0, %v958_v21  ;;  %vm983_vm15 = vmor %vm981_vm13, %vm982_vm11  ;;  %v1008_v33 = vor.u32 1.1754944e-38, %v1007_v11 }
 0x265   :  { %v978_v29 = vsub.f32 1.0, %v977_v60 }
 0x266   :  { %v960_v49 = vmul.f32 %v8984_v36, %v959_v45 }
 0x267   :  { %v979_v8 = vmul.f32 %v8986_v16, %v978_v29 }
 0x268   :  { %v8988_v62 = vpop.eup %8987  ;;  %v961_v43 = vadd.f32 %v8984_v36, %v960_v49 }
 0x269   :  { %v980_v51 = vadd.f32 %v8986_v16, %v979_v8  ;;  %v997_v44 = vmul.f32 %v8988_v62, %v995_v17  ;;  %v8990_v35 = vpop.eup %8989  ;;  %vm1002_vm3 = vweird.f32 %v8988_v62 }
 0x26a   :  { %v965_v48 = vsel %vm964_vm14, %v8984_v36, %v961_v43  ;;  %v1005_v36 = vand.u32 2147483647, %v995_v17  ;;  %vm1003_vm5 = vmor %vm1001_vm4, %vm1002_vm3  ;;  %v13153_v17 = vld [vmem:[#allocation28_spill] sm:$0xff]  ;;  %v13154_v43 = vld [vmem:[#allocation30_spill] sm:$0xff] }
 0x26b   :  { %v970_v22 = vsel %vm967_vm1, %v969_v30, %v965_v48  ;;  %v984_v39 = vsel %vm983_vm15, %v8986_v16, %v980_v51  ;;  %v998_v21 = vsub.f32 1.0, %v997_v44  ;;  %v346_v30 = vadd.f32 %v13154_v43, %v10234_v7 }
 0x26c   :  { %v989_v60 = vsel %vm986_vm2, %v988_v12, %v984_v39  ;;  %v1012_v45 = vmul.f32 %v8990_v35, %v970_v22  ;;  %vm1006_vm6 = vcmp.eq.f32.partialorder %v1005_v36, 8.507059e+37  ;;  %v13155_v39 = vld [vmem:[#allocation32_spill] sm:$0xff] }
 0x26d   :  { %v1011_v29 = vmul.f32 %v989_v60, %v10355_v61  ;;  %v999_v49 = vmul.f32 %v8988_v62, %v998_v21  ;;  %v404_v21 = vadd.f32 %v13155_v39, %v10246_v20 }
 0x26f   :  { %v10399_v57 = vadd.f32 %v1012_v45, %v1011_v29  ;;  %v1000_v47 = vadd.f32 %v8988_v62, %v999_v49 }
 0x271   :  { %8991 = vtanh.f32 %v10399_v57  ;;  %v1004_v59 = vsel %vm1003_vm5, %v8988_v62, %v1000_v47  ;;  %v317_v62 = vadd.f32 %v13153_v17, %v10230_v63 }
 0x272   :  { %v1009_v8 = vsel %vm1006_vm6, %v1008_v33, %v1004_v59 }
 0x277   :  { %v8992_v16 = vpop.eup %8991 }
 0x278   :  { %v10402_v5 = vmul.f32 %v8992_v16, %v1009_v8 }
 0x27a   :  { %13152 = vst [vmem:[#allocation25_spill] sm:$0xff] %v10402_v5  ;;  %v1023_v61 = vpack.c.bf16 %v10402_v5, %v10402_v5 }
 0x27c   :  { %1032 = vmatmul.bf16.vlgmr.msra.gmra.mxu0 %v1023_v61  ;;  %1045 = vmatmul.bf16.vlgmr.msra.gmra.mxu1 %v1023_v61 }
 0x27d   :  { %1058 = vmatmul.bf16.vlgmr.msra.gmra.mxu2 %v1023_v61  ;;  %1071 = vmatmul.bf16.vlgmr.msra.gmra.mxu3 %v1023_v61 }
 0x27e   :  { %1278 = vmatpush.bf16.msra.mxu0 %v9819_v54  ;;  %1291 = vmatpush.bf16.msra.mxu1 %v9829_v58 }
 0x27f   :  { %1304 = vmatpush.bf16.msra.mxu2 %v9849_v1  ;;  %1317 = vmatpush.bf16.msra.mxu3 %v9852_v2 }
 0x282   :  { %1279 = vmatpush.bf16.msra.mxu0 %v9854_v3  ;;  %1292 = vmatpush.bf16.msra.mxu1 %v9865_v6 }
 0x283   :  { %1305 = vmatpush.bf16.msra.mxu2 %v9892_v13  ;;  %1318 = vmatpush.bf16.msra.mxu3 %v9896_v14 }
 0x286   :  { %1280 = vmatpush.bf16.msra.mxu0 %v9898_v15  ;;  %1293 = vmatpush.bf16.msra.mxu1 %v9910_v19 }
 0x287   :  { %1306 = vmatpush.bf16.msra.mxu2 %v9928_v25  ;;  %1319 = vmatpush.bf16.msra.mxu3 %v9935_v27 }
 0x28a   :  { %1281 = vmatpush.bf16.msra.mxu0 %v9937_v28  ;;  %1294 = vmatpush.bf16.msra.mxu1 %v9949_v32 }
 0x28b   :  { %1307 = vmatpush.bf16.msra.mxu2 %v9973_v40  ;;  %1320 = vmatpush.bf16.msra.mxu3 %v9977_v41 }
 0x28e   :  { %1282 = vmatpush.bf16.msra.mxu0 %v9979_v42  ;;  %1295 = vmatpush.bf16.msra.mxu1 %v9990_v46 }
 0x28f   :  { %1308 = vmatpush.bf16.msra.mxu2 %v10008_v52  ;;  %1321 = vmatpush.bf16.msra.mxu3 %v10012_v53 }
 0x292   :  { %1283 = vmatpush.bf16.msra.mxu0 %v10014_v55  ;;  %1296 = vmatpush.bf16.msra.mxu1 %v10019_v56 }
 0x293   :  { %1309 = vmatpush.bf16.msra.mxu2 %v10061_v10  ;;  %1322 = vmatpush.bf16.msra.mxu3 %v10045_v0 }
 0x296   :  { %1284 = vmatpush.bf16.msra.mxu0 %v10047_v4  ;;  %1297 = vmatpush.bf16.msra.mxu1 %v10059_v9 }
 0x297   :  { %1310 = vmatpush.bf16.msra.mxu2 %v10094_v26  ;;  %1323 = vmatpush.bf16.msra.mxu3 %v10090_v23 }
 0x29a   :  { %1285 = vmatpush.bf16.msra.mxu0 %v10092_v24  ;;  %1298 = vmatpush.bf16.msra.mxu1 %v10103_v31 }
 0x29b   :  { %1311 = vmatpush.bf16.msra.mxu2 %v10118_v37  ;;  %1324 = vmatpush.bf16.msra.mxu3 %v10122_v38 }
 0x2f9   :  { %v1033_v51 = vpop.f32.mrf.mxu0  ;;  %v1046_v44 = vpop.f32.mrf.mxu1 }
 0x2fa   :  { %v1076_v12 = vadd.f32 %v1033_v51, %v317_v62  ;;  %v1077_v48 = vadd.f32 %v1046_v44, %v346_v30  ;;  %v13156_v62 = vld [vmem:[#allocation31_spill] sm:$0xff] }
 0x2fb   :  { %v375_v43 = vadd.f32 %v13156_v62, %v10244_v18 }
 0x2fc   :  { %v7460_v35 = vmul.f32 -1.442695, %v1076_v12  ;;  %v7461_v22 = vmul.f32 -1.442695, %v1077_v48 }
 0x2fe   :  { %8993 = vpow2.f32 %v7460_v35 }
 0x2ff   :  { %8995 = vpow2.f32 %v7461_v22 }
 0x300   :  { %v1059_v60 = vpop.f32.mrf.mxu2  ;;  %v1072_v45 = vpop.f32.mrf.mxu3 }
 0x301   :  { %v1079_v29 = vadd.f32 %v1072_v45, %v404_v21  ;;  %v1035_v49 = vpop.f32.mrf.mxu0  ;;  %v1048_v47 = vpop.f32.mrf.mxu1  ;;  %v1078_v44 = vadd.f32 %v1059_v60, %v375_v43 }
 0x303   :  { %v7462_v11 = vmul.f32 -1.442695, %v1079_v29 }
 0x304   :  { %v8994_v36 = vpop.eup %8993 }
 0x305   :  { %v8996_v59 = vpop.eup %8995  ;;  %v1083_v33 = vadd.f32 1.0, %v8994_v36  ;;  %8997 = vpow2.f32 %v7462_v11 }
 0x306   :  { %v1102_v16 = vadd.f32 1.0, %v8996_v59 }
 0x307   :  { %8999 = vrcp.f32 %v1083_v33  ;;  %v1095_v21 = vand.u32 2147483648, %v1083_v33  ;;  %v1093_v49 = vand.u32 2147483647, %v1083_v33  ;;  %vm1089_vm9 = vweird.f32 %v1083_v33 }
 0x308   :  { %9001 = vrcp.f32 %v1102_v16  ;;  %v1061_v8 = vpop.f32.mrf.mxu2  ;;  %v1074_v61 = vpop.f32.mrf.mxu3  ;;  %v1114_v45 = vand.u32 2147483648, %v1102_v16  ;;  %v1112_v11 = vand.u32 2147483647, %v1102_v16  ;;  %vm1108_vm10 = vweird.f32 %v1102_v16 }
 0x309   :  { %v1096_v60 = vor.u32 1.1754944e-38, %v1095_v21  ;;  %vm1094_vm13 = vcmp.eq.f32.partialorder %v1093_v49, 8.507059e+37 }
 0x30a   :  { %vm1113_vm14 = vcmp.eq.f32.partialorder %v1112_v11, 8.507059e+37 }
 0x30b   :  { %v8998_v17 = vpop.eup %8997 }
 0x30c   :  { %v1122_v30 = vadd.f32 1.0, %v8998_v17  ;;  %v1115_v17 = vor.u32 1.1754944e-38, %v1114_v45 }
 0x30d   :  { %v9000_v51 = vpop.eup %8999 }
 0x30e   :  { %v9002_v12 = vpop.eup %9001  ;;  %v1085_v48 = vmul.f32 %v9000_v51, %v1083_v33  ;;  %9003 = vrcp.f32 %v1122_v30  ;;  %vm1090_vm7 = vweird.f32 %v9000_v51  ;;  %v1134_v21 = vand.u32 2147483648, %v1122_v30 }
 0x30f   :  { %v1104_v35 = vmul.f32 %v9002_v12, %v1102_v16  ;;  %9005 = vtanh.f32 %v1078_v44  ;;  %vm1109_vm8 = vweird.f32 %v9002_v12  ;;  %vm1091_vm11 = vmor %vm1089_vm9, %vm1090_vm7  ;;  %vm1128_vm1 = vweird.f32 %v1122_v30 }
 0x310   :  { %v1086_v22 = vsub.f32 1.0, %v1085_v48  ;;  %vm1110_vm12 = vmor %vm1108_vm10, %vm1109_vm8  ;;  %v1135_v49 = vor.u32 1.1754944e-38, %v1134_v21 }
 0x311   :  { %v1105_v39 = vsub.f32 1.0, %v1104_v35 }
 0x312   :  { %v1087_v29 = vmul.f32 %v9000_v51, %v1086_v22 }
 0x313   :  { %v1106_v47 = vmul.f32 %v9002_v12, %v1105_v39 }
 0x314   :  { %v9004_v36 = vpop.eup %9003  ;;  %v1088_v59 = vadd.f32 %v9000_v51, %v1087_v29 }
 0x315   :  { %v1107_v8 = vadd.f32 %v9002_v12, %v1106_v47  ;;  %v1124_v61 = vmul.f32 %v9004_v36, %v1122_v30  ;;  %v9006_v43 = vpop.eup %9005  ;;  %vm1129_vm15 = vweird.f32 %v9004_v36 }
 0x316   :  { %v1092_v62 = vsel %vm1091_vm11, %v9000_v51, %v1088_v59  ;;  %v1132_v51 = vand.u32 2147483647, %v1122_v30  ;;  %vm1130_vm2 = vmor %vm1128_vm1, %vm1129_vm15 }
 0x317   :  { %v1097_v44 = vsel %vm1094_vm13, %v1096_v60, %v1092_v62  ;;  %v1111_v48 = vsel %vm1110_vm12, %v9002_v12, %v1107_v8  ;;  %v1125_v35 = vsub.f32 1.0, %v1124_v61  ;;  %v13159_v60 = vld [vmem:[#allocation34_spill] sm:$0xff] }
 0x318   :  { %v1116_v22 = vsel %vm1113_vm14, %v1115_v17, %v1111_v48  ;;  %v1139_v39 = vmul.f32 %v9006_v43, %v1097_v44  ;;  %vm1133_vm3 = vcmp.eq.f32.partialorder %v1132_v51, 8.507059e+37  ;;  %v13160_v44 = vld [vmem:[#allocation37_spill] sm:$0xff] }
 0x319   :  { %v1138_v5 = vmul.f32 %v1116_v22, %v10399_v57  ;;  %v1126_v29 = vmul.f32 %v9004_v36, %v1125_v35 }
 0x31b   :  { %v10447_v33 = vadd.f32 %v1139_v39, %v1138_v5  ;;  %v1127_v16 = vadd.f32 %v9004_v36, %v1126_v29 }
 0x31d   :  { %9007 = vtanh.f32 %v10447_v33  ;;  %v1131_v45 = vsel %vm1130_vm2, %v9004_v36, %v1127_v16  ;;  %v13158_v36 = vld [vmem:[#allocation33_spill] sm:$0xff] }
 0x31e   :  { %v1136_v47 = vsel %vm1133_vm3, %v1135_v49, %v1131_v45 }
 0x323   :  { %v9008_v12 = vpop.eup %9007 }
 0x324   :  { %v10450_v11 = vmul.f32 %v9008_v12, %v1136_v47 }
 0x326   :  { %13157 = vst [vmem:[#allocation26_spill] sm:$0xff] %v10450_v11  ;;  %v1150_v57 = vpack.c.bf16 %v10450_v11, %v10450_v11 }
 0x328   :  { %1159 = vmatmul.bf16.vlgmr.msrb.gmra.mxu0 %v1150_v57  ;;  %1172 = vmatmul.bf16.vlgmr.msrb.gmra.mxu1 %v1150_v57 }
 0x329   :  { %1185 = vmatmul.bf16.vlgmr.msrb.gmra.mxu2 %v1150_v57  ;;  %1198 = vmatmul.bf16.vlgmr.msrb.gmra.mxu3 %v1150_v57 }
 0x32a   :  { %1405 = vmatpush.bf16.msrb.mxu0 %v9819_v54  ;;  %1418 = vmatpush.bf16.msrb.mxu1 %v9829_v58 }
 0x32b   :  { %1431 = vmatpush.bf16.msrb.mxu2 %v9849_v1  ;;  %1444 = vmatpush.bf16.msrb.mxu3 %v9852_v2 }
 0x32e   :  { %1406 = vmatpush.bf16.msrb.mxu0 %v9854_v3  ;;  %1419 = vmatpush.bf16.msrb.mxu1 %v9865_v6 }
 0x32f   :  { %1432 = vmatpush.bf16.msrb.mxu2 %v9892_v13  ;;  %1445 = vmatpush.bf16.msrb.mxu3 %v9896_v14 }
 0x332   :  { %1407 = vmatpush.bf16.msrb.mxu0 %v9898_v15  ;;  %1420 = vmatpush.bf16.msrb.mxu1 %v9910_v19 }
 0x333   :  { %1433 = vmatpush.bf16.msrb.mxu2 %v9928_v25  ;;  %1446 = vmatpush.bf16.msrb.mxu3 %v9935_v27 }
 0x336   :  { %1408 = vmatpush.bf16.msrb.mxu0 %v9937_v28  ;;  %1421 = vmatpush.bf16.msrb.mxu1 %v9949_v32 }
 0x337   :  { %1434 = vmatpush.bf16.msrb.mxu2 %v9973_v40  ;;  %1447 = vmatpush.bf16.msrb.mxu3 %v9977_v41 }
 0x33a   :  { %1409 = vmatpush.bf16.msrb.mxu0 %v9979_v42  ;;  %1422 = vmatpush.bf16.msrb.mxu1 %v9990_v46 }
 0x33b   :  { %1435 = vmatpush.bf16.msrb.mxu2 %v10008_v52  ;;  %1448 = vmatpush.bf16.msrb.mxu3 %v10012_v53 }
 0x33e   :  { %1410 = vmatpush.bf16.msrb.mxu0 %v10014_v55  ;;  %1423 = vmatpush.bf16.msrb.mxu1 %v10019_v56 }
 0x33f   :  { %1436 = vmatpush.bf16.msrb.mxu2 %v10061_v10  ;;  %1449 = vmatpush.bf16.msrb.mxu3 %v10045_v0 }
 0x342   :  { %1411 = vmatpush.bf16.msrb.mxu0 %v10047_v4  ;;  %1424 = vmatpush.bf16.msrb.mxu1 %v10059_v9 }
 0x343   :  { %1437 = vmatpush.bf16.msrb.mxu2 %v10094_v26  ;;  %1450 = vmatpush.bf16.msrb.mxu3 %v10090_v23 }
 0x346   :  { %1412 = vmatpush.bf16.msrb.mxu0 %v10092_v24  ;;  %1425 = vmatpush.bf16.msrb.mxu1 %v10103_v31 }
 0x347   :  { %1438 = vmatpush.bf16.msrb.mxu2 %v10118_v37  ;;  %1451 = vmatpush.bf16.msrb.mxu3 %v10122_v38 }
 0x3a5   :  { %v1160_v5 = vpop.f32.mrf.mxu0  ;;  %v1173_v30 = vpop.f32.mrf.mxu1 }
 0x3a6   :  { %v1203_v59 = vadd.f32 %v1160_v5, %v13158_v36  ;;  %v1204_v8 = vadd.f32 %v1173_v30, %v13159_v60  ;;  %v13161_v5 = vld [vmem:[#allocation35_spill] sm:$0xff] }
 0x3a8   :  { %v7463_v61 = vmul.f32 -1.442695, %v1203_v59  ;;  %v7464_v17 = vmul.f32 -1.442695, %v1204_v8 }
 0x3aa   :  { %9009 = vpow2.f32 %v7463_v61 }
 0x3ab   :  { %9011 = vpow2.f32 %v7464_v17 }
 0x3ac   :  { %v1186_v62 = vpop.f32.mrf.mxu2  ;;  %v1199_v43 = vpop.f32.mrf.mxu3 }
 0x3ad   :  { %v1206_v48 = vadd.f32 %v1199_v43, %v13160_v44  ;;  %v1162_v35 = vpop.f32.mrf.mxu0  ;;  %v1175_v22 = vpop.f32.mrf.mxu1  ;;  %v1205_v30 = vadd.f32 %v1186_v62, %v13161_v5 }
 0x3af   :  { %v7465_v39 = vmul.f32 -1.442695, %v1206_v48 }
 0x3b0   :  { %v9010_v29 = vpop.eup %9009 }
 0x3b1   :  { %v9012_v16 = vpop.eup %9011  ;;  %v1210_v21 = vadd.f32 1.0, %v9010_v29  ;;  %9013 = vpow2.f32 %v7465_v39 }
 0x3b2   :  { %v1229_v51 = vadd.f32 1.0, %v9012_v16 }
 0x3b3   :  { %9015 = vrcp.f32 %v1210_v21  ;;  %v1222_v17 = vand.u32 2147483648, %v1210_v21  ;;  %v1220_v48 = vand.u32 2147483647, %v1210_v21  ;;  %vm1216_vm6 = vweird.f32 %v1210_v21 }
 0x3b4   :  { %9017 = vrcp.f32 %v1229_v51  ;;  %v1188_v45 = vpop.f32.mrf.mxu2  ;;  %v1201_v49 = vpop.f32.mrf.mxu3  ;;  %v1241_v43 = vand.u32 2147483648, %v1229_v51  ;;  %v1239_v22 = vand.u32 2147483647, %v1229_v51  ;;  %vm1235_vm7 = vweird.f32 %v1229_v51 }
 0x3b5   :  { %v1223_v62 = vor.u32 1.1754944e-38, %v1222_v17  ;;  %vm1221_vm10 = vcmp.eq.f32.partialorder %v1220_v48, 8.507059e+37 }
 0x3b6   :  { %v1242_v49 = vor.u32 1.1754944e-38, %v1241_v43  ;;  %vm1240_vm11 = vcmp.eq.f32.partialorder %v1239_v22, 8.507059e+37 }
 0x3b7   :  { %v9014_v12 = vpop.eup %9013 }
 0x3b8   :  { %v1249_v47 = vadd.f32 1.0, %v9014_v12 }
 0x3b9   :  { %v9016_v57 = vpop.eup %9015 }
 0x3ba   :  { %v9018_v36 = vpop.eup %9017  ;;  %v1212_v59 = vmul.f32 %v9016_v57, %v1210_v21  ;;  %9019 = vrcp.f32 %v1249_v47  ;;  %vm1217_vm4 = vweird.f32 %v9016_v57  ;;  %v1261_v17 = vand.u32 2147483648, %v1249_v47 }
 0x3bb   :  { %v1231_v60 = vmul.f32 %v9018_v36, %v1229_v51  ;;  %9021 = vtanh.f32 %v1205_v30  ;;  %vm1236_vm5 = vweird.f32 %v9018_v36  ;;  %vm1218_vm8 = vmor %vm1216_vm6, %vm1217_vm4  ;;  %vm1255_vm13 = vweird.f32 %v1249_v47 }
 0x3bc   :  { %v1213_v8 = vsub.f32 1.0, %v1212_v59  ;;  %vm1237_vm9 = vmor %vm1235_vm7, %vm1236_vm5  ;;  %v1262_v48 = vor.u32 1.1754944e-38, %v1261_v17 }
 0x3bd   :  { %v1232_v61 = vsub.f32 1.0, %v1231_v60 }
 0x3be   :  { %v1214_v44 = vmul.f32 %v9016_v57, %v1213_v8 }
 0x3bf   :  { %v1233_v35 = vmul.f32 %v9018_v36, %v1232_v61 }
 0x3c0   :  { %v9020_v39 = vpop.eup %9019  ;;  %v1215_v29 = vadd.f32 %v9016_v57, %v1214_v44 }
 0x3c1   :  { %v1234_v16 = vadd.f32 %v9018_v36, %v1233_v35  ;;  %v1251_v45 = vmul.f32 %v9020_v39, %v1249_v47  ;;  %v9022_v5 = vpop.eup %9021  ;;  %vm1256_vm12 = vweird.f32 %v9020_v39 }
 0x3c2   :  { %v1219_v12 = vsel %vm1218_vm8, %v9016_v57, %v1215_v29  ;;  %v1259_v57 = vand.u32 2147483647, %v1249_v47  ;;  %vm1257_vm14 = vmor %vm1255_vm13, %vm1256_vm12 }
 0x3c3   :  { %v1224_v30 = vsel %vm1221_vm10, %v1223_v62, %v1219_v12  ;;  %v1238_v59 = vsel %vm1237_vm9, %v9018_v36, %v1234_v16  ;;  %v1252_v60 = vsub.f32 1.0, %v1251_v45 }
 0x3c4   :  { %v1243_v8 = vsel %vm1240_vm11, %v1242_v49, %v1238_v59  ;;  %v1266_v61 = vmul.f32 %v9022_v5, %v1224_v30  ;;  %vm1260_vm15 = vcmp.eq.f32.partialorder %v1259_v57, 8.507059e+37 }
 0x3c5   :  { %v1265_v11 = vmul.f32 %v1243_v8, %v10447_v33  ;;  %v1253_v44 = vmul.f32 %v9020_v39, %v1252_v60 }
 0x3c7   :  { %v10491_v21 = vadd.f32 %v1266_v61, %v1265_v11  ;;  %v1254_v51 = vadd.f32 %v9020_v39, %v1253_v44 }
 0x3c9   :  { %9023 = vtanh.f32 %v10491_v21  ;;  %v1258_v43 = vsel %vm1257_vm14, %v9020_v39, %v1254_v51 }
 0x3ca   :  { %v1263_v35 = vsel %vm1260_vm15, %v1262_v48, %v1258_v43 }
 0x3cf   :  { %v9024_v36 = vpop.eup %9023 }
 0x3d0   :  { %v10494_v22 = vmul.f32 %v9024_v36, %v1263_v35 }
 0x3d2   :  { %13162 = vst [vmem:[#allocation29_spill] sm:$0xff] %v10494_v22  ;;  %v1277_v33 = vpack.c.bf16 %v10494_v22, %v10494_v22 }
 0x3d4   :  { %1286 = vmatmul.bf16.vlgmr.msra.gmra.mxu0 %v1277_v33  ;;  %1299 = vmatmul.bf16.vlgmr.msra.gmra.mxu1 %v1277_v33 }
 0x3d5   :  { %1312 = vmatmul.bf16.vlgmr.msra.gmra.mxu2 %v1277_v33  ;;  %1325 = vmatmul.bf16.vlgmr.msra.gmra.mxu3 %v1277_v33 }
 0x3d6   :  { %1532 = vmatpush.bf16.msra.mxu0 %v9819_v54  ;;  %1545 = vmatpush.bf16.msra.mxu1 %v9829_v58  ;;  %v13163_v54 = vld [vmem:[#allocation36_spill] sm:$0xff] }
 0x3d7   :  { %1558 = vmatpush.bf16.msra.mxu2 %v9849_v1  ;;  %1571 = vmatpush.bf16.msra.mxu3 %v9852_v2  ;;  %v322_v58 = vadd.f32 %v13163_v54, %v10230_v63  ;;  %v13164_v1 = vld [vmem:[#allocation38_spill] sm:$0xff] }
 0x3d8   :  { %v351_v2 = vadd.f32 %v13164_v1, %v10234_v7 }
 0x3da   :  { %1533 = vmatpush.bf16.msra.mxu0 %v9854_v3  ;;  %1546 = vmatpush.bf16.msra.mxu1 %v9865_v6 }
 0x3db   :  { %1559 = vmatpush.bf16.msra.mxu2 %v9892_v13  ;;  %1572 = vmatpush.bf16.msra.mxu3 %v9896_v14 }
 0x3de   :  { %1534 = vmatpush.bf16.msra.mxu0 %v9898_v15  ;;  %1547 = vmatpush.bf16.msra.mxu1 %v9910_v19 }
 0x3df   :  { %1560 = vmatpush.bf16.msra.mxu2 %v9928_v25  ;;  %1573 = vmatpush.bf16.msra.mxu3 %v9935_v27  ;;  %v13165_v25 = vld [vmem:[#allocation40_spill] sm:$0xff] }
 0x3e0   :  { %v409_v27 = vadd.f32 %v13165_v25, %v10246_v20 }
 0x3e2   :  { %1535 = vmatpush.bf16.msra.mxu0 %v9937_v28  ;;  %1548 = vmatpush.bf16.msra.mxu1 %v9949_v32 }
 0x3e3   :  { %1561 = vmatpush.bf16.msra.mxu2 %v9973_v40  ;;  %1574 = vmatpush.bf16.msra.mxu3 %v9977_v41 }
 0x3e6   :  { %1536 = vmatpush.bf16.msra.mxu0 %v9979_v42  ;;  %1549 = vmatpush.bf16.msra.mxu1 %v9990_v46 }
 0x3e7   :  { %1562 = vmatpush.bf16.msra.mxu2 %v10008_v52  ;;  %1575 = vmatpush.bf16.msra.mxu3 %v10012_v53 }
 0x3ea   :  { %1537 = vmatpush.bf16.msra.mxu0 %v10014_v55  ;;  %1550 = vmatpush.bf16.msra.mxu1 %v10019_v56 }
 0x3eb   :  { %1563 = vmatpush.bf16.msra.mxu2 %v10061_v10  ;;  %1576 = vmatpush.bf16.msra.mxu3 %v10045_v0  ;;  %v13166_v10 = vld [vmem:[#allocation39_spill] sm:$0xff] }
 0x3ee   :  { %1538 = vmatpush.bf16.msra.mxu0 %v10047_v4  ;;  %1551 = vmatpush.bf16.msra.mxu1 %v10059_v9 }
 0x3ef   :  { %1564 = vmatpush.bf16.msra.mxu2 %v10094_v26  ;;  %1577 = vmatpush.bf16.msra.mxu3 %v10090_v23  ;;  %v380_v23 = vadd.f32 %v13166_v10, %v10244_v18 }
 0x3f2   :  { %1539 = vmatpush.bf16.msra.mxu0 %v10092_v24  ;;  %1552 = vmatpush.bf16.msra.mxu1 %v10103_v31 }
 0x3f3   :  { %1565 = vmatpush.bf16.msra.mxu2 %v10118_v37  ;;  %1578 = vmatpush.bf16.msra.mxu3 %v10122_v38 }
 0x451   :  { %v1287_v3 = vpop.f32.mrf.mxu0  ;;  %v1300_v6 = vpop.f32.mrf.mxu1 }
 0x452   :  { %v1330_v13 = vadd.f32 %v1287_v3, %v322_v58  ;;  %v1331_v14 = vadd.f32 %v1300_v6, %v351_v2 }
 0x454   :  { %v7466_v15 = vmul.f32 -1.442695, %v1330_v13  ;;  %v7467_v19 = vmul.f32 -1.442695, %v1331_v14 }
 0x456   :  { %9025 = vpow2.f32 %v7466_v15 }
 0x457   :  { %9027 = vpow2.f32 %v7467_v19 }
 0x458   :  { %v1313_v28 = vpop.f32.mrf.mxu2  ;;  %v1326_v32 = vpop.f32.mrf.mxu3 }
 0x459   :  { %v1333_v40 = vadd.f32 %v1326_v32, %v409_v27  ;;  %v1289_v41 = vpop.f32.mrf.mxu0  ;;  %v1302_v42 = vpop.f32.mrf.mxu1  ;;  %v1332_v31 = vadd.f32 %v1313_v28, %v380_v23  ;;  %v13168_v27 = vld [vmem:[#allocation41_spill] sm:$0xff]  ;;  %v13169_v32 = vld [vmem:[#allocation42_spill] sm:$0xff] }
 0x45b   :  { %v7468_v46 = vmul.f32 -1.442695, %v1333_v40 }
 0x45c   :  { %v9026_v52 = vpop.eup %9025 }
 0x45d   :  { %v9028_v53 = vpop.eup %9027  ;;  %v1337_v55 = vadd.f32 1.0, %v9026_v52  ;;  %9029 = vpow2.f32 %v7468_v46 }
 0x45e   :  { %v1356_v56 = vadd.f32 1.0, %v9028_v53  ;;  %v13170_v53 = vld [vmem:[#allocation45_spill] sm:$0xff] }
 0x45f   :  { %9031 = vrcp.f32 %v1337_v55  ;;  %v1349_v29 = vand.u32 2147483648, %v1337_v55  ;;  %v1347_v45 = vand.u32 2147483647, %v1337_v55  ;;  %vm1343_vm3 = vweird.f32 %v1337_v55 }
 0x460   :  { %9033 = vrcp.f32 %v1356_v56  ;;  %v1315_v0 = vpop.f32.mrf.mxu2  ;;  %v1328_v4 = vpop.f32.mrf.mxu3  ;;  %v1368_v62 = vand.u32 2147483648, %v1356_v56  ;;  %v1366_v12 = vand.u32 2147483647, %v1356_v56  ;;  %vm1362_vm4 = vweird.f32 %v1356_v56 }
 0x461   :  { %v1350_v59 = vor.u32 1.1754944e-38, %v1349_v29  ;;  %vm1348_vm7 = vcmp.eq.f32.partialorder %v1347_v45, 8.507059e+37  ;;  %v7535_v45 = vld [vmem:[#allocation7 + $0x78] sm:$0xf0] }
 0x462   :  { %v1369_v61 = vor.u32 1.1754944e-38, %v1368_v62  ;;  %vm1367_vm8 = vcmp.eq.f32.partialorder %v1366_v12, 8.507059e+37  ;;  %v13171_v12 = vld [vmem:[#allocation43_spill] sm:$0xff] }
 0x463   :  { %v9030_v9 = vpop.eup %9029 }
 0x464   :  { %v1376_v24 = vadd.f32 1.0, %v9030_v9 }
 0x465   :  { %v9032_v26 = vpop.eup %9031 }
 0x466   :  { %v9034_v37 = vpop.eup %9033  ;;  %v1339_v38 = vmul.f32 %v9032_v26, %v1337_v55  ;;  %9035 = vrcp.f32 %v1376_v24  ;;  %vm1344_vm1 = vweird.f32 %v9032_v26  ;;  %v1388_v1 = vand.u32 2147483648, %v1376_v24 }
 0x467   :  { %v1358_v11 = vmul.f32 %v9034_v37, %v1356_v56  ;;  %9037 = vtanh.f32 %v1332_v31  ;;  %vm1363_vm2 = vweird.f32 %v9034_v37  ;;  %vm1345_vm5 = vmor %vm1343_vm3, %vm1344_vm1  ;;  %vm1382_vm10 = vweird.f32 %v1376_v24 }
 0x468   :  { %v1340_v47 = vsub.f32 1.0, %v1339_v38  ;;  %vm1364_vm6 = vmor %vm1362_vm4, %vm1363_vm2  ;;  %v1386_v2 = vand.u32 2147483647, %v1376_v24  ;;  %v1389_v6 = vor.u32 1.1754944e-38, %v1388_v1  ;;  %v8681_v38 = vld [vmem:[#allocation7 + $0x6c] sm:$0xf0] }
 0x469   :  { %v1359_v39 = vsub.f32 1.0, %v1358_v11  ;;  %v7517_v1 = vld [vmem:[#allocation7 + $0x48] sm:$0xf] }
 0x46a   :  { %v1341_v16 = vmul.f32 %v9032_v26, %v1340_v47  ;;  %vm1387_vm12 = vcmp.eq.f32.partialorder %v1386_v2, 8.507059e+37  ;;  %v8679_v47 = vld [vmem:[#allocation7 + $0x64] sm:$0xf]  ;;  %v8678_v2 = vld [vmem:[#allocation7 + $0x54] sm:$0xf0] }
 0x46b   :  { %v1360_v49 = vmul.f32 %v9034_v37, %v1359_v39  ;;  %v7527_v39 = vld [vmem:[#allocation7 + $0x70] sm:$0xf0] }
 0x46c   :  { %v9036_v5 = vpop.eup %9035  ;;  %v1342_v30 = vadd.f32 %v9032_v26, %v1341_v16  ;;  %v7530_v62 = vor.u32 %v8679_v47, %v7527_v39  ;;  %v8680_v16 = vld [vmem:[#allocation7 + $0x6c] sm:$0xf] }
 0x46d   :  { %v1361_v60 = vadd.f32 %v9034_v37, %v1360_v49  ;;  %v1378_v8 = vmul.f32 %v9036_v5, %v1376_v24  ;;  %v9038_v51 = vpop.eup %9037  ;;  %vm1383_vm9 = vweird.f32 %v9036_v5 }
 0x46e   :  { %v1346_v44 = vsel %vm1345_vm5, %v9032_v26, %v1342_v30  ;;  %vm1384_vm11 = vmor %vm1382_vm10, %vm1383_vm9  ;;  %v7525_v26 = vld [vmem:[#allocation7 + $0x60] sm:$0xf]  ;;  %v7538_v30 = vor.u32 %v8680_v16, %v7535_v45  ;;  %v8668_v16 = vld [vmem:[#allocation7 + $0xc] sm:$0xf] }
 0x46f   :  { %v1351_v17 = vsel %vm1348_vm7, %v1350_v59, %v1346_v44  ;;  %v1365_v57 = vsel %vm1364_vm6, %v9034_v37, %v1361_v60  ;;  %v1379_v43 = vsub.f32 1.0, %v1378_v8  ;;  %v7526_v11 = vor.u32 %v8681_v38, %v7525_v26  ;;  %v7533_v59 = vld [vmem:[#allocation7 + $0x68] sm:$0xf]  ;;  %v8682_v60 = vld [vmem:[#allocation7 + $0x74] sm:$0xf0] }
 0x470   :  { %v1370_v48 = vsel %vm1367_vm8, %v1369_v61, %v1365_v57  ;;  %v1393_v36 = vmul.f32 %v9038_v51, %v1351_v17  ;;  %v7509_v8 = vld [vmem:[#allocation7 + $0x40] sm:$0xf]  ;;  %v7534_v44 = vor.u32 %v8682_v60, %v7533_v59  ;;  %v8677_v51 = vld [vmem:[#allocation7 + $0x4c] sm:$0xf0]  ;;  %v8675_v17 = vld [vmem:[#allocation7 + $0x44] sm:$0xf] }
 0x471   :  { %v1392_v35 = vmul.f32 %v1370_v48, %v10491_v21  ;;  %v1380_v33 = vmul.f32 %v9036_v5, %v1379_v43  ;;  %v7510_v43 = vor.u32 %v8677_v51, %v7509_v8  ;;  %v7511_v48 = vld [vmem:[#allocation7 + $0x50] sm:$0xf0]  ;;  %v8669_v38 = vld [vmem:[#allocation7 + $0xc] sm:$0xf0]  ;;  %v7487_v45 = vld [vmem:[#allocation7 + $0x18] sm:$0xf0] }
 0x472   :  { %v7485_v60 = vld [vmem:[#allocation7 + $0x8] sm:$0xf]  ;;  %v8670_v8 = vld [vmem:[#allocation7 + $0x14] sm:$0xf0]  ;;  %v7490_v51 = vor.u32 %v8668_v16, %v7487_v45  ;;  %v8704_v45 = vld [vmem:[#allocation9 + $0xac] sm:$0xf] }
 0x473   :  { %v10539_v54 = vadd.f32 %v1393_v36, %v1392_v35  ;;  %v1381_v58 = vadd.f32 %v9036_v5, %v1380_v33  ;;  %v8676_v36 = vld [vmem:[#allocation7 + $0x4c] sm:$0xf]  ;;  %v7519_v35 = vld [vmem:[#allocation7 + $0x58] sm:$0xf0]  ;;  %v8710_v16 = vld [vmem:[#allocation9 + $0xd4] sm:$0xf0] }
 0x475   :  { %9039 = vtanh.f32 %v10539_v54  ;;  %v1385_v3 = vsel %vm1384_vm11, %v9036_v5, %v1381_v58 }
 0x476   :  { %v1390_v14 = vsel %vm1387_vm12, %v1389_v6, %v1385_v3  ;;  %v7493_v3 = vld [vmem:[#allocation7 + $0x20] sm:$0xf] }
 0x47b   :  { %v9040_v13 = vpop.eup %9039 }
 0x47c   :  { %v10542_v15 = vmul.f32 %v9040_v13, %v1390_v14 }
 0x47e   :  { %13167 = vst [vmem:[#allocation27_spill] sm:$0xff] %v10542_v15  ;;  %v1404_v21 = vpack.c.bf16 %v10542_v15, %v10542_v15 }
 0x480   :  { %1413 = vmatmul.bf16.vlgmr.msrb.gmra.mxu0 %v1404_v21  ;;  %1426 = vmatmul.bf16.vlgmr.msrb.gmra.mxu1 %v1404_v21 }
 0x481   :  { %1439 = vmatmul.bf16.vlgmr.msrb.gmra.mxu2 %v1404_v21  ;;  %1452 = vmatmul.bf16.vlgmr.msrb.gmra.mxu3 %v1404_v21  ;;  %v8673_v21 = vld [vmem:[#allocation7 + $0x2c] sm:$0xf0] }
 0x482   :  { %1763 = vmatpush.bf16.msrb.mxu0 %v7526_v11  ;;  %1792 = vmatpush.bf16.msrb.mxu1 %v7530_v62  ;;  %v8667_v11 = vld [vmem:[#allocation7 + $0x4] sm:$0xf]  ;;  %v7479_v62 = vld [vmem:[#allocation7 + $0x10] sm:$0xf0] }
 0x483   :  { %1850 = vmatpush.bf16.msrb.mxu3 %v7538_v30  ;;  %1821 = vmatpush.bf16.msrb.mxu2 %v7534_v44  ;;  %v7482_v44 = vor.u32 %v8667_v11, %v7479_v62  ;;  %v8705_v11 = vld [vmem:[#allocation9 + $0xac] sm:$0xf0]  ;;  %v7661_v62 = vld [vmem:[#allocation9 + $0xc8] sm:$0xf] }
 0x486   :  { %1764 = vmatpush.bf16.msrb.mxu0 %v7510_v43 }
 0x4fd   :  { %v1414_v19 = vpop.f32.mrf.mxu0  ;;  %v1427_v25 = vpop.f32.mrf.mxu1 }
 0x4fe   :  { %v1457_v28 = vadd.f32 %v1414_v19, %v13168_v27  ;;  %v1458_v40 = vadd.f32 %v1427_v25, %v13169_v32  ;;  %v7514_v25 = vor.u32 %v8675_v17, %v7511_v48  ;;  %v7522_v27 = vor.u32 %v8676_v36, %v7519_v35  ;;  %v8671_v32 = vld [vmem:[#allocation7 + $0x24] sm:$0xf] }
 0x4ff   :  { %v7486_v36 = vor.u32 %v8670_v8, %v7485_v60  ;;  %v7621_v60 = vld [vmem:[#allocation9 + $0x80] sm:$0xf]  ;;  %v8706_v8 = vld [vmem:[#allocation9 + $0xb4] sm:$0xf0] }
 0x500   :  { %v7469_v41 = vmul.f32 -1.442695, %v1457_v28  ;;  %v7470_v42 = vmul.f32 -1.442695, %v1458_v40  ;;  %v7518_v28 = vor.u32 %v8678_v2, %v7517_v1  ;;  %v7495_v40 = vld [vmem:[#allocation7 + $0x30] sm:$0xf0]  ;;  %1793 = vmatpush.bf16.msrb.mxu1 %v7514_v25  ;;  %1851 = vmatpush.bf16.msrb.mxu3 %v7522_v27 }
 0x501   :  { %v8711_v25 = vld [vmem:[#allocation9 + $0xe4] sm:$0xf]  ;;  %v7671_v27 = vld [vmem:[#allocation9 + $0xf0] sm:$0xf0] }
 0x502   :  { %9041 = vpow2.f32 %v7469_v41  ;;  %1822 = vmatpush.bf16.msrb.mxu2 %v7518_v28  ;;  %v8712_v28 = vld [vmem:[#allocation9 + $0xec] sm:$0xf] }
 0x503   :  { %9043 = vpow2.f32 %v7470_v42  ;;  %v8714_v42 = vld [vmem:[#allocation9 + $0xf4] sm:$0xf0] }
 0x504   :  { %v1440_v46 = vpop.f32.mrf.mxu2  ;;  %v1453_v52 = vpop.f32.mrf.mxu3 }
 0x505   :  { %v1460_v55 = vadd.f32 %v1453_v52, %v13170_v53  ;;  %v1416_v56 = vpop.f32.mrf.mxu0  ;;  %v1429_v0 = vpop.f32.mrf.mxu1  ;;  %v1459_v5 = vadd.f32 %v1440_v46, %v13171_v12  ;;  %v7494_v52 = vor.u32 %v8673_v21, %v7493_v3  ;;  %v8672_v53 = vld [vmem:[#allocation7 + $0x2c] sm:$0xf] }
 0x506   :  { %v7498_v56 = vor.u32 %v8671_v32, %v7495_v40  ;;  %v7503_v0 = vld [vmem:[#allocation7 + $0x38] sm:$0xf0] }
 0x507   :  { %v7471_v4 = vmul.f32 -1.442695, %v1460_v55  ;;  %1765 = vmatpush.bf16.msrb.mxu0 %v7494_v52  ;;  %v7506_v26 = vor.u32 %v8672_v53, %v7503_v0  ;;  %v7679_v40 = vld [vmem:[#allocation9 + $0xf8] sm:$0xf0]  ;;  %v10607_v52 = vor.u32 %v8711_v25, %v7671_v27  ;;  %v7653_v53 = vld [vmem:[#allocation9 + $0xc0] sm:$0xf] }
 0x508   :  { %v9042_v9 = vpop.eup %9041  ;;  %1794 = vmatpush.bf16.msrb.mxu1 %v7498_v56  ;;  %v8709_v56 = vld [vmem:[#allocation9 + $0xcc] sm:$0xf0]  ;;  %v8707_v0 = vld [vmem:[#allocation9 + $0xc4] sm:$0xf]  ;;  %v7629_v25 = vld [vmem:[#allocation9 + $0x88] sm:$0xf] }
 0x509   :  { %v9044_v10 = vpop.eup %9043  ;;  %v10549_v23 = vadd.f32 1.0, %v9042_v9  ;;  %9045 = vpow2.f32 %v7471_v4  ;;  %v7501_v4 = vld [vmem:[#allocation7 + $0x28] sm:$0xf]  ;;  %v8674_v9 = vld [vmem:[#allocation7 + $0x34] sm:$0xf0]  ;;  %1852 = vmatpush.bf16.msrb.mxu3 %v7506_v26 }
 0x50a   :  { %v10551_v24 = vadd.f32 1.0, %v9044_v10  ;;  %v7663_v26 = vld [vmem:[#allocation9 + $0xd8] sm:$0xf0]  ;;  %v8702_v27 = vld [vmem:[#allocation9 + $0x94] sm:$0xf0] }
 0x50b   :  { %9047 = vrcp.f32 %v10549_v23  ;;  %v1474_v29 = vand.u32 2147483647, %v10549_v23  ;;  %v1476_v14 = vand.u32 2147483648, %v10549_v23  ;;  %vm1470_vm2 = vweird.f32 %v10549_v23 }
 0x50c   :  { %9049 = vrcp.f32 %v10551_v24  ;;  %v1442_v31 = vpop.f32.mrf.mxu2  ;;  %v1455_v37 = vpop.f32.mrf.mxu3  ;;  %v1495_v13 = vand.u32 2147483648, %v10551_v24  ;;  %v1493_v46 = vand.u32 2147483647, %v10551_v24  ;;  %vm1489_vm1 = vweird.f32 %v10551_v24  ;;  %1795 = vmatpush.bf16.msrb.mxu1 %v7482_v44  ;;  %v8701_v44 = vld [vmem:[#allocation9 + $0x8c] sm:$0xf0] }
 0x50d   :  { %vm10570_vm13 = vcmp.eq.f32.partialorder %v1474_v29, 8.507059e+37  ;;  %v7502_v31 = vor.u32 %v8674_v9, %v7501_v4  ;;  %v7477_v37 = vld [vmem:[#allocation7] sm:$0xf]  ;;  %1853 = vmatpush.bf16.msrb.mxu3 %v7490_v51  ;;  %v7655_v4 = vld [vmem:[#allocation9 + $0xd0] sm:$0xf0] }
 0x50e   :  { %v7478_v29 = vor.u32 %v8669_v38, %v7477_v37  ;;  %v1496_v12 = vor.u32 1.1754944e-38, %v1495_v13  ;;  %vm1494_vm5 = vcmp.eq.f32.partialorder %v1493_v46, 8.507059e+37  ;;  %v10617_v37 = vor.u32 %v8707_v0, %v7655_v4  ;;  %v7637_v38 = vld [vmem:[#allocation9 + $0xa0] sm:$0xf]  ;;  %v8699_v51 = vld [vmem:[#allocation9 + $0x84] sm:$0xf] }
 0x50f   :  { %v9046_v49 = vpop.eup %9045  ;;  %1823 = vmatpush.bf16.msrb.mxu2 %v7502_v31  ;;  %v10615_v31 = vor.u32 %v8709_v56, %v7653_v53  ;;  %v8692_v0 = vld [vmem:[#allocation9 + $0x4c] sm:$0xf]  ;;  %v7599_v4 = vld [vmem:[#allocation9 + $0x58] sm:$0xf0] }
 0x510   :  { %v10557_v61 = vadd.f32 1.0, %v9046_v49  ;;  %1766 = vmatpush.bf16.msrb.mxu0 %v7478_v29  ;;  %v7639_v29 = vld [vmem:[#allocation9 + $0xb0] sm:$0xf0] }
 0x511   :  { %v10559_v57 = vpop.eup %9047 }
 0x512   :  { %v10561_v33 = vpop.eup %9049  ;;  %v1466_v58 = vmul.f32 %v10559_v57, %v10549_v23  ;;  %9051 = vrcp.f32 %v10557_v61  ;;  %vm1471_vm14 = vweird.f32 %v10559_v57  ;;  %vm1509_vm7 = vweird.f32 %v10557_v61 }
 0x513   :  { %v1485_v6 = vmul.f32 %v10561_v33, %v10551_v24  ;;  %9053 = vtanh.f32 %v1459_v5  ;;  %vm1490_vm15 = vweird.f32 %v10561_v33  ;;  %vm1472_vm3 = vmor %vm1470_vm2, %vm1471_vm14  ;;  %v1477_v5 = vor.u32 1.1754944e-38, %v1476_v14  ;;  %1824 = vmatpush.bf16.msrb.mxu2 %v7486_v36  ;;  %v8713_v14 = vld [vmem:[#allocation9 + $0xec] sm:$0xf0]  ;;  %v7631_v36 = vld [vmem:[#allocation9 + $0x98] sm:$0xf0] }
 0x514   :  { %v1467_v19 = vsub.f32 1.0, %v1466_v58  ;;  %vm1491_vm4 = vmor %vm1489_vm1, %vm1490_vm15  ;;  %v1513_v3 = vand.u32 2147483647, %v10557_v61 }
 0x515   :  { %v1486_v41 = vsub.f32 1.0, %v1485_v6 }
 0x516   :  { %v1468_v55 = vmul.f32 %v10559_v57, %v1467_v19  ;;  %vm1514_vm9 = vcmp.eq.f32.partialorder %v1513_v3, 8.507059e+37  ;;  %v8695_v3 = vld [vmem:[#allocation9 + $0x64] sm:$0xf] }
 0x517   :  { %v1487_v10 = vmul.f32 %v10561_v33, %v1486_v41  ;;  %v7677_v41 = vld [vmem:[#allocation9 + $0xe8] sm:$0xf] }
 0x518   :  { %v9052_v47 = vpop.eup %9051  ;;  %v1469_v39 = vadd.f32 %v10559_v57, %v1468_v55  ;;  %v10609_v55 = vor.u32 %v8712_v28, %v7679_v40  ;;  %v10611_v9 = vor.u32 %v8714_v42, %v7677_v41  ;;  %v7589_v28 = vld [vmem:[#allocation9 + $0x40] sm:$0xf]  ;;  %v10665_v40 = vor.u32 %v8702_v27, %v7629_v25  ;;  %v8693_v41 = vld [vmem:[#allocation9 + $0x4c] sm:$0xf0]  ;;  %v8691_v42 = vld [vmem:[#allocation9 + $0x44] sm:$0xf] }
 0x519   :  { %v9054_v49 = vpop.eup %9053  ;;  %v1488_v30 = vadd.f32 %v10561_v33, %v1487_v10  ;;  %v1505_v59 = vmul.f32 %v9052_v47, %v10557_v61  ;;  %vm1510_vm6 = vweird.f32 %v9052_v47  ;;  %v8708_v10 = vld [vmem:[#allocation9 + $0xcc] sm:$0xf]  ;;  %v10669_v53 = vor.u32 %v8693_v41, %v7589_v28  ;;  %v7567_v28 = vld [vmem:[#allocation9 + $0x18] sm:$0xf0] }
 0x51a   :  { %v1473_v23 = vsel %vm1472_vm3, %v10559_v57, %v1469_v39  ;;  %vm1511_vm8 = vmor %vm1509_vm7, %vm1510_vm6  ;;  %v10620_v39 = vor.u32 %v8708_v10, %v7663_v26  ;;  %v7613_v10 = vld [vmem:[#allocation9 + $0x68] sm:$0xf]  ;;  %v10674_v26 = vor.u32 %v8692_v0, %v7599_v4  ;;  %v8684_v25 = vld [vmem:[#allocation9 + $0xc] sm:$0xf] }
 0x51b   :  { %v1478_v17 = vsel %vm10570_vm13, %v1477_v5, %v1473_v23  ;;  %v1492_v43 = vsel %vm1491_vm4, %v10561_v33, %v1488_v30  ;;  %v1506_v48 = vsub.f32 1.0, %v1505_v59  ;;  %v1515_v33 = vand.u32 2147483648, %v10557_v61  ;;  %v7645_v5 = vld [vmem:[#allocation9 + $0xa8] sm:$0xf]  ;;  %v13177_v4 = vld [vmem:[#allocation22_spill] sm:$0xff] }
 0x51c   :  { %v1497_v35 = vsel %vm1494_vm5, %v1496_v12, %v1492_v43  ;;  %v1520_v58 = vmul.f32 %v9054_v49, %v1478_v17  ;;  %v7647_v49 = vld [vmem:[#allocation9 + $0xb8] sm:$0xf0]  ;;  %v10623_v12 = vor.u32 %v8710_v16, %v7661_v62  ;;  %v10627_v30 = vor.u32 %v8705_v11, %v7637_v38  ;;  %v7623_v17 = vld [vmem:[#allocation9 + $0x90] sm:$0xf0]  ;;  %v8698_v38 = vld [vmem:[#allocation9 + $0x74] sm:$0xf0] }
 0x51d   :  { %v1519_v24 = vmul.f32 %v1497_v35, %v10539_v54  ;;  %v1507_v1 = vmul.f32 %v9052_v47, %v1506_v48  ;;  %v1516_v13 = vor.u32 1.1754944e-38, %v1515_v33  ;;  %v7669_v54 = vld [vmem:[#allocation9 + $0xe0] sm:$0xf]  ;;  %v10632_v23 = vor.u32 %v8704_v45, %v7647_v49  ;;  %v8700_v48 = vld [vmem:[#allocation9 + $0x8c] sm:$0xf] }
 0x51e   :  { %v10605_v61 = vor.u32 %v8713_v14, %v7669_v54  ;;  %v10635_v43 = vor.u32 %v8706_v8, %v7645_v5  ;;  %v10639_v35 = vor.u32 %v8701_v44, %v7621_v60  ;;  %v8697_v33 = vld [vmem:[#allocation9 + $0x6c] sm:$0xf0]  ;;  %v8696_v54 = vld [vmem:[#allocation9 + $0x6c] sm:$0xf]  ;;  %v7615_v14 = vld [vmem:[#allocation9 + $0x78] sm:$0xf0]  ;;  %v10676_v11 = vor.u32 %v8698_v38, %v7613_v10 }
 0x51f   :  { %v10595_v57 = vadd.f32 %v1520_v58, %v1519_v24  ;;  %v1508_v2 = vadd.f32 %v9052_v47, %v1507_v1  ;;  %v10641_v58 = vor.u32 %v8699_v51, %v7623_v17  ;;  %v10644_v24 = vor.u32 %v8700_v48, %v7631_v36  ;;  %v13175_v1 = vld [vmem:[#allocation20_spill] sm:$0xff]  ;;  %v8689_v62 = vld [vmem:[#allocation9 + $0x2c] sm:$0xf0]  ;;  %v7575_v49 = vld [vmem:[#allocation9 + $0x30] sm:$0xf0] }
 0x520   :  { %v8687_v16 = vld [vmem:[#allocation9 + $0x24] sm:$0xf]  ;;  %v8688_v5 = vld [vmem:[#allocation9 + $0x2c] sm:$0xf]  ;;  %v7583_v60 = vld [vmem:[#allocation9 + $0x38] sm:$0xf0]  ;;  %v10708_v41 = vor.u32 %v8684_v25, %v7567_v28 }
 0x521   :  { %9055 = vtanh.f32 %v10595_v57  ;;  %v1512_v6 = vsel %vm1511_vm8, %v9052_v47, %v1508_v2  ;;  %v8703_v47 = vld [vmem:[#allocation9 + $0xa4] sm:$0xf]  ;;  %v7605_v2 = vld [vmem:[#allocation9 + $0x60] sm:$0xf]  ;;  %v10692_v8 = vor.u32 %v8687_v16, %v7575_v49  ;;  %v10694_v44 = vor.u32 %v8688_v5, %v7583_v60  ;;  %v7597_v51 = vld [vmem:[#allocation9 + $0x48] sm:$0xf] }
 0x522   :  { %v1517_v19 = vsel %vm1514_vm9, %v1516_v13, %v1512_v6  ;;  %v10629_v59 = vor.u32 %v8703_v47, %v7639_v29  ;;  %v10658_v6 = vor.u32 %v8697_v33, %v7605_v2  ;;  %v7607_v13 = vld [vmem:[#allocation9 + $0x70] sm:$0xf0]  ;;  %v13176_v47 = vld [vmem:[#allocation21_spill] sm:$0xff]  ;;  %v7573_v29 = vld [vmem:[#allocation9 + $0x20] sm:$0xf]  ;;  %v13179_v38 = vmov 0  }
 0x523   :  { %v10690_v45 = vor.u32 %v8689_v62, %v7573_v29  ;;  %v8694_v17 = vld [vmem:[#allocation9 + $0x54] sm:$0xf0]  ;;  %v7557_v48 = vld [vmem:[#allocation9] sm:$0xf]  ;;  %v8683_v2 = vld [vmem:[#allocation9 + $0x4] sm:$0xf] }
 0x524   :  { %v10697_v36 = vor.u32 %v8694_v17, %v7597_v51  ;;  %v7559_v33 = vld [vmem:[#allocation9 + $0x10] sm:$0xf0]  ;;  %v13178_v10 = vld [vmem:[#allocation23_spill] sm:$0xff] }
 0x525   :  { %v13181_v62 = vld [vmem:[#allocation46_spill] sm:$0xff] }
 0x526   :  { %v356_v16 = vadd.f32 %v13181_v62, %v10234_v7 }
 0x527   :  { %v9056_v21 = vpop.eup %9055 }
 0x528   :  { %v10601_v32 = vmul.f32 %v9056_v21, %v1517_v19  ;;  %v10660_v21 = vor.u32 %v8695_v3, %v7607_v13  ;;  %v10662_v19 = vor.u32 %v8696_v54, %v7615_v14  ;;  %v10703_v13 = vor.u32 %v8683_v2, %v7559_v33  ;;  %v7581_v54 = vld [vmem:[#allocation9 + $0x28] sm:$0xf]  ;;  %v8690_v14 = vld [vmem:[#allocation9 + $0x34] sm:$0xf0]  ;;  %v13183_v33 = vld [vmem:[#allocation48_spill] sm:$0xff] }
 0x529   :  { %v10706_v27 = vor.u32 %v8690_v14, %v7581_v54  ;;  %v414_v54 = vadd.f32 %v13183_v33, %v10246_v20 }
 0x52a   :  { %13174 = vst [vmem:[#allocation28_spill] sm:$0xff] %v10601_v32  ;;  %v1531_v46 = vpack.c.bf16 %v10601_v32, %v10601_v32 }
 0x52c   :  { %1540 = vmatmul.bf16.vlgmr.msra.gmra.mxu0 %v1531_v46  ;;  %1553 = vmatmul.bf16.vlgmr.msra.gmra.mxu1 %v1531_v46 }
 0x52d   :  { %1566 = vmatmul.bf16.vlgmr.msra.gmra.mxu2 %v1531_v46  ;;  %1579 = vmatmul.bf16.vlgmr.msra.gmra.mxu3 %v1531_v46  ;;  %v7591_v46 = vld [vmem:[#allocation9 + $0x50] sm:$0xf0] }
 0x52e   :  { %2103 = vmatpush.bf16.msra.mxu0 %v10605_v61  ;;  %2116 = vmatpush.bf16.msra.mxu1 %v10607_v52  ;;  %v10671_v56 = vor.u32 %v8691_v42, %v7591_v46  ;;  %v7565_v42 = vld [vmem:[#allocation9 + $0x8] sm:$0xf]  ;;  %v8686_v46 = vld [vmem:[#allocation9 + $0x14] sm:$0xf0] }
 0x52f   :  { %2142 = vmatpush.bf16.msra.mxu3 %v10609_v55  ;;  %2129 = vmatpush.bf16.msra.mxu2 %v10611_v9  ;;  %v10714_v0 = vor.u32 %v8686_v46, %v7565_v42 }
 0x532   :  { %2104 = vmatpush.bf16.msra.mxu0 %v10615_v31  ;;  %2117 = vmatpush.bf16.msra.mxu1 %v10617_v37 }
 0x533   :  { %2143 = vmatpush.bf16.msra.mxu3 %v10620_v39  ;;  %2130 = vmatpush.bf16.msra.mxu2 %v10623_v12 }
 0x536   :  { %2105 = vmatpush.bf16.msra.mxu0 %v10627_v30  ;;  %2118 = vmatpush.bf16.msra.mxu1 %v10629_v59 }
 0x537   :  { %2144 = vmatpush.bf16.msra.mxu3 %v10632_v23  ;;  %2131 = vmatpush.bf16.msra.mxu2 %v10635_v43 }
 0x53a   :  { %2106 = vmatpush.bf16.msra.mxu0 %v10639_v35  ;;  %2119 = vmatpush.bf16.msra.mxu1 %v10641_v58 }
 0x53b   :  { %2145 = vmatpush.bf16.msra.mxu3 %v10644_v24  ;;  %2132 = vmatpush.bf16.msra.mxu2 %v10665_v40 }
 0x53c   :  { %7539 = vmatmul.msk.bf16.vlgmr.msrb.gmra.mxu0 %vm287_vm0, %v13175_v1  ;;  %7543 = vmatmul.msk.bf16.vlgmr.msrb.gmra.mxu1 %vm287_vm0, %v13175_v1 }
 0x53d   :  { %7551 = vmatmul.msk.bf16.vlgmr.msrb.gmra.mxu3 %vm287_vm0, %v13175_v1  ;;  %7547 = vmatmul.msk.bf16.vlgmr.msrb.gmra.mxu2 %vm287_vm0, %v13175_v1  ;;  %v8685_v1 = vld [vmem:[#allocation9 + $0xc] sm:$0xf0] }
 0x53e   :  { %2107 = vmatpush.bf16.msra.mxu0 %v10658_v6  ;;  %2120 = vmatpush.bf16.msra.mxu1 %v10660_v21  ;;  %v10701_v3 = vor.u32 %v8685_v1, %v7557_v48  ;;  %v13182_v1 = vld [vmem:[#allocation47_spill] sm:$0xff] }
 0x53f   :  { %2146 = vmatpush.bf16.msra.mxu3 %v10662_v19  ;;  %2133 = vmatpush.bf16.msra.mxu2 %v10676_v11  ;;  %v385_v2 = vadd.f32 %v13182_v1, %v10244_v18 }
 0x542   :  { %2108 = vmatpush.bf16.msra.mxu0 %v10669_v53  ;;  %2121 = vmatpush.bf16.msra.mxu1 %v10671_v56 }
 0x543   :  { %2147 = vmatpush.bf16.msra.mxu3 %v10674_v26  ;;  %2134 = vmatpush.bf16.msra.mxu2 %v10697_v36 }
 0x546   :  { %2109 = vmatpush.bf16.msra.mxu0 %v10690_v45  ;;  %2122 = vmatpush.bf16.msra.mxu1 %v10692_v8 }
 0x547   :  { %2148 = vmatpush.bf16.msra.mxu3 %v10694_v44  ;;  %2135 = vmatpush.bf16.msra.mxu2 %v10706_v27 }
 0x54a   :  { %2110 = vmatpush.bf16.msra.mxu0 %v10701_v3  ;;  %2123 = vmatpush.bf16.msra.mxu1 %v10703_v13 }
 0x54b   :  { %2149 = vmatpush.bf16.msra.mxu3 %v10708_v41  ;;  %2136 = vmatpush.bf16.msra.mxu2 %v10714_v0 }
 0x54c   :  { %7540 = vmatmul.msk.bf16.gmra.mxu0 %vm287_vm0, %v13176_v47  ;;  %7544 = vmatmul.msk.bf16.gmra.mxu1 %vm287_vm0, %v13176_v47 }
 0x54d   :  { %7552 = vmatmul.msk.bf16.gmra.mxu3 %vm287_vm0, %v13176_v47  ;;  %7548 = vmatmul.msk.bf16.gmra.mxu2 %vm287_vm0, %v13176_v47  ;;  %v13180_v47 = vld [vmem:[#allocation44_spill] sm:$0xff] }
 0x54e   :  { %2228 = vmatpush.bf16.msrb.mxu0 %v10605_v61  ;;  %2241 = vmatpush.bf16.msrb.mxu1 %v10607_v52  ;;  %v327_v29 = vadd.f32 %v13180_v47, %v10230_v63 }
 0x54f   :  { %2267 = vmatpush.bf16.msrb.mxu3 %v10609_v55  ;;  %2254 = vmatpush.bf16.msrb.mxu2 %v10611_v9 }
 0x552   :  { %2229 = vmatpush.bf16.msrb.mxu0 %v10615_v31  ;;  %2242 = vmatpush.bf16.msrb.mxu1 %v10617_v37 }
 0x553   :  { %2268 = vmatpush.bf16.msrb.mxu3 %v10620_v39  ;;  %2255 = vmatpush.bf16.msrb.mxu2 %v10623_v12 }
 0x556   :  { %2230 = vmatpush.bf16.msrb.mxu0 %v10627_v30  ;;  %2243 = vmatpush.bf16.msrb.mxu1 %v10629_v59 }
 0x557   :  { %2269 = vmatpush.bf16.msrb.mxu3 %v10632_v23  ;;  %2256 = vmatpush.bf16.msrb.mxu2 %v10635_v43 }
 0x55a   :  { %2231 = vmatpush.bf16.msrb.mxu0 %v10639_v35  ;;  %2244 = vmatpush.bf16.msrb.mxu1 %v10641_v58 }
 0x55b   :  { %2270 = vmatpush.bf16.msrb.mxu3 %v10644_v24  ;;  %2257 = vmatpush.bf16.msrb.mxu2 %v10665_v40 }
 0x55c   :  { %7541 = vmatmul.msk.bf16.gmra.mxu0 %vm287_vm0, %v13177_v4  ;;  %7545 = vmatmul.msk.bf16.gmra.mxu1 %vm287_vm0, %v13177_v4 }
 0x55d   :  { %7553 = vmatmul.msk.bf16.gmra.mxu3 %vm287_vm0, %v13177_v4  ;;  %7549 = vmatmul.msk.bf16.gmra.mxu2 %vm287_vm0, %v13177_v4  ;;  %v1669_v4 = vld [vmem:[%s13030_s6] sm:$0xf] }
 0x55e   :  { %2232 = vmatpush.bf16.msrb.mxu0 %v10658_v6  ;;  %2245 = vmatpush.bf16.msrb.mxu1 %v10660_v21  ;;  %v10812_v62 = vperm.slane %v1669_v4, 0  ;;  %v10814_v20 = vperm.slane %v1669_v4, 1  ;;  %v10824_v33 = vperm.slane %v1669_v4, 3 }
 0x55f   :  { %2271 = vmatpush.bf16.msrb.mxu3 %v10662_v19  ;;  %2258 = vmatpush.bf16.msrb.mxu2 %v10676_v11 }
 0x560   :  { %13184 = vst [vmem:[#allocation30_spill] sm:$0xff] %v10814_v20 }
 0x561   :  { %13187 = vst [vmem:[#allocation33_spill] sm:$0xff] %v10824_v33 }
 0x562   :  { %2233 = vmatpush.bf16.msrb.mxu0 %v10669_v53  ;;  %2246 = vmatpush.bf16.msrb.mxu1 %v10671_v56 }
 0x563   :  { %2272 = vmatpush.bf16.msrb.mxu3 %v10674_v26  ;;  %2259 = vmatpush.bf16.msrb.mxu2 %v10697_v36 }
 0x566   :  { %2234 = vmatpush.bf16.msrb.mxu0 %v10690_v45  ;;  %2247 = vmatpush.bf16.msrb.mxu1 %v10692_v8 }
 0x567   :  { %2273 = vmatpush.bf16.msrb.mxu3 %v10694_v44  ;;  %2260 = vmatpush.bf16.msrb.mxu2 %v10706_v27 }
 0x56a   :  { %2235 = vmatpush.bf16.msrb.mxu0 %v10701_v3  ;;  %2248 = vmatpush.bf16.msrb.mxu1 %v10703_v13 }
 0x56b   :  { %2274 = vmatpush.bf16.msrb.mxu3 %v10708_v41  ;;  %2261 = vmatpush.bf16.msrb.mxu2 %v10714_v0 }
 0x56c   :  { %7542 = vmatmul.msk.bf16.gmra.mxu0 %vm287_vm0, %v13178_v10  ;;  %7546 = vmatmul.msk.bf16.gmra.mxu1 %vm287_vm0, %v13178_v10 }
 0x56d   :  { %7554 = vmatmul.msk.bf16.gmra.mxu3 %vm287_vm0, %v13178_v10  ;;  %7550 = vmatmul.msk.bf16.gmra.mxu2 %vm287_vm0, %v13178_v10 }
 0x57c   :  { %2111 = vmatmul.bf16.vlgmr.msra.gmra.mxu0 %v13179_v38  ;;  %2124 = vmatmul.bf16.vlgmr.msra.gmra.mxu1 %v13179_v38 }
 0x57d   :  { %2150 = vmatmul.bf16.vlgmr.msra.gmra.mxu3 %v13179_v38  ;;  %2137 = vmatmul.bf16.vlgmr.msra.gmra.mxu2 %v13179_v38 }
 0x57e   :  { %2353 = vmatpush.bf16.msra.mxu0 %v10605_v61  ;;  %2366 = vmatpush.bf16.msra.mxu1 %v10607_v52 }
 0x57f   :  { %2379 = vmatpush.bf16.msra.mxu2 %v10611_v9  ;;  %2392 = vmatpush.bf16.msra.mxu3 %v10609_v55 }
 0x582   :  { %2354 = vmatpush.bf16.msra.mxu0 %v10615_v31  ;;  %2367 = vmatpush.bf16.msra.mxu1 %v10617_v37 }
 0x583   :  { %2380 = vmatpush.bf16.msra.mxu2 %v10623_v12  ;;  %2393 = vmatpush.bf16.msra.mxu3 %v10620_v39 }
 0x586   :  { %2355 = vmatpush.bf16.msra.mxu0 %v10627_v30  ;;  %2368 = vmatpush.bf16.msra.mxu1 %v10629_v59 }
 0x587   :  { %2381 = vmatpush.bf16.msra.mxu2 %v10635_v43  ;;  %2394 = vmatpush.bf16.msra.mxu3 %v10632_v23 }
 0x58a   :  { %2356 = vmatpush.bf16.msra.mxu0 %v10639_v35  ;;  %2369 = vmatpush.bf16.msra.mxu1 %v10641_v58 }
 0x58b   :  { %2382 = vmatpush.bf16.msra.mxu2 %v10665_v40  ;;  %2395 = vmatpush.bf16.msra.mxu3 %v10644_v24 }
 0x58e   :  { %2357 = vmatpush.bf16.msra.mxu0 %v10658_v6  ;;  %2370 = vmatpush.bf16.msra.mxu1 %v10660_v21 }
 0x58f   :  { %2383 = vmatpush.bf16.msra.mxu2 %v10676_v11  ;;  %2396 = vmatpush.bf16.msra.mxu3 %v10662_v19 }
 0x592   :  { %2358 = vmatpush.bf16.msra.mxu0 %v10669_v53  ;;  %2371 = vmatpush.bf16.msra.mxu1 %v10671_v56 }
 0x593   :  { %2384 = vmatpush.bf16.msra.mxu2 %v10697_v36  ;;  %2397 = vmatpush.bf16.msra.mxu3 %v10674_v26 }
 0x596   :  { %2359 = vmatpush.bf16.msra.mxu0 %v10690_v45  ;;  %2372 = vmatpush.bf16.msra.mxu1 %v10692_v8 }
 0x597   :  { %2385 = vmatpush.bf16.msra.mxu2 %v10706_v27  ;;  %2398 = vmatpush.bf16.msra.mxu3 %v10694_v44 }
 0x59a   :  { %2360 = vmatpush.bf16.msra.mxu0 %v10701_v3  ;;  %2373 = vmatpush.bf16.msra.mxu1 %v10703_v13 }
 0x59b   :  { %2386 = vmatpush.bf16.msra.mxu2 %v10714_v0  ;;  %2399 = vmatpush.bf16.msra.mxu3 %v10708_v41 }
 0x5a9   :  { %v1541_v49 = vpop.f32.mrf.mxu0  ;;  %v1554_v5 = vpop.f32.mrf.mxu1 }
 0x5aa   :  { %v1584_v60 = vadd.f32 %v1541_v49, %v327_v29  ;;  %v1585_v51 = vadd.f32 %v1554_v5, %v356_v16 }
 0x5ac   :  { %v7472_v17 = vmul.f32 -1.442695, %v1584_v60  ;;  %v7473_v48 = vmul.f32 -1.442695, %v1585_v51 }
 0x5ae   :  { %9057 = vpow2.f32 %v7472_v17 }
 0x5af   :  { %9059 = vpow2.f32 %v7473_v48 }
 0x5b0   :  { %v1567_v14 = vpop.f32.mrf.mxu2  ;;  %v1580_v25 = vpop.f32.mrf.mxu3 }
 0x5b1   :  { %v1586_v63 = vadd.f32 %v1567_v14, %v385_v2  ;;  %v1587_v28 = vadd.f32 %v1580_v25, %v414_v54  ;;  %v1543_v42 = vpop.f32.mrf.mxu0  ;;  %v1556_v7 = vpop.f32.mrf.mxu1  ;;  %v10827_v25 = vperm.slane %v1669_v4, 2 }
 0x5b3   :  { %v7474_v46 = vmul.f32 -1.442695, %v1587_v28  ;;  %13188 = vst [vmem:[#allocation34_spill] sm:$0xff] %v10827_v25 }
 0x5b4   :  { %v9058_v10 = vpop.eup %9057 }
 0x5b5   :  { %v9060_v47 = vpop.eup %9059  ;;  %v1591_v29 = vadd.f32 1.0, %v9058_v10  ;;  %9061 = vpow2.f32 %v7474_v46 }
 0x5b6   :  { %v1610_v18 = vadd.f32 1.0, %v9060_v47 }
 0x5b7   :  { %9063 = vrcp.f32 %v1591_v29  ;;  %v1601_v47 = vand.u32 2147483647, %v1591_v29  ;;  %vm1597_vm11 = vweird.f32 %v1591_v29 }
 0x5b8   :  { %9065 = vrcp.f32 %v1610_v18  ;;  %v1569_v16 = vpop.f32.mrf.mxu2  ;;  %v1582_v49 = vpop.f32.mrf.mxu3  ;;  %vm1616_vm12 = vweird.f32 %v1610_v18 }
 0x5b9   :  { %v1768_v5 = vpop.f32.mrf.mxu0  ;;  %v1797_v60 = vpop.f32.mrf.mxu1  ;;  %v1603_v16 = vand.u32 2147483648, %v1591_v29  ;;  %vm1602_vm15 = vcmp.eq.f32.partialorder %v1601_v47, 8.507059e+37 }
 0x5ba   :  { %v10817_v51 = vadd.f32 %v1768_v5, %v10812_v62  ;;  %v10820_v17 = vadd.f32 %v1797_v60, %v10814_v20 }
 0x5bb   :  { %v9062_v48 = vpop.eup %9061 }
 0x5bc   :  { %13185 = vst [vmem:[#allocation32_spill] sm:$0xff] %v10817_v51  ;;  %v10822_v1 = vadd.f32 1.0, %v9062_v48  ;;  %v1622_v48 = vand.u32 2147483648, %v1610_v18 }
 0x5bd   :  { %13186 = vst [vmem:[#allocation31_spill] sm:$0xff] %v10820_v17  ;;  %v9064_v2 = vpop.eup %9063 }
 0x5be   :  { %v9066_v54 = vpop.eup %9065  ;;  %v1593_v14 = vmul.f32 %v9064_v2, %v1591_v29  ;;  %9067 = vrcp.f32 %v10822_v1  ;;  %vm1598_vm0 = vweird.f32 %v9064_v2  ;;  %v1623_v15 = vor.u32 1.1754944e-38, %v1622_v48 }
 0x5bf   :  { %v1612_v28 = vmul.f32 %v9066_v54, %v1610_v18  ;;  %9069 = vtanh.f32 %v1586_v63  ;;  %vm1617_vm10 = vweird.f32 %v9066_v54  ;;  %v1620_v63 = vand.u32 2147483647, %v1610_v18  ;;  %vm1599_vm13 = vmor %vm1597_vm11, %vm1598_vm0 }
 0x5c0   :  { %v1594_v42 = vsub.f32 1.0, %v1593_v14  ;;  %v1855_v7 = vpop.f32.mrf.mxu3  ;;  %v1826_v46 = vpop.f32.mrf.mxu2  ;;  %vm1618_vm14 = vmor %vm1616_vm12, %vm1617_vm10  ;;  %vm1636_vm3 = vweird.f32 %v10822_v1 }
 0x5c1   :  { %v1613_v10 = vsub.f32 1.0, %v1612_v28  ;;  %v10830_v49 = vadd.f32 %v1855_v7, %v10824_v33  ;;  %v10832_v5 = vpop.f32.mrf.mxu0  ;;  %v10834_v60 = vpop.f32.mrf.mxu1  ;;  %v10837_v4 = vadd.f32 %v1826_v46, %v10827_v25  ;;  %v1604_v7 = vor.u32 1.1754944e-38, %v1603_v16 }
 0x5c2   :  { %13190 = vst [vmem:[#allocation35_spill] sm:$0xff] %v10832_v5  ;;  %v1595_v38 = vmul.f32 %v9064_v2, %v1594_v42  ;;  %vm1621_vm1 = vcmp.eq.f32.partialorder %v1620_v63, 8.507059e+37 }
 0x5c3   :  { %13189 = vst [vmem:[#allocation37_spill] sm:$0xff] %v10830_v49  ;;  %v1614_v14 = vmul.f32 %v9066_v54, %v1613_v10 }
 0x5c4   :  { %13191 = vst [vmem:[#allocation36_spill] sm:$0xff] %v10834_v60  ;;  %v9068_v17 = vpop.eup %9067  ;;  %v1596_v28 = vadd.f32 %v9064_v2, %v1595_v38 }
 0x5c5   :  { %13192 = vst [vmem:[#allocation38_spill] sm:$0xff] %v10837_v4  ;;  %v1615_v49 = vadd.f32 %v9066_v54, %v1614_v14  ;;  %v1632_v51 = vmul.f32 %v9068_v17, %v10822_v1  ;;  %v9070_v32 = vpop.eup %9069  ;;  %vm1637_vm2 = vweird.f32 %v9068_v17 }
 0x5c6   :  { %v1600_v42 = vsel %vm1599_vm13, %v9064_v2, %v1596_v28  ;;  %vm1638_vm4 = vmor %vm1636_vm3, %vm1637_vm2 }
 0x5c7   :  { %v1605_v22 = vsel %vm1602_vm15, %v1604_v7, %v1600_v42  ;;  %v1619_v46 = vsel %vm1618_vm14, %v9066_v54, %v1615_v49  ;;  %v1633_v10 = vsub.f32 1.0, %v1632_v51 }
 0x5c8   :  { %v1624_v4 = vsel %vm1621_vm1, %v1623_v15, %v1619_v46  ;;  %v1647_v34 = vmul.f32 %v9070_v32, %v1605_v22  ;;  %v10840_v50 = vpop.f32.mrf.mxu3  ;;  %v10842_v38 = vpop.f32.mrf.mxu2  ;;  %v1642_v22 = vand.u32 2147483648, %v10822_v1  ;;  %v1640_v15 = vand.u32 2147483647, %v10822_v1 }
 0x5c9   :  { %13193 = vst [vmem:[#allocation40_spill] sm:$0xff] %v10840_v50  ;;  %v1646_v29 = vmul.f32 %v1624_v4, %v10595_v57  ;;  %v1634_v18 = vmul.f32 %v9068_v17, %v1633_v10  ;;  %v1773_v16 = vpop.f32.mrf.mxu0  ;;  %v1802_v14 = vpop.f32.mrf.mxu1 }
 0x5ca   :  { %13194 = vst [vmem:[#allocation39_spill] sm:$0xff] %v10842_v38  ;;  %v10846_v60 = vadd.f32 %v1773_v16, %v10812_v62  ;;  %v10849_v2 = vadd.f32 %v1802_v14, %v10814_v20  ;;  %v1643_v49 = vor.u32 1.1754944e-38, %v1642_v22  ;;  %vm1641_vm5 = vcmp.eq.f32.partialorder %v1640_v15, 8.507059e+37 }
 0x5cb   :  { %v1648_v54 = vadd.f32 %v1647_v34, %v1646_v29  ;;  %v1635_v47 = vadd.f32 %v9068_v17, %v1634_v18 }
 0x5cc   :  { %13195 = vst [vmem:[#allocation41_spill] sm:$0xff] %v10846_v60 }
 0x5cd   :  { %13196 = vst [vmem:[#allocation42_spill] sm:$0xff] %v10849_v2  ;;  %9071 = vtanh.f32 %v1648_v54  ;;  %v1639_v57 = vsel %vm1638_vm4, %v9068_v17, %v1635_v47 }
 0x5ce   :  { %v1644_v7 = vsel %vm1641_vm5, %v1643_v49, %v1639_v57 }
 0x5d0   :  { %v1860_v32 = vpop.f32.mrf.mxu3  ;;  %v1831_v51 = vpop.f32.mrf.mxu2 }
 0x5d1   :  { %v10855_v48 = vadd.f32 %v1860_v32, %v10824_v33  ;;  %v10858_v4 = vadd.f32 %v1831_v51, %v10827_v25  ;;  %v10860_v34 = vpop.f32.mrf.mxu0  ;;  %v10862_v63 = vpop.f32.mrf.mxu1 }
 0x5d2   :  { %13199 = vst [vmem:[#allocation20_spill] sm:$0xff] %v10860_v34 }
 0x5d3   :  { %13197 = vst [vmem:[#allocation45_spill] sm:$0xff] %v10855_v48  ;;  %v9072_v28 = vpop.eup %9071 }
 0x5d4   :  { %13198 = vst [vmem:[#allocation43_spill] sm:$0xff] %v10858_v4  ;;  %v10864_v42 = vmul.f32 %v9072_v28, %v1644_v7 }
 0x5d5   :  { %13200 = vst [vmem:[#allocation21_spill] sm:$0xff] %v10862_v63 }
 0x5d6   :  { %13201 = vst [vmem:[#allocation22_spill] sm:$0xff] %v10864_v42 }
 0x5d8   :  { %v10866_v1 = vpop.f32.mrf.mxu3  ;;  %v10868_v17 = vpop.f32.mrf.mxu2 }
 0x5d9   :  { %13202 = vst [vmem:[#allocation23_spill] sm:$0xff] %v10866_v1  ;;  %v1778_v46 = vpop.f32.mrf.mxu0  ;;  %v1807_v10 = vpop.f32.mrf.mxu1 }
 0x5da   :  { %13203 = vst [vmem:[#allocation44_spill] sm:$0xff] %v10868_v17  ;;  %v10871_v29 = vadd.f32 %v1778_v46, %v10812_v62  ;;  %v10874_v18 = vadd.f32 %v1807_v10, %v10814_v20 }
 0x5dc   :  { %13204 = vst [vmem:[#allocation46_spill] sm:$0xff] %v10871_v29 }
 0x5dd   :  { %13205 = vst [vmem:[#allocation47_spill] sm:$0xff] %v10874_v18 }
 0x5e0   :  { %v1865_v16 = vpop.f32.mrf.mxu3  ;;  %v1836_v14 = vpop.f32.mrf.mxu2 }
 0x5e1   :  { %v10877_v54 = vadd.f32 %v1865_v16, %v10824_v33  ;;  %v10880_v47 = vadd.f32 %v1836_v14, %v10827_v25  ;;  %v10882_v22 = vpop.f32.mrf.mxu0  ;;  %v10884_v15 = vpop.f32.mrf.mxu1 }
 0x5e2   :  { %13208 = vst [vmem:[#allocation51_spill] sm:$0xff] %v10884_v15 }
 0x5e3   :  { %13206 = vst [vmem:[#allocation48_spill] sm:$0xff] %v10877_v54 }
 0x5e4   :  { %13207 = vst [vmem:[#allocation50_spill] sm:$0xff] %v10880_v47 }
 0x5e8   :  { %v10886_v57 = vpop.f32.mrf.mxu3  ;;  %v10888_v32 = vpop.f32.mrf.mxu2 }
 0x5e9   :  { %13209 = vst [vmem:[#allocation52_spill] sm:$0xff] %v10886_v57  ;;  %v1783_v51 = vpop.f32.mrf.mxu0  ;;  %v1812_v49 = vpop.f32.mrf.mxu1 }
 0x5ea   :  { %13210 = vst [vmem:[#allocation53_spill] sm:$0xff] %v10888_v32  ;;  %v10891_v28 = vadd.f32 %v1783_v51, %v10812_v62  ;;  %v10894_v7 = vadd.f32 %v1812_v49, %v10814_v20 }
 0x5f0   :  { %v1870_v46 = vpop.f32.mrf.mxu3  ;;  %v1841_v10 = vpop.f32.mrf.mxu2 }
 0x5f1   :  { %v10897_v16 = vadd.f32 %v1870_v46, %v10824_v33  ;;  %v10900_v14 = vadd.f32 %v1841_v10, %v10827_v25  ;;  %v1785_v42 = vpop.f32.mrf.mxu0  ;;  %v1814_v38 = vpop.f32.mrf.mxu1 }
 0x5f2   :  { %v1786_v50 = vadd.f32 %v1785_v42, %v10812_v62  ;;  %v1815_v5 = vadd.f32 %v1814_v38, %v10814_v20 }
 0x5f8   :  { %v1872_v4 = vpop.f32.mrf.mxu3  ;;  %v1843_v51 = vpop.f32.mrf.mxu2 }
 0x5f9   :  { %v2112_v48 = vpop.f32.mrf.mxu0  ;;  %v2125_v2 = vpop.f32.mrf.mxu1  ;;  %v1873_v46 = vadd.f32 %v1872_v4, %v10824_v33 }
 0x5fa   :  { %v2155_v49 = vadd.f32 %v2112_v48, %v1786_v50  ;;  %v2156_v60 = vadd.f32 %v2125_v2, %v1815_v5 }
 0x5fc   :  { %v7683_v17 = vmul.f32 -1.442695, %v2155_v49  ;;  %v7684_v1 = vmul.f32 -1.442695, %v2156_v60  ;;  %v1844_v60 = vadd.f32 %v1843_v51, %v10827_v25 }
 0x5fe   :  { %9073 = vpow2.f32 %v7683_v17 }
 0x5ff   :  { %9075 = vpow2.f32 %v7684_v1 }
 0x600   :  { %v2151_v10 = vpop.f32.mrf.mxu3  ;;  %v2138_v63 = vpop.f32.mrf.mxu2 }
 0x601   :  { %v2158_v34 = vadd.f32 %v2151_v10, %v1873_v46  ;;  %v2114_v47 = vpop.f32.mrf.mxu0  ;;  %v2127_v54 = vpop.f32.mrf.mxu1  ;;  %v2157_v1 = vadd.f32 %v2138_v63, %v1844_v60 }
 0x603   :  { %v7685_v42 = vmul.f32 -1.442695, %v2158_v34 }
 0x604   :  { %v9074_v18 = vpop.eup %9073 }
 0x605   :  { %v9076_v38 = vpop.eup %9075  ;;  %v2162_v29 = vadd.f32 1.0, %v9074_v18  ;;  %9077 = vpow2.f32 %v7685_v42 }
 0x606   :  { %v2181_v32 = vadd.f32 1.0, %v9076_v38 }
 0x607   :  { %9079 = vrcp.f32 %v2162_v29  ;;  %v2174_v46 = vand.u32 2147483648, %v2162_v29  ;;  %v2172_v42 = vand.u32 2147483647, %v2162_v29  ;;  %vm2168_vm8 = vweird.f32 %v2162_v29 }
 0x608   :  { %9081 = vrcp.f32 %v2181_v32  ;;  %v2153_v50 = vpop.f32.mrf.mxu3  ;;  %v2140_v5 = vpop.f32.mrf.mxu2  ;;  %v2193_v18 = vand.u32 2147483648, %v2181_v32  ;;  %vm2187_vm9 = vweird.f32 %v2181_v32 }
 0x609   :  { %v2191_v50 = vand.u32 2147483647, %v2181_v32  ;;  %v2175_v60 = vor.u32 1.1754944e-38, %v2174_v46  ;;  %vm2173_vm10 = vcmp.eq.f32.partialorder %v2172_v42, 8.507059e+37 }
 0x60a   :  { %v2194_v25 = vor.u32 1.1754944e-38, %v2193_v18 }
 0x60b   :  { %v9078_v2 = vpop.eup %9077  ;;  %vm2192_vm12 = vcmp.eq.f32.partialorder %v2191_v50, 8.507059e+37 }
 0x60c   :  { %v2201_v48 = vadd.f32 1.0, %v9078_v2 }
 0x60d   :  { %v9080_v4 = vpop.eup %9079 }
 0x60e   :  { %v9082_v17 = vpop.eup %9081  ;;  %v2164_v49 = vmul.f32 %v9080_v4, %v2162_v29  ;;  %9083 = vrcp.f32 %v2201_v48  ;;  %vm2169_vm6 = vweird.f32 %v9080_v4  ;;  %vm2207_vm14 = vweird.f32 %v2201_v48 }
 0x60f   :  { %v2183_v54 = vmul.f32 %v9082_v17, %v2181_v32  ;;  %9085 = vtanh.f32 %v2157_v1  ;;  %vm2188_vm7 = vweird.f32 %v9082_v17  ;;  %vm2170_vm0 = vmor %vm2168_vm8, %vm2169_vm6  ;;  %v2213_v32 = vand.u32 2147483648, %v2201_v48 }
 0x610   :  { %v2165_v34 = vsub.f32 1.0, %v2164_v49  ;;  %vm2189_vm11 = vmor %vm2187_vm9, %vm2188_vm7 }
 0x611   :  { %v2184_v47 = vsub.f32 1.0, %v2183_v54  ;;  %v2214_v18 = vor.u32 1.1754944e-38, %v2213_v32 }
 0x612   :  { %v2166_v10 = vmul.f32 %v9080_v4, %v2165_v34 }
 0x613   :  { %v2185_v38 = vmul.f32 %v9082_v17, %v2184_v47 }
 0x614   :  { %v9084_v51 = vpop.eup %9083  ;;  %v2167_v5 = vadd.f32 %v9080_v4, %v2166_v10 }
 0x615   :  { %v2203_v63 = vmul.f32 %v9084_v51, %v2201_v48  ;;  %v2186_v2 = vadd.f32 %v9082_v17, %v2185_v38  ;;  %v9086_v1 = vpop.eup %9085  ;;  %vm2208_vm13 = vweird.f32 %v9084_v51 }
 0x616   :  { %v2171_v49 = vsel %vm2170_vm0, %v9080_v4, %v2167_v5  ;;  %v2211_v4 = vand.u32 2147483647, %v2201_v48  ;;  %vm2209_vm15 = vmor %vm2207_vm14, %vm2208_vm13 }
 0x617   :  { %v2204_v54 = vsub.f32 1.0, %v2203_v63  ;;  %v2176_v34 = vsel %vm2173_vm10, %v2175_v60, %v2171_v49  ;;  %v2190_v57 = vsel %vm2189_vm11, %v9082_v17, %v2186_v2 }
 0x618   :  { %v2195_v47 = vsel %vm2192_vm12, %v2194_v25, %v2190_v57  ;;  %v2218_v33 = vmul.f32 %v9086_v1, %v2176_v34  ;;  %vm2212_vm1 = vcmp.eq.f32.partialorder %v2211_v4, 8.507059e+37 }
 0x619   :  { %v2205_v15 = vmul.f32 %v9084_v51, %v2204_v54  ;;  %v2217_v20 = vmul.f32 0.0, %v2195_v47 }
 0x61b   :  { %v10906_v10 = vadd.f32 %v2218_v33, %v2217_v20  ;;  %v2206_v29 = vadd.f32 %v9084_v51, %v2205_v15 }
 0x61d   :  { %9087 = vtanh.f32 %v10906_v10  ;;  %v2210_v46 = vsel %vm2209_vm15, %v9084_v51, %v2206_v29 }
 0x61e   :  { %v2215_v17 = vsel %vm2212_vm1, %v2214_v18, %v2210_v46 }
 0x623   :  { %v9088_v42 = vpop.eup %9087 }
 0x624   :  { %v10909_v38 = vmul.f32 %v9088_v42, %v2215_v17 }
 0x626   :  { %13211 = vst [vmem:[#allocation54_spill] sm:$0xff] %v10909_v38  ;;  %v2227_v25 = vpack.c.bf16 %v10909_v38, %v10909_v38 }
 0x628   :  { %2236 = vmatmul.bf16.vlgmr.msrb.gmra.mxu0 %v2227_v25  ;;  %2249 = vmatmul.bf16.vlgmr.msrb.gmra.mxu1 %v2227_v25 }
 0x629   :  { %2262 = vmatmul.bf16.vlgmr.msrb.gmra.mxu2 %v2227_v25  ;;  %2275 = vmatmul.bf16.vlgmr.msrb.gmra.mxu3 %v2227_v25 }
 0x62a   :  { %2478 = vmatpush.bf16.msrb.mxu0 %v10605_v61  ;;  %2491 = vmatpush.bf16.msrb.mxu1 %v10607_v52 }
 0x62b   :  { %2504 = vmatpush.bf16.msrb.mxu2 %v10611_v9  ;;  %2517 = vmatpush.bf16.msrb.mxu3 %v10609_v55 }
 0x62e   :  { %2479 = vmatpush.bf16.msrb.mxu0 %v10615_v31  ;;  %2492 = vmatpush.bf16.msrb.mxu1 %v10617_v37 }
 0x62f   :  { %2505 = vmatpush.bf16.msrb.mxu2 %v10623_v12  ;;  %2518 = vmatpush.bf16.msrb.mxu3 %v10620_v39 }
 0x632   :  { %2480 = vmatpush.bf16.msrb.mxu0 %v10627_v30  ;;  %2493 = vmatpush.bf16.msrb.mxu1 %v10629_v59 }
 0x633   :  { %2506 = vmatpush.bf16.msrb.mxu2 %v10635_v43  ;;  %2519 = vmatpush.bf16.msrb.mxu3 %v10632_v23 }
 0x636   :  { %2481 = vmatpush.bf16.msrb.mxu0 %v10639_v35  ;;  %2494 = vmatpush.bf16.msrb.mxu1 %v10641_v58 }
 0x637   :  { %2507 = vmatpush.bf16.msrb.mxu2 %v10665_v40  ;;  %2520 = vmatpush.bf16.msrb.mxu3 %v10644_v24 }
 0x63a   :  { %2482 = vmatpush.bf16.msrb.mxu0 %v10658_v6  ;;  %2495 = vmatpush.bf16.msrb.mxu1 %v10660_v21 }
 0x63b   :  { %2508 = vmatpush.bf16.msrb.mxu2 %v10676_v11  ;;  %2521 = vmatpush.bf16.msrb.mxu3 %v10662_v19 }
 0x63e   :  { %2483 = vmatpush.bf16.msrb.mxu0 %v10669_v53  ;;  %2496 = vmatpush.bf16.msrb.mxu1 %v10671_v56 }
 0x63f   :  { %2509 = vmatpush.bf16.msrb.mxu2 %v10697_v36  ;;  %2522 = vmatpush.bf16.msrb.mxu3 %v10674_v26 }
 0x642   :  { %2484 = vmatpush.bf16.msrb.mxu0 %v10690_v45  ;;  %2497 = vmatpush.bf16.msrb.mxu1 %v10692_v8 }
 0x643   :  { %2510 = vmatpush.bf16.msrb.mxu2 %v10706_v27  ;;  %2523 = vmatpush.bf16.msrb.mxu3 %v10694_v44 }
 0x646   :  { %2485 = vmatpush.bf16.msrb.mxu0 %v10701_v3  ;;  %2498 = vmatpush.bf16.msrb.mxu1 %v10703_v13 }
 0x647   :  { %2511 = vmatpush.bf16.msrb.mxu2 %v10714_v0  ;;  %2524 = vmatpush.bf16.msrb.mxu3 %v10708_v41 }
 0x6a5   :  { %v2237_v20 = vpop.f32.mrf.mxu0  ;;  %v2250_v33 = vpop.f32.mrf.mxu1 }
 0x6a6   :  { %v2280_v15 = vadd.f32 %v2237_v20, %v10891_v28  ;;  %v2281_v57 = vadd.f32 %v2250_v33, %v10894_v7 }
 0x6a8   :  { %v7686_v48 = vmul.f32 -1.442695, %v2280_v15  ;;  %v7687_v50 = vmul.f32 -1.442695, %v2281_v57 }
 0x6aa   :  { %9089 = vpow2.f32 %v7686_v48 }
 0x6ab   :  { %9091 = vpow2.f32 %v7687_v50 }
 0x6ac   :  { %v2263_v51 = vpop.f32.mrf.mxu2  ;;  %v2276_v5 = vpop.f32.mrf.mxu3 }
 0x6ad   :  { %v2283_v63 = vadd.f32 %v2276_v5, %v10897_v16  ;;  %v2239_v60 = vpop.f32.mrf.mxu0  ;;  %v2252_v2 = vpop.f32.mrf.mxu1  ;;  %v2282_v46 = vadd.f32 %v2263_v51, %v10900_v14 }
 0x6af   :  { %v7688_v49 = vmul.f32 -1.442695, %v2283_v63 }
 0x6b0   :  { %v9090_v1 = vpop.eup %9089 }
 0x6b1   :  { %v9092_v54 = vpop.eup %9091  ;;  %v2287_v34 = vadd.f32 1.0, %v9090_v1  ;;  %9093 = vpow2.f32 %v7688_v49 }
 0x6b2   :  { %v2306_v47 = vadd.f32 1.0, %v9092_v54 }
 0x6b3   :  { %9095 = vrcp.f32 %v2287_v34  ;;  %v2299_v20 = vand.u32 2147483648, %v2287_v34  ;;  %v2297_v57 = vand.u32 2147483647, %v2287_v34  ;;  %vm2293_vm4 = vweird.f32 %v2287_v34 }
 0x6b4   :  { %9097 = vrcp.f32 %v2306_v47  ;;  %v2265_v28 = vpop.f32.mrf.mxu2  ;;  %v2278_v7 = vpop.f32.mrf.mxu3  ;;  %v2318_v33 = vand.u32 2147483648, %v2306_v47  ;;  %v2316_v50 = vand.u32 2147483647, %v2306_v47  ;;  %vm2312_vm5 = vweird.f32 %v2306_v47 }
 0x6b5   :  { %v2300_v14 = vor.u32 1.1754944e-38, %v2299_v20  ;;  %vm2298_vm8 = vcmp.eq.f32.partialorder %v2297_v57, 8.507059e+37  ;;  %v13213_v57 = vld [vmem:[#allocation30_spill] sm:$0xff] }
 0x6b6   :  { %v2319_v2 = vor.u32 1.1754944e-38, %v2318_v33  ;;  %vm2317_vm9 = vcmp.eq.f32.partialorder %v2316_v50, 8.507059e+37 }
 0x6b7   :  { %v9094_v29 = vpop.eup %9093 }
 0x6b8   :  { %v2326_v32 = vadd.f32 1.0, %v9094_v29 }
 0x6b9   :  { %v9096_v4 = vpop.eup %9095 }
 0x6ba   :  { %v9098_v18 = vpop.eup %9097  ;;  %v2289_v42 = vmul.f32 %v9096_v4, %v2287_v34  ;;  %9099 = vrcp.f32 %v2326_v32  ;;  %vm2294_vm2 = vweird.f32 %v9096_v4  ;;  %vm2332_vm10 = vweird.f32 %v2326_v32 }
 0x6bb   :  { %v2308_v16 = vmul.f32 %v9098_v18, %v2306_v47  ;;  %9101 = vtanh.f32 %v2282_v46  ;;  %vm2313_vm3 = vweird.f32 %v9098_v18  ;;  %vm2295_vm6 = vmor %vm2293_vm4, %vm2294_vm2 }
 0x6bc   :  { %v2290_v17 = vsub.f32 1.0, %v2289_v42  ;;  %vm2314_vm7 = vmor %vm2312_vm5, %vm2313_vm3 }
 0x6bd   :  { %v2309_v25 = vsub.f32 1.0, %v2308_v16 }
 0x6be   :  { %v2291_v15 = vmul.f32 %v9096_v4, %v2290_v17  ;;  %v2338_v17 = vand.u32 2147483648, %v2326_v32 }
 0x6bf   :  { %v2310_v48 = vmul.f32 %v9098_v18, %v2309_v25 }
 0x6c0   :  { %v9100_v5 = vpop.eup %9099  ;;  %v2292_v63 = vadd.f32 %v9096_v4, %v2291_v15  ;;  %v2339_v20 = vor.u32 1.1754944e-38, %v2338_v17 }
 0x6c1   :  { %v2311_v51 = vadd.f32 %v9098_v18, %v2310_v48  ;;  %v2328_v60 = vmul.f32 %v9100_v5, %v2326_v32  ;;  %v9102_v1 = vpop.eup %9101  ;;  %vm2333_vm0 = vweird.f32 %v9100_v5  ;;  %v13214_v48 = vld [vmem:[#allocation51_spill] sm:$0xff] }
 0x6c2   :  { %v2296_v49 = vsel %vm2295_vm6, %v9096_v4, %v2292_v63  ;;  %v2336_v4 = vand.u32 2147483647, %v2326_v32  ;;  %vm2334_vm11 = vmor %vm2332_vm10, %vm2333_vm0  ;;  %v1781_v32 = vadd.f32 %v10882_v22, %v10812_v62  ;;  %v1810_v50 = vadd.f32 %v13214_v48, %v13213_v57 }
 0x6c3   :  { %v2301_v54 = vsel %vm2298_vm8, %v2300_v14, %v2296_v49  ;;  %v2315_v28 = vsel %vm2314_vm7, %v9098_v18, %v2311_v51  ;;  %v2329_v7 = vsub.f32 1.0, %v2328_v60  ;;  %v13215_v49 = vld [vmem:[#allocation33_spill] sm:$0xff] }
 0x6c4   :  { %v2320_v29 = vsel %vm2317_vm9, %v2319_v2, %v2315_v28  ;;  %v2343_v46 = vmul.f32 %v9102_v1, %v2301_v54  ;;  %vm2337_vm12 = vcmp.eq.f32.partialorder %v2336_v4, 8.507059e+37  ;;  %v13216_v1 = vld [vmem:[#allocation52_spill] sm:$0xff] }
 0x6c5   :  { %v2342_v42 = vmul.f32 %v2320_v29, %v10906_v10  ;;  %v2330_v16 = vmul.f32 %v9100_v5, %v2329_v7  ;;  %v1868_v54 = vadd.f32 %v13216_v1, %v13215_v49 }
 0x6c7   :  { %v10950_v34 = vadd.f32 %v2343_v46, %v2342_v42  ;;  %v2331_v47 = vadd.f32 %v9100_v5, %v2330_v16 }
 0x6c9   :  { %9103 = vtanh.f32 %v10950_v34  ;;  %v2335_v25 = vsel %vm2334_vm11, %v9100_v5, %v2331_v47 }
 0x6ca   :  { %v2340_v33 = vsel %vm2337_vm12, %v2339_v20, %v2335_v25 }
 0x6cf   :  { %v9104_v18 = vpop.eup %9103 }
 0x6d0   :  { %v10953_v15 = vmul.f32 %v9104_v18, %v2340_v33  ;;  %v13217_v33 = vld [vmem:[#allocation34_spill] sm:$0xff] }
 0x6d2   :  { %13212 = vst [vmem:[#allocation55_spill] sm:$0xff] %v10953_v15  ;;  %v2352_v10 = vpack.c.bf16 %v10953_v15, %v10953_v15 }
 0x6d4   :  { %2361 = vmatmul.bf16.vlgmr.msra.gmra.mxu0 %v2352_v10  ;;  %2374 = vmatmul.bf16.vlgmr.msra.gmra.mxu1 %v2352_v10 }
 0x6d5   :  { %2387 = vmatmul.bf16.vlgmr.msra.gmra.mxu2 %v2352_v10  ;;  %2400 = vmatmul.bf16.vlgmr.msra.gmra.mxu3 %v2352_v10  ;;  %v13218_v10 = vld [vmem:[#allocation53_spill] sm:$0xff] }
 0x6d6   :  { %2603 = vmatpush.bf16.msra.mxu0 %v10605_v61  ;;  %2616 = vmatpush.bf16.msra.mxu1 %v10607_v52 }
 0x6d7   :  { %2629 = vmatpush.bf16.msra.mxu2 %v10611_v9  ;;  %2642 = vmatpush.bf16.msra.mxu3 %v10609_v55 }
 0x6da   :  { %2604 = vmatpush.bf16.msra.mxu0 %v10615_v31  ;;  %2617 = vmatpush.bf16.msra.mxu1 %v10617_v37 }
 0x6db   :  { %2630 = vmatpush.bf16.msra.mxu2 %v10623_v12  ;;  %2643 = vmatpush.bf16.msra.mxu3 %v10620_v39 }
 0x6de   :  { %2605 = vmatpush.bf16.msra.mxu0 %v10627_v30  ;;  %2618 = vmatpush.bf16.msra.mxu1 %v10629_v59 }
 0x6df   :  { %2631 = vmatpush.bf16.msra.mxu2 %v10635_v43  ;;  %2644 = vmatpush.bf16.msra.mxu3 %v10632_v23 }
 0x6e2   :  { %2606 = vmatpush.bf16.msra.mxu0 %v10639_v35  ;;  %2619 = vmatpush.bf16.msra.mxu1 %v10641_v58 }
 0x6e3   :  { %2632 = vmatpush.bf16.msra.mxu2 %v10665_v40  ;;  %2645 = vmatpush.bf16.msra.mxu3 %v10644_v24 }
 0x6e6   :  { %2607 = vmatpush.bf16.msra.mxu0 %v10658_v6  ;;  %2620 = vmatpush.bf16.msra.mxu1 %v10660_v21 }
 0x6e7   :  { %2633 = vmatpush.bf16.msra.mxu2 %v10676_v11  ;;  %2646 = vmatpush.bf16.msra.mxu3 %v10662_v19 }
 0x6ea   :  { %2608 = vmatpush.bf16.msra.mxu0 %v10669_v53  ;;  %2621 = vmatpush.bf16.msra.mxu1 %v10671_v56 }
 0x6eb   :  { %2634 = vmatpush.bf16.msra.mxu2 %v10697_v36  ;;  %2647 = vmatpush.bf16.msra.mxu3 %v10674_v26 }
 0x6ee   :  { %2609 = vmatpush.bf16.msra.mxu0 %v10690_v45  ;;  %2622 = vmatpush.bf16.msra.mxu1 %v10692_v8 }
 0x6ef   :  { %2635 = vmatpush.bf16.msra.mxu2 %v10706_v27  ;;  %2648 = vmatpush.bf16.msra.mxu3 %v10694_v44 }
 0x6f2   :  { %2610 = vmatpush.bf16.msra.mxu0 %v10701_v3  ;;  %2623 = vmatpush.bf16.msra.mxu1 %v10703_v13 }
 0x6f3   :  { %2636 = vmatpush.bf16.msra.mxu2 %v10714_v0  ;;  %2649 = vmatpush.bf16.msra.mxu3 %v10708_v41 }
 0x751   :  { %v2362_v5 = vpop.f32.mrf.mxu0  ;;  %v2375_v63 = vpop.f32.mrf.mxu1 }
 0x752   :  { %v2405_v14 = vadd.f32 %v2362_v5, %v1781_v32  ;;  %v2406_v51 = vadd.f32 %v2375_v63, %v1810_v50  ;;  %v1839_v32 = vadd.f32 %v13218_v10, %v13217_v33 }
 0x754   :  { %v7689_v60 = vmul.f32 -1.442695, %v2405_v14  ;;  %v7690_v2 = vmul.f32 -1.442695, %v2406_v51 }
 0x756   :  { %9105 = vpow2.f32 %v7689_v60 }
 0x757   :  { %9107 = vpow2.f32 %v7690_v2 }
 0x758   :  { %v2388_v28 = vpop.f32.mrf.mxu2  ;;  %v2401_v7 = vpop.f32.mrf.mxu3 }
 0x759   :  { %v2408_v29 = vadd.f32 %v2401_v7, %v1868_v54  ;;  %v2364_v46 = vpop.f32.mrf.mxu0  ;;  %v2377_v42 = vpop.f32.mrf.mxu1  ;;  %v2407_v5 = vadd.f32 %v2388_v28, %v1839_v32 }
 0x75b   :  { %v7691_v22 = vmul.f32 -1.442695, %v2408_v29 }
 0x75c   :  { %v9106_v16 = vpop.eup %9105 }
 0x75d   :  { %v9108_v47 = vpop.eup %9107  ;;  %v2412_v17 = vadd.f32 1.0, %v9106_v16  ;;  %9109 = vpow2.f32 %v7691_v22 }
 0x75e   :  { %v2431_v4 = vadd.f32 1.0, %v9108_v47 }
 0x75f   :  { %9111 = vrcp.f32 %v2412_v17  ;;  %v2424_v1 = vand.u32 2147483648, %v2412_v17  ;;  %v2422_v29 = vand.u32 2147483647, %v2412_v17  ;;  %vm2418_vm15 = vweird.f32 %v2412_v17 }
 0x760   :  { %9113 = vrcp.f32 %v2431_v4  ;;  %v2390_v25 = vpop.f32.mrf.mxu2  ;;  %v2403_v20 = vpop.f32.mrf.mxu3  ;;  %v2443_v54 = vand.u32 2147483648, %v2431_v4  ;;  %v2441_v42 = vand.u32 2147483647, %v2431_v4  ;;  %vm2437_vm1 = vweird.f32 %v2431_v4 }
 0x761   :  { %v2425_v28 = vor.u32 1.1754944e-38, %v2424_v1  ;;  %vm2423_vm4 = vcmp.eq.f32.partialorder %v2422_v29, 8.507059e+37 }
 0x762   :  { %v2444_v20 = vor.u32 1.1754944e-38, %v2443_v54  ;;  %vm2442_vm5 = vcmp.eq.f32.partialorder %v2441_v42, 8.507059e+37 }
 0x763   :  { %v9110_v18 = vpop.eup %9109 }
 0x764   :  { %v2451_v48 = vadd.f32 1.0, %v9110_v18 }
 0x765   :  { %v9112_v50 = vpop.eup %9111 }
 0x766   :  { %v9114_v63 = vpop.eup %9113  ;;  %v2414_v14 = vmul.f32 %v9112_v50, %v2412_v17  ;;  %9115 = vrcp.f32 %v2451_v48  ;;  %vm2419_vm13 = vweird.f32 %v9112_v50  ;;  %v2463_v1 = vand.u32 2147483648, %v2451_v48 }
 0x767   :  { %v2433_v51 = vmul.f32 %v9114_v63, %v2431_v4  ;;  %9117 = vtanh.f32 %v2407_v5  ;;  %vm2438_vm14 = vweird.f32 %v9114_v63  ;;  %vm2420_vm2 = vmor %vm2418_vm15, %vm2419_vm13  ;;  %vm2457_vm7 = vweird.f32 %v2451_v48 }
 0x768   :  { %v2415_v60 = vsub.f32 1.0, %v2414_v14  ;;  %vm2439_vm3 = vmor %vm2437_vm1, %vm2438_vm14  ;;  %v2464_v29 = vor.u32 1.1754944e-38, %v2463_v1 }
 0x769   :  { %v2434_v2 = vsub.f32 1.0, %v2433_v51 }
 0x76a   :  { %v2416_v7 = vmul.f32 %v9112_v50, %v2415_v60 }
 0x76b   :  { %v2435_v46 = vmul.f32 %v9114_v63, %v2434_v2 }
 0x76c   :  { %v9116_v22 = vpop.eup %9115  ;;  %v2417_v16 = vadd.f32 %v9112_v50, %v2416_v7 }
 0x76d   :  { %v2436_v47 = vadd.f32 %v9114_v63, %v2435_v46  ;;  %v2453_v25 = vmul.f32 %v9116_v22, %v2451_v48  ;;  %v9118_v10 = vpop.eup %9117  ;;  %vm2458_vm6 = vweird.f32 %v9116_v22 }
 0x76e   :  { %v2421_v18 = vsel %vm2420_vm2, %v9112_v50, %v2417_v16  ;;  %v2461_v50 = vand.u32 2147483647, %v2451_v48  ;;  %vm2459_vm8 = vmor %vm2457_vm7, %vm2458_vm6  ;;  %v13219_v16 = vld [vmem:[#allocation46_spill] sm:$0xff] }
 0x76f   :  { %v2426_v32 = vsel %vm2423_vm4, %v2425_v28, %v2421_v18  ;;  %v2440_v5 = vsel %vm2439_vm3, %v9114_v63, %v2436_v47  ;;  %v2454_v14 = vsub.f32 1.0, %v2453_v25  ;;  %v13220_v47 = vld [vmem:[#allocation47_spill] sm:$0xff] }
 0x770   :  { %v2445_v51 = vsel %vm2442_vm5, %v2444_v20, %v2440_v5  ;;  %v2468_v60 = vmul.f32 %v9118_v10, %v2426_v32  ;;  %vm2462_vm9 = vcmp.eq.f32.partialorder %v2461_v50, 8.507059e+37  ;;  %v13221_v5 = vld [vmem:[#allocation48_spill] sm:$0xff] }
 0x771   :  { %v2467_v2 = vmul.f32 %v2445_v51, %v10950_v34  ;;  %v2455_v7 = vmul.f32 %v9116_v22, %v2454_v14 }
 0x773   :  { %v10998_v17 = vadd.f32 %v2468_v60, %v2467_v2  ;;  %v2456_v4 = vadd.f32 %v9116_v22, %v2455_v7 }
 0x775   :  { %9119 = vtanh.f32 %v10998_v17  ;;  %v2460_v54 = vsel %vm2459_vm8, %v9116_v22, %v2456_v4 }
 0x776   :  { %v2465_v46 = vsel %vm2462_vm9, %v2464_v29, %v2460_v54 }
 0x77b   :  { %v9120_v63 = vpop.eup %9119 }
 0x77c   :  { %v11001_v42 = vmul.f32 %v9120_v63, %v2465_v46 }
 0x77e   :  { %v2477_v34 = vpack.c.bf16 %v11001_v42, %v11001_v42 }
 0x780   :  { %2486 = vmatmul.bf16.vlgmr.msrb.gmra.mxu0 %v2477_v34  ;;  %2499 = vmatmul.bf16.vlgmr.msrb.gmra.mxu1 %v2477_v34 }
 0x781   :  { %2512 = vmatmul.bf16.vlgmr.msrb.gmra.mxu2 %v2477_v34  ;;  %2525 = vmatmul.bf16.vlgmr.msrb.gmra.mxu3 %v2477_v34 }
 0x782   :  { %2728 = vmatpush.bf16.msrb.mxu0 %v10605_v61  ;;  %2741 = vmatpush.bf16.msrb.mxu1 %v10607_v52 }
 0x783   :  { %2754 = vmatpush.bf16.msrb.mxu2 %v10611_v9  ;;  %2767 = vmatpush.bf16.msrb.mxu3 %v10609_v55 }
 0x786   :  { %2729 = vmatpush.bf16.msrb.mxu0 %v10615_v31  ;;  %2742 = vmatpush.bf16.msrb.mxu1 %v10617_v37 }
 0x787   :  { %2755 = vmatpush.bf16.msrb.mxu2 %v10623_v12  ;;  %2768 = vmatpush.bf16.msrb.mxu3 %v10620_v39 }
 0x78a   :  { %2730 = vmatpush.bf16.msrb.mxu0 %v10627_v30  ;;  %2743 = vmatpush.bf16.msrb.mxu1 %v10629_v59 }
 0x78b   :  { %2756 = vmatpush.bf16.msrb.mxu2 %v10635_v43  ;;  %2769 = vmatpush.bf16.msrb.mxu3 %v10632_v23 }
 0x78e   :  { %2731 = vmatpush.bf16.msrb.mxu0 %v10639_v35  ;;  %2744 = vmatpush.bf16.msrb.mxu1 %v10641_v58 }
 0x78f   :  { %2757 = vmatpush.bf16.msrb.mxu2 %v10665_v40  ;;  %2770 = vmatpush.bf16.msrb.mxu3 %v10644_v24 }
 0x792   :  { %2732 = vmatpush.bf16.msrb.mxu0 %v10658_v6  ;;  %2745 = vmatpush.bf16.msrb.mxu1 %v10660_v21 }
 0x793   :  { %2758 = vmatpush.bf16.msrb.mxu2 %v10676_v11  ;;  %2771 = vmatpush.bf16.msrb.mxu3 %v10662_v19 }
 0x796   :  { %2733 = vmatpush.bf16.msrb.mxu0 %v10669_v53  ;;  %2746 = vmatpush.bf16.msrb.mxu1 %v10671_v56 }
 0x797   :  { %2759 = vmatpush.bf16.msrb.mxu2 %v10697_v36  ;;  %2772 = vmatpush.bf16.msrb.mxu3 %v10674_v26 }
 0x79a   :  { %2734 = vmatpush.bf16.msrb.mxu0 %v10690_v45  ;;  %2747 = vmatpush.bf16.msrb.mxu1 %v10692_v8 }
 0x79b   :  { %2760 = vmatpush.bf16.msrb.mxu2 %v10706_v27  ;;  %2773 = vmatpush.bf16.msrb.mxu3 %v10694_v44 }
 0x79e   :  { %2735 = vmatpush.bf16.msrb.mxu0 %v10701_v3  ;;  %2748 = vmatpush.bf16.msrb.mxu1 %v10703_v13 }
 0x79f   :  { %2761 = vmatpush.bf16.msrb.mxu2 %v10714_v0  ;;  %2774 = vmatpush.bf16.msrb.mxu3 %v10708_v41 }
 0x7fd   :  { %v2487_v48 = vpop.f32.mrf.mxu0  ;;  %v2500_v22 = vpop.f32.mrf.mxu1 }
 0x7fe   :  { %v2530_v28 = vadd.f32 %v2487_v48, %v13219_v16  ;;  %v2531_v25 = vadd.f32 %v2500_v22, %v13220_v47  ;;  %v13222_v48 = vld [vmem:[#allocation50_spill] sm:$0xff] }
 0x800   :  { %v7692_v20 = vmul.f32 -1.442695, %v2530_v28  ;;  %v7693_v18 = vmul.f32 -1.442695, %v2531_v25 }
 0x802   :  { %9121 = vpow2.f32 %v7692_v20 }
 0x803   :  { %9123 = vpow2.f32 %v7693_v18 }
 0x804   :  { %v2513_v10 = vpop.f32.mrf.mxu2  ;;  %v2526_v32 = vpop.f32.mrf.mxu3 }
 0x805   :  { %v2533_v14 = vadd.f32 %v2526_v32, %v13221_v5  ;;  %v2489_v51 = vpop.f32.mrf.mxu0  ;;  %v2502_v60 = vpop.f32.mrf.mxu1  ;;  %v2532_v22 = vadd.f32 %v2513_v10, %v13222_v48 }
 0x807   :  { %v7694_v2 = vmul.f32 -1.442695, %v2533_v14 }
 0x808   :  { %v9122_v7 = vpop.eup %9121 }
 0x809   :  { %v9124_v4 = vpop.eup %9123  ;;  %v2537_v1 = vadd.f32 1.0, %v9122_v7  ;;  %9125 = vpow2.f32 %v7694_v2 }
 0x80a   :  { %v2556_v50 = vadd.f32 1.0, %v9124_v4 }
 0x80b   :  { %9127 = vrcp.f32 %v2537_v1  ;;  %v2549_v18 = vand.u32 2147483648, %v2537_v1  ;;  %v2547_v14 = vand.u32 2147483647, %v2537_v1  ;;  %vm2543_vm11 = vweird.f32 %v2537_v1 }
 0x80c   :  { %9129 = vrcp.f32 %v2556_v50  ;;  %v2515_v54 = vpop.f32.mrf.mxu2  ;;  %v2528_v29 = vpop.f32.mrf.mxu3  ;;  %v2568_v32 = vand.u32 2147483648, %v2556_v50  ;;  %v2566_v60 = vand.u32 2147483647, %v2556_v50  ;;  %vm2562_vm12 = vweird.f32 %v2556_v50 }
 0x80d   :  { %v2550_v10 = vor.u32 1.1754944e-38, %v2549_v18  ;;  %vm2548_vm15 = vcmp.eq.f32.partialorder %v2547_v14, 8.507059e+37 }
 0x80e   :  { %v2569_v29 = vor.u32 1.1754944e-38, %v2568_v32  ;;  %vm2567_vm1 = vcmp.eq.f32.partialorder %v2566_v60, 8.507059e+37 }
 0x80f   :  { %v9126_v63 = vpop.eup %9125 }
 0x810   :  { %v2576_v46 = vadd.f32 1.0, %v9126_v63 }
 0x811   :  { %v9128_v34 = vpop.eup %9127 }
 0x812   :  { %v9130_v16 = vpop.eup %9129  ;;  %v2539_v28 = vmul.f32 %v9128_v34, %v2537_v1  ;;  %9131 = vrcp.f32 %v2576_v46  ;;  %vm2544_vm0 = vweird.f32 %v9128_v34  ;;  %v2588_v18 = vand.u32 2147483648, %v2576_v46 }
 0x813   :  { %v2558_v47 = vmul.f32 %v9130_v16, %v2556_v50  ;;  %9133 = vtanh.f32 %v2532_v22  ;;  %vm2563_vm10 = vweird.f32 %v9130_v16  ;;  %vm2545_vm13 = vmor %vm2543_vm11, %vm2544_vm0  ;;  %vm2582_vm3 = vweird.f32 %v2576_v46 }
 0x814   :  { %v2540_v25 = vsub.f32 1.0, %v2539_v28  ;;  %vm2564_vm14 = vmor %vm2562_vm12, %vm2563_vm10  ;;  %v2589_v14 = vor.u32 1.1754944e-38, %v2588_v18 }
 0x815   :  { %v2559_v20 = vsub.f32 1.0, %v2558_v47 }
 0x816   :  { %v2541_v5 = vmul.f32 %v9128_v34, %v2540_v25 }
 0x817   :  { %v2560_v51 = vmul.f32 %v9130_v16, %v2559_v20 }
 0x818   :  { %v9132_v2 = vpop.eup %9131  ;;  %v2542_v7 = vadd.f32 %v9128_v34, %v2541_v5 }
 0x819   :  { %v2561_v4 = vadd.f32 %v9130_v16, %v2560_v51  ;;  %v2578_v54 = vmul.f32 %v9132_v2, %v2576_v46  ;;  %v9134_v48 = vpop.eup %9133  ;;  %vm2583_vm2 = vweird.f32 %v9132_v2 }
 0x81a   :  { %v2546_v63 = vsel %vm2545_vm13, %v9128_v34, %v2542_v7  ;;  %v2586_v34 = vand.u32 2147483647, %v2576_v46  ;;  %vm2584_vm4 = vmor %vm2582_vm3, %vm2583_vm2 }
 0x81b   :  { %v2551_v22 = vsel %vm2548_vm15, %v2550_v10, %v2546_v63  ;;  %v2565_v28 = vsel %vm2564_vm14, %v9130_v16, %v2561_v4  ;;  %v2579_v47 = vsub.f32 1.0, %v2578_v54 }
 0x81c   :  { %v2570_v25 = vsel %vm2567_vm1, %v2569_v29, %v2565_v28  ;;  %v2593_v20 = vmul.f32 %v9134_v48, %v2551_v22  ;;  %vm2587_vm5 = vcmp.eq.f32.partialorder %v2586_v34, 8.507059e+37  ;;  %v13225_v22 = vld [vmem:[#allocation23_spill] sm:$0xff] }
 0x81d   :  { %v2592_v38 = vmul.f32 %v2570_v25, %v10998_v17  ;;  %v2580_v5 = vmul.f32 %v9132_v2, %v2579_v47  ;;  %v1863_v28 = vadd.f32 %v13225_v22, %v13215_v49 }
 0x81f   :  { %v11042_v1 = vadd.f32 %v2593_v20, %v2592_v38  ;;  %v2581_v50 = vadd.f32 %v9132_v2, %v2580_v5  ;;  %v13223_v38 = vld [vmem:[#allocation20_spill] sm:$0xff] }
 0x820   :  { %v1776_v46 = vadd.f32 %v13223_v38, %v10812_v62 }
 0x821   :  { %9135 = vtanh.f32 %v11042_v1  ;;  %v2585_v32 = vsel %vm2584_vm4, %v9132_v2, %v2581_v50  ;;  %v13224_v2 = vld [vmem:[#allocation21_spill] sm:$0xff] }
 0x822   :  { %v2590_v51 = vsel %vm2587_vm5, %v2589_v14, %v2585_v32  ;;  %v1805_v7 = vadd.f32 %v13224_v2, %v13213_v57 }
 0x827   :  { %v9136_v16 = vpop.eup %9135 }
 0x828   :  { %v11045_v60 = vmul.f32 %v9136_v16, %v2590_v51 }
 0x82a   :  { %v2602_v17 = vpack.c.bf16 %v11045_v60, %v11045_v60 }
 0x82c   :  { %2611 = vmatmul.bf16.vlgmr.msra.gmra.mxu0 %v2602_v17  ;;  %2624 = vmatmul.bf16.vlgmr.msra.gmra.mxu1 %v2602_v17 }
 0x82d   :  { %2637 = vmatmul.bf16.vlgmr.msra.gmra.mxu2 %v2602_v17  ;;  %2650 = vmatmul.bf16.vlgmr.msra.gmra.mxu3 %v2602_v17 }
 0x82e   :  { %2853 = vmatpush.bf16.msra.mxu0 %v10605_v61  ;;  %2866 = vmatpush.bf16.msra.mxu1 %v10607_v52 }
 0x82f   :  { %2879 = vmatpush.bf16.msra.mxu2 %v10611_v9  ;;  %2892 = vmatpush.bf16.msra.mxu3 %v10609_v55 }
 0x832   :  { %2854 = vmatpush.bf16.msra.mxu0 %v10615_v31  ;;  %2867 = vmatpush.bf16.msra.mxu1 %v10617_v37 }
 0x833   :  { %2880 = vmatpush.bf16.msra.mxu2 %v10623_v12  ;;  %2893 = vmatpush.bf16.msra.mxu3 %v10620_v39 }
 0x836   :  { %2855 = vmatpush.bf16.msra.mxu0 %v10627_v30  ;;  %2868 = vmatpush.bf16.msra.mxu1 %v10629_v59 }
 0x837   :  { %2881 = vmatpush.bf16.msra.mxu2 %v10635_v43  ;;  %2894 = vmatpush.bf16.msra.mxu3 %v10632_v23 }
 0x83a   :  { %2856 = vmatpush.bf16.msra.mxu0 %v10639_v35  ;;  %2869 = vmatpush.bf16.msra.mxu1 %v10641_v58 }
 0x83b   :  { %2882 = vmatpush.bf16.msra.mxu2 %v10665_v40  ;;  %2895 = vmatpush.bf16.msra.mxu3 %v10644_v24 }
 0x83e   :  { %2857 = vmatpush.bf16.msra.mxu0 %v10658_v6  ;;  %2870 = vmatpush.bf16.msra.mxu1 %v10660_v21 }
 0x83f   :  { %2883 = vmatpush.bf16.msra.mxu2 %v10676_v11  ;;  %2896 = vmatpush.bf16.msra.mxu3 %v10662_v19 }
 0x842   :  { %2858 = vmatpush.bf16.msra.mxu0 %v10669_v53  ;;  %2871 = vmatpush.bf16.msra.mxu1 %v10671_v56 }
 0x843   :  { %2884 = vmatpush.bf16.msra.mxu2 %v10697_v36  ;;  %2897 = vmatpush.bf16.msra.mxu3 %v10674_v26 }
 0x846   :  { %2859 = vmatpush.bf16.msra.mxu0 %v10690_v45  ;;  %2872 = vmatpush.bf16.msra.mxu1 %v10692_v8 }
 0x847   :  { %2885 = vmatpush.bf16.msra.mxu2 %v10706_v27  ;;  %2898 = vmatpush.bf16.msra.mxu3 %v10694_v44 }
 0x84a   :  { %2860 = vmatpush.bf16.msra.mxu0 %v10701_v3  ;;  %2873 = vmatpush.bf16.msra.mxu1 %v10703_v13 }
 0x84b   :  { %2886 = vmatpush.bf16.msra.mxu2 %v10714_v0  ;;  %2899 = vmatpush.bf16.msra.mxu3 %v10708_v41 }
 0x8a9   :  { %v2612_v10 = vpop.f32.mrf.mxu0  ;;  %v2625_v4 = vpop.f32.mrf.mxu1 }
 0x8aa   :  { %v2655_v54 = vadd.f32 %v2612_v10, %v1776_v46  ;;  %v2656_v29 = vadd.f32 %v2625_v4, %v1805_v7  ;;  %v13226_v46 = vld [vmem:[#allocation44_spill] sm:$0xff] }
 0x8ab   :  { %v1834_v2 = vadd.f32 %v13226_v46, %v13217_v33 }
 0x8ac   :  { %v7695_v63 = vmul.f32 -1.442695, %v2655_v54  ;;  %v7696_v48 = vmul.f32 -1.442695, %v2656_v29 }
 0x8ae   :  { %9137 = vpow2.f32 %v7695_v63 }
 0x8af   :  { %9139 = vpow2.f32 %v7696_v48 }
 0x8b0   :  { %v2638_v47 = vpop.f32.mrf.mxu2  ;;  %v2651_v25 = vpop.f32.mrf.mxu3 }
 0x8b1   :  { %v2658_v20 = vadd.f32 %v2651_v25, %v1863_v28  ;;  %v2614_v5 = vpop.f32.mrf.mxu0  ;;  %v2627_v50 = vpop.f32.mrf.mxu1  ;;  %v2657_v4 = vadd.f32 %v2638_v47, %v1834_v2 }
 0x8b3   :  { %v7697_v18 = vmul.f32 -1.442695, %v2658_v20 }
 0x8b4   :  { %v9138_v34 = vpop.eup %9137 }
 0x8b5   :  { %v9140_v32 = vpop.eup %9139  ;;  %v2662_v14 = vadd.f32 1.0, %v9138_v34  ;;  %9141 = vpow2.f32 %v7697_v18 }
 0x8b6   :  { %v2681_v16 = vadd.f32 1.0, %v9140_v32 }
 0x8b7   :  { %9143 = vrcp.f32 %v2662_v14  ;;  %v2674_v28 = vand.u32 2147483648, %v2662_v14  ;;  %v2672_v5 = vand.u32 2147483647, %v2662_v14  ;;  %vm2668_vm8 = vweird.f32 %v2662_v14 }
 0x8b8   :  { %9145 = vrcp.f32 %v2681_v16  ;;  %v2640_v51 = vpop.f32.mrf.mxu2  ;;  %v2653_v17 = vpop.f32.mrf.mxu3  ;;  %v2693_v25 = vand.u32 2147483648, %v2681_v16  ;;  %v2691_v18 = vand.u32 2147483647, %v2681_v16  ;;  %vm2687_vm9 = vweird.f32 %v2681_v16 }
 0x8b9   :  { %v2675_v47 = vor.u32 1.1754944e-38, %v2674_v28  ;;  %vm2673_vm11 = vcmp.eq.f32.partialorder %v2672_v5, 8.507059e+37 }
 0x8ba   :  { %vm2692_vm12 = vcmp.eq.f32.partialorder %v2691_v18, 8.507059e+37 }
 0x8bb   :  { %v9142_v38 = vpop.eup %9141 }
 0x8bc   :  { %v2701_v7 = vadd.f32 1.0, %v9142_v38  ;;  %v2694_v38 = vor.u32 1.1754944e-38, %v2693_v25 }
 0x8bd   :  { %v9144_v10 = vpop.eup %9143 }
 0x8be   :  { %v9146_v54 = vpop.eup %9145  ;;  %v2664_v29 = vmul.f32 %v9144_v10, %v2662_v14  ;;  %9147 = vrcp.f32 %v2701_v7  ;;  %vm2669_vm6 = vweird.f32 %v9144_v10  ;;  %v2713_v28 = vand.u32 2147483648, %v2701_v7 }
 0x8bf   :  { %v2683_v63 = vmul.f32 %v9146_v54, %v2681_v16  ;;  %9149 = vtanh.f32 %v2657_v4  ;;  %vm2688_vm7 = vweird.f32 %v9146_v54  ;;  %vm2670_vm0 = vmor %vm2668_vm8, %vm2669_vm6  ;;  %vm2707_vm14 = vweird.f32 %v2701_v7 }
 0x8c0   :  { %v2665_v48 = vsub.f32 1.0, %v2664_v29  ;;  %vm2689_vm10 = vmor %vm2687_vm9, %vm2688_vm7  ;;  %v2714_v5 = vor.u32 1.1754944e-38, %v2713_v28 }
 0x8c1   :  { %v2684_v22 = vsub.f32 1.0, %v2683_v63 }
 0x8c2   :  { %v2666_v20 = vmul.f32 %v9144_v10, %v2665_v48 }
 0x8c3   :  { %v2685_v50 = vmul.f32 %v9146_v54, %v2684_v22 }
 0x8c4   :  { %v9148_v34 = vpop.eup %9147  ;;  %v2667_v32 = vadd.f32 %v9144_v10, %v2666_v20 }
 0x8c5   :  { %v2686_v51 = vadd.f32 %v9146_v54, %v2685_v50  ;;  %v2703_v17 = vmul.f32 %v9148_v34, %v2701_v7  ;;  %v9150_v2 = vpop.eup %9149  ;;  %vm2708_vm13 = vweird.f32 %v9148_v34 }
 0x8c6   :  { %v2671_v46 = vsel %vm2670_vm0, %v9144_v10, %v2667_v32  ;;  %v2711_v10 = vand.u32 2147483647, %v2701_v7  ;;  %vm2709_vm15 = vmor %vm2707_vm14, %vm2708_vm13 }
 0x8c7   :  { %v2676_v4 = vsel %vm2673_vm11, %v2675_v47, %v2671_v46  ;;  %v2690_v29 = vsel %vm2689_vm10, %v9146_v54, %v2686_v51  ;;  %v2704_v63 = vsub.f32 1.0, %v2703_v17 }
 0x8c8   :  { %v2695_v48 = vsel %vm2692_vm12, %v2694_v38, %v2690_v29  ;;  %v2718_v22 = vmul.f32 %v9150_v2, %v2676_v4  ;;  %vm2712_vm1 = vcmp.eq.f32.partialorder %v2711_v10, 8.507059e+37 }
 0x8c9   :  { %v2717_v15 = vmul.f32 %v2695_v48, %v11042_v1  ;;  %v2705_v20 = vmul.f32 %v9148_v34, %v2704_v63 }
 0x8cb   :  { %v11090_v14 = vadd.f32 %v2718_v22, %v2717_v15  ;;  %v2706_v16 = vadd.f32 %v9148_v34, %v2705_v20 }
 0x8cd   :  { %9151 = vtanh.f32 %v11090_v14  ;;  %v2710_v25 = vsel %vm2709_vm15, %v9148_v34, %v2706_v16 }
 0x8ce   :  { %v2715_v50 = vsel %vm2712_vm1, %v2714_v5, %v2710_v25 }
 0x8d3   :  { %v9152_v54 = vpop.eup %9151 }
 0x8d4   :  { %v11093_v18 = vmul.f32 %v9152_v54, %v2715_v50 }
 0x8d6   :  { %v2727_v1 = vpack.c.bf16 %v11093_v18, %v11093_v18 }
 0x8d8   :  { %2736 = vmatmul.bf16.vlgmr.msrb.gmra.mxu0 %v2727_v1  ;;  %2749 = vmatmul.bf16.vlgmr.msrb.gmra.mxu1 %v2727_v1 }
 0x8d9   :  { %2762 = vmatmul.bf16.vlgmr.msrb.gmra.mxu2 %v2727_v1  ;;  %2775 = vmatmul.bf16.vlgmr.msrb.gmra.mxu3 %v2727_v1 }
 0x8da   :  { %2978 = vmatpush.bf16.msrb.mxu0 %v10605_v61  ;;  %3004 = vmatpush.bf16.msrb.mxu2 %v10611_v9 }
 0x8db   :  { %2991 = vmatpush.bf16.msrb.mxu1 %v10607_v52  ;;  %3017 = vmatpush.bf16.msrb.mxu3 %v10609_v55  ;;  %v13227_v55 = vld [vmem:[#allocation41_spill] sm:$0xff] }
 0x8de   :  { %2979 = vmatpush.bf16.msrb.mxu0 %v10615_v31  ;;  %3005 = vmatpush.bf16.msrb.mxu2 %v10623_v12  ;;  %v13228_v31 = vld [vmem:[#allocation42_spill] sm:$0xff] }
 0x8df   :  { %2992 = vmatpush.bf16.msrb.mxu1 %v10617_v37  ;;  %3018 = vmatpush.bf16.msrb.mxu3 %v10620_v39 }
 0x8e2   :  { %2980 = vmatpush.bf16.msrb.mxu0 %v10627_v30  ;;  %3006 = vmatpush.bf16.msrb.mxu2 %v10635_v43 }
 0x8e3   :  { %2993 = vmatpush.bf16.msrb.mxu1 %v10629_v59  ;;  %3019 = vmatpush.bf16.msrb.mxu3 %v10632_v23  ;;  %v13229_v23 = vld [vmem:[#allocation45_spill] sm:$0xff] }
 0x8e6   :  { %2981 = vmatpush.bf16.msrb.mxu0 %v10639_v35  ;;  %3007 = vmatpush.bf16.msrb.mxu2 %v10665_v40 }
 0x8e7   :  { %2994 = vmatpush.bf16.msrb.mxu1 %v10641_v58  ;;  %3020 = vmatpush.bf16.msrb.mxu3 %v10644_v24 }
 0x8ea   :  { %2982 = vmatpush.bf16.msrb.mxu0 %v10658_v6  ;;  %3008 = vmatpush.bf16.msrb.mxu2 %v10676_v11 }
 0x8eb   :  { %2995 = vmatpush.bf16.msrb.mxu1 %v10660_v21  ;;  %3021 = vmatpush.bf16.msrb.mxu3 %v10662_v19 }
 0x8ee   :  { %2983 = vmatpush.bf16.msrb.mxu0 %v10669_v53  ;;  %3009 = vmatpush.bf16.msrb.mxu2 %v10697_v36 }
 0x8ef   :  { %2996 = vmatpush.bf16.msrb.mxu1 %v10671_v56  ;;  %3022 = vmatpush.bf16.msrb.mxu3 %v10674_v26 }
 0x8f2   :  { %2984 = vmatpush.bf16.msrb.mxu0 %v10690_v45  ;;  %3010 = vmatpush.bf16.msrb.mxu2 %v10706_v27 }
 0x8f3   :  { %2997 = vmatpush.bf16.msrb.mxu1 %v10692_v8  ;;  %3023 = vmatpush.bf16.msrb.mxu3 %v10694_v44  ;;  %v13230_v8 = vld [vmem:[#allocation43_spill] sm:$0xff] }
 0x8f6   :  { %2985 = vmatpush.bf16.msrb.mxu0 %v10701_v3  ;;  %3011 = vmatpush.bf16.msrb.mxu2 %v10714_v0 }
 0x8f7   :  { %2998 = vmatpush.bf16.msrb.mxu1 %v10703_v13  ;;  %3024 = vmatpush.bf16.msrb.mxu3 %v10708_v41 }
 0x955   :  { %v2737_v61 = vpop.f32.mrf.mxu0  ;;  %v2750_v52 = vpop.f32.mrf.mxu1 }
 0x956   :  { %v2780_v9 = vadd.f32 %v2737_v61, %v13227_v55  ;;  %v2781_v37 = vadd.f32 %v2750_v52, %v13228_v31 }
 0x958   :  { %v7698_v39 = vmul.f32 -1.442695, %v2780_v9  ;;  %v7699_v12 = vmul.f32 -1.442695, %v2781_v37  ;;  %v7821_v37 = vld [vmem:[%s13031_s7 + $0xe0] sm:$0xf] }
 0x95a   :  { %9153 = vpow2.f32 %v7698_v39  ;;  %v8745_v39 = vld [vmem:[%s13031_s7 + $0xec] sm:$0xf0] }
 0x95b   :  { %9155 = vpow2.f32 %v7699_v12  ;;  %v8743_v12 = vld [vmem:[%s13031_s7 + $0xe4] sm:$0xf] }
 0x95c   :  { %v2763_v30 = vpop.f32.mrf.mxu2  ;;  %v2776_v59 = vpop.f32.mrf.mxu3 }
 0x95d   :  { %v2783_v43 = vadd.f32 %v2776_v59, %v13229_v23  ;;  %v2739_v35 = vpop.f32.mrf.mxu0  ;;  %v2752_v58 = vpop.f32.mrf.mxu1  ;;  %v2782_v44 = vadd.f32 %v2763_v30, %v13230_v8  ;;  %v13231_v30 = vld [vmem:[#allocation35_spill] sm:$0xff]  ;;  %v13232_v23 = vld [vmem:[#allocation36_spill] sm:$0xff] }
 0x95e   :  { %v1771_v59 = vadd.f32 %v13231_v30, %v10812_v62  ;;  %v7822_v35 = vor.u32 %v8745_v39, %v7821_v37  ;;  %v7823_v58 = vld [vmem:[%s13031_s7 + $0xf0] sm:$0xf0]  ;;  %v8741_v62 = vld [vmem:[%s13031_s7 + $0xcc] sm:$0xf0] }
 0x95f   :  { %v7700_v24 = vmul.f32 -1.442695, %v2783_v43  ;;  %v1800_v43 = vadd.f32 %v13232_v23, %v13213_v57  ;;  %v8739_v57 = vld [vmem:[%s13031_s7 + $0xc4] sm:$0xf]  ;;  %v7743_v30 = vld [vmem:[%s13031_s7 + $0x50] sm:$0xf0] }
 0x960   :  { %v9154_v6 = vpop.eup %9153 }
 0x961   :  { %v9156_v21 = vpop.eup %9155  ;;  %v2787_v19 = vadd.f32 1.0, %v9154_v6  ;;  %9157 = vpow2.f32 %v7700_v24 }
 0x962   :  { %v2806_v40 = vadd.f32 1.0, %v9156_v21  ;;  %v7826_v21 = vor.u32 %v8743_v12, %v7823_v58  ;;  %v8723_v12 = vld [vmem:[%s13031_s7 + $0x44] sm:$0xf] }
 0x963   :  { %9159 = vrcp.f32 %v2787_v19  ;;  %v2799_v0 = vand.u32 2147483648, %v2787_v19  ;;  %v2797_v34 = vand.u32 2147483647, %v2787_v19  ;;  %vm2793_vm4 = vweird.f32 %v2787_v19 }
 0x964   :  { %9161 = vrcp.f32 %v2806_v40  ;;  %v2765_v53 = vpop.f32.mrf.mxu2  ;;  %v2778_v56 = vpop.f32.mrf.mxu3  ;;  %v2818_v15 = vand.u32 2147483648, %v2806_v40  ;;  %v2816_v47 = vand.u32 2147483647, %v2806_v40  ;;  %vm2812_vm5 = vweird.f32 %v2806_v40 }
 0x965   :  { %v2800_v38 = vor.u32 1.1754944e-38, %v2799_v0  ;;  %vm2798_vm8 = vcmp.eq.f32.partialorder %v2797_v34, 8.507059e+37  ;;  %v7805_v53 = vld [vmem:[%s13031_s7 + $0xc0] sm:$0xf]  ;;  %v8733_v34 = vld [vmem:[%s13031_s7 + $0x8c] sm:$0xf0]  ;;  %v7746_v23 = vor.u32 %v8723_v12, %v7743_v30 }
 0x966   :  { %v2819_v4 = vor.u32 1.1754944e-38, %v2818_v15  ;;  %vm2817_vm9 = vcmp.eq.f32.partialorder %v2816_v47, 8.507059e+37  ;;  %v7831_v30 = vld [vmem:[%s13031_s7 + $0xf8] sm:$0xf0] }
 0x967   :  { %v9158_v26 = vpop.eup %9157 }
 0x968   :  { %v2826_v11 = vadd.f32 1.0, %v9158_v26 }
 0x969   :  { %v9160_v45 = vpop.eup %9159 }
 0x96a   :  { %v9162_v36 = vpop.eup %9161  ;;  %v2789_v3 = vmul.f32 %v9160_v45, %v2787_v19  ;;  %9163 = vrcp.f32 %v2826_v11  ;;  %vm2794_vm2 = vweird.f32 %v9160_v45  ;;  %v2838_v50 = vand.u32 2147483648, %v2826_v11 }
 0x96b   :  { %v2808_v13 = vmul.f32 %v9162_v36, %v2806_v40  ;;  %9165 = vtanh.f32 %v2782_v44  ;;  %vm2813_vm3 = vweird.f32 %v9162_v36  ;;  %vm2795_vm6 = vmor %vm2793_vm4, %vm2794_vm2  ;;  %vm2832_vm10 = vweird.f32 %v2826_v11  ;;  %v7789_v44 = vld [vmem:[%s13031_s7 + $0xa0] sm:$0xf] }
 0x96c   :  { %v2790_v27 = vsub.f32 1.0, %v2789_v3  ;;  %vm2814_vm7 = vmor %vm2812_vm5, %vm2813_vm3  ;;  %v2836_v1 = vand.u32 2147483647, %v2826_v11  ;;  %v2839_v52 = vor.u32 1.1754944e-38, %v2838_v50  ;;  %v8735_v3 = vld [vmem:[%s13031_s7 + $0xa4] sm:$0xf] }
 0x96d   :  { %v2809_v41 = vsub.f32 1.0, %v2808_v13  ;;  %v8727_v50 = vld [vmem:[%s13031_s7 + $0x64] sm:$0xf] }
 0x96e   :  { %v2791_v7 = vmul.f32 %v9160_v45, %v2790_v27  ;;  %vm2837_vm12 = vcmp.eq.f32.partialorder %v2836_v1, 8.507059e+37  ;;  %v7791_v27 = vld [vmem:[%s13031_s7 + $0xb0] sm:$0xf0] }
 0x96f   :  { %v2810_v32 = vmul.f32 %v9162_v36, %v2809_v41  ;;  %v13233_v41 = vld [vmem:[#allocation40_spill] sm:$0xff]  ;;  %v7794_v15 = vor.u32 %v8735_v3, %v7791_v27  ;;  %v7759_v1 = vld [vmem:[%s13031_s7 + $0x70] sm:$0xf0] }
 0x970   :  { %v9164_v51 = vpop.eup %9163  ;;  %v2792_v17 = vadd.f32 %v9160_v45, %v2791_v7  ;;  %v1858_v0 = vadd.f32 %v13233_v41, %v13215_v49  ;;  %v7773_v7 = vld [vmem:[%s13031_s7 + $0x80] sm:$0xf]  ;;  %v7775_v49 = vld [vmem:[%s13031_s7 + $0x90] sm:$0xf0] }
 0x971   :  { %v2811_v46 = vadd.f32 %v9162_v36, %v2810_v32  ;;  %v2828_v2 = vmul.f32 %v9164_v51, %v2826_v11  ;;  %v9166_v63 = vpop.eup %9165  ;;  %vm2833_vm0 = vweird.f32 %v9164_v51  ;;  %v7806_v11 = vor.u32 %v8741_v62, %v7805_v53 }
 0x972   :  { %v2796_v29 = vsel %vm2795_vm6, %v9160_v45, %v2792_v17  ;;  %vm2834_vm11 = vmor %vm2832_vm10, %vm2833_vm0  ;;  %v7807_v45 = vld [vmem:[%s13031_s7 + $0xd0] sm:$0xf0] }
 0x973   :  { %v2801_v48 = vsel %vm2798_vm8, %v2800_v38, %v2796_v29  ;;  %v2815_v22 = vsel %vm2814_vm7, %v9162_v36, %v2811_v46  ;;  %v2829_v20 = vsub.f32 1.0, %v2828_v2  ;;  %v7810_v8 = vor.u32 %v8739_v57, %v7807_v45  ;;  %v8737_v36 = vld [vmem:[%s13031_s7 + $0xac] sm:$0xf0] }
 0x974   :  { %v2820_v16 = vsel %vm2817_vm9, %v2819_v4, %v2815_v22  ;;  %v2843_v28 = vmul.f32 %v9166_v63, %v2801_v48  ;;  %v7790_v13 = vor.u32 %v8737_v36, %v7789_v44  ;;  %v7774_v2 = vor.u32 %v8733_v34, %v7773_v7  ;;  %v7711_v44 = vld [vmem:[%s13031_s7 + $0x10] sm:$0xf0] }
 0x975   :  { %v2842_v10 = vmul.f32 %v2820_v16, %v11090_v14  ;;  %v2830_v25 = vmul.f32 %v9164_v51, %v2829_v20  ;;  %v7757_v16 = vld [vmem:[%s13031_s7 + $0x60] sm:$0xf] }
 0x977   :  { %v11134_v5 = vadd.f32 %v2843_v28, %v2842_v10  ;;  %v2831_v54 = vadd.f32 %v9164_v51, %v2830_v25  ;;  %v8729_v25 = vld [vmem:[%s13031_s7 + $0x6c] sm:$0xf0] }
 0x979   :  { %9167 = vtanh.f32 %v11134_v5  ;;  %v2835_v61 = vsel %vm2834_vm11, %v9164_v51, %v2831_v54  ;;  %v8731_v51 = vld [vmem:[%s13031_s7 + $0x84] sm:$0xf]  ;;  %v7758_v54 = vor.u32 %v8729_v25, %v7757_v16 }
 0x97a   :  { %v2840_v9 = vsel %vm2837_vm12, %v2839_v52, %v2835_v61  ;;  %v7778_v29 = vor.u32 %v8731_v51, %v7775_v49  ;;  %v7762_v61 = vor.u32 %v8727_v50, %v7759_v1  ;;  %v7741_v52 = vld [vmem:[%s13031_s7 + $0x40] sm:$0xf] }
 0x97f   :  { %v9168_v55 = vpop.eup %9167 }
 0x980   :  { %v11137_v31 = vmul.f32 %v9168_v55, %v2840_v9  ;;  %v8725_v55 = vld [vmem:[%s13031_s7 + $0x4c] sm:$0xf0] }
 0x981   :  { %v7742_v39 = vor.u32 %v8725_v55, %v7741_v52  ;;  %v13235_v52 = vld [vmem:[#allocation49_spill] sm:$0xff]  ;;  %v13236_v55 = vld [vmem:[#allocation24_spill] sm:$0xff] }
 0x982   :  { %v2852_v14 = vpack.c.bf16 %v11137_v31, %v11137_v31 }
 0x984   :  { %2861 = vmatmul.bf16.vlgmr.msra.gmra.mxu0 %v2852_v14  ;;  %2874 = vmatmul.bf16.vlgmr.msra.gmra.mxu1 %v2852_v14 }
 0x985   :  { %2887 = vmatmul.bf16.vlgmr.msra.gmra.mxu2 %v2852_v14  ;;  %2900 = vmatmul.bf16.vlgmr.msra.gmra.mxu3 %v2852_v14  ;;  %v13234_v14 = vld [vmem:[#allocation39_spill] sm:$0xff] }
 0x986   :  { %3516 = vmatpush.bf16.msra.mxu0 %v7822_v35  ;;  %3574 = vmatpush.bf16.msra.mxu2 %v7826_v21  ;;  %v1829_v37 = vadd.f32 %v13234_v14, %v13217_v33  ;;  %v8721_v33 = vld [vmem:[%s13031_s7 + $0x2c] sm:$0xf0]  ;;  %v7829_v14 = vld [vmem:[%s13031_s7 + $0xe8] sm:$0xf] }
 0x98a   :  { %3517 = vmatpush.bf16.msra.mxu0 %v7806_v11  ;;  %3575 = vmatpush.bf16.msra.mxu2 %v7810_v8  ;;  %v8715_v8 = vld [vmem:[%s13031_s7 + $0x4] sm:$0xf] }
 0x98b   :  { %v7714_v34 = vor.u32 %v8715_v8, %v7711_v44  ;;  %v13238_v44 = vld [vmem:[#allocation25_spill] sm:$0xff] }
 0x98e   :  { %3518 = vmatpush.bf16.msra.mxu0 %v7790_v13  ;;  %3576 = vmatpush.bf16.msra.mxu2 %v7794_v15 }
 0x992   :  { %3519 = vmatpush.bf16.msra.mxu0 %v7774_v2  ;;  %3577 = vmatpush.bf16.msra.mxu2 %v7778_v29 }
 0x996   :  { %3520 = vmatpush.bf16.msra.mxu0 %v7758_v54  ;;  %3578 = vmatpush.bf16.msra.mxu2 %v7762_v61 }
 0x99a   :  { %3521 = vmatpush.bf16.msra.mxu0 %v7742_v39  ;;  %3579 = vmatpush.bf16.msra.mxu2 %v7746_v23  ;;  %v8744_v39 = vld [vmem:[%s13031_s7 + $0xec] sm:$0xf]  ;;  %v7813_v23 = vld [vmem:[%s13031_s7 + $0xc8] sm:$0xf] }
 0xa01   :  { %v2862_v24 = vpop.f32.mrf.mxu0  ;;  %v2875_v6 = vpop.f32.mrf.mxu1 }
 0xa02   :  { %v2905_v19 = vadd.f32 %v2862_v24, %v1771_v59  ;;  %v2906_v40 = vadd.f32 %v2875_v6, %v1800_v43  ;;  %v7725_v43 = vld [vmem:[%s13031_s7 + $0x20] sm:$0xf]  ;;  %v8719_v24 = vld [vmem:[%s13031_s7 + $0x24] sm:$0xf]  ;;  %v7727_v6 = vld [vmem:[%s13031_s7 + $0x30] sm:$0xf0] }
 0xa03   :  { %v7726_v53 = vor.u32 %v8721_v33, %v7725_v43  ;;  %v7730_v57 = vor.u32 %v8719_v24, %v7727_v6  ;;  %v8742_v43 = vld [vmem:[%s13031_s7 + $0xd4] sm:$0xf0]  ;;  %v8740_v33 = vld [vmem:[%s13031_s7 + $0xcc] sm:$0xf]  ;;  %v7797_v6 = vld [vmem:[%s13031_s7 + $0xa8] sm:$0xf] }
 0xa04   :  { %v7701_v56 = vmul.f32 -1.442695, %v2905_v19  ;;  %v7702_v26 = vmul.f32 -1.442695, %v2906_v40 }
 0xa05   :  { %3522 = vmatpush.bf16.msra.mxu0 %v7726_v53  ;;  %3580 = vmatpush.bf16.msra.mxu2 %v7730_v57  ;;  %v7781_v57 = vld [vmem:[%s13031_s7 + $0x88] sm:$0xf] }
 0xa06   :  { %9169 = vpow2.f32 %v7701_v56  ;;  %v7709_v56 = vld [vmem:[%s13031_s7] sm:$0xf] }
 0xa07   :  { %9171 = vpow2.f32 %v7702_v26  ;;  %v8717_v26 = vld [vmem:[%s13031_s7 + $0xc] sm:$0xf0] }
 0xa08   :  { %v2888_v32 = vpop.f32.mrf.mxu2  ;;  %v2901_v47 = vpop.f32.mrf.mxu3 }
 0xa09   :  { %v2908_v17 = vadd.f32 %v2901_v47, %v1858_v0  ;;  %v2864_v38 = vpop.f32.mrf.mxu0  ;;  %v2877_v46 = vpop.f32.mrf.mxu1  ;;  %v2907_v58 = vadd.f32 %v2888_v32, %v1829_v37  ;;  %v7710_v0 = vor.u32 %v8717_v26, %v7709_v56  ;;  %3581 = vmatpush.bf16.msra.mxu2 %v7714_v34  ;;  %v8746_v37 = vld [vmem:[%s13031_s7 + $0xf4] sm:$0xf0]  ;;  %v8732_v26 = vld [vmem:[%s13031_s7 + $0x8c] sm:$0xf]  ;;  %v7749_v34 = vld [vmem:[%s13031_s7 + $0x48] sm:$0xf] }
 0xa0a   :  { %v7830_v12 = vor.u32 %v8746_v37, %v7829_v14  ;;  %v8734_v56 = vld [vmem:[%s13031_s7 + $0x94] sm:$0xf0]  ;;  %v7949_v14 = vld [vmem:[%s13031_s7 + $0x1e0] sm:$0xf]  ;;  %v8777_v37 = vld [vmem:[%s13031_s7 + $0x1ec] sm:$0xf0] }
 0xa0b   :  { %v7703_v4 = vmul.f32 -1.442695, %v2908_v17  ;;  %3523 = vmatpush.bf16.msra.mxu0 %v7710_v0 }
 0xa0c   :  { %v9170_v63 = vpop.eup %9169 }
 0xa0d   :  { %v9172_v48 = vpop.eup %9171  ;;  %v11195_v22 = vadd.f32 1.0, %v9170_v63  ;;  %9173 = vpow2.f32 %v7703_v4 }
 0xa0e   :  { %v11197_v20 = vadd.f32 1.0, %v9172_v48 }
 0xa0f   :  { %9175 = vrcp.f32 %v11195_v22  ;;  %v2924_v45 = vand.u32 2147483648, %v11195_v22  ;;  %v2922_v13 = vand.u32 2147483647, %v11195_v22  ;;  %vm2918_vm15 = vweird.f32 %v11195_v22 }
 0xa10   :  { %9177 = vrcp.f32 %v11197_v20  ;;  %v2890_v28 = vpop.f32.mrf.mxu2  ;;  %v2903_v10 = vpop.f32.mrf.mxu3  ;;  %v2943_v36 = vand.u32 2147483648, %v11197_v20  ;;  %v2941_v41 = vand.u32 2147483647, %v11197_v20  ;;  %vm2937_vm1 = vweird.f32 %v11197_v20 }
 0xa11   :  { %v2925_v32 = vor.u32 1.1754944e-38, %v2924_v45  ;;  %vm2923_vm4 = vcmp.eq.f32.partialorder %v2922_v13, 8.507059e+37  ;;  %v7782_v45 = vor.u32 %v8734_v56, %v7781_v57  ;;  %v7765_v13 = vld [vmem:[%s13031_s7 + $0x68] sm:$0xf]  ;;  %v7917_v57 = vld [vmem:[%s13031_s7 + $0x1a0] sm:$0xf] }
 0xa12   :  { %v2944_v49 = vor.u32 1.1754944e-38, %v2943_v36  ;;  %vm2942_vm5 = vcmp.eq.f32.partialorder %v2941_v41, 8.507059e+37  ;;  %v13239_v36 = vld [vmem:[#allocation26_spill] sm:$0xff]  ;;  %v8728_v41 = vld [vmem:[%s13031_s7 + $0x6c] sm:$0xf] }
 0xa13   :  { %v9174_v9 = vpop.eup %9173  ;;  %v8769_v56 = vld [vmem:[%s13031_s7 + $0x1ac] sm:$0xf0] }
 0xa14   :  { %v11227_v59 = vadd.f32 1.0, %v9174_v9  ;;  %v11276_v9 = vpack.c.bf16 %v13236_v55, %v13235_v52  ;;  %v13245_v52 = vld [vmem:[#allocation22_spill] sm:$0xff] }
 0xa15   :  { %v9176_v35 = vpop.eup %9175 }
 0xa16   :  { %v9178_v21 = vpop.eup %9177  ;;  %v2914_v19 = vmul.f32 %v9176_v35, %v11195_v22  ;;  %9179 = vrcp.f32 %v11227_v59  ;;  %vm2919_vm13 = vweird.f32 %v9176_v35  ;;  %v2963_v28 = vand.u32 2147483648, %v11227_v59  ;;  %13237 = vst [vmem:[#allocation30_spill] sm:$0xff] %v11276_v9 }
 0xa17   :  { %v2933_v40 = vmul.f32 %v9178_v21, %v11197_v20  ;;  %9181 = vtanh.f32 %v2907_v58  ;;  %vm2938_vm14 = vweird.f32 %v9178_v21  ;;  %vm2920_vm2 = vmor %vm2918_vm15, %vm2919_vm13  ;;  %vm2957_vm7 = vweird.f32 %v11227_v59  ;;  %v7815_v58 = vld [vmem:[%s13031_s7 + $0xd8] sm:$0xf0] }
 0xa18   :  { %v2915_v62 = vsub.f32 1.0, %v2914_v19  ;;  %vm2939_vm3 = vmor %vm2937_vm1, %vm2938_vm14  ;;  %v2961_v10 = vand.u32 2147483647, %v11227_v59  ;;  %v2964_v54 = vor.u32 1.1754944e-38, %v2963_v28  ;;  %v7818_v24 = vor.u32 %v8740_v33, %v7815_v58  ;;  %v8736_v19 = vld [vmem:[%s13031_s7 + $0xac] sm:$0xf] }
 0xa19   :  { %v2934_v11 = vsub.f32 1.0, %v2933_v40  ;;  %v7799_v40 = vld [vmem:[%s13031_s7 + $0xb8] sm:$0xf0]  ;;  %v8773_v58 = vld [vmem:[%s13031_s7 + $0x1cc] sm:$0xf0] }
 0xa1a   :  { %v2916_v3 = vmul.f32 %v9176_v35, %v2915_v62  ;;  %vm2962_vm9 = vcmp.eq.f32.partialorder %v2961_v10, 8.507059e+37  ;;  %v7802_v62 = vor.u32 %v8736_v19, %v7799_v40  ;;  %v7719_v28 = vld [vmem:[%s13031_s7 + $0x18] sm:$0xf0]  ;;  %v8061_v40 = vld [vmem:[#allocation10 + $0xc0] sm:$0xf] }
 0xa1b   :  { %v2935_v27 = vmul.f32 %v9178_v21, %v2934_v11  ;;  %v7783_v11 = vld [vmem:[%s13031_s7 + $0x98] sm:$0xf0] }
 0xa1c   :  { %v9180_v15 = vpop.eup %9179  ;;  %v2917_v7 = vadd.f32 %v9176_v35, %v2916_v3  ;;  %v7786_v8 = vor.u32 %v8732_v26, %v7783_v11  ;;  %v11330_v3 = vpack.c.bf16 %v13239_v36, %v13238_v44  ;;  %v8767_v26 = vld [vmem:[%s13031_s7 + $0x1a4] sm:$0xf]  ;;  %v7918_v11 = vor.u32 %v8769_v56, %v7917_v57  ;;  %v8045_v44 = vld [vmem:[#allocation10 + $0xa0] sm:$0xf]  ;;  %v8801_v36 = vld [vmem:[#allocation10 + $0xac] sm:$0xf0] }
 0xa1d   :  { %v2936_v47 = vadd.f32 %v9178_v21, %v2935_v27  ;;  %v2953_v51 = vmul.f32 %v9180_v15, %v11227_v59  ;;  %v9182_v38 = vpop.eup %9181  ;;  %vm2958_vm6 = vweird.f32 %v9180_v15  ;;  %v7834_v59 = vor.u32 %v8744_v39, %v7831_v30  ;;  %v8730_v27 = vld [vmem:[%s13031_s7 + $0x74] sm:$0xf0]  ;;  %v8775_v39 = vld [vmem:[%s13031_s7 + $0x1e4] sm:$0xf]  ;;  %v7951_v30 = vld [vmem:[%s13031_s7 + $0x1f0] sm:$0xf0] }
 0xa1e   :  { %v2921_v17 = vsel %vm2920_vm2, %v9176_v35, %v2917_v7  ;;  %vm2959_vm8 = vmor %vm2957_vm7, %vm2958_vm6  ;;  %v7814_v35 = vor.u32 %v8742_v43, %v7813_v23  ;;  %13240 = vst [vmem:[#allocation51_spill] sm:$0xff] %v11330_v3  ;;  %v7766_v0 = vor.u32 %v8730_v27, %v7765_v13  ;;  %v8077_v23 = vld [vmem:[#allocation10 + $0xe0] sm:$0xf]  ;;  %v8809_v43 = vld [vmem:[#allocation10 + $0xec] sm:$0xf0]  ;;  %v11442_v13 = vor.u32 %v8801_v36, %v8045_v44 }
 0xa1f   :  { %v2926_v46 = vsel %vm2923_vm4, %v2925_v32, %v2921_v17  ;;  %v2940_v2 = vsel %vm2939_vm3, %v9178_v21, %v2936_v47  ;;  %v2954_v4 = vsub.f32 1.0, %v2953_v51  ;;  %v8738_v21 = vld [vmem:[%s13031_s7 + $0xb4] sm:$0xf0]  ;;  %v8724_v47 = vld [vmem:[%s13031_s7 + $0x4c] sm:$0xf]  ;;  %v11410_v33 = vor.u32 %v8809_v43, %v8077_v23 }
 0xa20   :  { %v2945_v29 = vsel %vm2942_vm5, %v2944_v49, %v2940_v2  ;;  %v2968_v63 = vmul.f32 %v9182_v38, %v2926_v46  ;;  %v7798_v53 = vor.u32 %v8738_v21, %v7797_v6  ;;  %v8726_v32 = vld [vmem:[%s13031_s7 + $0x54] sm:$0xf0]  ;;  %v7751_v49 = vld [vmem:[%s13031_s7 + $0x58] sm:$0xf0]  ;;  %v7733_v38 = vld [vmem:[%s13031_s7 + $0x28] sm:$0xf] }
 0xa21   :  { %v2967_v48 = vmul.f32 %v2945_v29, %v11134_v5  ;;  %v2955_v22 = vmul.f32 %v9180_v15, %v2954_v4  ;;  %v7750_v51 = vor.u32 %v8726_v32, %v7749_v34  ;;  %v7754_v17 = vor.u32 %v8724_v47, %v7751_v49  ;;  %v8722_v46 = vld [vmem:[%s13031_s7 + $0x34] sm:$0xf0]  ;;  %v8720_v2 = vld [vmem:[%s13031_s7 + $0x2c] sm:$0xf]  ;;  %v7735_v4 = vld [vmem:[%s13031_s7 + $0x38] sm:$0xf0] }
 0xa22   :  { %v7734_v29 = vor.u32 %v8722_v46, %v7733_v38  ;;  %v7935_v21 = vld [vmem:[%s13031_s7 + $0x1d0] sm:$0xf0]  ;;  %v7901_v27 = vld [vmem:[%s13031_s7 + $0x180] sm:$0xf]  ;;  %v8797_v47 = vld [vmem:[#allocation10 + $0x8c] sm:$0xf0] }
 0xa23   :  { %v11264_v20 = vadd.f32 %v2968_v63, %v2967_v48  ;;  %v2956_v16 = vadd.f32 %v9180_v15, %v2955_v22  ;;  %v7738_v63 = vor.u32 %v8720_v2, %v7735_v4  ;;  %v7717_v48 = vld [vmem:[%s13031_s7 + $0x8] sm:$0xf]  ;;  %v8718_v22 = vld [vmem:[%s13031_s7 + $0x14] sm:$0xf0]  ;;  %v8029_v32 = vld [vmem:[#allocation10 + $0x80] sm:$0xf] }
 0xa24   :  { %v7718_v10 = vor.u32 %v8718_v22, %v7717_v48  ;;  %v7885_v49 = vld [vmem:[%s13031_s7 + $0x160] sm:$0xf]  ;;  %v8759_v38 = vld [vmem:[%s13031_s7 + $0x164] sm:$0xf]  ;;  %v7887_v2 = vld [vmem:[%s13031_s7 + $0x170] sm:$0xf0] }
 0xa25   :  { %9183 = vtanh.f32 %v11264_v20  ;;  %v2960_v25 = vsel %vm2959_vm8, %v9180_v15, %v2956_v16  ;;  %v7767_v15 = vld [vmem:[%s13031_s7 + $0x78] sm:$0xf0]  ;;  %v8716_v16 = vld [vmem:[%s13031_s7 + $0xc] sm:$0xf]  ;;  %v8013_v48 = vld [vmem:[#allocation10 + $0x60] sm:$0xf] }
 0xa26   :  { %v2965_v1 = vsel %vm2962_vm9, %v2964_v54, %v2960_v25  ;;  %v7770_v7 = vor.u32 %v8728_v41, %v7767_v15  ;;  %v7722_v25 = vor.u32 %v8716_v16, %v7719_v28  ;;  %v13241_v54 = vld [vmem:[#allocation29_spill] sm:$0xff]  ;;  %v8765_v41 = vld [vmem:[%s13031_s7 + $0x18c] sm:$0xf0]  ;;  %v13247_v16 = vld [vmem:[#allocation32_spill] sm:$0xff] }
 0xa27   :  { %v7902_v15 = vor.u32 %v8765_v41, %v7901_v27  ;;  %v8793_v22 = vld [vmem:[#allocation10 + $0x6c] sm:$0xf0]  ;;  %v7837_v27 = vld [vmem:[%s13031_s7 + $0x100] sm:$0xf] }
 0xa28   :  { %v8789_v23 = vld [vmem:[#allocation10 + $0x4c] sm:$0xf0] }
 0xa29   :  { %v8749_v41 = vld [vmem:[%s13031_s7 + $0x10c] sm:$0xf0] }
 0xa2b   :  { %v9184_v50 = vpop.eup %9183 }
 0xa2c   :  { %v11270_v5 = vmul.f32 %v9184_v50, %v2965_v1  ;;  %v13242_v50 = vld [vmem:[#allocation27_spill] sm:$0xff] }
 0xa2d   :  { %v11384_v1 = vpack.c.bf16 %v13242_v50, %v13241_v54  ;;  %v11474_v54 = vor.u32 %v8793_v22, %v8013_v48  ;;  %v7869_v50 = vld [vmem:[%s13031_s7 + $0x140] sm:$0xf]  ;;  %v7957_v48 = vld [vmem:[%s13031_s7 + $0x1e8] sm:$0xf]  ;;  %v8778_v22 = vld [vmem:[%s13031_s7 + $0x1f4] sm:$0xf0] }
 0xa2e   :  { %v2977_v61 = vpack.c.bf16 %v11270_v5, %v11270_v5 }
 0xa2f   :  { %13243 = vst [vmem:[#allocation33_spill] sm:$0xff] %v11384_v1 }
 0xa30   :  { %2986 = vmatmul.bf16.vlgmr.msrb.gmra.mxu0 %v2977_v61  ;;  %2999 = vmatmul.bf16.vlgmr.msrb.gmra.mxu1 %v2977_v61 }
 0xa31   :  { %3012 = vmatmul.bf16.vlgmr.msrb.gmra.mxu2 %v2977_v61  ;;  %3025 = vmatmul.bf16.vlgmr.msrb.gmra.mxu3 %v2977_v61  ;;  %v13244_v61 = vld [vmem:[#allocation28_spill] sm:$0xff] }
 0xa32   :  { %3632 = vmatpush.bf16.msrb.mxu0 %v7830_v12  ;;  %3690 = vmatpush.bf16.msrb.mxu2 %v7834_v59  ;;  %v11390_v55 = vpack.c.bf16 %v13245_v52, %v13244_v61  ;;  %v7950_v12 = vor.u32 %v8777_v37, %v7949_v14  ;;  %v7954_v59 = vor.u32 %v8775_v39, %v7951_v30  ;;  %v8757_v61 = vld [vmem:[%s13031_s7 + $0x14c] sm:$0xf0]  ;;  %v8755_v52 = vld [vmem:[%s13031_s7 + $0x144] sm:$0xf] }
 0xa33   :  { %v7870_v39 = vor.u32 %v8757_v61, %v7869_v50 }
 0xa34   :  { %13246 = vst [vmem:[#allocation52_spill] sm:$0xff] %v11390_v55  ;;  %3545 = vmatpush.bf16.msra.mxu1 %v7950_v12  ;;  %3603 = vmatpush.bf16.msra.mxu3 %v7954_v59  ;;  %v7871_v12 = vld [vmem:[%s13031_s7 + $0x150] sm:$0xf0]  ;;  %v7997_v59 = vld [vmem:[#allocation10 + $0x40] sm:$0xf] }
 0xa35   :  { %v7874_v30 = vor.u32 %v8755_v52, %v7871_v12  ;;  %v11491_v43 = vor.u32 %v8789_v23, %v7997_v59  ;;  %v13250_v52 = vmov 0  }
 0xa36   :  { %3633 = vmatpush.bf16.msrb.mxu0 %v7814_v35  ;;  %3691 = vmatpush.bf16.msrb.mxu2 %v7818_v24  ;;  %v7933_v35 = vld [vmem:[%s13031_s7 + $0x1c0] sm:$0xf]  ;;  %v8771_v24 = vld [vmem:[%s13031_s7 + $0x1c4] sm:$0xf] }
 0xa37   :  { %v7934_v6 = vor.u32 %v8773_v58, %v7933_v35  ;;  %v7938_v19 = vor.u32 %v8771_v24, %v7935_v21  ;;  %v7853_v35 = vld [vmem:[%s13031_s7 + $0x120] sm:$0xf]  ;;  %v8753_v58 = vld [vmem:[%s13031_s7 + $0x12c] sm:$0xf0]  ;;  %v8751_v24 = vld [vmem:[%s13031_s7 + $0x124] sm:$0xf] }
 0xa39   :  { %3546 = vmatpush.bf16.msra.mxu1 %v7934_v6  ;;  %3604 = vmatpush.bf16.msra.mxu3 %v7938_v19  ;;  %v7854_v19 = vor.u32 %v8753_v58, %v7853_v35 }
 0xa3a   :  { %3634 = vmatpush.bf16.msrb.mxu0 %v7798_v53  ;;  %3692 = vmatpush.bf16.msrb.mxu2 %v7802_v62  ;;  %v8805_v53 = vld [vmem:[#allocation10 + $0xcc] sm:$0xf0] }
 0xa3b   :  { %v11427_v62 = vor.u32 %v8805_v53, %v8061_v40  ;;  %v7855_v40 = vld [vmem:[%s13031_s7 + $0x130] sm:$0xf0]  ;;  %v13249_v53 = vld [vmem:[#allocation37_spill] sm:$0xff] }
 0xa3d   :  { %3547 = vmatpush.bf16.msra.mxu1 %v7918_v11  ;;  %v7858_v11 = vor.u32 %v8751_v24, %v7855_v40 }
 0xa3e   :  { %3635 = vmatpush.bf16.msrb.mxu0 %v7782_v45  ;;  %3693 = vmatpush.bf16.msrb.mxu2 %v7786_v8  ;;  %v7919_v45 = vld [vmem:[%s13031_s7 + $0x1b0] sm:$0xf0] }
 0xa3f   :  { %v7922_v8 = vor.u32 %v8767_v26, %v7919_v45  ;;  %v7981_v45 = vld [vmem:[#allocation10 + $0x20] sm:$0xf] }
 0xa40   :  { %3524 = vmatmul.bf16.vlgmr.msra.gmra.mxu0 %v11276_v9 }
 0xa41   :  { %3582 = vmatmul.bf16.vlgmr.msra.gmra.mxu2 %v11276_v9  ;;  %3605 = vmatpush.bf16.msra.mxu3 %v7922_v8  ;;  %v8785_v8 = vld [vmem:[#allocation10 + $0x2c] sm:$0xf0] }
 0xa42   :  { %3636 = vmatpush.bf16.msrb.mxu0 %v7766_v0  ;;  %3694 = vmatpush.bf16.msrb.mxu2 %v7770_v7  ;;  %v8763_v0 = vld [vmem:[%s13031_s7 + $0x184] sm:$0xf]  ;;  %v7903_v7 = vld [vmem:[%s13031_s7 + $0x190] sm:$0xf0]  ;;  %v11507_v44 = vor.u32 %v8785_v8, %v7981_v45 }
 0xa43   :  { %v7906_v34 = vor.u32 %v8763_v0, %v7903_v7  ;;  %3548 = vmatpush.bf16.msra.mxu1 %v7902_v15  ;;  %v7838_v15 = vor.u32 %v8749_v41, %v7837_v27  ;;  %v8747_v7 = vld [vmem:[%s13031_s7 + $0x104] sm:$0xf] }
 0xa45   :  { %3606 = vmatpush.bf16.msra.mxu3 %v7906_v34  ;;  %v7839_v34 = vld [vmem:[%s13031_s7 + $0x110] sm:$0xf0] }
 0xa46   :  { %3637 = vmatpush.bf16.msrb.mxu0 %v7750_v51  ;;  %3695 = vmatpush.bf16.msrb.mxu2 %v7754_v17  ;;  %v11457_v51 = vor.u32 %v8797_v47, %v8029_v32  ;;  %v8761_v17 = vld [vmem:[%s13031_s7 + $0x16c] sm:$0xf0] }
 0xa47   :  { %v7886_v46 = vor.u32 %v8761_v17, %v7885_v49  ;;  %v7842_v49 = vor.u32 %v8747_v7, %v7839_v34  ;;  %v7965_v17 = vld [vmem:[#allocation10] sm:$0xf] }
 0xa48   :  { %v11584_v34 = vld [vmem:[%s13033_s9] sm:$0xf] }
 0xa49   :  { %3549 = vmatpush.bf16.msra.mxu1 %v7886_v46 }
 0xa4a   :  { %3638 = vmatpush.bf16.msrb.mxu0 %v7734_v29  ;;  %3696 = vmatpush.bf16.msrb.mxu2 %v7738_v63  ;;  %v7890_v63 = vor.u32 %v8759_v38, %v7887_v2  ;;  %v8781_v38 = vld [vmem:[#allocation10 + $0xc] sm:$0xf0] }
 0xa4b   :  { %v11526_v2 = vor.u32 %v8781_v38, %v7965_v17 }
 0xa4c   :  { %3607 = vmatpush.bf16.msra.mxu3 %v7890_v63 }
 0xa4d   :  { %3550 = vmatpush.bf16.msra.mxu1 %v7870_v39 }
 0xa4e   :  { %3639 = vmatpush.bf16.msrb.mxu0 %v7718_v10  ;;  %3697 = vmatpush.bf16.msrb.mxu2 %v7722_v25  ;;  %v13248_v10 = vld [vmem:[#allocation31_spill] sm:$0xff] }
 0xa50   :  { %3529 = vmatmul.bf16.gmra.mxu0 %v11330_v3  ;;  %3608 = vmatpush.bf16.msra.mxu3 %v7874_v30 }
 0xa51   :  { %3587 = vmatmul.bf16.gmra.mxu2 %v11330_v3  ;;  %3551 = vmatpush.bf16.msra.mxu1 %v7854_v19 }
 0xa52   :  { %3976 = vmatpush.bf16.msra.mxu0 %v11410_v33 }
 0xa54   :  { %3609 = vmatpush.bf16.msra.mxu3 %v7858_v11  ;;  %v7943_v11 = vld [vmem:[%s13031_s7 + $0x1d8] sm:$0xf0] }
 0xa55   :  { %3552 = vmatpush.bf16.msra.mxu1 %v7838_v15 }
 0xa56   :  { %3977 = vmatpush.bf16.msra.mxu0 %v11427_v62 }
 0xa58   :  { %3610 = vmatpush.bf16.msra.mxu3 %v7842_v49 }
 0xa5a   :  { %3978 = vmatpush.bf16.msra.mxu0 %v11442_v13 }
 0xa5e   :  { %3979 = vmatpush.bf16.msra.mxu0 %v11457_v51 }
 0xa60   :  { %3534 = vmatmul.bf16.gmra.mxu0 %v11384_v1 }
 0xa61   :  { %3592 = vmatmul.bf16.gmra.mxu2 %v11384_v1 }
 0xa62   :  { %3980 = vmatpush.bf16.msra.mxu0 %v11474_v54 }
 0xa66   :  { %3981 = vmatpush.bf16.msra.mxu0 %v11491_v43 }
 0xa6a   :  { %3982 = vmatpush.bf16.msra.mxu0 %v11507_v44 }
 0xa6e   :  { %3983 = vmatpush.bf16.msra.mxu0 %v11526_v2 }
 0xa70   :  { %3539 = vmatmul.bf16.gmra.mxu0 %v11390_v55 }
 0xa71   :  { %3597 = vmatmul.bf16.gmra.mxu2 %v11390_v55 }
 0xa80   :  { %3640 = vmatmul.bf16.vlgmr.msrb.gmra.mxu0 %v11276_v9 }
 0xa81   :  { %3698 = vmatmul.bf16.vlgmr.msrb.gmra.mxu2 %v11276_v9  ;;  %4101 = vmatpush.bf16.msrb.mxu0 %v11410_v33  ;;  %v7999_v9 = vld [vmem:[#allocation10 + $0x50] sm:$0xf0] }
 0xa85   :  { %4102 = vmatpush.bf16.msrb.mxu0 %v11427_v62 }
 0xa89   :  { %4103 = vmatpush.bf16.msrb.mxu0 %v11442_v13 }
 0xa8d   :  { %4104 = vmatpush.bf16.msrb.mxu0 %v11457_v51 }
 0xa90   :  { %3645 = vmatmul.bf16.gmra.mxu0 %v11330_v3 }
 0xa91   :  { %3703 = vmatmul.bf16.gmra.mxu2 %v11330_v3  ;;  %4105 = vmatpush.bf16.msrb.mxu0 %v11474_v54  ;;  %v8787_v3 = vld [vmem:[#allocation10 + $0x44] sm:$0xf] }
 0xa95   :  { %4106 = vmatpush.bf16.msrb.mxu0 %v11491_v43 }
 0xa99   :  { %4107 = vmatpush.bf16.msrb.mxu0 %v11507_v44 }
 0xa9d   :  { %4108 = vmatpush.bf16.msrb.mxu0 %v11526_v2 }
 0xaa0   :  { %3650 = vmatmul.bf16.gmra.mxu0 %v11384_v1 }
 0xaa1   :  { %3708 = vmatmul.bf16.gmra.mxu2 %v11384_v1  ;;  %v8023_v1 = vld [vmem:[#allocation10 + $0x78] sm:$0xf0] }
 0xaad   :  { %v2987_v4 = vpop.f32.mrf.mxu0  ;;  %v3000_v29 = vpop.f32.mrf.mxu1 }
 0xaae   :  { %v3030_v28 = vadd.f32 %v2987_v4, %v13247_v16  ;;  %v3031_v25 = vadd.f32 %v3000_v29, %v13248_v10  ;;  %v7958_v16 = vor.u32 %v8778_v22, %v7957_v48  ;;  %v7959_v10 = vld [vmem:[%s13031_s7 + $0x1f8] sm:$0xf0]  ;;  %v11588_v48 = vperm.slane %v11584_v34, 0 }
 0xab0   :  { %v7704_v14 = vmul.f32 -1.442695, %v3030_v28  ;;  %v7705_v37 = vmul.f32 -1.442695, %v3031_v25  ;;  %3655 = vmatmul.bf16.gmra.mxu0 %v11390_v55  ;;  %v8776_v28 = vld [vmem:[%s13031_s7 + $0x1ec] sm:$0xf]  ;;  %3661 = vmatpush.bf16.msrb.mxu1 %v7958_v16 }
 0xab1   :  { %3713 = vmatmul.bf16.gmra.mxu2 %v11390_v55  ;;  %v7962_v50 = vor.u32 %v8776_v28, %v7959_v10  ;;  %v8791_v55 = vld [vmem:[#allocation10 + $0x64] sm:$0xf] }
 0xab2   :  { %9185 = vpow2.f32 %v7704_v14 }
 0xab3   :  { %9187 = vpow2.f32 %v7705_v37  ;;  %v13251_v37 = vld [vmem:[#allocation38_spill] sm:$0xff]  ;;  %3719 = vmatpush.bf16.msrb.mxu3 %v7962_v50  ;;  %v8770_v50 = vld [vmem:[%s13031_s7 + $0x1b4] sm:$0xf0] }
 0xab4   :  { %v3013_v6 = vpop.f32.mrf.mxu2  ;;  %v3026_v21 = vpop.f32.mrf.mxu3 }
 0xab5   :  { %v3033_v57 = vadd.f32 %v3026_v21, %v13249_v53  ;;  %v2989_v56 = vpop.f32.mrf.mxu0  ;;  %v3002_v26 = vpop.f32.mrf.mxu1  ;;  %v3032_v39 = vadd.f32 %v3013_v6, %v13251_v37  ;;  %v7941_v53 = vld [vmem:[%s13031_s7 + $0x1c8] sm:$0xf] }
 0xab6   :  { %v8774_v56 = vld [vmem:[%s13031_s7 + $0x1d4] sm:$0xf0]  ;;  %v8772_v26 = vld [vmem:[%s13031_s7 + $0x1cc] sm:$0xf] }
 0xab7   :  { %v7706_v36 = vmul.f32 -1.442695, %v3033_v57  ;;  %v7942_v8 = vor.u32 %v8774_v56, %v7941_v53  ;;  %v7909_v56 = vld [vmem:[%s13031_s7 + $0x188] sm:$0xf] }
 0xab8   :  { %v9186_v0 = vpop.eup %9185 }
 0xab9   :  { %v9188_v32 = vpop.eup %9187  ;;  %v11521_v47 = vadd.f32 1.0, %v9186_v0  ;;  %9189 = vpow2.f32 %v7706_v36  ;;  %v7946_v36 = vor.u32 %v8772_v26, %v7943_v11  ;;  %3662 = vmatpush.bf16.msrb.mxu1 %v7942_v8  ;;  %v8766_v26 = vld [vmem:[%s13031_s7 + $0x194] sm:$0xf0]  ;;  %v7911_v8 = vld [vmem:[%s13031_s7 + $0x198] sm:$0xf0] }
 0xaba   :  { %v11524_v46 = vadd.f32 1.0, %v9188_v32  ;;  %v7910_v11 = vor.u32 %v8766_v26, %v7909_v56  ;;  %v8756_v56 = vld [vmem:[%s13031_s7 + $0x14c] sm:$0xf]  ;;  %v7879_v26 = vld [vmem:[%s13031_s7 + $0x158] sm:$0xf0] }
 0xabb   :  { %9191 = vrcp.f32 %v11521_v47  ;;  %v3047_v35 = vand.u32 2147483647, %v11521_v47  ;;  %v3049_v58 = vand.u32 2147483648, %v11521_v47  ;;  %vm3043_vm11 = vweird.f32 %v11521_v47  ;;  %3720 = vmatpush.bf16.msrb.mxu3 %v7946_v36  ;;  %v8085_v36 = vld [vmem:[#allocation10 + $0xe8] sm:$0xf] }
 0xabc   :  { %9193 = vrcp.f32 %v11524_v46  ;;  %v3015_v4 = vpop.f32.mrf.mxu2  ;;  %v3028_v29 = vpop.f32.mrf.mxu3  ;;  %v3068_v6 = vand.u32 2147483648, %v11524_v46  ;;  %v3066_v19 = vand.u32 2147483647, %v11524_v46  ;;  %vm3062_vm12 = vweird.f32 %v11524_v46 }
 0xabd   :  { %v11530_v63 = vpop.f32.mrf.mxu0  ;;  %v3050_v0 = vor.u32 1.1754944e-38, %v3049_v58  ;;  %vm3048_vm15 = vcmp.eq.f32.partialorder %v3047_v35, 8.507059e+37 }
 0xabe   :  { %v3069_v32 = vor.u32 1.1754944e-38, %v3068_v6  ;;  %vm3067_vm1 = vcmp.eq.f32.partialorder %v3066_v19, 8.507059e+37 }
 0xabf   :  { %v9190_v25 = vpop.eup %9189 }
 0xac0   :  { %v11546_v61 = vadd.f32 1.0, %v9190_v25  ;;  %3984 = vmatmul.bf16.vlgmr.msra.gmra.mxu0 %v13250_v52  ;;  %v7925_v25 = vld [vmem:[%s13031_s7 + $0x1a8] sm:$0xf] }
 0xac1   :  { %v9192_v14 = vpop.eup %9191  ;;  %v7926_v37 = vor.u32 %v8770_v50, %v7925_v25  ;;  %4227 = vmatpush.bf16.msra.mxu0 %v11410_v33  ;;  %v7895_v25 = vld [vmem:[%s13031_s7 + $0x178] sm:$0xf0]  ;;  %v8053_v50 = vld [vmem:[#allocation10 + $0xa8] sm:$0xf] }
 0xac2   :  { %v9194_v12 = vpop.eup %9193  ;;  %v3039_v30 = vmul.f32 %v9192_v14, %v11521_v47  ;;  %9195 = vrcp.f32 %v11546_v61  ;;  %vm3044_vm0 = vweird.f32 %v9192_v14  ;;  %v3088_v35 = vand.u32 2147483648, %v11546_v61 }
 0xac3   :  { %v3058_v59 = vmul.f32 %v9194_v12, %v11524_v46  ;;  %9197 = vtanh.f32 %v3032_v39  ;;  %vm3063_vm10 = vweird.f32 %v9194_v12  ;;  %vm3045_vm13 = vmor %vm3043_vm11, %vm3044_vm0  ;;  %v8768_v39 = vld [vmem:[%s13031_s7 + $0x1ac] sm:$0xf]  ;;  %3663 = vmatpush.bf16.msrb.mxu1 %v7926_v37  ;;  %vm3082_vm3 = vweird.f32 %v11546_v61 }
 0xac4   :  { %v3040_v23 = vsub.f32 1.0, %v3039_v30  ;;  %v11556_v24 = vpop.f32.mrf.mxu2  ;;  %vm3064_vm14 = vmor %vm3062_vm12, %vm3063_vm10  ;;  %v3089_v53 = vor.u32 1.1754944e-38, %v3088_v35  ;;  %v8798_v35 = vld [vmem:[#allocation10 + $0x94] sm:$0xf0] }
 0xac5   :  { %v3059_v21 = vsub.f32 1.0, %v3058_v59  ;;  %v11560_v40 = vpop.f32.mrf.mxu0  ;;  %4228 = vmatpush.bf16.msra.mxu0 %v11427_v62 }
 0xac6   :  { %v3041_v57 = vmul.f32 %v9192_v14, %v3040_v23  ;;  %v3086_v23 = vand.u32 2147483647, %v11546_v61 }
 0xac7   :  { %v3060_v45 = vmul.f32 %v9194_v12, %v3059_v21  ;;  %v11621_v21 = vperm.slane %v11584_v34, 1  ;;  %3664 = vmatpush.bf16.msrb.mxu1 %v7910_v11  ;;  %v8021_v11 = vld [vmem:[#allocation10 + $0x68] sm:$0xf] }
 0xac8   :  { %v11575_v27 = vpop.eup %9195  ;;  %v3042_v41 = vadd.f32 %v9192_v14, %v3041_v57  ;;  %vm3087_vm5 = vcmp.eq.f32.partialorder %v3086_v23, 8.507059e+37  ;;  %v8037_v23 = vld [vmem:[#allocation10 + $0x88] sm:$0xf] }
 0xac9   :  { %v3061_v15 = vadd.f32 %v9194_v12, %v3060_v45  ;;  %v3078_v7 = vmul.f32 %v11575_v27, %v11546_v61  ;;  %v9198_v47 = vpop.eup %9197  ;;  %vm3083_vm2 = vweird.f32 %v11575_v27  ;;  %v8764_v45 = vld [vmem:[%s13031_s7 + $0x18c] sm:$0xf]  ;;  %4229 = vmatpush.bf16.msra.mxu0 %v11442_v13 }
 0xaca   :  { %v3046_v49 = vsel %vm3045_vm13, %v9192_v14, %v3042_v41  ;;  %vm11616_vm4 = vmor %vm3082_vm3, %vm3083_vm2 }
 0xacb   :  { %v3051_v17 = vsel %vm3048_vm15, %v3050_v0, %v3046_v49  ;;  %v3065_v38 = vsel %vm3064_vm14, %v9194_v12, %v3061_v15  ;;  %v3079_v46 = vsub.f32 1.0, %v3078_v7  ;;  %v7914_v0 = vor.u32 %v8764_v45, %v7911_v8  ;;  %v8810_v15 = vld [vmem:[#allocation10 + $0xf4] sm:$0xf0] }
 0xacc   :  { %v3070_v4 = vsel %vm3067_vm1, %v3069_v32, %v3065_v38  ;;  %v3093_v29 = vmul.f32 %v9198_v47, %v3051_v17  ;;  %v11590_v22 = vpop.f32.mrf.mxu2  ;;  %v11644_v32 = vor.u32 %v8810_v15, %v8085_v36  ;;  %v8069_v47 = vld [vmem:[#allocation10 + $0xc8] sm:$0xf]  ;;  %v8806_v17 = vld [vmem:[#allocation10 + $0xd4] sm:$0xf0]  ;;  %v7882_v45 = vor.u32 %v8756_v56, %v7879_v26  ;;  %v8748_v26 = vld [vmem:[%s13031_s7 + $0x10c] sm:$0xf] }
 0xacd   :  { %13252 = vst [vmem:[#allocation34_spill] sm:$0xff] %v11590_v22  ;;  %v3092_v16 = vmul.f32 %v3070_v4, %v11264_v20  ;;  %v3080_v28 = vmul.f32 %v11575_v27, %v3079_v46  ;;  %v3530_v10 = vpop.f32.mrf.mxu0  ;;  %v7927_v20 = vld [vmem:[%s13031_s7 + $0x1b8] sm:$0xf0]  ;;  %v11656_v46 = vor.u32 %v8806_v17, %v8069_v47  ;;  %v8794_v8 = vld [vmem:[#allocation10 + $0x74] sm:$0xf0]  ;;  %4230 = vmatpush.bf16.msra.mxu0 %v11457_v51 }
 0xace   :  { %v11601_v14 = vadd.f32 %v3530_v10, %v11588_v48  ;;  %v7930_v30 = vor.u32 %v8768_v39, %v7927_v20  ;;  %4002 = vmatpush.bf16.msra.mxu2 %v11644_v32  ;;  %v8760_v10 = vld [vmem:[%s13031_s7 + $0x16c] sm:$0xf]  ;;  %v8802_v39 = vld [vmem:[#allocation10 + $0xb4] sm:$0xf0]  ;;  %v7877_v20 = vld [vmem:[%s13031_s7 + $0x148] sm:$0xf]  ;;  %v11700_v36 = vor.u32 %v8794_v8, %v8021_v11  ;;  %v11760_v8 = vpack.c.bf16 %v11001_v42, %v11045_v60 }
 0xacf   :  { %v3094_v12 = vadd.f32 %v3093_v29, %v3092_v16  ;;  %v3081_v59 = vadd.f32 %v11575_v27, %v3080_v28  ;;  %v8762_v29 = vld [vmem:[%s13031_s7 + $0x174] sm:$0xf0]  ;;  %v7898_v37 = vor.u32 %v8760_v10, %v7895_v25  ;;  %v7847_v11 = vld [vmem:[%s13031_s7 + $0x118] sm:$0xf0] }
 0xad0   :  { %3721 = vmatpush.bf16.msrb.mxu3 %v7930_v30  ;;  %v11681_v30 = vor.u32 %v8802_v39, %v8053_v50  ;;  %v8786_v25 = vld [vmem:[#allocation10 + $0x34] sm:$0xf0]  ;;  %v7845_v50 = vld [vmem:[%s13031_s7 + $0x108] sm:$0xf]  ;;  %13262 = vst [vmem:[#allocation23_spill] sm:$0xff] %v11760_v8 }
 0xad1   :  { %9199 = vtanh.f32 %v3094_v12  ;;  %v3085_v6 = vsel %vm11616_vm4, %v11575_v27, %v3081_v59  ;;  %v8758_v12 = vld [vmem:[%s13031_s7 + $0x154] sm:$0xf0]  ;;  %4231 = vmatpush.bf16.msra.mxu0 %v11474_v54 }
 0xad2   :  { %v3090_v41 = vsel %vm3087_vm5, %v3089_v53, %v3085_v6  ;;  %4003 = vmatpush.bf16.msra.mxu2 %v11656_v46  ;;  %v7878_v59 = vor.u32 %v8758_v12, %v7877_v20  ;;  %v11685_v6 = vor.u32 %v8798_v35, %v8037_v23  ;;  %v7973_v12 = vld [vmem:[#allocation10 + $0x8] sm:$0xf] }
 0xad4   :  { %v3588_v19 = vpop.f32.mrf.mxu2  ;;  %3722 = vmatpush.bf16.msrb.mxu3 %v7914_v0  ;;  %v8790_v0 = vld [vmem:[#allocation10 + $0x54] sm:$0xf0] }
 0xad5   :  { %v11627_v57 = vadd.f32 %v3588_v19, %v11621_v21  ;;  %v11629_v61 = vpop.f32.mrf.mxu0  ;;  %4232 = vmatpush.bf16.msra.mxu0 %v11491_v43 }
 0xad6   :  { %13255 = vst [vmem:[#allocation53_spill] sm:$0xff] %v11629_v61  ;;  %4004 = vmatpush.bf16.msra.mxu2 %v11681_v30 }
 0xad7   :  { %v9200_v27 = vpop.eup %9199 }
 0xad8   :  { %v3096_v7 = vmul.f32 %v9200_v27, %v3090_v41  ;;  %3723 = vmatpush.bf16.msrb.mxu3 %v7898_v37  ;;  %v11704_v27 = vpack.c.bf16 %v11093_v18, %v11137_v31  ;;  %v8005_v41 = vld [vmem:[#allocation10 + $0x48] sm:$0xf]  ;;  %v8754_v18 = vld [vmem:[%s13031_s7 + $0x134] sm:$0xf0] }
 0xad9   :  { %v11718_v31 = vor.u32 %v8790_v0, %v8005_v41  ;;  %v8750_v37 = vld [vmem:[%s13031_s7 + $0x114] sm:$0xf0]  ;;  %4233 = vmatpush.bf16.msra.mxu0 %v11507_v44 }
 0xada   :  { %v11647_v49 = vpack.c.bf16 %v11270_v5, %v3096_v7  ;;  %v7893_v5 = vld [vmem:[%s13031_s7 + $0x168] sm:$0xf]  ;;  %4005 = vmatpush.bf16.msra.mxu2 %v11685_v6  ;;  %13259 = vst [vmem:[#allocation50_spill] sm:$0xff] %v11704_v27  ;;  %v7846_v20 = vor.u32 %v8750_v37, %v7845_v50  ;;  %v8804_v50 = vld [vmem:[#allocation10 + $0xcc] sm:$0xf] }
 0xadb   :  { %v7894_v28 = vor.u32 %v8762_v29, %v7893_v5  ;;  %v7861_v7 = vld [vmem:[%s13031_s7 + $0x128] sm:$0xf]  ;;  %v8752_v5 = vld [vmem:[%s13031_s7 + $0x12c] sm:$0xf]  ;;  %v7863_v29 = vld [vmem:[%s13031_s7 + $0x138] sm:$0xf0] }
 0xadc   :  { %13256 = vst [vmem:[#allocation46_spill] sm:$0xff] %v11647_v49  ;;  %3553 = vmatmul.bf16.vlgmr.msra.gmra.mxu1 %v11647_v49  ;;  %v11653_v38 = vpop.f32.mrf.mxu2  ;;  %3611 = vmatmul.bf16.vlgmr.msra.gmra.mxu3 %v11647_v49  ;;  %v7862_v17 = vor.u32 %v8754_v18, %v7861_v7  ;;  %v7866_v10 = vor.u32 %v8752_v5, %v7863_v29  ;;  %v8807_v7 = vld [vmem:[#allocation10 + $0xe4] sm:$0xf]  ;;  %v8079_v18 = vld [vmem:[#allocation10 + $0xf0] sm:$0xf0] }
 0xadd   :  { %13257 = vst [vmem:[#allocation47_spill] sm:$0xff] %v11653_v38  ;;  %v3535_v4 = vpop.f32.mrf.mxu0  ;;  %3665 = vmatpush.bf16.msrb.mxu1 %v7894_v28  ;;  %3724 = vmatpush.bf16.msrb.mxu3 %v7882_v45  ;;  %v7989_v28 = vld [vmem:[#allocation10 + $0x28] sm:$0xf]  ;;  %v7850_v45 = vor.u32 %v8748_v26, %v7847_v11  ;;  %v8087_v5 = vld [vmem:[#allocation10 + $0xf8] sm:$0xf0]  ;;  %v11794_v26 = vperm.slane %v11584_v34, 2 }
 0xade   :  { %v11665_v16 = vadd.f32 %v3535_v4, %v11588_v48  ;;  %4006 = vmatpush.bf16.msra.mxu2 %v11700_v36  ;;  %v11737_v39 = vor.u32 %v8786_v25, %v7989_v28  ;;  %4234 = vmatpush.bf16.msra.mxu0 %v11526_v2  ;;  %v8803_v28 = vld [vmem:[#allocation10 + $0xc4] sm:$0xf]  ;;  %v8071_v37 = vld [vmem:[#allocation10 + $0xd8] sm:$0xf0]  ;;  %v7967_v38 = vld [vmem:[#allocation10 + $0x10] sm:$0xf0] }
 0xadf   :  { %13268 = vst [vmem:[#allocation45_spill] sm:$0xff] %v11794_v26 }
 0xae1   :  { %3666 = vmatpush.bf16.msrb.mxu1 %v7878_v59  ;;  %3725 = vmatpush.bf16.msrb.mxu3 %v7866_v10  ;;  %v8782_v59 = vld [vmem:[#allocation10 + $0x14] sm:$0xf0]  ;;  %v8063_v10 = vld [vmem:[#allocation10 + $0xd0] sm:$0xf0] }
 0xae2   :  { %4007 = vmatpush.bf16.msra.mxu2 %v11718_v31  ;;  %v11741_v35 = vor.u32 %v8782_v59, %v7973_v12  ;;  %v11781_v25 = vor.u32 %v8803_v28, %v8063_v10  ;;  %v13265_v12 = vld [vmem:[#allocation55_spill] sm:$0xff]  ;;  %v13266_v59 = vld [vmem:[#allocation54_spill] sm:$0xff]  ;;  %v8800_v28 = vld [vmem:[#allocation10 + $0xac] sm:$0xf] }
 0xae3   :  { %v8055_v10 = vld [vmem:[#allocation10 + $0xb8] sm:$0xf0] }
 0xae4   :  { %v3593_v58 = vpop.f32.mrf.mxu2 }
 0xae5   :  { %v11688_v19 = vadd.f32 %v3593_v58, %v11621_v21  ;;  %v11690_v53 = vpop.f32.mrf.mxu0  ;;  %3667 = vmatpush.bf16.msrb.mxu1 %v7862_v17  ;;  %3726 = vmatpush.bf16.msrb.mxu3 %v7850_v45  ;;  %v8808_v17 = vld [vmem:[#allocation10 + $0xec] sm:$0xf] }
 0xae6   :  { %13258 = vst [vmem:[#allocation48_spill] sm:$0xff] %v11690_v53  ;;  %4008 = vmatpush.bf16.msra.mxu2 %v11737_v39  ;;  %v11771_v29 = vor.u32 %v8808_v17, %v8087_v5  ;;  %v8788_v53 = vld [vmem:[#allocation10 + $0x4c] sm:$0xf] }
 0xae9   :  { %3668 = vmatpush.bf16.msrb.mxu1 %v7846_v20  ;;  %4015 = vmatpush.bf16.msra.mxu3 %v11771_v29  ;;  %v11783_v20 = vor.u32 %v8804_v50, %v8071_v37  ;;  %v11805_v50 = vor.u32 %v8800_v28, %v8055_v10  ;;  %v11811_v37 = vperm.slane %v11584_v34, 3  ;;  %v8796_v10 = vld [vmem:[#allocation10 + $0x8c] sm:$0xf] }
 0xaea   :  { %4009 = vmatpush.bf16.msra.mxu2 %v11741_v35 }
 0xaec   :  { %3558 = vmatmul.bf16.gmra.mxu1 %v11704_v27  ;;  %v11709_v15 = vpop.f32.mrf.mxu2  ;;  %3616 = vmatmul.bf16.gmra.mxu3 %v11704_v27 }
 0xaed   :  { %13260 = vst [vmem:[#allocation20_spill] sm:$0xff] %v11709_v15  ;;  %v3540_v47 = vpop.f32.mrf.mxu0  ;;  %4010 = vmatmul.bf16.vlgmr.msra.gmra.mxu2 %v13250_v52  ;;  %4016 = vmatpush.bf16.msra.mxu3 %v11783_v20 }
 0xaee   :  { %v11721_v4 = vadd.f32 %v3540_v47, %v11588_v48  ;;  %4127 = vmatpush.bf16.msrb.mxu2 %v11644_v32  ;;  %v11769_v47 = vor.u32 %v8807_v7, %v8079_v18  ;;  %v8799_v7 = vld [vmem:[#allocation10 + $0xa4] sm:$0xf]  ;;  %v8047_v18 = vld [vmem:[#allocation10 + $0xb0] sm:$0xf0] }
 0xaef   :  { %v11803_v5 = vor.u32 %v8799_v7, %v8047_v18  ;;  %v8795_v7 = vld [vmem:[#allocation10 + $0x84] sm:$0xf]  ;;  %v8031_v18 = vld [vmem:[#allocation10 + $0x90] sm:$0xf0] }
 0xaf0   :  { %3989 = vmatpush.bf16.msra.mxu1 %v11769_v47  ;;  %v11820_v28 = vor.u32 %v8795_v7, %v8031_v18  ;;  %v8015_v7 = vld [vmem:[#allocation10 + $0x70] sm:$0xf0]  ;;  %v8792_v18 = vld [vmem:[#allocation10 + $0x6c] sm:$0xf] }
 0xaf1   :  { %4017 = vmatpush.bf16.msra.mxu3 %v11805_v50  ;;  %v11837_v15 = vor.u32 %v8792_v18, %v8023_v1 }
 0xaf2   :  { %4128 = vmatpush.bf16.msrb.mxu2 %v11656_v46 }
 0xaf4   :  { %v3598_v23 = vpop.f32.mrf.mxu2  ;;  %3990 = vmatpush.bf16.msra.mxu1 %v11781_v25 }
 0xaf5   :  { %v11744_v58 = vadd.f32 %v3598_v23, %v11621_v21  ;;  %v11746_v56 = vpop.f32.mrf.mxu0  ;;  %v11790_v23 = vpack.c.bf16 %v13266_v59, %v13265_v12 }
 0xaf6   :  { %13261 = vst [vmem:[#allocation21_spill] sm:$0xff] %v11746_v56  ;;  %4129 = vmatpush.bf16.msrb.mxu2 %v11681_v30 }
 0xaf7   :  { %13267 = vst [vmem:[#allocation42_spill] sm:$0xff] %v11790_v23 }
 0xaf8   :  { %3991 = vmatpush.bf16.msra.mxu1 %v11803_v5 }
 0xafa   :  { %4130 = vmatpush.bf16.msrb.mxu2 %v11685_v6 }
 0xafc   :  { %3563 = vmatmul.bf16.gmra.mxu1 %v11760_v8  ;;  %v11764_v41 = vpop.f32.mrf.mxu2  ;;  %3621 = vmatmul.bf16.gmra.mxu3 %v11760_v8 }
 0xafd   :  { %13263 = vst [vmem:[#allocation44_spill] sm:$0xff] %v11764_v41  ;;  %v11767_v0 = vpop.f32.mrf.mxu0  ;;  %v8039_v41 = vld [vmem:[#allocation10 + $0x98] sm:$0xf0]  ;;  %3992 = vmatpush.bf16.msra.mxu1 %v11820_v28 }
 0xafe   :  { %4131 = vmatpush.bf16.msrb.mxu2 %v11700_v36  ;;  %v11822_v56 = vor.u32 %v8796_v10, %v8039_v41  ;;  %v11835_v10 = vor.u32 %v8791_v55, %v8015_v7 }
 0xb00   :  { %4018 = vmatpush.bf16.msra.mxu3 %v11822_v56 }
 0xb01   :  { %3993 = vmatpush.bf16.msra.mxu1 %v11835_v10 }
 0xb02   :  { %4132 = vmatpush.bf16.msrb.mxu2 %v11718_v31 }
 0xb04   :  { %v11777_v42 = vpop.f32.mrf.mxu2  ;;  %4019 = vmatpush.bf16.msra.mxu3 %v11837_v15 }
 0xb05   :  { %v11779_v60 = vpop.f32.mrf.mxu0 }
 0xb06   :  { %13264 = vst [vmem:[#allocation41_spill] sm:$0xff] %v11779_v60  ;;  %4133 = vmatpush.bf16.msrb.mxu2 %v11737_v39 }
 0xb0a   :  { %4134 = vmatpush.bf16.msrb.mxu2 %v11741_v35 }
 0xb0c   :  { %3568 = vmatmul.bf16.gmra.mxu1 %v11790_v23  ;;  %3626 = vmatmul.bf16.gmra.mxu3 %v11790_v23  ;;  %v11798_v11 = vpop.f32.mrf.mxu2 }
 0xb0d   :  { %13269 = vst [vmem:[#allocation43_spill] sm:$0xff] %v11798_v11  ;;  %v3646_v45 = vpop.f32.mrf.mxu0 }
 0xb0e   :  { %v11801_v17 = vadd.f32 %v3646_v45, %v11794_v26  ;;  %4253 = vmatpush.bf16.msra.mxu2 %v11644_v32 }
 0xb12   :  { %4254 = vmatpush.bf16.msra.mxu2 %v11656_v46 }
 0xb14   :  { %v3704_v12 = vpop.f32.mrf.mxu2 }
 0xb15   :  { %v11816_v59 = vadd.f32 %v3704_v12, %v11811_v37  ;;  %v11818_v45 = vpop.f32.mrf.mxu0 }
 0xb16   :  { %13270 = vst [vmem:[#allocation35_spill] sm:$0xff] %v11818_v45  ;;  %4255 = vmatpush.bf16.msra.mxu2 %v11681_v30  ;;  %v8007_v45 = vld [vmem:[#allocation10 + $0x58] sm:$0xf0] }
 0xb1a   :  { %4256 = vmatpush.bf16.msra.mxu2 %v11685_v6 }
 0xb1c   :  { %3669 = vmatmul.bf16.vlgmr.msrb.gmra.mxu1 %v11647_v49  ;;  %v11828_v34 = vpop.f32.mrf.mxu2  ;;  %3727 = vmatmul.bf16.vlgmr.msrb.gmra.mxu3 %v11647_v49  ;;  %v11840_v49 = vor.u32 %v8787_v3, %v7999_v9  ;;  %v8783_v3 = vld [vmem:[#allocation10 + $0x24] sm:$0xf] }
 0xb1d   :  { %13271 = vst [vmem:[#allocation36_spill] sm:$0xff] %v11828_v34  ;;  %v3651_v12 = vpop.f32.mrf.mxu0  ;;  %v11843_v34 = vor.u32 %v8788_v53, %v8007_v45  ;;  %v7983_v53 = vld [vmem:[#allocation10 + $0x30] sm:$0xf0]  ;;  %v8784_v45 = vld [vmem:[#allocation10 + $0x2c] sm:$0xf] }
 0xb1e   :  { %v11833_v41 = vadd.f32 %v3651_v12, %v11794_v26  ;;  %3994 = vmatpush.bf16.msra.mxu1 %v11840_v49  ;;  %4257 = vmatpush.bf16.msra.mxu2 %v11700_v36  ;;  %v11859_v18 = vor.u32 %v8783_v3, %v7983_v53 }
 0xb1f   :  { %4020 = vmatpush.bf16.msra.mxu3 %v11843_v34 }
 0xb22   :  { %4258 = vmatpush.bf16.msra.mxu2 %v11718_v31  ;;  %3995 = vmatpush.bf16.msra.mxu1 %v11859_v18 }
 0xb24   :  { %v3709_v12 = vpop.f32.mrf.mxu2 }
 0xb25   :  { %v11848_v55 = vadd.f32 %v3709_v12, %v11811_v37  ;;  %v11850_v1 = vpop.f32.mrf.mxu0  ;;  %v7991_v12 = vld [vmem:[#allocation10 + $0x38] sm:$0xf0] }
 0xb26   :  { %13272 = vst [vmem:[#allocation40_spill] sm:$0xff] %v11850_v1  ;;  %v8779_v1 = vld [vmem:[#allocation10 + $0x4] sm:$0xf]  ;;  %4259 = vmatpush.bf16.msra.mxu2 %v11737_v39  ;;  %v11865_v60 = vor.u32 %v8784_v45, %v7991_v12  ;;  %v8780_v45 = vld [vmem:[#allocation10 + $0xc] sm:$0xf] }
 0xb27   :  { %v7975_v12 = vld [vmem:[#allocation10 + $0x18] sm:$0xf0] }
 0xb28   :  { %4021 = vmatpush.bf16.msra.mxu3 %v11865_v60 }
 0xb2a   :  { %4260 = vmatpush.bf16.msra.mxu2 %v11741_v35 }
 0xb2c   :  { %3674 = vmatmul.bf16.gmra.mxu1 %v11704_v27  ;;  %v11856_v9 = vpop.f32.mrf.mxu2  ;;  %3732 = vmatmul.bf16.gmra.mxu3 %v11704_v27  ;;  %v11879_v27 = vor.u32 %v8780_v45, %v7975_v12 }
 0xb2d   :  { %13273 = vst [vmem:[#allocation39_spill] sm:$0xff] %v11856_v9  ;;  %v3656_v7 = vpop.f32.mrf.mxu0  ;;  %v11868_v9 = vor.u32 %v8779_v1, %v7967_v38 }
 0xb2e   :  { %v11863_v61 = vadd.f32 %v3656_v7, %v11794_v26  ;;  %4022 = vmatpush.bf16.msra.mxu3 %v11879_v27 }
 0xb2f   :  { %3996 = vmatpush.bf16.msra.mxu1 %v11868_v9 }
 0xb32   :  { %4140 = vmatpush.bf16.msrb.mxu3 %v11771_v29 }
 0xb33   :  { %4114 = vmatpush.bf16.msrb.mxu1 %v11769_v47 }
 0xb34   :  { %v3714_v3 = vpop.f32.mrf.mxu2 }
 0xb35   :  { %v11875_v53 = vadd.f32 %v3714_v3, %v11811_v37  ;;  %v11877_v7 = vpop.f32.mrf.mxu0  ;;  %v3526_v3 = vadd.f32 %v11530_v63, %v11588_v48 }
 0xb36   :  { %13274 = vst [vmem:[#allocation49_spill] sm:$0xff] %v11877_v7  ;;  %4141 = vmatpush.bf16.msrb.mxu3 %v11783_v20  ;;  %v3584_v7 = vadd.f32 %v11556_v24, %v11621_v21 }
 0xb37   :  { %4115 = vmatpush.bf16.msrb.mxu1 %v11781_v25 }
 0xb3a   :  { %4142 = vmatpush.bf16.msrb.mxu3 %v11805_v50 }
 0xb3b   :  { %4116 = vmatpush.bf16.msrb.mxu1 %v11803_v5 }
 0xb3c   :  { %3679 = vmatmul.bf16.gmra.mxu1 %v11760_v8  ;;  %3737 = vmatmul.bf16.gmra.mxu3 %v11760_v8 }
 0xb3d   :  { %v3985_v38 = vpop.f32.mrf.mxu0 }
 0xb3e   :  { %4143 = vmatpush.bf16.msrb.mxu3 %v11822_v56 }
 0xb3f   :  { %4117 = vmatpush.bf16.msrb.mxu1 %v11820_v28 }
 0xb42   :  { %4144 = vmatpush.bf16.msrb.mxu3 %v11837_v15 }
 0xb43   :  { %4118 = vmatpush.bf16.msrb.mxu1 %v11835_v10 }
 0xb45   :  { %v3987_v1 = vpop.f32.mrf.mxu0 }
 0xb46   :  { %4145 = vmatpush.bf16.msrb.mxu3 %v11843_v34 }
 0xb47   :  { %4119 = vmatpush.bf16.msrb.mxu1 %v11840_v49 }
 0xb4a   :  { %4146 = vmatpush.bf16.msrb.mxu3 %v11865_v60 }
 0xb4b   :  { %4120 = vmatpush.bf16.msrb.mxu1 %v11859_v18 }
 0xb4c   :  { %3684 = vmatmul.bf16.gmra.mxu1 %v11790_v23  ;;  %3742 = vmatmul.bf16.gmra.mxu3 %v11790_v23 }
 0xb4e   :  { %4147 = vmatpush.bf16.msrb.mxu3 %v11879_v27 }
 0xb4f   :  { %4121 = vmatpush.bf16.msrb.mxu1 %v11868_v9 }
 0xb59   :  { %v3554_v45 = vpop.f32.mrf.mxu1 }
 0xb5a   :  { %v3555_v12 = vadd.f32 %v3554_v45, %v3526_v3  ;;  %v11933_v45 = vpop.f32.mrf.mxu2 }
 0xb5b   :  { %13280 = vst [vmem:[#allocation28_spill] sm:$0xff] %v11933_v45 }
 0xb5c   :  { %v4028_v1 = vadd.f32 %v3985_v38, %v3555_v12  ;;  %3997 = vmatmul.bf16.vlgmr.msra.gmra.mxu1 %v13250_v52  ;;  %4023 = vmatmul.bf16.vlgmr.msra.gmra.mxu3 %v13250_v52 }
 0xb5d   :  { %4240 = vmatpush.bf16.msra.mxu1 %v11769_v47  ;;  %4266 = vmatpush.bf16.msra.mxu3 %v11771_v29 }
 0xb5f   :  { %v3612_v23 = vpop.f32.mrf.mxu3 }
 0xb60   :  { %v11909_v8 = vadd.f32 %v3612_v23, %v3584_v7 }
 0xb61   :  { %v11911_v11 = vpop.f32.mrf.mxu1  ;;  %4241 = vmatpush.bf16.msra.mxu1 %v11781_v25  ;;  %4267 = vmatpush.bf16.msra.mxu3 %v11783_v20 }
 0xb62   :  { %13275 = vst [vmem:[#allocation24_spill] sm:$0xff] %v11911_v11 }
 0xb65   :  { %4242 = vmatpush.bf16.msra.mxu1 %v11803_v5  ;;  %4268 = vmatpush.bf16.msra.mxu3 %v11805_v50 }
 0xb67   :  { %v11917_v63 = vpop.f32.mrf.mxu3 }
 0xb68   :  { %13276 = vst [vmem:[#allocation25_spill] sm:$0xff] %v11917_v63 }
 0xb69   :  { %v3559_v38 = vpop.f32.mrf.mxu1  ;;  %4243 = vmatpush.bf16.msra.mxu1 %v11820_v28  ;;  %4269 = vmatpush.bf16.msra.mxu3 %v11822_v56 }
 0xb6a   :  { %v11922_v24 = vadd.f32 %v3559_v38, %v11601_v14  ;;  %v8091_v14 = vmul.f32 -1.442695, %v4028_v1 }
 0xb6c   :  { %13277 = vst [vmem:[#allocation26_spill] sm:$0xff] %v11922_v24  ;;  %9201 = vpow2.f32 %v8091_v14 }
 0xb6d   :  { %4244 = vmatpush.bf16.msra.mxu1 %v11835_v10  ;;  %4270 = vmatpush.bf16.msra.mxu3 %v11837_v15 }
 0xb6f   :  { %v3617_v23 = vpop.f32.mrf.mxu3 }
 0xb70   :  { %v11927_v7 = vadd.f32 %v3617_v23, %v11627_v57  ;;  %v4011_v23 = vpop.f32.mrf.mxu2 }
 0xb71   :  { %v11929_v3 = vpop.f32.mrf.mxu1  ;;  %4245 = vmatpush.bf16.msra.mxu1 %v11840_v49  ;;  %4271 = vmatpush.bf16.msra.mxu3 %v11843_v34 }
 0xb72   :  { %13278 = vst [vmem:[#allocation29_spill] sm:$0xff] %v11927_v7 }
 0xb73   :  { %13279 = vst [vmem:[#allocation27_spill] sm:$0xff] %v11929_v3  ;;  %v9202_v3 = vpop.eup %9201 }
 0xb74   :  { %v4035_v1 = vadd.f32 1.0, %v9202_v3 }
 0xb75   :  { %4246 = vmatpush.bf16.msra.mxu1 %v11859_v18  ;;  %4272 = vmatpush.bf16.msra.mxu3 %v11865_v60 }
 0xb76   :  { %9203 = vrcp.f32 %v4035_v1  ;;  %vm4041_vm7 = vweird.f32 %v4035_v1 }
 0xb77   :  { %v11937_v12 = vpop.f32.mrf.mxu3 }
 0xb78   :  { %13281 = vst [vmem:[#allocation22_spill] sm:$0xff] %v11937_v12  ;;  %v4013_v24 = vpop.f32.mrf.mxu2 }
 0xb79   :  { %v3564_v38 = vpop.f32.mrf.mxu1  ;;  %4247 = vmatpush.bf16.msra.mxu1 %v11868_v9  ;;  %4273 = vmatpush.bf16.msra.mxu3 %v11879_v27  ;;  %v3642_v24 = vadd.f32 %v11767_v0, %v11794_v26 }
 0xb7a   :  { %v11942_v57 = vadd.f32 %v3564_v38, %v11665_v16 }
 0xb7c   :  { %13282 = vst [vmem:[#allocation32_spill] sm:$0xff] %v11942_v57  ;;  %v9204_v16 = vpop.eup %9203 }
 0xb7d   :  { %v4037_v57 = vmul.f32 %v9204_v16, %v4035_v1  ;;  %vm4042_vm6 = vweird.f32 %v9204_v16 }
 0xb7e   :  { %vm4043_vm8 = vmor %vm4041_vm7, %vm4042_vm6 }
 0xb7f   :  { %v3622_v52 = vpop.f32.mrf.mxu3 }
 0xb80   :  { %v11945_v45 = vadd.f32 %v3622_v52, %v11688_v19  ;;  %v4038_v19 = vsub.f32 1.0, %v4037_v57 }
 0xb81   :  { %v11947_v7 = vpop.f32.mrf.mxu1 }
 0xb82   :  { %13283 = vst [vmem:[#allocation31_spill] sm:$0xff] %v11945_v45 }
 0xb83   :  { %13284 = vst [vmem:[#allocation37_spill] sm:$0xff] %v11947_v7 }
 0xb87   :  { %v11949_v12 = vpop.f32.mrf.mxu3 }
 0xb88   :  { %13285 = vst [vmem:[#allocation38_spill] sm:$0xff] %v11949_v12  ;;  %v4039_v12 = vmul.f32 %v9204_v16, %v4038_v19 }
 0xb89   :  { %v3569_v63 = vpop.f32.mrf.mxu1 }
 0xb8a   :  { %v11952_v11 = vadd.f32 %v3569_v63, %v11721_v4  ;;  %v4040_v4 = vadd.f32 %v9204_v16, %v4039_v12  ;;  %v3700_v63 = vadd.f32 %v11777_v42, %v11811_v37 }
 0xb8c   :  { %13286 = vst [vmem:[#allocation55_spill] sm:$0xff] %v11952_v11 }
 0xb8f   :  { %v3627_v38 = vpop.f32.mrf.mxu3 }
 0xb90   :  { %v11955_v14 = vadd.f32 %v3627_v38, %v11744_v58  ;;  %v4047_v58 = vand.u32 2147483648, %v4035_v1  ;;  %v4045_v38 = vand.u32 2147483647, %v4035_v1 }
 0xb91   :  { %v11957_v52 = vpop.f32.mrf.mxu1 }
 0xb92   :  { %13287 = vst [vmem:[#allocation54_spill] sm:$0xff] %v11955_v14  ;;  %v4048_v0 = vor.u32 1.1754944e-38, %v4047_v58  ;;  %vm4046_vm9 = vcmp.eq.f32.partialorder %v4045_v38, 8.507059e+37 }
 0xb93   :  { %13288 = vst [vmem:[#allocation56_spill] sm:$0xff] %v11957_v52 }
 0xb97   :  { %v11959_v45 = vpop.f32.mrf.mxu3 }
 0xb98   :  { %13289 = vst [vmem:[#allocation57_spill] sm:$0xff] %v11959_v45  ;;  %v4044_v45 = vsel %vm4043_vm8, %v9204_v16, %v4040_v4 }
 0xb99   :  { %v3670_v3 = vpop.f32.mrf.mxu1 }
 0xb9a   :  { %v3671_v7 = vadd.f32 %v3670_v3, %v3642_v24  ;;  %v4049_v24 = vsel %vm4046_vm9, %v4048_v0, %v4044_v45 }
 0xb9c   :  { %v4030_v22 = vadd.f32 %v4011_v23, %v3671_v7 }
 0xb9e   :  { %9205 = vtanh.f32 %v4030_v22 }
 0xb9f   :  { %v3728_v52 = vpop.f32.mrf.mxu3 }
 0xba0   :  { %v3729_v57 = vadd.f32 %v3728_v52, %v3700_v63 }
 0xba1   :  { %v11965_v14 = vpop.f32.mrf.mxu1 }
 0xba4   :  { %v9206_v19 = vpop.eup %9205 }
 0xba5   :  { %v4091_v7 = vmul.f32 %v9206_v19, %v4049_v24 }
 0xba7   :  { %v11967_v12 = vpop.f32.mrf.mxu3 }
 0xba9   :  { %v3675_v23 = vpop.f32.mrf.mxu1 }
 0xbaa   :  { %v11970_v42 = vadd.f32 %v3675_v23, %v11801_v17 }
 0xbaf   :  { %v3733_v22 = vpop.f32.mrf.mxu3 }
 0xbb0   :  { %v11973_v1 = vadd.f32 %v3733_v22, %v11816_v59 }
 0xbb1   :  { %v11975_v3 = vpop.f32.mrf.mxu1 }
 0xbb2   :  { %13290 = vst [vmem:[#allocation58_spill] sm:$0xff] %v11975_v3 }
 0xbb7   :  { %v11977_v16 = vpop.f32.mrf.mxu3 }
 0xbb9   :  { %v3680_v52 = vpop.f32.mrf.mxu1 }
 0xbba   :  { %v11980_v4 = vadd.f32 %v3680_v52, %v11833_v41 }
 0xbbc   :  { %13291 = vst [vmem:[#allocation59_spill] sm:$0xff] %v11980_v4 }
 0xbbf   :  { %v3738_v45 = vpop.f32.mrf.mxu3 }
 0xbc0   :  { %v11983_v63 = vadd.f32 %v3738_v45, %v11848_v55 }
 0xbc1   :  { %v11985_v58 = vpop.f32.mrf.mxu1 }
 0xbc2   :  { %13292 = vst [vmem:[#allocation60_spill] sm:$0xff] %v11983_v63 }
 0xbc3   :  { %13293 = vst [vmem:[#allocation61_spill] sm:$0xff] %v11985_v58 }
 0xbc7   :  { %v11987_v17 = vpop.f32.mrf.mxu3 }
 0xbc8   :  { %13294 = vst [vmem:[#allocation62_spill] sm:$0xff] %v11987_v17 }
 0xbc9   :  { %v3685_v38 = vpop.f32.mrf.mxu1 }
 0xbca   :  { %v11990_v59 = vadd.f32 %v3685_v38, %v11863_v61 }
 0xbcc   :  { %13295 = vst [vmem:[#allocation63_spill] sm:$0xff] %v11990_v59 }
 0xbcf   :  { %v3743_v0 = vpop.f32.mrf.mxu3 }
 0xbd0   :  { %v11993_v19 = vadd.f32 %v3743_v0, %v11875_v53 }
 0xbd1   :  { %v11995_v24 = vpop.f32.mrf.mxu1 }
 0xbd2   :  { %13296 = vst [vmem:[#allocation64_spill] sm:$0xff] %v11993_v19 }
 0xbd3   :  { %13297 = vst [vmem:[#allocation65_spill] sm:$0xff] %v11995_v24 }
 0xbd7   :  { %v11997_v41 = vpop.f32.mrf.mxu3 }
 0xbd8   :  { %13298 = vst [vmem:[#allocation66_spill] sm:$0xff] %v11997_v41 }
 0xbd9   :  { %v3998_v23 = vpop.f32.mrf.mxu1 }
 0xbda   :  { %v4029_v55 = vadd.f32 %v3998_v23, %v11909_v8 }
 0xbdc   :  { %v8092_v22 = vmul.f32 -1.442695, %v4029_v55 }
 0xbde   :  { %9207 = vpow2.f32 %v8092_v22 }
 0xbdf   :  { %v4024_v52 = vpop.f32.mrf.mxu3 }
 0xbe0   :  { %v4031_v45 = vadd.f32 %v4024_v52, %v3729_v57 }
 0xbe1   :  { %v4000_v11 = vpop.f32.mrf.mxu1 }
 0xbe2   :  { %v8093_v58 = vmul.f32 -1.442695, %v4031_v45 }
 0xbe4   :  { %v9208_v17 = vpop.eup %9207  ;;  %9209 = vpow2.f32 %v8093_v58 }
 0xbe5   :  { %v4054_v61 = vadd.f32 1.0, %v9208_v17 }
 0xbe7   :  { %9211 = vrcp.f32 %v4054_v61  ;;  %v4026_v38 = vpop.f32.mrf.mxu3  ;;  %v4066_v19 = vand.u32 2147483648, %v4054_v61  ;;  %v4064_v8 = vand.u32 2147483647, %v4054_v61  ;;  %vm4060_vm10 = vweird.f32 %v4054_v61 }
 0xbe9   :  { %v4067_v57 = vor.u32 1.1754944e-38, %v4066_v19  ;;  %vm4065_vm12 = vcmp.eq.f32.partialorder %v4064_v8, 8.507059e+37 }
 0xbea   :  { %v9210_v53 = vpop.eup %9209 }
 0xbeb   :  { %v4074_v0 = vadd.f32 1.0, %v9210_v53 }
 0xbed   :  { %v9212_v59 = vpop.eup %9211  ;;  %9213 = vrcp.f32 %v4074_v0  ;;  %vm4080_vm14 = vweird.f32 %v4074_v0 }
 0xbee   :  { %v4056_v24 = vmul.f32 %v9212_v59, %v4054_v61  ;;  %vm4061_vm0 = vweird.f32 %v9212_v59 }
 0xbef   :  { %vm4062_vm11 = vmor %vm4060_vm10, %vm4061_vm0 }
 0xbf0   :  { %v4057_v41 = vsub.f32 1.0, %v4056_v24  ;;  %v4086_v24 = vand.u32 2147483648, %v4074_v0 }
 0xbf2   :  { %v4058_v4 = vmul.f32 %v9212_v59, %v4057_v41  ;;  %v4084_v41 = vand.u32 2147483647, %v4074_v0  ;;  %v4087_v61 = vor.u32 1.1754944e-38, %v4086_v24 }
 0xbf3   :  { %v9214_v23 = vpop.eup %9213 }
 0xbf4   :  { %v4059_v55 = vadd.f32 %v9212_v59, %v4058_v4  ;;  %v4076_v11 = vmul.f32 %v9214_v23, %v4074_v0  ;;  %vm4081_vm13 = vweird.f32 %v9214_v23  ;;  %vm4085_vm1 = vcmp.eq.f32.partialorder %v4084_v41, 8.507059e+37  ;;  %v13300_v0 = vld [vmem:[#allocation34_spill] sm:$0xff] }
 0xbf5   :  { %vm4082_vm15 = vmor %vm4080_vm14, %vm4081_vm13 }
 0xbf6   :  { %v4063_v58 = vsel %vm4062_vm11, %v9212_v59, %v4059_v55  ;;  %v4077_v17 = vsub.f32 1.0, %v4076_v11  ;;  %v13301_v11 = vld [vmem:[#allocation24_spill] sm:$0xff] }
 0xbf7   :  { %v4068_v22 = vsel %vm4065_vm12, %v4067_v57, %v4063_v58  ;;  %v13302_v58 = vld [vmem:[#allocation25_spill] sm:$0xff] }
 0xbf8   :  { %v4090_v52 = vmul.f32 0.0, %v4068_v22  ;;  %v4078_v45 = vmul.f32 %v9214_v23, %v4077_v17 }
 0xbfa   :  { %v12000_v38 = vadd.f32 %v4091_v7, %v4090_v52  ;;  %v4079_v53 = vadd.f32 %v9214_v23, %v4078_v45  ;;  %v3528_v7 = vadd.f32 %v11560_v40, %v11588_v48 }
 0xbfc   :  { %9215 = vtanh.f32 %v12000_v38  ;;  %v4083_v4 = vsel %vm4082_vm15, %v9214_v23, %v4079_v53  ;;  %v3586_v23 = vadd.f32 %v13300_v0, %v11621_v21  ;;  %v3557_v57 = vadd.f32 %v13301_v11, %v3528_v7 }
 0xbfd   :  { %v4088_v59 = vsel %vm4085_vm1, %v4087_v61, %v4083_v4  ;;  %v13303_v4 = vld [vmem:[#allocation43_spill] sm:$0xff] }
 0xbfe   :  { %v3615_v17 = vadd.f32 %v13302_v58, %v3586_v23  ;;  %v3702_v61 = vadd.f32 %v13303_v4, %v11811_v37 }
 0xc02   :  { %v9216_v19 = vpop.eup %9215 }
 0xc03   :  { %v12003_v8 = vmul.f32 %v9216_v19, %v4088_v59  ;;  %v3731_v19 = vadd.f32 %v11967_v12, %v3702_v61 }
 0xc05   :  { %13299 = vst [vmem:[#allocation67_spill] sm:$0xff] %v12003_v8  ;;  %v4100_v55 = vpack.c.bf16 %v12003_v8, %v12003_v8 }
 0xc07   :  { %4109 = vmatmul.bf16.vlgmr.msrb.gmra.mxu0 %v4100_v55  ;;  %4122 = vmatmul.bf16.vlgmr.msrb.gmra.mxu1 %v4100_v55 }
 0xc08   :  { %4135 = vmatmul.bf16.vlgmr.msrb.gmra.mxu2 %v4100_v55  ;;  %4148 = vmatmul.bf16.vlgmr.msrb.gmra.mxu3 %v4100_v55 }
 0xc09   :  { %4353 = vmatpush.bf16.msrb.mxu0 %v11410_v33  ;;  %4366 = vmatpush.bf16.msrb.mxu1 %v11769_v47 }
 0xc0a   :  { %4379 = vmatpush.bf16.msrb.mxu2 %v11644_v32  ;;  %4392 = vmatpush.bf16.msrb.mxu3 %v11771_v29 }
 0xc0d   :  { %4354 = vmatpush.bf16.msrb.mxu0 %v11427_v62  ;;  %4367 = vmatpush.bf16.msrb.mxu1 %v11781_v25 }
 0xc0e   :  { %4380 = vmatpush.bf16.msrb.mxu2 %v11656_v46  ;;  %4393 = vmatpush.bf16.msrb.mxu3 %v11783_v20 }
 0xc11   :  { %4355 = vmatpush.bf16.msrb.mxu0 %v11442_v13  ;;  %4368 = vmatpush.bf16.msrb.mxu1 %v11803_v5 }
 0xc12   :  { %4381 = vmatpush.bf16.msrb.mxu2 %v11681_v30  ;;  %4394 = vmatpush.bf16.msrb.mxu3 %v11805_v50 }
 0xc15   :  { %4356 = vmatpush.bf16.msrb.mxu0 %v11457_v51  ;;  %4369 = vmatpush.bf16.msrb.mxu1 %v11820_v28 }
 0xc16   :  { %4382 = vmatpush.bf16.msrb.mxu2 %v11685_v6  ;;  %4395 = vmatpush.bf16.msrb.mxu3 %v11822_v56 }
 0xc19   :  { %4357 = vmatpush.bf16.msrb.mxu0 %v11474_v54  ;;  %4370 = vmatpush.bf16.msrb.mxu1 %v11835_v10 }
 0xc1a   :  { %4383 = vmatpush.bf16.msrb.mxu2 %v11700_v36  ;;  %4396 = vmatpush.bf16.msrb.mxu3 %v11837_v15 }
 0xc1d   :  { %4358 = vmatpush.bf16.msrb.mxu0 %v11491_v43  ;;  %4371 = vmatpush.bf16.msrb.mxu1 %v11840_v49 }
 0xc1e   :  { %4384 = vmatpush.bf16.msrb.mxu2 %v11718_v31  ;;  %4397 = vmatpush.bf16.msrb.mxu3 %v11843_v34 }
 0xc21   :  { %4359 = vmatpush.bf16.msrb.mxu0 %v11507_v44  ;;  %4372 = vmatpush.bf16.msrb.mxu1 %v11859_v18 }
 0xc22   :  { %4385 = vmatpush.bf16.msrb.mxu2 %v11737_v39  ;;  %4398 = vmatpush.bf16.msrb.mxu3 %v11865_v60 }
 0xc25   :  { %4360 = vmatpush.bf16.msrb.mxu0 %v11526_v2  ;;  %4373 = vmatpush.bf16.msrb.mxu1 %v11868_v9 }
 0xc26   :  { %4386 = vmatpush.bf16.msrb.mxu2 %v11741_v35  ;;  %4399 = vmatpush.bf16.msrb.mxu3 %v11879_v27 }
 0xc84   :  { %v4110_v22 = vpop.f32.mrf.mxu0  ;;  %v4123_v52 = vpop.f32.mrf.mxu1 }
 0xc85   :  { %v4153_v45 = vadd.f32 %v4110_v22, %v3557_v57  ;;  %v4154_v53 = vadd.f32 %v4123_v52, %v3615_v17  ;;  %v13304_v52 = vld [vmem:[#allocation41_spill] sm:$0xff] }
 0xc87   :  { %v8094_v24 = vmul.f32 -1.442695, %v4153_v45  ;;  %v8095_v41 = vmul.f32 -1.442695, %v4154_v53  ;;  %v3644_v45 = vadd.f32 %v13304_v52, %v11794_v26 }
 0xc89   :  { %9217 = vpow2.f32 %v8094_v24  ;;  %v3673_v53 = vadd.f32 %v11965_v14, %v3644_v45 }
 0xc8a   :  { %9219 = vpow2.f32 %v8095_v41 }
 0xc8b   :  { %v4136_v40 = vpop.f32.mrf.mxu2  ;;  %v4149_v59 = vpop.f32.mrf.mxu3 }
 0xc8c   :  { %v4156_v55 = vadd.f32 %v4149_v59, %v3731_v19  ;;  %v4112_v0 = vpop.f32.mrf.mxu0  ;;  %v4125_v7 = vpop.f32.mrf.mxu1  ;;  %v4155_v4 = vadd.f32 %v4136_v40, %v3673_v53 }
 0xc8e   :  { %v8096_v11 = vmul.f32 -1.442695, %v4156_v55 }
 0xc8f   :  { %v9218_v23 = vpop.eup %9217 }
 0xc90   :  { %v9220_v58 = vpop.eup %9219  ;;  %v4160_v8 = vadd.f32 1.0, %v9218_v23  ;;  %9221 = vpow2.f32 %v8096_v11 }
 0xc91   :  { %v4179_v57 = vadd.f32 1.0, %v9220_v58 }
 0xc92   :  { %9223 = vrcp.f32 %v4160_v8  ;;  %v4172_v7 = vand.u32 2147483648, %v4160_v8  ;;  %v4170_v58 = vand.u32 2147483647, %v4160_v8  ;;  %vm4166_vm4 = vweird.f32 %v4160_v8 }
 0xc93   :  { %9225 = vrcp.f32 %v4179_v57  ;;  %v4138_v17 = vpop.f32.mrf.mxu2  ;;  %v4151_v22 = vpop.f32.mrf.mxu3  ;;  %v4191_v11 = vand.u32 2147483648, %v4179_v57  ;;  %vm4185_vm5 = vweird.f32 %v4179_v57 }
 0xc94   :  { %v4189_v22 = vand.u32 2147483647, %v4179_v57  ;;  %v4173_v40 = vor.u32 1.1754944e-38, %v4172_v7  ;;  %vm4171_vm8 = vcmp.eq.f32.partialorder %v4170_v58, 8.507059e+37 }
 0xc95   :  { %v4192_v53 = vor.u32 1.1754944e-38, %v4191_v11 }
 0xc96   :  { %v9222_v12 = vpop.eup %9221  ;;  %vm4190_vm9 = vcmp.eq.f32.partialorder %v4189_v22, 8.507059e+37 }
 0xc97   :  { %v4199_v24 = vadd.f32 1.0, %v9222_v12 }
 0xc98   :  { %v9224_v41 = vpop.eup %9223 }
 0xc99   :  { %v9226_v61 = vpop.eup %9225  ;;  %v4162_v19 = vmul.f32 %v9224_v41, %v4160_v8  ;;  %9227 = vrcp.f32 %v4199_v24  ;;  %vm4167_vm2 = vweird.f32 %v9224_v41  ;;  %v4211_v7 = vand.u32 2147483648, %v4199_v24 }
 0xc9a   :  { %v4181_v59 = vmul.f32 %v9226_v61, %v4179_v57  ;;  %9229 = vtanh.f32 %v4155_v4  ;;  %vm4186_vm3 = vweird.f32 %v9226_v61  ;;  %vm4168_vm6 = vmor %vm4166_vm4, %vm4167_vm2  ;;  %vm4205_vm10 = vweird.f32 %v4199_v24 }
 0xc9b   :  { %v4163_v55 = vsub.f32 1.0, %v4162_v19  ;;  %vm4187_vm7 = vmor %vm4185_vm5, %vm4186_vm3  ;;  %v4212_v58 = vor.u32 1.1754944e-38, %v4211_v7 }
 0xc9c   :  { %v4182_v0 = vsub.f32 1.0, %v4181_v59 }
 0xc9d   :  { %v4164_v23 = vmul.f32 %v9224_v41, %v4163_v55 }
 0xc9e   :  { %v4183_v17 = vmul.f32 %v9226_v61, %v4182_v0 }
 0xc9f   :  { %v9228_v52 = vpop.eup %9227  ;;  %v4165_v14 = vadd.f32 %v9224_v41, %v4164_v23 }
 0xca0   :  { %v4184_v45 = vadd.f32 %v9226_v61, %v4183_v17  ;;  %v4201_v12 = vmul.f32 %v9228_v52, %v4199_v24  ;;  %v9230_v4 = vpop.eup %9229  ;;  %vm4206_vm0 = vweird.f32 %v9228_v52 }
 0xca1   :  { %v4169_v19 = vsel %vm4168_vm6, %v9224_v41, %v4165_v14  ;;  %v4209_v41 = vand.u32 2147483647, %v4199_v24  ;;  %vm4207_vm11 = vmor %vm4205_vm10, %vm4206_vm0 }
 0xca2   :  { %v4174_v59 = vsel %vm4171_vm8, %v4173_v40, %v4169_v19  ;;  %v4188_v55 = vsel %vm4187_vm7, %v9226_v61, %v4184_v45  ;;  %v4202_v63 = vsub.f32 1.0, %v4201_v12 }
 0xca3   :  { %v4193_v0 = vsel %vm4190_vm9, %v4192_v53, %v4188_v55  ;;  %v4216_v3 = vmul.f32 %v9230_v4, %v4174_v59  ;;  %vm4210_vm12 = vcmp.eq.f32.partialorder %v4209_v41, 8.507059e+37 }
 0xca4   :  { %v4215_v26 = vmul.f32 %v4193_v0, %v12000_v38  ;;  %v4203_v23 = vmul.f32 %v9228_v52, %v4202_v63  ;;  %v13306_v38 = vld [vmem:[#allocation26_spill] sm:$0xff] }
 0xca6   :  { %v12052_v8 = vadd.f32 %v4216_v3, %v4215_v26  ;;  %v4204_v57 = vadd.f32 %v9228_v52, %v4203_v23 }
 0xca8   :  { %9231 = vtanh.f32 %v12052_v8  ;;  %v4208_v11 = vsel %vm4207_vm11, %v9228_v52, %v4204_v57  ;;  %v13307_v52 = vld [vmem:[#allocation29_spill] sm:$0xff] }
 0xca9   :  { %v4213_v17 = vsel %vm4210_vm12, %v4212_v58, %v4208_v11 }
 0xcae   :  { %v9232_v61 = vpop.eup %9231 }
 0xcaf   :  { %v12055_v22 = vmul.f32 %v9232_v61, %v4213_v17 }
 0xcb1   :  { %13305 = vst [vmem:[#allocation34_spill] sm:$0xff] %v12055_v22  ;;  %v4226_v63 = vpack.c.bf16 %v12055_v22, %v12055_v22 }
 0xcb3   :  { %4235 = vmatmul.bf16.vlgmr.msra.gmra.mxu0 %v4226_v63  ;;  %4248 = vmatmul.bf16.vlgmr.msra.gmra.mxu1 %v4226_v63 }
 0xcb4   :  { %4261 = vmatmul.bf16.vlgmr.msra.gmra.mxu2 %v4226_v63  ;;  %4274 = vmatmul.bf16.vlgmr.msra.gmra.mxu3 %v4226_v63 }
 0xcb5   :  { %4479 = vmatpush.bf16.msra.mxu0 %v11410_v33  ;;  %4492 = vmatpush.bf16.msra.mxu1 %v11769_v47 }
 0xcb6   :  { %4505 = vmatpush.bf16.msra.mxu2 %v11644_v32  ;;  %4518 = vmatpush.bf16.msra.mxu3 %v11771_v29 }
 0xcb9   :  { %4480 = vmatpush.bf16.msra.mxu0 %v11427_v62  ;;  %4493 = vmatpush.bf16.msra.mxu1 %v11781_v25 }
 0xcba   :  { %4506 = vmatpush.bf16.msra.mxu2 %v11656_v46  ;;  %4519 = vmatpush.bf16.msra.mxu3 %v11783_v20 }
 0xcbd   :  { %4481 = vmatpush.bf16.msra.mxu0 %v11442_v13  ;;  %4494 = vmatpush.bf16.msra.mxu1 %v11803_v5 }
 0xcbe   :  { %4507 = vmatpush.bf16.msra.mxu2 %v11681_v30  ;;  %4520 = vmatpush.bf16.msra.mxu3 %v11805_v50 }
 0xcc1   :  { %4482 = vmatpush.bf16.msra.mxu0 %v11457_v51  ;;  %4495 = vmatpush.bf16.msra.mxu1 %v11820_v28 }
 0xcc2   :  { %4508 = vmatpush.bf16.msra.mxu2 %v11685_v6  ;;  %4521 = vmatpush.bf16.msra.mxu3 %v11822_v56 }
 0xcc5   :  { %4483 = vmatpush.bf16.msra.mxu0 %v11474_v54  ;;  %4496 = vmatpush.bf16.msra.mxu1 %v11835_v10 }
 0xcc6   :  { %4509 = vmatpush.bf16.msra.mxu2 %v11700_v36  ;;  %4522 = vmatpush.bf16.msra.mxu3 %v11837_v15 }
 0xcc9   :  { %4484 = vmatpush.bf16.msra.mxu0 %v11491_v43  ;;  %4497 = vmatpush.bf16.msra.mxu1 %v11840_v49 }
 0xcca   :  { %4510 = vmatpush.bf16.msra.mxu2 %v11718_v31  ;;  %4523 = vmatpush.bf16.msra.mxu3 %v11843_v34 }
 0xccd   :  { %4485 = vmatpush.bf16.msra.mxu0 %v11507_v44  ;;  %4498 = vmatpush.bf16.msra.mxu1 %v11859_v18 }
 0xcce   :  { %4511 = vmatpush.bf16.msra.mxu2 %v11737_v39  ;;  %4524 = vmatpush.bf16.msra.mxu3 %v11865_v60 }
 0xcd1   :  { %4486 = vmatpush.bf16.msra.mxu0 %v11526_v2  ;;  %4499 = vmatpush.bf16.msra.mxu1 %v11868_v9 }
 0xcd2   :  { %4512 = vmatpush.bf16.msra.mxu2 %v11741_v35  ;;  %4525 = vmatpush.bf16.msra.mxu3 %v11879_v27 }
 0xd30   :  { %v4236_v26 = vpop.f32.mrf.mxu0  ;;  %v4249_v3 = vpop.f32.mrf.mxu1 }
 0xd31   :  { %v4279_v24 = vadd.f32 %v4236_v26, %v13306_v38  ;;  %v4280_v14 = vadd.f32 %v4249_v3, %v13307_v52 }
 0xd33   :  { %v8097_v40 = vmul.f32 -1.442695, %v4279_v24  ;;  %v8098_v45 = vmul.f32 -1.442695, %v4280_v14 }
 0xd35   :  { %9233 = vpow2.f32 %v8097_v40 }
 0xd36   :  { %9235 = vpow2.f32 %v8098_v45 }
 0xd37   :  { %v4262_v12 = vpop.f32.mrf.mxu2  ;;  %v4275_v53 = vpop.f32.mrf.mxu3 }
 0xd38   :  { %v4282_v19 = vadd.f32 %v4275_v53, %v11973_v1  ;;  %v4238_v4 = vpop.f32.mrf.mxu0  ;;  %v4251_v59 = vpop.f32.mrf.mxu1  ;;  %v4281_v63 = vadd.f32 %v4262_v12, %v11970_v42 }
 0xd3a   :  { %v8099_v55 = vmul.f32 -1.442695, %v4282_v19 }
 0xd3b   :  { %v9234_v0 = vpop.eup %9233 }
 0xd3c   :  { %v9236_v23 = vpop.eup %9235  ;;  %v4286_v57 = vadd.f32 1.0, %v9234_v0  ;;  %9237 = vpow2.f32 %v8099_v55 }
 0xd3d   :  { %v4305_v7 = vadd.f32 1.0, %v9236_v23 }
 0xd3e   :  { %9239 = vrcp.f32 %v4286_v57  ;;  %v4298_v52 = vand.u32 2147483648, %v4286_v57  ;;  %v4296_v45 = vand.u32 2147483647, %v4286_v57  ;;  %vm4292_vm15 = vweird.f32 %v4286_v57 }
 0xd3f   :  { %9241 = vrcp.f32 %v4305_v7  ;;  %v4264_v41 = vpop.f32.mrf.mxu2  ;;  %v4277_v11 = vpop.f32.mrf.mxu3  ;;  %v4317_v14 = vand.u32 2147483648, %v4305_v7  ;;  %v4315_v19 = vand.u32 2147483647, %v4305_v7  ;;  %vm4311_vm1 = vweird.f32 %v4305_v7 }
 0xd40   :  { %v4299_v42 = vor.u32 1.1754944e-38, %v4298_v52  ;;  %vm4297_vm4 = vcmp.eq.f32.partialorder %v4296_v45, 8.507059e+37 }
 0xd41   :  { %v4318_v0 = vor.u32 1.1754944e-38, %v4317_v14  ;;  %vm4316_vm5 = vcmp.eq.f32.partialorder %v4315_v19, 8.507059e+37 }
 0xd42   :  { %v9238_v58 = vpop.eup %9237 }
 0xd43   :  { %v4325_v61 = vadd.f32 1.0, %v9238_v58 }
 0xd44   :  { %v9240_v17 = vpop.eup %9239 }
 0xd45   :  { %v9242_v26 = vpop.eup %9241  ;;  %v4288_v3 = vmul.f32 %v9240_v17, %v4286_v57  ;;  %9243 = vrcp.f32 %v4325_v61  ;;  %vm4293_vm13 = vweird.f32 %v9240_v17  ;;  %v4337_v52 = vand.u32 2147483648, %v4325_v61 }
 0xd46   :  { %v4307_v1 = vmul.f32 %v9242_v26, %v4305_v7  ;;  %9245 = vtanh.f32 %v4281_v63  ;;  %vm4312_vm14 = vweird.f32 %v9242_v26  ;;  %vm4294_vm2 = vmor %vm4292_vm15, %vm4293_vm13  ;;  %vm4331_vm7 = vweird.f32 %v4325_v61 }
 0xd47   :  { %v4289_v38 = vsub.f32 1.0, %v4288_v3  ;;  %vm4313_vm3 = vmor %vm4311_vm1, %vm4312_vm14 }
 0xd48   :  { %v4308_v24 = vsub.f32 1.0, %v4307_v1 }
 0xd49   :  { %v4290_v40 = vmul.f32 %v9240_v17, %v4289_v38 }
 0xd4a   :  { %v4309_v53 = vmul.f32 %v9242_v26, %v4308_v24 }
 0xd4b   :  { %v9244_v4 = vpop.eup %9243  ;;  %v4291_v59 = vadd.f32 %v9240_v17, %v4290_v40  ;;  %v4338_v40 = vor.u32 1.1754944e-38, %v4337_v52 }
 0xd4c   :  { %v4310_v12 = vadd.f32 %v9242_v26, %v4309_v53  ;;  %v4327_v55 = vmul.f32 %v9244_v4, %v4325_v61  ;;  %v9246_v41 = vpop.eup %9245  ;;  %vm4332_vm6 = vweird.f32 %v9244_v4 }
 0xd4d   :  { %v4295_v23 = vsel %vm4294_vm2, %v9240_v17, %v4291_v59  ;;  %v4335_v17 = vand.u32 2147483647, %v4325_v61  ;;  %vm4333_vm8 = vmor %vm4331_vm7, %vm4332_vm6  ;;  %v13309_v61 = vld [vmem:[#allocation53_spill] sm:$0xff] }
 0xd4e   :  { %v4300_v11 = vsel %vm4297_vm4, %v4299_v42, %v4295_v23  ;;  %v4314_v58 = vsel %vm4313_vm3, %v9242_v26, %v4310_v12  ;;  %v4328_v63 = vsub.f32 1.0, %v4327_v55  ;;  %v3533_v19 = vadd.f32 %v13309_v61, %v11588_v48  ;;  %v13311_v42 = vld [vmem:[#allocation27_spill] sm:$0xff]  ;;  %v13312_v55 = vld [vmem:[#allocation22_spill] sm:$0xff] }
 0xd4f   :  { %v4319_v3 = vsel %vm4316_vm5, %v4318_v0, %v4314_v58  ;;  %v4342_v1 = vmul.f32 %v9246_v41, %v4300_v11  ;;  %vm4336_vm9 = vcmp.eq.f32.partialorder %v4335_v17, 8.507059e+37 }
 0xd50   :  { %v4341_v38 = vmul.f32 %v4319_v3, %v12052_v8  ;;  %v4329_v24 = vmul.f32 %v9244_v4, %v4328_v63  ;;  %v3562_v12 = vadd.f32 %v13311_v42, %v3533_v19  ;;  %v13314_v42 = vld [vmem:[#allocation45_spill] sm:$0xff] }
 0xd52   :  { %v12096_v57 = vadd.f32 %v4342_v1, %v4341_v38  ;;  %v4330_v7 = vadd.f32 %v9244_v4, %v4329_v24  ;;  %v13313_v1 = vld [vmem:[#allocation36_spill] sm:$0xff] }
 0xd53   :  { %v3707_v38 = vadd.f32 %v13313_v1, %v11811_v37 }
 0xd54   :  { %9247 = vtanh.f32 %v12096_v57  ;;  %v4334_v14 = vsel %vm4333_vm8, %v9244_v4, %v4330_v7  ;;  %v13310_v4 = vld [vmem:[#allocation47_spill] sm:$0xff] }
 0xd55   :  { %v4339_v45 = vsel %vm4336_vm9, %v4338_v40, %v4334_v14  ;;  %v3591_v59 = vadd.f32 %v13310_v4, %v11621_v21  ;;  %v3736_v24 = vadd.f32 %v11977_v16, %v3707_v38 }
 0xd57   :  { %v3620_v0 = vadd.f32 %v13312_v55, %v3591_v59 }
 0xd5a   :  { %v9248_v26 = vpop.eup %9247 }
 0xd5b   :  { %v12099_v53 = vmul.f32 %v9248_v26, %v4339_v45 }
 0xd5d   :  { %13308 = vst [vmem:[#allocation24_spill] sm:$0xff] %v12099_v53  ;;  %v4352_v8 = vpack.c.bf16 %v12099_v53, %v12099_v53 }
 0xd5f   :  { %4361 = vmatmul.bf16.vlgmr.msrb.gmra.mxu0 %v4352_v8  ;;  %4374 = vmatmul.bf16.vlgmr.msrb.gmra.mxu1 %v4352_v8 }
 0xd60   :  { %4387 = vmatmul.bf16.vlgmr.msrb.gmra.mxu2 %v4352_v8  ;;  %4400 = vmatmul.bf16.vlgmr.msrb.gmra.mxu3 %v4352_v8 }
 0xd61   :  { %4605 = vmatpush.bf16.msrb.mxu0 %v11410_v33  ;;  %4618 = vmatpush.bf16.msrb.mxu1 %v11769_v47 }
 0xd62   :  { %4631 = vmatpush.bf16.msrb.mxu2 %v11644_v32  ;;  %4644 = vmatpush.bf16.msrb.mxu3 %v11771_v29 }
 0xd65   :  { %4606 = vmatpush.bf16.msrb.mxu0 %v11427_v62  ;;  %4619 = vmatpush.bf16.msrb.mxu1 %v11781_v25 }
 0xd66   :  { %4632 = vmatpush.bf16.msrb.mxu2 %v11656_v46  ;;  %4645 = vmatpush.bf16.msrb.mxu3 %v11783_v20 }
 0xd69   :  { %4607 = vmatpush.bf16.msrb.mxu0 %v11442_v13  ;;  %4620 = vmatpush.bf16.msrb.mxu1 %v11803_v5 }
 0xd6a   :  { %4633 = vmatpush.bf16.msrb.mxu2 %v11681_v30  ;;  %4646 = vmatpush.bf16.msrb.mxu3 %v11805_v50 }
 0xd6d   :  { %4608 = vmatpush.bf16.msrb.mxu0 %v11457_v51  ;;  %4621 = vmatpush.bf16.msrb.mxu1 %v11820_v28 }
 0xd6e   :  { %4634 = vmatpush.bf16.msrb.mxu2 %v11685_v6  ;;  %4647 = vmatpush.bf16.msrb.mxu3 %v11822_v56 }
 0xd71   :  { %4609 = vmatpush.bf16.msrb.mxu0 %v11474_v54  ;;  %4622 = vmatpush.bf16.msrb.mxu1 %v11835_v10 }
 0xd72   :  { %4635 = vmatpush.bf16.msrb.mxu2 %v11700_v36  ;;  %4648 = vmatpush.bf16.msrb.mxu3 %v11837_v15 }
 0xd75   :  { %4610 = vmatpush.bf16.msrb.mxu0 %v11491_v43  ;;  %4623 = vmatpush.bf16.msrb.mxu1 %v11840_v49 }
 0xd76   :  { %4636 = vmatpush.bf16.msrb.mxu2 %v11718_v31  ;;  %4649 = vmatpush.bf16.msrb.mxu3 %v11843_v34 }
 0xd79   :  { %4611 = vmatpush.bf16.msrb.mxu0 %v11507_v44  ;;  %4624 = vmatpush.bf16.msrb.mxu1 %v11859_v18 }
 0xd7a   :  { %4637 = vmatpush.bf16.msrb.mxu2 %v11737_v39  ;;  %4650 = vmatpush.bf16.msrb.mxu3 %v11865_v60 }
 0xd7d   :  { %4612 = vmatpush.bf16.msrb.mxu0 %v11526_v2  ;;  %4625 = vmatpush.bf16.msrb.mxu1 %v11868_v9 }
 0xd7e   :  { %4638 = vmatpush.bf16.msrb.mxu2 %v11741_v35  ;;  %4651 = vmatpush.bf16.msrb.mxu3 %v11879_v27 }
 0xddc   :  { %v4362_v23 = vpop.f32.mrf.mxu0  ;;  %v4375_v41 = vpop.f32.mrf.mxu1 }
 0xddd   :  { %v4405_v11 = vadd.f32 %v4362_v23, %v3562_v12  ;;  %v4406_v58 = vadd.f32 %v4375_v41, %v3620_v0  ;;  %v13315_v12 = vld [vmem:[#allocation35_spill] sm:$0xff]  ;;  %v13316_v0 = vld [vmem:[#allocation58_spill] sm:$0xff] }
 0xdde   :  { %v3649_v55 = vadd.f32 %v13315_v12, %v13314_v42 }
 0xddf   :  { %v8100_v63 = vmul.f32 -1.442695, %v4405_v11  ;;  %v8101_v3 = vmul.f32 -1.442695, %v4406_v58 }
 0xde0   :  { %v3678_v23 = vadd.f32 %v13316_v0, %v3649_v55 }
 0xde1   :  { %9249 = vpow2.f32 %v8100_v63 }
 0xde2   :  { %9251 = vpow2.f32 %v8101_v3 }
 0xde3   :  { %v4388_v7 = vpop.f32.mrf.mxu2  ;;  %v4401_v52 = vpop.f32.mrf.mxu3 }
 0xde4   :  { %v4408_v17 = vadd.f32 %v4401_v52, %v3736_v24  ;;  %v4364_v14 = vpop.f32.mrf.mxu0  ;;  %v4377_v40 = vpop.f32.mrf.mxu1  ;;  %v4407_v58 = vadd.f32 %v4388_v7, %v3678_v23 }
 0xde6   :  { %v8102_v26 = vmul.f32 -1.442695, %v4408_v17 }
 0xde7   :  { %v9250_v45 = vpop.eup %9249 }
 0xde8   :  { %v9252_v8 = vpop.eup %9251  ;;  %v4412_v61 = vadd.f32 1.0, %v9250_v45  ;;  %9253 = vpow2.f32 %v8102_v26 }
 0xde9   :  { %v4431_v19 = vadd.f32 1.0, %v9252_v8 }
 0xdea   :  { %9255 = vrcp.f32 %v4412_v61  ;;  %v4424_v52 = vand.u32 2147483648, %v4412_v61  ;;  %v4422_v40 = vand.u32 2147483647, %v4412_v61  ;;  %vm4418_vm11 = vweird.f32 %v4412_v61 }
 0xdeb   :  { %9257 = vrcp.f32 %v4431_v19  ;;  %v4390_v4 = vpop.f32.mrf.mxu2  ;;  %v4403_v59 = vpop.f32.mrf.mxu3  ;;  %v4443_v17 = vand.u32 2147483648, %v4431_v19  ;;  %v4441_v45 = vand.u32 2147483647, %v4431_v19  ;;  %vm4437_vm12 = vweird.f32 %v4431_v19 }
 0xdec   :  { %v4425_v7 = vor.u32 1.1754944e-38, %v4424_v52  ;;  %vm4423_vm15 = vcmp.eq.f32.partialorder %v4422_v40, 8.507059e+37 }
 0xded   :  { %v4444_v55 = vor.u32 1.1754944e-38, %v4443_v17  ;;  %vm4442_vm1 = vcmp.eq.f32.partialorder %v4441_v45, 8.507059e+37 }
 0xdee   :  { %v9254_v16 = vpop.eup %9253 }
 0xdef   :  { %v4451_v41 = vadd.f32 1.0, %v9254_v16 }
 0xdf0   :  { %v9256_v11 = vpop.eup %9255 }
 0xdf1   :  { %v9258_v63 = vpop.eup %9257  ;;  %v4414_v3 = vmul.f32 %v9256_v11, %v4412_v61  ;;  %9259 = vrcp.f32 %v4451_v41  ;;  %vm4419_vm0 = vweird.f32 %v9256_v11  ;;  %v4463_v52 = vand.u32 2147483648, %v4451_v41 }
 0xdf2   :  { %v4433_v1 = vmul.f32 %v9258_v63, %v4431_v19  ;;  %9261 = vtanh.f32 %v4407_v58  ;;  %vm4438_vm10 = vweird.f32 %v9258_v63  ;;  %vm4420_vm13 = vmor %vm4418_vm11, %vm4419_vm0  ;;  %vm4457_vm3 = vweird.f32 %v4451_v41 }
 0xdf3   :  { %v4415_v38 = vsub.f32 1.0, %v4414_v3  ;;  %vm4439_vm14 = vmor %vm4437_vm12, %vm4438_vm10  ;;  %v4464_v40 = vor.u32 1.1754944e-38, %v4463_v52 }
 0xdf4   :  { %v4434_v24 = vsub.f32 1.0, %v4433_v1 }
 0xdf5   :  { %v4416_v14 = vmul.f32 %v9256_v11, %v4415_v38 }
 0xdf6   :  { %v4435_v26 = vmul.f32 %v9258_v63, %v4434_v24 }
 0xdf7   :  { %v9260_v8 = vpop.eup %9259  ;;  %v4417_v4 = vadd.f32 %v9256_v11, %v4416_v14 }
 0xdf8   :  { %v4436_v59 = vadd.f32 %v9258_v63, %v4435_v26  ;;  %v4453_v12 = vmul.f32 %v9260_v8, %v4451_v41  ;;  %v9262_v0 = vpop.eup %9261  ;;  %vm4458_vm2 = vweird.f32 %v9260_v8 }
 0xdf9   :  { %v4421_v16 = vsel %vm4420_vm13, %v9256_v11, %v4417_v4  ;;  %v4461_v11 = vand.u32 2147483647, %v4451_v41  ;;  %vm4459_vm4 = vmor %vm4457_vm3, %vm4458_vm2  ;;  %v13318_v4 = vld [vmem:[#allocation32_spill] sm:$0xff] }
 0xdfa   :  { %v4426_v23 = vsel %vm4423_vm15, %v4425_v7, %v4421_v16  ;;  %v4440_v58 = vsel %vm4439_vm14, %v9258_v63, %v4436_v59  ;;  %v4454_v3 = vsub.f32 1.0, %v4453_v12  ;;  %v13319_v59 = vld [vmem:[#allocation31_spill] sm:$0xff] }
 0xdfb   :  { %v4445_v1 = vsel %vm4442_vm1, %v4444_v55, %v4440_v58  ;;  %v4468_v38 = vmul.f32 %v9262_v0, %v4426_v23  ;;  %vm4462_vm5 = vcmp.eq.f32.partialorder %v4461_v11, 8.507059e+37  ;;  %v13320_v58 = vld [vmem:[#allocation60_spill] sm:$0xff] }
 0xdfc   :  { %v4467_v24 = vmul.f32 %v4445_v1, %v12096_v57  ;;  %v4455_v14 = vmul.f32 %v9260_v8, %v4454_v3 }
 0xdfe   :  { %v12148_v61 = vadd.f32 %v4468_v38, %v4467_v24  ;;  %v4456_v19 = vadd.f32 %v9260_v8, %v4455_v14 }
 0xe00   :  { %9263 = vtanh.f32 %v12148_v61  ;;  %v4460_v17 = vsel %vm4459_vm4, %v9260_v8, %v4456_v19 }
 0xe01   :  { %v4465_v26 = vsel %vm4462_vm5, %v4464_v40, %v4460_v17 }
 0xe06   :  { %v9264_v63 = vpop.eup %9263 }
 0xe07   :  { %v12151_v45 = vmul.f32 %v9264_v63, %v4465_v26 }
 0xe09   :  { %13317 = vst [vmem:[#allocation25_spill] sm:$0xff] %v12151_v45  ;;  %v4478_v57 = vpack.c.bf16 %v12151_v45, %v12151_v45 }
 0xe0b   :  { %4487 = vmatmul.bf16.vlgmr.msra.gmra.mxu0 %v4478_v57  ;;  %4500 = vmatmul.bf16.vlgmr.msra.gmra.mxu1 %v4478_v57 }
 0xe0c   :  { %4513 = vmatmul.bf16.vlgmr.msra.gmra.mxu2 %v4478_v57  ;;  %4526 = vmatmul.bf16.vlgmr.msra.gmra.mxu3 %v4478_v57 }
 0xe0d   :  { %4731 = vmatpush.bf16.msra.mxu0 %v11410_v33  ;;  %4744 = vmatpush.bf16.msra.mxu1 %v11769_v47 }
 0xe0e   :  { %4757 = vmatpush.bf16.msra.mxu2 %v11644_v32  ;;  %4770 = vmatpush.bf16.msra.mxu3 %v11771_v29 }
 0xe11   :  { %4732 = vmatpush.bf16.msra.mxu0 %v11427_v62  ;;  %4745 = vmatpush.bf16.msra.mxu1 %v11781_v25 }
 0xe12   :  { %4758 = vmatpush.bf16.msra.mxu2 %v11656_v46  ;;  %4771 = vmatpush.bf16.msra.mxu3 %v11783_v20 }
 0xe15   :  { %4733 = vmatpush.bf16.msra.mxu0 %v11442_v13  ;;  %4746 = vmatpush.bf16.msra.mxu1 %v11803_v5 }
 0xe16   :  { %4759 = vmatpush.bf16.msra.mxu2 %v11681_v30  ;;  %4772 = vmatpush.bf16.msra.mxu3 %v11805_v50 }
 0xe19   :  { %4734 = vmatpush.bf16.msra.mxu0 %v11457_v51  ;;  %4747 = vmatpush.bf16.msra.mxu1 %v11820_v28 }
 0xe1a   :  { %4760 = vmatpush.bf16.msra.mxu2 %v11685_v6  ;;  %4773 = vmatpush.bf16.msra.mxu3 %v11822_v56 }
 0xe1d   :  { %4735 = vmatpush.bf16.msra.mxu0 %v11474_v54  ;;  %4748 = vmatpush.bf16.msra.mxu1 %v11835_v10 }
 0xe1e   :  { %4761 = vmatpush.bf16.msra.mxu2 %v11700_v36  ;;  %4774 = vmatpush.bf16.msra.mxu3 %v11837_v15 }
 0xe21   :  { %4736 = vmatpush.bf16.msra.mxu0 %v11491_v43  ;;  %4749 = vmatpush.bf16.msra.mxu1 %v11840_v49 }
 0xe22   :  { %4762 = vmatpush.bf16.msra.mxu2 %v11718_v31  ;;  %4775 = vmatpush.bf16.msra.mxu3 %v11843_v34 }
 0xe25   :  { %4737 = vmatpush.bf16.msra.mxu0 %v11507_v44  ;;  %4750 = vmatpush.bf16.msra.mxu1 %v11859_v18 }
 0xe26   :  { %4763 = vmatpush.bf16.msra.mxu2 %v11737_v39  ;;  %4776 = vmatpush.bf16.msra.mxu3 %v11865_v60 }
 0xe29   :  { %4738 = vmatpush.bf16.msra.mxu0 %v11526_v2  ;;  %4751 = vmatpush.bf16.msra.mxu1 %v11868_v9 }
 0xe2a   :  { %4764 = vmatpush.bf16.msra.mxu2 %v11741_v35  ;;  %4777 = vmatpush.bf16.msra.mxu3 %v11879_v27 }
 0xe88   :  { %v4488_v41 = vpop.f32.mrf.mxu0  ;;  %v4501_v8 = vpop.f32.mrf.mxu1 }
 0xe89   :  { %v4531_v7 = vadd.f32 %v4488_v41, %v13318_v4  ;;  %v4532_v12 = vadd.f32 %v4501_v8, %v13319_v59  ;;  %v13321_v41 = vld [vmem:[#allocation59_spill] sm:$0xff] }
 0xe8b   :  { %v8103_v55 = vmul.f32 -1.442695, %v4531_v7  ;;  %v8104_v16 = vmul.f32 -1.442695, %v4532_v12 }
 0xe8d   :  { %9265 = vpow2.f32 %v8103_v55 }
 0xe8e   :  { %9267 = vpow2.f32 %v8104_v16 }
 0xe8f   :  { %v4514_v0 = vpop.f32.mrf.mxu2  ;;  %v4527_v23 = vpop.f32.mrf.mxu3 }
 0xe90   :  { %v4534_v3 = vadd.f32 %v4527_v23, %v13320_v58  ;;  %v4490_v1 = vpop.f32.mrf.mxu0  ;;  %v4503_v38 = vpop.f32.mrf.mxu1  ;;  %v4533_v8 = vadd.f32 %v4514_v0, %v13321_v41 }
 0xe92   :  { %v8105_v24 = vmul.f32 -1.442695, %v4534_v3 }
 0xe93   :  { %v9266_v14 = vpop.eup %9265 }
 0xe94   :  { %v9268_v19 = vpop.eup %9267  ;;  %v4538_v52 = vadd.f32 1.0, %v9266_v14  ;;  %9269 = vpow2.f32 %v8105_v24 }
 0xe95   :  { %v4557_v11 = vadd.f32 1.0, %v9268_v19 }
 0xe96   :  { %9271 = vrcp.f32 %v4538_v52  ;;  %v4550_v16 = vand.u32 2147483648, %v4538_v52  ;;  %v4548_v3 = vand.u32 2147483647, %v4538_v52  ;;  %vm4544_vm8 = vweird.f32 %v4538_v52 }
 0xe97   :  { %9273 = vrcp.f32 %v4557_v11  ;;  %v4516_v17 = vpop.f32.mrf.mxu2  ;;  %v4529_v40 = vpop.f32.mrf.mxu3  ;;  %v4569_v23 = vand.u32 2147483648, %v4557_v11  ;;  %v4567_v38 = vand.u32 2147483647, %v4557_v11  ;;  %vm4563_vm9 = vweird.f32 %v4557_v11 }
 0xe98   :  { %v4551_v0 = vor.u32 1.1754944e-38, %v4550_v16  ;;  %vm4549_vm11 = vcmp.eq.f32.partialorder %v4548_v3, 8.507059e+37 }
 0xe99   :  { %v4570_v40 = vor.u32 1.1754944e-38, %v4569_v23  ;;  %vm4568_vm12 = vcmp.eq.f32.partialorder %v4567_v38, 8.507059e+37 }
 0xe9a   :  { %v9270_v63 = vpop.eup %9269 }
 0xe9b   :  { %v4577_v26 = vadd.f32 1.0, %v9270_v63 }
 0xe9c   :  { %v9272_v57 = vpop.eup %9271 }
 0xe9d   :  { %v9274_v4 = vpop.eup %9273  ;;  %v4540_v7 = vmul.f32 %v9272_v57, %v4538_v52  ;;  %9275 = vrcp.f32 %v4577_v26  ;;  %vm4545_vm6 = vweird.f32 %v9272_v57  ;;  %v4589_v16 = vand.u32 2147483648, %v4577_v26 }
 0xe9e   :  { %v4559_v59 = vmul.f32 %v9274_v4, %v4557_v11  ;;  %9277 = vtanh.f32 %v4533_v8  ;;  %vm4564_vm7 = vweird.f32 %v9274_v4  ;;  %vm4546_vm0 = vmor %vm4544_vm8, %vm4545_vm6  ;;  %vm4583_vm14 = vweird.f32 %v4577_v26 }
 0xe9f   :  { %v4541_v12 = vsub.f32 1.0, %v4540_v7  ;;  %vm4565_vm10 = vmor %vm4563_vm9, %vm4564_vm7  ;;  %v4590_v3 = vor.u32 1.1754944e-38, %v4589_v16 }
 0xea0   :  { %v4560_v55 = vsub.f32 1.0, %v4559_v59 }
 0xea1   :  { %v4542_v58 = vmul.f32 %v9272_v57, %v4541_v12 }
 0xea2   :  { %v4561_v1 = vmul.f32 %v9274_v4, %v4560_v55 }
 0xea3   :  { %v9276_v24 = vpop.eup %9275  ;;  %v4543_v14 = vadd.f32 %v9272_v57, %v4542_v58 }
 0xea4   :  { %v4562_v19 = vadd.f32 %v9274_v4, %v4561_v1  ;;  %v4579_v17 = vmul.f32 %v9276_v24, %v4577_v26  ;;  %v9278_v41 = vpop.eup %9277  ;;  %vm4584_vm13 = vweird.f32 %v9276_v24 }
 0xea5   :  { %v4547_v63 = vsel %vm4546_vm0, %v9272_v57, %v4543_v14  ;;  %v4587_v57 = vand.u32 2147483647, %v4577_v26  ;;  %vm4585_vm15 = vmor %vm4583_vm14, %vm4584_vm13  ;;  %v13330_v26 = vld [vmem:[#allocation61_spill] sm:$0xff] }
 0xea6   :  { %v4552_v8 = vsel %vm4549_vm11, %v4551_v0, %v4547_v63  ;;  %v4566_v7 = vsel %vm4565_vm10, %v9274_v4, %v4562_v19  ;;  %v4580_v59 = vsub.f32 1.0, %v4579_v17 }
 0xea7   :  { %v4571_v12 = vsel %vm4568_vm12, %v4570_v40, %v4566_v7  ;;  %v4594_v55 = vmul.f32 %v9278_v41, %v4552_v8  ;;  %vm4588_vm1 = vcmp.eq.f32.partialorder %v4587_v57, 8.507059e+37 }
 0xea8   :  { %v4593_v22 = vmul.f32 %v4571_v12, %v12148_v61  ;;  %v4581_v58 = vmul.f32 %v9276_v24, %v4580_v59 }
 0xeaa   :  { %v12192_v52 = vadd.f32 %v4594_v55, %v4593_v22  ;;  %v4582_v11 = vadd.f32 %v9276_v24, %v4581_v58 }
 0xeac   :  { %9279 = vtanh.f32 %v12192_v52  ;;  %v4586_v23 = vsel %vm4585_vm15, %v9276_v24, %v4582_v11 }
 0xead   :  { %v4591_v1 = vsel %vm4588_vm1, %v4590_v3, %v4586_v23 }
 0xeb2   :  { %v9280_v4 = vpop.eup %9279 }
 0xeb3   :  { %v12195_v38 = vmul.f32 %v9280_v4, %v4591_v1 }
 0xeb5   :  { %13322 = vst [vmem:[#allocation43_spill] sm:$0xff] %v12195_v38  ;;  %v4604_v61 = vpack.c.bf16 %v12195_v38, %v12195_v38 }
 0xeb7   :  { %4613 = vmatmul.bf16.vlgmr.msrb.gmra.mxu0 %v4604_v61  ;;  %4626 = vmatmul.bf16.vlgmr.msrb.gmra.mxu1 %v4604_v61 }
 0xeb8   :  { %4639 = vmatmul.bf16.vlgmr.msrb.gmra.mxu2 %v4604_v61  ;;  %4652 = vmatmul.bf16.vlgmr.msrb.gmra.mxu3 %v4604_v61 }
 0xeb9   :  { %4857 = vmatpush.bf16.msrb.mxu0 %v11410_v33  ;;  %4870 = vmatpush.bf16.msrb.mxu1 %v11769_v47  ;;  %v13323_v33 = vld [vmem:[#allocation48_spill] sm:$0xff] }
 0xeba   :  { %4883 = vmatpush.bf16.msrb.mxu2 %v11644_v32  ;;  %4896 = vmatpush.bf16.msrb.mxu3 %v11771_v29 }
 0xebd   :  { %4858 = vmatpush.bf16.msrb.mxu0 %v11427_v62  ;;  %4871 = vmatpush.bf16.msrb.mxu1 %v11781_v25  ;;  %v3538_v62 = vadd.f32 %v13323_v33, %v11588_v48 }
 0xebe   :  { %4884 = vmatpush.bf16.msrb.mxu2 %v11656_v46  ;;  %4897 = vmatpush.bf16.msrb.mxu3 %v11783_v20 }
 0xec1   :  { %4859 = vmatpush.bf16.msrb.mxu0 %v11442_v13  ;;  %4872 = vmatpush.bf16.msrb.mxu1 %v11803_v5  ;;  %v13324_v13 = vld [vmem:[#allocation20_spill] sm:$0xff] }
 0xec2   :  { %4885 = vmatpush.bf16.msrb.mxu2 %v11681_v30  ;;  %4898 = vmatpush.bf16.msrb.mxu3 %v11805_v50 }
 0xec5   :  { %4860 = vmatpush.bf16.msrb.mxu0 %v11457_v51  ;;  %4873 = vmatpush.bf16.msrb.mxu1 %v11820_v28  ;;  %v3596_v51 = vadd.f32 %v13324_v13, %v11621_v21 }
 0xec6   :  { %4886 = vmatpush.bf16.msrb.mxu2 %v11685_v6  ;;  %4899 = vmatpush.bf16.msrb.mxu3 %v11822_v56 }
 0xec9   :  { %4861 = vmatpush.bf16.msrb.mxu0 %v11474_v54  ;;  %4874 = vmatpush.bf16.msrb.mxu1 %v11835_v10  ;;  %v13325_v54 = vld [vmem:[#allocation37_spill] sm:$0xff] }
 0xeca   :  { %4887 = vmatpush.bf16.msrb.mxu2 %v11700_v36  ;;  %4900 = vmatpush.bf16.msrb.mxu3 %v11837_v15  ;;  %v13327_v15 = vld [vmem:[#allocation39_spill] sm:$0xff] }
 0xecd   :  { %4862 = vmatpush.bf16.msrb.mxu0 %v11491_v43  ;;  %4875 = vmatpush.bf16.msrb.mxu1 %v11840_v49  ;;  %v3567_v43 = vadd.f32 %v13325_v54, %v3538_v62 }
 0xece   :  { %4888 = vmatpush.bf16.msrb.mxu2 %v11718_v31  ;;  %4901 = vmatpush.bf16.msrb.mxu3 %v11843_v34  ;;  %v3712_v31 = vadd.f32 %v13327_v15, %v11811_v37 }
 0xed1   :  { %4863 = vmatpush.bf16.msrb.mxu0 %v11507_v44  ;;  %4876 = vmatpush.bf16.msrb.mxu1 %v11859_v18  ;;  %v13326_v44 = vld [vmem:[#allocation38_spill] sm:$0xff] }
 0xed2   :  { %4889 = vmatpush.bf16.msrb.mxu2 %v11737_v39  ;;  %4902 = vmatpush.bf16.msrb.mxu3 %v11865_v60  ;;  %v3625_v32 = vadd.f32 %v13326_v44, %v3596_v51 }
 0xed5   :  { %4864 = vmatpush.bf16.msrb.mxu0 %v11526_v2  ;;  %4877 = vmatpush.bf16.msrb.mxu1 %v11868_v9  ;;  %v13329_v9 = vld [vmem:[#allocation40_spill] sm:$0xff] }
 0xed6   :  { %4890 = vmatpush.bf16.msrb.mxu2 %v11741_v35  ;;  %4903 = vmatpush.bf16.msrb.mxu3 %v11879_v27  ;;  %v13328_v27 = vld [vmem:[#allocation62_spill] sm:$0xff]  ;;  %v3654_v18 = vadd.f32 %v13329_v9, %v13314_v42  ;;  %v13332_v9 = vld [vmem:[#allocation55_spill] sm:$0xff] }
 0xed7   :  { %v3741_v39 = vadd.f32 %v13328_v27, %v3712_v31 }
 0xed8   :  { %v3683_v24 = vadd.f32 %v13330_v26, %v3654_v18 }
 0xf34   :  { %v4614_v49 = vpop.f32.mrf.mxu0  ;;  %v4627_v46 = vpop.f32.mrf.mxu1 }
 0xf35   :  { %v4657_v30 = vadd.f32 %v4614_v49, %v3567_v43  ;;  %v4658_v2 = vadd.f32 %v4627_v46, %v3625_v32 }
 0xf37   :  { %v8106_v6 = vmul.f32 -1.442695, %v4657_v30  ;;  %v8107_v36 = vmul.f32 -1.442695, %v4658_v2 }
 0xf39   :  { %9281 = vpow2.f32 %v8106_v6 }
 0xf3a   :  { %9283 = vpow2.f32 %v8107_v36 }
 0xf3b   :  { %v4640_v35 = vpop.f32.mrf.mxu2  ;;  %v4653_v56 = vpop.f32.mrf.mxu3 }
 0xf3c   :  { %v4660_v47 = vadd.f32 %v4653_v56, %v3741_v39  ;;  %v4616_v29 = vpop.f32.mrf.mxu0  ;;  %v4629_v60 = vpop.f32.mrf.mxu1  ;;  %v4659_v19 = vadd.f32 %v4640_v35, %v3683_v24  ;;  %v8229_v39 = vld [vmem:[#allocation12 + $0xe0] sm:$0xf]  ;;  %v8841_v35 = vld [vmem:[#allocation12 + $0xec] sm:$0xf0] }
 0xf3d   :  { %v8357_v56 = vld [vmem:[#allocation12 + $0x1e0] sm:$0xf]  ;;  %v8873_v29 = vld [vmem:[#allocation12 + $0x1ec] sm:$0xf0]  ;;  %v8839_v60 = vld [vmem:[#allocation12 + $0xe4] sm:$0xf] }
 0xf3e   :  { %v8108_v25 = vmul.f32 -1.442695, %v4660_v47  ;;  %v8230_v47 = vor.u32 %v8841_v35, %v8229_v39  ;;  %v8827_v39 = vld [vmem:[#allocation12 + $0x84] sm:$0xf]  ;;  %v8183_v35 = vld [vmem:[#allocation12 + $0x90] sm:$0xf0] }
 0xf3f   :  { %v9282_v20 = vpop.eup %9281 }
 0xf40   :  { %v9284_v5 = vpop.eup %9283  ;;  %v4664_v50 = vadd.f32 1.0, %v9282_v20  ;;  %9285 = vpow2.f32 %v8108_v25  ;;  %v8231_v25 = vld [vmem:[#allocation12 + $0xf0] sm:$0xf0] }
 0xf41   :  { %v4683_v28 = vadd.f32 1.0, %v9284_v5 }
 0xf42   :  { %9287 = vrcp.f32 %v4664_v50  ;;  %v4676_v7 = vand.u32 2147483648, %v4664_v50  ;;  %v4674_v55 = vand.u32 2147483647, %v4664_v50  ;;  %vm4670_vm4 = vweird.f32 %v4664_v50 }
 0xf43   :  { %9289 = vrcp.f32 %v4683_v28  ;;  %v4642_v34 = vpop.f32.mrf.mxu2  ;;  %v4655_v10 = vpop.f32.mrf.mxu3  ;;  %v4695_v59 = vand.u32 2147483648, %v4683_v28  ;;  %v4693_v11 = vand.u32 2147483647, %v4683_v28  ;;  %vm4689_vm5 = vweird.f32 %v4683_v28 }
 0xf44   :  { %v4677_v23 = vor.u32 1.1754944e-38, %v4676_v7  ;;  %vm4675_vm8 = vcmp.eq.f32.partialorder %v4674_v55, 8.507059e+37  ;;  %v8871_v34 = vld [vmem:[#allocation12 + $0x1e4] sm:$0xf]  ;;  %v8359_v10 = vld [vmem:[#allocation12 + $0x1f0] sm:$0xf0] }
 0xf45   :  { %v4696_v1 = vor.u32 1.1754944e-38, %v4695_v59  ;;  %vm4694_vm9 = vcmp.eq.f32.partialorder %v4693_v11, 8.507059e+37  ;;  %v8362_v24 = vor.u32 %v8871_v34, %v8359_v10  ;;  %v8835_v7 = vld [vmem:[#allocation12 + $0xc4] sm:$0xf]  ;;  %v8215_v59 = vld [vmem:[#allocation12 + $0xd0] sm:$0xf0] }
 0xf46   :  { %v9286_v22 = vpop.eup %9285  ;;  %v8218_v55 = vor.u32 %v8835_v7, %v8215_v59  ;;  %v8197_v11 = vld [vmem:[#allocation12 + $0xa0] sm:$0xf]  ;;  %v8855_v59 = vld [vmem:[#allocation12 + $0x164] sm:$0xf] }
 0xf47   :  { %v4703_v14 = vadd.f32 1.0, %v9286_v22  ;;  %v13333_v22 = vld [vmem:[#allocation54_spill] sm:$0xff]  ;;  %v8165_v10 = vld [vmem:[#allocation12 + $0x60] sm:$0xf] }
 0xf48   :  { %v9288_v0 = vpop.eup %9287 }
 0xf49   :  { %v9290_v17 = vpop.eup %9289  ;;  %v4666_v40 = vmul.f32 %v9288_v0, %v4664_v50  ;;  %9291 = vrcp.f32 %v4703_v14  ;;  %vm4671_vm2 = vweird.f32 %v9288_v0  ;;  %v4715_v30 = vand.u32 2147483648, %v4703_v14 }
 0xf4a   :  { %v4685_v63 = vmul.f32 %v9290_v17, %v4683_v28  ;;  %9293 = vtanh.f32 %v4659_v19  ;;  %vm4690_vm3 = vweird.f32 %v9290_v17  ;;  %vm4672_vm6 = vmor %vm4670_vm4, %vm4671_vm2  ;;  %vm4709_vm10 = vweird.f32 %v4703_v14  ;;  %v8341_v19 = vld [vmem:[#allocation12 + $0x1c0] sm:$0xf] }
 0xf4b   :  { %v4667_v41 = vsub.f32 1.0, %v4666_v40  ;;  %vm4691_vm7 = vmor %vm4689_vm5, %vm4690_vm3  ;;  %v4713_v2 = vand.u32 2147483647, %v4703_v14  ;;  %v4716_v36 = vor.u32 1.1754944e-38, %v4715_v30  ;;  %v8358_v50 = vor.u32 %v8873_v29, %v8357_v56  ;;  %v8859_v29 = vld [vmem:[#allocation12 + $0x184] sm:$0xf] }
 0xf4c   :  { %v4686_v8 = vsub.f32 1.0, %v4685_v63  ;;  %v8234_v28 = vor.u32 %v8839_v60, %v8231_v25  ;;  %v8311_v60 = vld [vmem:[#allocation12 + $0x190] sm:$0xf0] }
 0xf4d   :  { %v4668_v12 = vmul.f32 %v9288_v0, %v4667_v41  ;;  %vm4714_vm12 = vcmp.eq.f32.partialorder %v4713_v2, 8.507059e+37  ;;  %v8869_v41 = vld [vmem:[#allocation12 + $0x1cc] sm:$0xf0] }
 0xf4e   :  { %v4687_v58 = vmul.f32 %v9290_v17, %v4686_v8  ;;  %v8342_v8 = vor.u32 %v8869_v41, %v8341_v19  ;;  %v13335_v41 = vld [vmem:[#allocation63_spill] sm:$0xff] }
 0xf4f   :  { %v9292_v16 = vpop.eup %9291  ;;  %v4669_v57 = vadd.f32 %v9288_v0, %v4668_v12  ;;  %v8867_v12 = vld [vmem:[#allocation12 + $0x1c4] sm:$0xf] }
 0xf50   :  { %v4688_v3 = vadd.f32 %v9290_v17, %v4687_v58  ;;  %v4705_v4 = vmul.f32 %v9292_v16, %v4703_v14  ;;  %v9294_v33 = vpop.eup %9293  ;;  %vm4710_vm0 = vweird.f32 %v9292_v16  ;;  %v8213_v14 = vld [vmem:[#allocation12 + $0xc0] sm:$0xf]  ;;  %v8343_v58 = vld [vmem:[#allocation12 + $0x1d0] sm:$0xf0] }
 0xf51   :  { %v4673_v61 = vsel %vm4672_vm6, %v9288_v0, %v4669_v57  ;;  %vm4711_vm11 = vmor %vm4709_vm10, %vm4710_vm0  ;;  %v8837_v0 = vld [vmem:[#allocation12 + $0xcc] sm:$0xf0]  ;;  %v8346_v57 = vor.u32 %v8867_v12, %v8343_v58  ;;  %v8295_v12 = vld [vmem:[#allocation12 + $0x170] sm:$0xf0] }
 0xf52   :  { %v4678_v62 = vsel %vm4675_vm8, %v4677_v23, %v4673_v61  ;;  %v4692_v13 = vsel %vm4691_vm7, %v9290_v17, %v4688_v3  ;;  %v4706_v51 = vsub.f32 1.0, %v4705_v4  ;;  %v8214_v63 = vor.u32 %v8837_v0, %v8213_v14  ;;  %v8325_v3 = vld [vmem:[#allocation12 + $0x1a0] sm:$0xf]  ;;  %v8865_v4 = vld [vmem:[#allocation12 + $0x1ac] sm:$0xf0] }
 0xf53   :  { %v4697_v54 = vsel %vm4694_vm9, %v4696_v1, %v4692_v13  ;;  %v4720_v43 = vmul.f32 %v9294_v33, %v4678_v62  ;;  %v8831_v1 = vld [vmem:[#allocation12 + $0xa4] sm:$0xf]  ;;  %v8326_v62 = vor.u32 %v8865_v4, %v8325_v3  ;;  %v8199_v13 = vld [vmem:[#allocation12 + $0xb0] sm:$0xf0]  ;;  %v8857_v14 = vld [vmem:[#allocation12 + $0x16c] sm:$0xf0] }
 0xf54   :  { %v4719_v44 = vmul.f32 %v4697_v54, %v12192_v52  ;;  %v4707_v32 = vmul.f32 %v9292_v16, %v4706_v51  ;;  %v8863_v51 = vld [vmem:[#allocation12 + $0x1a4] sm:$0xf]  ;;  %v8327_v54 = vld [vmem:[#allocation12 + $0x1b0] sm:$0xf0]  ;;  %v8202_v30 = vor.u32 %v8831_v1, %v8199_v13  ;;  %v8853_v4 = vld [vmem:[#allocation12 + $0x14c] sm:$0xf0] }
 0xf55   :  { %v8330_v2 = vor.u32 %v8863_v51, %v8327_v54  ;;  %v8819_v1 = vld [vmem:[#allocation12 + $0x44] sm:$0xf]  ;;  %v8279_v51 = vld [vmem:[#allocation12 + $0x150] sm:$0xf0]  ;;  %v8133_v54 = vld [vmem:[#allocation12 + $0x20] sm:$0xf] }
 0xf56   :  { %v12244_v49 = vadd.f32 %v4720_v43, %v4719_v44  ;;  %v4708_v46 = vadd.f32 %v9292_v16, %v4707_v32  ;;  %v13334_v43 = vld [vmem:[#allocation64_spill] sm:$0xff] }
 0xf57   :  { %v8851_v13 = vld [vmem:[#allocation12 + $0x144] sm:$0xf] }
 0xf58   :  { %9295 = vtanh.f32 %v12244_v49  ;;  %v4712_v6 = vsel %vm4711_vm11, %v9292_v16, %v4708_v46  ;;  %v8833_v16 = vld [vmem:[#allocation12 + $0xac] sm:$0xf0] }
 0xf59   :  { %v4717_v31 = vsel %vm4714_vm12, %v4716_v36, %v4712_v6  ;;  %v8198_v23 = vor.u32 %v8833_v16, %v8197_v11  ;;  %v8181_v6 = vld [vmem:[#allocation12 + $0x80] sm:$0xf]  ;;  %v8829_v36 = vld [vmem:[#allocation12 + $0x8c] sm:$0xf0]  ;;  %v8298_v11 = vor.u32 %v8855_v59, %v8295_v12  ;;  %v8843_v12 = vld [vmem:[#allocation12 + $0x104] sm:$0xf] }
 0xf5a   :  { %v8821_v16 = vld [vmem:[#allocation12 + $0x4c] sm:$0xf0] }
 0xf5e   :  { %v9296_v15 = vpop.eup %9295 }
 0xf5f   :  { %v12247_v27 = vmul.f32 %v9296_v15, %v4717_v31  ;;  %v8309_v15 = vld [vmem:[#allocation12 + $0x180] sm:$0xf]  ;;  %v8182_v31 = vor.u32 %v8829_v36, %v8181_v6  ;;  %v8282_v36 = vor.u32 %v8851_v13, %v8279_v51 }
 0xf61   :  { %13331 = vst [vmem:[#allocation41_spill] sm:$0xff] %v12247_v27  ;;  %v4730_v52 = vpack.c.bf16 %v12247_v27, %v12247_v27 }
 0xf63   :  { %4739 = vmatmul.bf16.vlgmr.msra.gmra.mxu0 %v4730_v52  ;;  %4752 = vmatmul.bf16.vlgmr.msra.gmra.mxu1 %v4730_v52 }
 0xf64   :  { %4765 = vmatmul.bf16.vlgmr.msra.gmra.mxu2 %v4730_v52  ;;  %4778 = vmatmul.bf16.vlgmr.msra.gmra.mxu3 %v4730_v52  ;;  %v8861_v52 = vld [vmem:[#allocation12 + $0x18c] sm:$0xf0] }
 0xf65   :  { %5372 = vmatpush.bf16.msra.mxu0 %v8230_v47  ;;  %5401 = vmatpush.bf16.msra.mxu1 %v8358_v50  ;;  %v8310_v47 = vor.u32 %v8861_v52, %v8309_v15  ;;  %v8261_v15 = vld [vmem:[#allocation12 + $0x120] sm:$0xf] }
 0xf66   :  { %5430 = vmatpush.bf16.msra.mxu2 %v8234_v28  ;;  %5459 = vmatpush.bf16.msra.mxu3 %v8362_v24  ;;  %v8314_v28 = vor.u32 %v8859_v29, %v8311_v60  ;;  %v8293_v24 = vld [vmem:[#allocation12 + $0x160] sm:$0xf] }
 0xf67   :  { %v8294_v19 = vor.u32 %v8857_v14, %v8293_v24 }
 0xf69   :  { %5373 = vmatpush.bf16.msra.mxu0 %v8214_v63  ;;  %5402 = vmatpush.bf16.msra.mxu1 %v8342_v8 }
 0xf6a   :  { %5431 = vmatpush.bf16.msra.mxu2 %v8218_v55  ;;  %5460 = vmatpush.bf16.msra.mxu3 %v8346_v57  ;;  %v8149_v55 = vld [vmem:[#allocation12 + $0x40] sm:$0xf] }
 0xf6b   :  { %v8277_v57 = vld [vmem:[#allocation12 + $0x140] sm:$0xf]  ;;  %v8150_v3 = vor.u32 %v8821_v16, %v8149_v55  ;;  %v8247_v55 = vld [vmem:[#allocation12 + $0x110] sm:$0xf0] }
 0xf6d   :  { %5374 = vmatpush.bf16.msra.mxu0 %v8198_v23  ;;  %5403 = vmatpush.bf16.msra.mxu1 %v8326_v62 }
 0xf6e   :  { %5432 = vmatpush.bf16.msra.mxu2 %v8202_v30  ;;  %5461 = vmatpush.bf16.msra.mxu3 %v8330_v2  ;;  %v8278_v2 = vor.u32 %v8853_v4, %v8277_v57 }
 0xf71   :  { %5375 = vmatpush.bf16.msra.mxu0 %v8182_v31  ;;  %5404 = vmatpush.bf16.msra.mxu1 %v8310_v47  ;;  %v8849_v31 = vld [vmem:[#allocation12 + $0x12c] sm:$0xf0]  ;;  %v8815_v47 = vld [vmem:[#allocation12 + $0x24] sm:$0xf] }
 0xf72   :  { %5462 = vmatpush.bf16.msra.mxu3 %v8314_v28  ;;  %v8262_v60 = vor.u32 %v8849_v31, %v8261_v15  ;;  %v8367_v31 = vld [vmem:[#allocation12 + $0x1f8] sm:$0xf0] }
 0xf75   :  { %5405 = vmatpush.bf16.msra.mxu1 %v8294_v19  ;;  %v8845_v19 = vld [vmem:[#allocation12 + $0x10c] sm:$0xf0] }
 0xf76   :  { %5463 = vmatpush.bf16.msra.mxu3 %v8298_v11 }
 0xf79   :  { %5406 = vmatpush.bf16.msra.mxu1 %v8278_v2  ;;  %v8365_v2 = vld [vmem:[#allocation12 + $0x1e8] sm:$0xf] }
 0xf7a   :  { %5464 = vmatpush.bf16.msra.mxu3 %v8282_v36  ;;  %v8872_v36 = vld [vmem:[#allocation12 + $0x1ec] sm:$0xf] }
 0xf7d   :  { %5407 = vmatpush.bf16.msra.mxu1 %v8262_v60  ;;  %v8838_v60 = vld [vmem:[#allocation12 + $0xd4] sm:$0xf0] }
 0xfe0   :  { %v4740_v20 = vpop.f32.mrf.mxu0  ;;  %v4753_v5 = vpop.f32.mrf.mxu1 }
 0xfe1   :  { %v4783_v18 = vadd.f32 %v4740_v20, %v13332_v9  ;;  %v4784_v26 = vadd.f32 %v4753_v5, %v13333_v22  ;;  %v8186_v20 = vor.u32 %v8827_v39, %v8183_v35  ;;  %v8825_v22 = vld [vmem:[#allocation12 + $0x6c] sm:$0xf0]  ;;  %v8239_v39 = vld [vmem:[#allocation12 + $0xf8] sm:$0xf0] }
 0xfe3   :  { %v8109_v17 = vmul.f32 -1.442695, %v4783_v18  ;;  %v8110_v40 = vmul.f32 -1.442695, %v4784_v26  ;;  %5433 = vmatpush.bf16.msra.mxu2 %v8186_v20  ;;  %v8166_v26 = vor.u32 %v8825_v22, %v8165_v10  ;;  %v8847_v20 = vld [vmem:[#allocation12 + $0x124] sm:$0xf] }
 0xfe4   :  { %v8813_v22 = vld [vmem:[#allocation12 + $0xc] sm:$0xf0] }
 0xfe5   :  { %9297 = vpow2.f32 %v8109_v17  ;;  %v8823_v17 = vld [vmem:[#allocation12 + $0x64] sm:$0xf]  ;;  %5376 = vmatpush.bf16.msra.mxu0 %v8166_v26  ;;  %v8245_v26 = vld [vmem:[#allocation12 + $0x100] sm:$0xf] }
 0xfe6   :  { %9299 = vpow2.f32 %v8110_v40  ;;  %v8167_v40 = vld [vmem:[#allocation12 + $0x70] sm:$0xf0]  ;;  %v8246_v11 = vor.u32 %v8845_v19, %v8245_v26  ;;  %v8836_v26 = vld [vmem:[#allocation12 + $0xcc] sm:$0xf]  ;;  %v8333_v19 = vld [vmem:[#allocation12 + $0x1a8] sm:$0xf] }
 0xfe7   :  { %v4766_v61 = vpop.f32.mrf.mxu2  ;;  %v4779_v33 = vpop.f32.mrf.mxu3  ;;  %v8170_v7 = vor.u32 %v8823_v17, %v8167_v40  ;;  %v8811_v17 = vld [vmem:[#allocation12 + $0x4] sm:$0xf]  ;;  %v8119_v40 = vld [vmem:[#allocation12 + $0x10] sm:$0xf0] }
 0xfe8   :  { %v4786_v44 = vadd.f32 %v4779_v33, %v13334_v43  ;;  %v4742_v32 = vpop.f32.mrf.mxu0  ;;  %v4755_v46 = vpop.f32.mrf.mxu1  ;;  %v4785_v8 = vadd.f32 %v4766_v61, %v13335_v41  ;;  %v8151_v33 = vld [vmem:[#allocation12 + $0x50] sm:$0xf0]  ;;  %v8122_v16 = vor.u32 %v8811_v17, %v8119_v40  ;;  %5408 = vmatpush.bf16.msra.mxu1 %v8246_v11  ;;  %v8866_v17 = vld [vmem:[#allocation12 + $0x1b4] sm:$0xf0] }
 0xfe9   :  { %5434 = vmatpush.bf16.msra.mxu2 %v8170_v7  ;;  %5377 = vmatpush.bf16.msra.mxu0 %v8150_v3  ;;  %v8817_v46 = vld [vmem:[#allocation12 + $0x2c] sm:$0xf0]  ;;  %v8154_v6 = vor.u32 %v8819_v1, %v8151_v33  ;;  %v8250_v1 = vor.u32 %v8843_v12, %v8247_v55  ;;  %v8334_v12 = vor.u32 %v8866_v17, %v8333_v19  ;;  %v8189_v55 = vld [vmem:[#allocation12 + $0x88] sm:$0xf]  ;;  %v8830_v11 = vld [vmem:[#allocation12 + $0x94] sm:$0xf0] }
 0xfea   :  { %v8111_v56 = vmul.f32 -1.442695, %v4786_v44  ;;  %v8159_v19 = vld [vmem:[#allocation12 + $0x58] sm:$0xf0] }
 0xfeb   :  { %v9298_v25 = vpop.eup %9297 }
 0xfec   :  { %v9300_v5 = vpop.eup %9299  ;;  %v12254_v50 = vadd.f32 1.0, %v9298_v25  ;;  %9301 = vpow2.f32 %v8111_v56  ;;  %v8134_v56 = vor.u32 %v8817_v46, %v8133_v54  ;;  %v8135_v25 = vld [vmem:[#allocation12 + $0x30] sm:$0xf0] }
 0xfed   :  { %v12256_v34 = vadd.f32 1.0, %v9300_v5  ;;  %5435 = vmatpush.bf16.msra.mxu2 %v8154_v6  ;;  %v8263_v5 = vld [vmem:[#allocation12 + $0x130] sm:$0xf0]  ;;  %v8138_v10 = vor.u32 %v8815_v47, %v8135_v25  ;;  %v8874_v6 = vld [vmem:[#allocation12 + $0x1f4] sm:$0xf0] }
 0xfee   :  { %9303 = vrcp.f32 %v12254_v50  ;;  %v4800_v0 = vand.u32 2147483647, %v12254_v50  ;;  %v4802_v32 = vand.u32 2147483648, %v12254_v50  ;;  %5378 = vmatpush.bf16.msra.mxu0 %v8134_v56  ;;  %vm4796_vm2 = vweird.f32 %v12254_v50  ;;  %v8221_v47 = vld [vmem:[#allocation12 + $0xc8] sm:$0xf] }
 0xfef   :  { %9305 = vrcp.f32 %v12256_v34  ;;  %v4768_v9 = vpop.f32.mrf.mxu2  ;;  %v4781_v18 = vpop.f32.mrf.mxu3  ;;  %v4821_v44 = vand.u32 2147483648, %v12256_v34  ;;  %v4819_v35 = vand.u32 2147483647, %v12256_v34  ;;  %vm4815_vm1 = vweird.f32 %v12256_v34  ;;  %v8349_v25 = vld [vmem:[#allocation12 + $0x1c8] sm:$0xf] }
 0xff0   :  { %vm12275_vm13 = vcmp.eq.f32.partialorder %v4800_v0, 8.507059e+37  ;;  %v8266_v9 = vor.u32 %v8847_v20, %v8263_v5  ;;  %v8117_v18 = vld [vmem:[#allocation12] sm:$0xf]  ;;  %v8366_v56 = vor.u32 %v8874_v6, %v8365_v2  ;;  %v8870_v20 = vld [vmem:[#allocation12 + $0x1d4] sm:$0xf0] }
 0xff1   :  { %v8118_v0 = vor.u32 %v8813_v22, %v8117_v18  ;;  %v4822_v41 = vor.u32 1.1754944e-38, %v4821_v44  ;;  %vm4820_vm5 = vcmp.eq.f32.partialorder %v4819_v35, 8.507059e+37  ;;  %5436 = vmatpush.bf16.msra.mxu2 %v8138_v10  ;;  %v8351_v10 = vld [vmem:[#allocation12 + $0x1d8] sm:$0xf0]  ;;  %v8350_v18 = vor.u32 %v8870_v20, %v8349_v25  ;;  %v8205_v22 = vld [vmem:[#allocation12 + $0xa8] sm:$0xf] }
 0xff2   :  { %v9302_v63 = vpop.eup %9301  ;;  %5465 = vmatpush.bf16.msra.mxu3 %v8266_v9  ;;  %v8222_v9 = vor.u32 %v8838_v60, %v8221_v47  ;;  %v8856_v6 = vld [vmem:[#allocation12 + $0x16c] sm:$0xf]  ;;  %v8175_v60 = vld [vmem:[#allocation12 + $0x78] sm:$0xf0] }
 0xff3   :  { %v12262_v58 = vadd.f32 1.0, %v9302_v63  ;;  %5379 = vmatpush.bf16.msra.mxu0 %v8118_v0  ;;  %v8834_v0 = vld [vmem:[#allocation12 + $0xb4] sm:$0xf0]  ;;  %v8852_v25 = vld [vmem:[#allocation12 + $0x14c] sm:$0xf] }
 0xff4   :  { %v12264_v23 = vpop.eup %9303 }
 0xff5   :  { %v12266_v62 = vpop.eup %9305  ;;  %v4792_v61 = vmul.f32 %v12264_v23, %v12254_v50  ;;  %9307 = vrcp.f32 %v12262_v58  ;;  %vm4797_vm14 = vweird.f32 %v12264_v23  ;;  %5437 = vmatpush.bf16.msra.mxu2 %v8122_v16  ;;  %vm4835_vm7 = vweird.f32 %v12262_v58  ;;  %v8317_v16 = vld [vmem:[#allocation12 + $0x188] sm:$0xf] }
 0xff6   :  { %v4811_v43 = vmul.f32 %v12266_v62, %v12256_v34  ;;  %9309 = vtanh.f32 %v4785_v8  ;;  %vm4816_vm15 = vweird.f32 %v12266_v62  ;;  %vm4798_vm3 = vmor %vm4796_vm2, %vm4797_vm14  ;;  %v4803_v8 = vor.u32 1.1754944e-38, %v4802_v32  ;;  %5466 = vmatpush.bf16.msra.mxu3 %v8250_v1  ;;  %v8842_v32 = vld [vmem:[#allocation12 + $0xf4] sm:$0xf0]  ;;  %v8319_v1 = vld [vmem:[#allocation12 + $0x198] sm:$0xf0] }
 0xff7   :  { %v4793_v30 = vsub.f32 1.0, %v4792_v61  ;;  %vm4817_vm4 = vmor %vm4815_vm1, %vm4816_vm15  ;;  %v4839_v54 = vand.u32 2147483647, %v12262_v58 }
 0xff8   :  { %v4812_v52 = vsub.f32 1.0, %v4811_v43 }
 0xff9   :  { %v4794_v29 = vmul.f32 %v12264_v23, %v4793_v30  ;;  %vm4840_vm9 = vcmp.eq.f32.partialorder %v4839_v54, 8.507059e+37  ;;  %v8826_v54 = vld [vmem:[#allocation12 + $0x74] sm:$0xf0] }
 0xffa   :  { %v4813_v28 = vmul.f32 %v12266_v62, %v4812_v52  ;;  %v8840_v52 = vld [vmem:[#allocation12 + $0xec] sm:$0xf] }
 0xffb   :  { %v9308_v24 = vpop.eup %9307  ;;  %v4795_v14 = vadd.f32 %v12264_v23, %v4794_v29  ;;  %v8370_v29 = vor.u32 %v8872_v36, %v8367_v31  ;;  %v8242_v5 = vor.u32 %v8840_v52, %v8239_v39  ;;  %v8303_v36 = vld [vmem:[#allocation12 + $0x178] sm:$0xf0]  ;;  %v8157_v31 = vld [vmem:[#allocation12 + $0x48] sm:$0xf]  ;;  %v8822_v39 = vld [vmem:[#allocation12 + $0x54] sm:$0xf0] }
 0xffc   :  { %v9310_v63 = vpop.eup %9309  ;;  %v4814_v7 = vadd.f32 %v12266_v62, %v4813_v28  ;;  %v4831_v59 = vmul.f32 %v9308_v24, %v12262_v58  ;;  %vm4836_vm6 = vweird.f32 %v9308_v24  ;;  %v8868_v28 = vld [vmem:[#allocation12 + $0x1cc] sm:$0xf]  ;;  %v8306_v52 = vor.u32 %v8856_v6, %v8303_v36  ;;  %v8495_v6 = vld [vmem:[#allocation13 + $0xf8] sm:$0xf0] }
 0xffd   :  { %v4799_v50 = vsel %vm4798_vm3, %v12264_v23, %v4795_v14  ;;  %vm4837_vm8 = vmor %vm4835_vm7, %vm4836_vm6  ;;  %v8354_v14 = vor.u32 %v8868_v28, %v8351_v10  ;;  %v13341_v10 = vld [vmem:[#allocation51_spill] sm:$0xff] }
 0xffe   :  { %v4804_v57 = vsel %vm12275_vm13, %v4803_v8, %v4799_v50  ;;  %v4818_v3 = vsel %vm4817_vm4, %v12266_v62, %v4814_v7  ;;  %v4832_v4 = vsub.f32 1.0, %v4831_v59  ;;  %v4841_v62 = vand.u32 2147483648, %v12262_v58  ;;  %v8832_v8 = vld [vmem:[#allocation12 + $0xac] sm:$0xf]  ;;  %v8207_v7 = vld [vmem:[#allocation12 + $0xb8] sm:$0xf0] }
 0xfff   :  { %v4823_v33 = vsel %vm4820_vm5, %v4822_v41, %v4818_v3  ;;  %v4846_v61 = vmul.f32 %v9310_v63, %v4804_v57  ;;  %v8864_v63 = vld [vmem:[#allocation12 + $0x1ac] sm:$0xf]  ;;  %v8335_v41 = vld [vmem:[#allocation12 + $0x1b8] sm:$0xf0]  ;;  %v8206_v59 = vor.u32 %v8834_v0, %v8205_v22  ;;  %v8862_v57 = vld [vmem:[#allocation12 + $0x194] sm:$0xf0]  ;;  %v8210_v3 = vor.u32 %v8832_v8, %v8207_v7 }
0x1000   :  { %v4845_v34 = vmul.f32 %v4823_v33, %v12244_v49  ;;  %v4833_v13 = vmul.f32 %v9308_v24, %v4832_v4  ;;  %v4842_v44 = vor.u32 1.1754944e-38, %v4841_v62  ;;  %v8237_v49 = vld [vmem:[#allocation12 + $0xe8] sm:$0xf]  ;;  %v8338_v50 = vor.u32 %v8864_v63, %v8335_v41  ;;  %v8860_v4 = vld [vmem:[#allocation12 + $0x18c] sm:$0xf] }
0x1001   :  { %v8238_v58 = vor.u32 %v8842_v32, %v8237_v49  ;;  %v8190_v33 = vor.u32 %v8830_v11, %v8189_v55  ;;  %v8173_v62 = vld [vmem:[#allocation12 + $0x68] sm:$0xf]  ;;  %v8858_v49 = vld [vmem:[#allocation12 + $0x174] sm:$0xf0]  ;;  %v8828_v32 = vld [vmem:[#allocation12 + $0x8c] sm:$0xf] }
0x1002   :  { %v12300_v23 = vadd.f32 %v4846_v61, %v4845_v34  ;;  %v4834_v51 = vadd.f32 %v9308_v24, %v4833_v13  ;;  %v8318_v61 = vor.u32 %v8862_v57, %v8317_v16  ;;  %v8322_v34 = vor.u32 %v8860_v4, %v8319_v1  ;;  %v13339_v13 = vld [vmem:[#allocation30_spill] sm:$0xff]  ;;  %v8818_v22 = vld [vmem:[#allocation12 + $0x34] sm:$0xf0]  ;;  %v8820_v0 = vld [vmem:[#allocation12 + $0x4c] sm:$0xf] }
0x1003   :  { %v8848_v63 = vld [vmem:[#allocation12 + $0x12c] sm:$0xf]  ;;  %v8271_v41 = vld [vmem:[#allocation12 + $0x138] sm:$0xf0]  ;;  %v8125_v8 = vld [vmem:[#allocation12 + $0x8] sm:$0xf] }
0x1004   :  { %9311 = vtanh.f32 %v12300_v23  ;;  %v4838_v43 = vsel %vm4837_vm8, %v9308_v24, %v4834_v51  ;;  %v8223_v24 = vld [vmem:[#allocation12 + $0xd8] sm:$0xf0]  ;;  %v13340_v51 = vld [vmem:[#allocation46_spill] sm:$0xff]  ;;  %v8274_v7 = vor.u32 %v8848_v63, %v8271_v41  ;;  %v8846_v55 = vld [vmem:[#allocation12 + $0x114] sm:$0xf0] }
0x1005   :  { %v4843_v30 = vsel %vm4840_vm9, %v4842_v44, %v4838_v43  ;;  %v8226_v40 = vor.u32 %v8836_v26, %v8223_v24  ;;  %v8301_v43 = vld [vmem:[#allocation12 + $0x168] sm:$0xf]  ;;  %v8174_v44 = vor.u32 %v8826_v54, %v8173_v62  ;;  %v8816_v16 = vld [vmem:[#allocation12 + $0x2c] sm:$0xf]  ;;  %v8143_v57 = vld [vmem:[#allocation12 + $0x38] sm:$0xf0] }
0x1006   :  { %v8269_v26 = vld [vmem:[#allocation12 + $0x128] sm:$0xf]  ;;  %v8146_v4 = vor.u32 %v8816_v16, %v8143_v57  ;;  %v8127_v1 = vld [vmem:[#allocation12 + $0x18] sm:$0xf0] }
0x1007   :  { %v13343_v54 = vld [vmem:[#allocation33_spill] sm:$0xff] }
0x100a   :  { %v9312_v46 = vpop.eup %9311 }
0x100b   :  { %v12306_v15 = vmul.f32 %v9312_v46, %v4843_v30  ;;  %v8191_v46 = vld [vmem:[#allocation12 + $0x98] sm:$0xf0]  ;;  %v8302_v30 = vor.u32 %v8858_v49, %v8301_v43  ;;  %v8905_v49 = vld [vmem:[#allocation13 + $0xec] sm:$0xf0] }
0x100c   :  { %v8194_v2 = vor.u32 %v8828_v32, %v8191_v46  ;;  %v13344_v43 = vld [vmem:[#allocation23_spill] sm:$0xff]  ;;  %v8903_v32 = vld [vmem:[#allocation13 + $0xe4] sm:$0xf] }
0x100d   :  { %13338 = vst [vmem:[#allocation26_spill] sm:$0xff] %v12306_v15  ;;  %v4856_v35 = vpack.c.bf16 %v12306_v15, %v12306_v15 }
0x100f   :  { %4865 = vmatmul.bf16.vlgmr.msrb.gmra.mxu0 %v4856_v35  ;;  %4878 = vmatmul.bf16.vlgmr.msrb.gmra.mxu1 %v4856_v35 }
0x1010   :  { %4891 = vmatmul.bf16.vlgmr.msrb.gmra.mxu2 %v4856_v35  ;;  %4904 = vmatmul.bf16.vlgmr.msrb.gmra.mxu3 %v4856_v35  ;;  %v8285_v35 = vld [vmem:[#allocation12 + $0x148] sm:$0xf] }
0x1011   :  { %5488 = vmatpush.bf16.msrb.mxu0 %v8238_v58  ;;  %5517 = vmatpush.bf16.msrb.mxu1 %v8366_v56  ;;  %v8854_v58 = vld [vmem:[#allocation12 + $0x154] sm:$0xf0]  ;;  %v8158_v56 = vor.u32 %v8822_v39, %v8157_v31  ;;  %v8901_v39 = vld [vmem:[#allocation13 + $0xcc] sm:$0xf0] }
0x1012   :  { %5575 = vmatpush.bf16.msrb.mxu3 %v8370_v29  ;;  %5546 = vmatpush.bf16.msrb.mxu2 %v8242_v5  ;;  %v8286_v47 = vor.u32 %v8854_v58, %v8285_v35  ;;  %v8824_v29 = vld [vmem:[#allocation12 + $0x6c] sm:$0xf]  ;;  %v8287_v5 = vld [vmem:[#allocation12 + $0x158] sm:$0xf0]  ;;  %v8899_v35 = vld [vmem:[#allocation13 + $0xc4] sm:$0xf] }
0x1013   :  { %v8178_v20 = vor.u32 %v8824_v29, %v8175_v60  ;;  %v8290_v28 = vor.u32 %v8852_v25, %v8287_v5  ;;  %v8479_v29 = vld [vmem:[#allocation13 + $0xd8] sm:$0xf0]  ;;  %v8906_v5 = vld [vmem:[#allocation13 + $0xf4] sm:$0xf0] }
0x1015   :  { %5489 = vmatpush.bf16.msrb.mxu0 %v8222_v9  ;;  %5518 = vmatpush.bf16.msrb.mxu1 %v8350_v18  ;;  %v13342_v9 = vld [vmem:[#allocation50_spill] sm:$0xff]  ;;  %v8141_v18 = vld [vmem:[#allocation12 + $0x28] sm:$0xf] }
0x1016   :  { %5576 = vmatpush.bf16.msrb.mxu3 %v8354_v14  ;;  %5547 = vmatpush.bf16.msrb.mxu2 %v8226_v40  ;;  %v8142_v24 = vor.u32 %v8818_v22, %v8141_v18  ;;  %v8850_v14 = vld [vmem:[#allocation12 + $0x134] sm:$0xf0]  ;;  %v8162_v40 = vor.u32 %v8820_v0, %v8159_v19  ;;  %v13345_v18 = vld [vmem:[#allocation52_spill] sm:$0xff]  ;;  %v13346_v22 = vld [vmem:[#allocation42_spill] sm:$0xff] }
0x1017   :  { %v8270_v17 = vor.u32 %v8850_v14, %v8269_v26  ;;  %v8453_v26 = vld [vmem:[#allocation13 + $0xa0] sm:$0xf]  ;;  %v8895_v14 = vld [vmem:[#allocation13 + $0xa4] sm:$0xf]  ;;  %v8455_v19 = vld [vmem:[#allocation13 + $0xb0] sm:$0xf0] }
0x1018   :  { %v12349_v63 = vor.u32 %v8895_v14, %v8455_v19  ;;  %v8890_v14 = vld [vmem:[#allocation13 + $0x74] sm:$0xf0] }
0x1019   :  { %5490 = vmatpush.bf16.msrb.mxu0 %v8206_v59  ;;  %5519 = vmatpush.bf16.msrb.mxu1 %v8334_v12  ;;  %v8814_v59 = vld [vmem:[#allocation12 + $0x14] sm:$0xf0]  ;;  %v8253_v12 = vld [vmem:[#allocation12 + $0x108] sm:$0xf] }
0x101a   :  { %5577 = vmatpush.bf16.msrb.mxu3 %v8338_v50  ;;  %5548 = vmatpush.bf16.msrb.mxu2 %v8210_v3  ;;  %v8126_v50 = vor.u32 %v8814_v59, %v8125_v8  ;;  %v8254_v11 = vor.u32 %v8846_v55, %v8253_v12  ;;  %v8812_v3 = vld [vmem:[#allocation12 + $0xc] sm:$0xf]  ;;  %v8477_v8 = vld [vmem:[#allocation13 + $0xc8] sm:$0xf]  ;;  %v8437_v59 = vld [vmem:[#allocation13 + $0x80] sm:$0xf] }
0x101b   :  { %v8130_v62 = vor.u32 %v8812_v3, %v8127_v1  ;;  %v8893_v55 = vld [vmem:[#allocation13 + $0x8c] sm:$0xf0]  ;;  %v8892_v3 = vld [vmem:[#allocation13 + $0x8c] sm:$0xf]  ;;  %v8461_v1 = vld [vmem:[#allocation13 + $0xa8] sm:$0xf] }
0x101c   :  { %v12358_v16 = vor.u32 %v8893_v55, %v8437_v59  ;;  %v8886_v59 = vld [vmem:[#allocation13 + $0x54] sm:$0xf0] }
0x101d   :  { %5491 = vmatpush.bf16.msrb.mxu0 %v8190_v33  ;;  %5520 = vmatpush.bf16.msrb.mxu1 %v8318_v61  ;;  %v8844_v33 = vld [vmem:[#allocation12 + $0x10c] sm:$0xf]  ;;  %v8255_v61 = vld [vmem:[#allocation12 + $0x118] sm:$0xf0] }
0x101e   :  { %5578 = vmatpush.bf16.msrb.mxu3 %v8322_v34  ;;  %5549 = vmatpush.bf16.msrb.mxu2 %v8194_v2  ;;  %v8258_v34 = vor.u32 %v8844_v33, %v8255_v61  ;;  %v8904_v2 = vld [vmem:[#allocation13 + $0xec] sm:$0xf]  ;;  %v8898_v61 = vld [vmem:[#allocation13 + $0xb4] sm:$0xf0] }
0x101f   :  { %5380 = vmatmul.bf16.vlgmr.msra.gmra.mxu0 %v13339_v13  ;;  %5409 = vmatmul.bf16.vlgmr.msra.gmra.mxu1 %v13340_v51  ;;  %v12326_v31 = vor.u32 %v8904_v2, %v8495_v6  ;;  %v8888_v2 = vld [vmem:[#allocation13 + $0x6c] sm:$0xf]  ;;  %v8431_v6 = vld [vmem:[#allocation13 + $0x78] sm:$0xf0] }
0x1020   :  { %5438 = vmatmul.bf16.vlgmr.msra.gmra.mxu2 %v13339_v13  ;;  %5467 = vmatmul.bf16.vlgmr.msra.gmra.mxu3 %v13340_v51 }
0x1021   :  { %5492 = vmatpush.bf16.msrb.mxu0 %v8174_v44  ;;  %5521 = vmatpush.bf16.msrb.mxu1 %v8302_v30  ;;  %v8485_v44 = vld [vmem:[#allocation13 + $0xe0] sm:$0xf]  ;;  %v8487_v30 = vld [vmem:[#allocation13 + $0xf0] sm:$0xf0] }
0x1022   :  { %5579 = vmatpush.bf16.msrb.mxu3 %v8306_v52  ;;  %5550 = vmatpush.bf16.msrb.mxu2 %v8178_v20  ;;  %v12322_v46 = vor.u32 %v8905_v49, %v8485_v44  ;;  %v12324_v36 = vor.u32 %v8903_v32, %v8487_v30  ;;  %v8469_v52 = vld [vmem:[#allocation13 + $0xc0] sm:$0xf]  ;;  %v8493_v20 = vld [vmem:[#allocation13 + $0xe8] sm:$0xf]  ;;  %v8889_v44 = vld [vmem:[#allocation13 + $0x6c] sm:$0xf0] }
0x1023   :  { %v12329_v58 = vor.u32 %v8901_v39, %v8469_v52  ;;  %v8887_v49 = vld [vmem:[#allocation13 + $0x64] sm:$0xf]  ;;  %v8423_v30 = vld [vmem:[#allocation13 + $0x70] sm:$0xf0]  ;;  %v12379_v39 = vor.u32 %v8888_v2, %v8431_v6  ;;  %v8373_v2 = vld [vmem:[#allocation13] sm:$0xf] }
0x1024   :  { %v12377_v52 = vor.u32 %v8887_v49, %v8423_v30  ;;  %v8882_v49 = vld [vmem:[#allocation13 + $0x34] sm:$0xf0]  ;;  %v8877_v6 = vld [vmem:[#allocation13 + $0xc] sm:$0xf0] }
0x1025   :  { %5493 = vmatpush.bf16.msrb.mxu0 %v8158_v56  ;;  %5522 = vmatpush.bf16.msrb.mxu1 %v8286_v47  ;;  %v8471_v56 = vld [vmem:[#allocation13 + $0xd0] sm:$0xf0]  ;;  %v8900_v47 = vld [vmem:[#allocation13 + $0xcc] sm:$0xf] }
0x1026   :  { %5580 = vmatpush.bf16.msrb.mxu3 %v8290_v28  ;;  %5551 = vmatpush.bf16.msrb.mxu2 %v8162_v40  ;;  %v12333_v60 = vor.u32 %v8899_v35, %v8471_v56  ;;  %v12335_v25 = vor.u32 %v8900_v47, %v8479_v29  ;;  %v12337_v28 = vor.u32 %v8906_v5, %v8493_v20  ;;  %v8463_v40 = vld [vmem:[#allocation13 + $0xb8] sm:$0xf0]  ;;  %v8445_v35 = vld [vmem:[#allocation13 + $0x88] sm:$0xf]  ;;  %v8894_v56 = vld [vmem:[#allocation13 + $0x94] sm:$0xf0] }
0x1027   :  { %v8405_v47 = vld [vmem:[#allocation13 + $0x40] sm:$0xf]  ;;  %v8883_v29 = vld [vmem:[#allocation13 + $0x44] sm:$0xf]  ;;  %v8407_v20 = vld [vmem:[#allocation13 + $0x50] sm:$0xf0] }
0x1029   :  { %5494 = vmatpush.bf16.msrb.mxu0 %v8142_v24  ;;  %5523 = vmatpush.bf16.msrb.mxu1 %v8270_v17  ;;  %v8897_v24 = vld [vmem:[#allocation13 + $0xac] sm:$0xf0]  ;;  %v8896_v17 = vld [vmem:[#allocation13 + $0xac] sm:$0xf] }
0x102a   :  { %5581 = vmatpush.bf16.msrb.mxu3 %v8274_v7  ;;  %5552 = vmatpush.bf16.msrb.mxu2 %v8146_v4  ;;  %v12347_v0 = vor.u32 %v8897_v24, %v8453_v26  ;;  %v12351_v41 = vor.u32 %v8896_v17, %v8463_v40  ;;  %v8902_v7 = vld [vmem:[#allocation13 + $0xd4] sm:$0xf0]  ;;  %v8447_v4 = vld [vmem:[#allocation13 + $0x98] sm:$0xf0]  ;;  %v12388_v26 = vor.u32 %v8883_v29, %v8407_v20  ;;  %v8429_v24 = vld [vmem:[#allocation13 + $0x68] sm:$0xf] }
0x102b   :  { %v12354_v12 = vor.u32 %v8902_v7, %v8477_v8  ;;  %v12363_v33 = vor.u32 %v8892_v3, %v8447_v4  ;;  %v12395_v19 = vor.u32 %v8890_v14, %v8429_v24  ;;  %v8884_v17 = vld [vmem:[#allocation13 + $0x4c] sm:$0xf]  ;;  %v8415_v40 = vld [vmem:[#allocation13 + $0x58] sm:$0xf0]  ;;  %v8413_v8 = vld [vmem:[#allocation13 + $0x48] sm:$0xf] }
0x102c   :  { %v12400_v7 = vor.u32 %v8884_v17, %v8415_v40  ;;  %v12402_v55 = vor.u32 %v8886_v59, %v8413_v8  ;;  %v8879_v3 = vld [vmem:[#allocation13 + $0x24] sm:$0xf]  ;;  %v8880_v4 = vld [vmem:[#allocation13 + $0x2c] sm:$0xf]  ;;  %v8878_v20 = vld [vmem:[#allocation13 + $0x14] sm:$0xf0] }
0x102d   :  { %5495 = vmatpush.bf16.msrb.mxu0 %v8126_v50  ;;  %5524 = vmatpush.bf16.msrb.mxu1 %v8254_v11  ;;  %v8891_v50 = vld [vmem:[#allocation13 + $0x84] sm:$0xf]  ;;  %v8439_v11 = vld [vmem:[#allocation13 + $0x90] sm:$0xf0]  ;;  %v8876_v24 = vld [vmem:[#allocation13 + $0xc] sm:$0xf] }
0x102e   :  { %5582 = vmatpush.bf16.msrb.mxu3 %v8258_v34  ;;  %5553 = vmatpush.bf16.msrb.mxu2 %v8130_v62  ;;  %v12360_v57 = vor.u32 %v8891_v50, %v8439_v11  ;;  %v12365_v34 = vor.u32 %v8898_v61, %v8461_v1  ;;  %v8421_v62 = vld [vmem:[#allocation13 + $0x60] sm:$0xf]  ;;  %v8881_v11 = vld [vmem:[#allocation13 + $0x2c] sm:$0xf0]  ;;  %v8399_v1 = vld [vmem:[#allocation13 + $0x38] sm:$0xf0] }
0x102f   :  { %5385 = vmatmul.bf16.gmra.mxu0 %v13341_v10  ;;  %5414 = vmatmul.bf16.gmra.mxu1 %v13342_v9  ;;  %v12375_v32 = vor.u32 %v8889_v44, %v8421_v62  ;;  %v8389_v50 = vld [vmem:[#allocation13 + $0x20] sm:$0xf]  ;;  %v12410_v62 = vor.u32 %v8880_v4, %v8399_v1  ;;  %v8397_v44 = vld [vmem:[#allocation13 + $0x28] sm:$0xf]  ;;  %v8383_v17 = vld [vmem:[#allocation13 + $0x18] sm:$0xf0] }
0x1030   :  { %5443 = vmatmul.bf16.gmra.mxu2 %v13341_v10  ;;  %5472 = vmatmul.bf16.gmra.mxu3 %v13342_v9  ;;  %v12413_v30 = vor.u32 %v8882_v49, %v8397_v44  ;;  %v12426_v40 = vor.u32 %v8876_v24, %v8383_v17  ;;  %v13348_v8 = vld [vmem:[#allocation44_spill] sm:$0xff]  ;;  %v13354_v24 = vld [vmem:[#allocation66_spill] sm:$0xff] }
0x1031   :  { %5832 = vmatpush.bf16.msra.mxu0 %v12322_v46  ;;  %5845 = vmatpush.bf16.msra.mxu1 %v12324_v36  ;;  %v3601_v59 = vadd.f32 %v13348_v8, %v11621_v21 }
0x1032   :  { %5871 = vmatpush.bf16.msra.mxu3 %v12326_v31  ;;  %5858 = vmatpush.bf16.msra.mxu2 %v12337_v28 }
0x1035   :  { %5833 = vmatpush.bf16.msra.mxu0 %v12329_v58  ;;  %5846 = vmatpush.bf16.msra.mxu1 %v12333_v60 }
0x1036   :  { %5872 = vmatpush.bf16.msra.mxu3 %v12335_v25  ;;  %5859 = vmatpush.bf16.msra.mxu2 %v12354_v12 }
0x1039   :  { %5834 = vmatpush.bf16.msra.mxu0 %v12347_v0  ;;  %5847 = vmatpush.bf16.msra.mxu1 %v12349_v63 }
0x103a   :  { %5873 = vmatpush.bf16.msra.mxu3 %v12351_v41  ;;  %5860 = vmatpush.bf16.msra.mxu2 %v12365_v34 }
0x103d   :  { %5835 = vmatpush.bf16.msra.mxu0 %v12358_v16  ;;  %5848 = vmatpush.bf16.msra.mxu1 %v12360_v57 }
0x103e   :  { %5874 = vmatpush.bf16.msra.mxu3 %v12363_v33 }
0x103f   :  { %5390 = vmatmul.bf16.gmra.mxu0 %v13343_v54  ;;  %5419 = vmatmul.bf16.gmra.mxu1 %v13344_v43 }
0x1040   :  { %5448 = vmatmul.bf16.gmra.mxu2 %v13343_v54  ;;  %5477 = vmatmul.bf16.gmra.mxu3 %v13344_v43 }
0x1041   :  { %5836 = vmatpush.bf16.msra.mxu0 %v12375_v32  ;;  %5849 = vmatpush.bf16.msra.mxu1 %v12377_v52 }
0x1042   :  { %5875 = vmatpush.bf16.msra.mxu3 %v12379_v39 }
0x1045   :  { %5850 = vmatpush.bf16.msra.mxu1 %v12388_v26 }
0x1046   :  { %5876 = vmatpush.bf16.msra.mxu3 %v12400_v7 }
0x104a   :  { %5877 = vmatpush.bf16.msra.mxu3 %v12410_v62 }
0x104e   :  { %5878 = vmatpush.bf16.msra.mxu3 %v12426_v40 }
0x104f   :  { %5395 = vmatmul.bf16.gmra.mxu0 %v13345_v18  ;;  %5424 = vmatmul.bf16.gmra.mxu1 %v13346_v22 }
0x1050   :  { %5453 = vmatmul.bf16.gmra.mxu2 %v13345_v18  ;;  %5482 = vmatmul.bf16.gmra.mxu3 %v13346_v22 }
0x105f   :  { %5496 = vmatmul.bf16.vlgmr.msrb.gmra.mxu0 %v13339_v13  ;;  %5525 = vmatmul.bf16.vlgmr.msrb.gmra.mxu1 %v13340_v51 }
0x1060   :  { %5554 = vmatmul.bf16.vlgmr.msrb.gmra.mxu2 %v13339_v13  ;;  %5583 = vmatmul.bf16.vlgmr.msrb.gmra.mxu3 %v13340_v51  ;;  %v12382_v13 = vor.u32 %v8894_v56, %v8445_v35  ;;  %v8885_v51 = vld [vmem:[#allocation13 + $0x4c] sm:$0xf0]  ;;  %v8875_v35 = vld [vmem:[#allocation13 + $0x4] sm:$0xf]  ;;  %v12417_v56 = vor.u32 %v8877_v6, %v8373_v2  ;;  %v13351_v2 = vld [vmem:[#allocation49_spill] sm:$0xff] }
0x1061   :  { %v12386_v5 = vor.u32 %v8885_v51, %v8405_v47  ;;  %v8375_v47 = vld [vmem:[#allocation13 + $0x10] sm:$0xf0]  ;;  %v8381_v51 = vld [vmem:[#allocation13 + $0x8] sm:$0xf]  ;;  %5996 = vmatpush.bf16.msrb.mxu3 %v12326_v31  ;;  %v3659_v6 = vadd.f32 %v13351_v2, %v13314_v42 }
0x1062   :  { %5861 = vmatpush.bf16.msra.mxu2 %v12382_v13  ;;  %v12420_v29 = vor.u32 %v8875_v35, %v8375_v47  ;;  %v12423_v14 = vor.u32 %v8878_v20, %v8381_v51  ;;  %v13352_v35 = vld [vmem:[#allocation28_spill] sm:$0xff]  ;;  %v13353_v51 = vld [vmem:[#allocation65_spill] sm:$0xff] }
0x1063   :  { %5837 = vmatpush.bf16.msra.mxu0 %v12386_v5  ;;  %v3717_v47 = vadd.f32 %v13352_v35, %v11811_v37  ;;  %v3688_v20 = vadd.f32 %v13353_v51, %v3659_v6 }
0x1065   :  { %5997 = vmatpush.bf16.msrb.mxu3 %v12335_v25  ;;  %v3746_v17 = vadd.f32 %v13354_v24, %v3717_v47  ;;  %v13356_v47 = vmov 0  }
0x1066   :  { %5862 = vmatpush.bf16.msra.mxu2 %v12395_v19 }
0x1069   :  { %5998 = vmatpush.bf16.msrb.mxu3 %v12351_v41 }
0x106a   :  { %5863 = vmatpush.bf16.msra.mxu2 %v12402_v55 }
0x106d   :  { %5999 = vmatpush.bf16.msrb.mxu3 %v12363_v33 }
0x106e   :  { %5864 = vmatpush.bf16.msra.mxu2 %v12413_v30 }
0x106f   :  { %5501 = vmatmul.bf16.gmra.mxu0 %v13341_v10  ;;  %5530 = vmatmul.bf16.gmra.mxu1 %v13342_v9 }
0x1070   :  { %5559 = vmatmul.bf16.gmra.mxu2 %v13341_v10  ;;  %5588 = vmatmul.bf16.gmra.mxu3 %v13342_v9  ;;  %v12406_v10 = vor.u32 %v8881_v11, %v8389_v50  ;;  %v8391_v9 = vld [vmem:[#allocation13 + $0x30] sm:$0xf0]  ;;  %v13349_v50 = vld [vmem:[#allocation56_spill] sm:$0xff] }
0x1071   :  { %v12408_v61 = vor.u32 %v8879_v3, %v8391_v9  ;;  %v13350_v3 = vld [vmem:[#allocation57_spill] sm:$0xff]  ;;  %6000 = vmatpush.bf16.msrb.mxu3 %v12379_v39 }
0x1072   :  { %5838 = vmatpush.bf16.msra.mxu0 %v12406_v10  ;;  %5865 = vmatpush.bf16.msra.mxu2 %v12423_v14  ;;  %v3630_v9 = vadd.f32 %v13350_v3, %v3601_v59  ;;  %v12474_v59 = vld [vmem:[%s13036_s12] sm:$0xf] }
0x1073   :  { %5851 = vmatpush.bf16.msra.mxu1 %v12408_v61 }
0x1075   :  { %6001 = vmatpush.bf16.msrb.mxu3 %v12400_v7 }
0x1076   :  { %5839 = vmatpush.bf16.msra.mxu0 %v12417_v56  ;;  %5983 = vmatpush.bf16.msrb.mxu2 %v12337_v28 }
0x1077   :  { %5852 = vmatpush.bf16.msra.mxu1 %v12420_v29 }
0x1079   :  { %6002 = vmatpush.bf16.msrb.mxu3 %v12410_v62 }
0x107a   :  { %5957 = vmatpush.bf16.msrb.mxu0 %v12322_v46  ;;  %5984 = vmatpush.bf16.msrb.mxu2 %v12354_v12 }
0x107b   :  { %5970 = vmatpush.bf16.msrb.mxu1 %v12324_v36 }
0x107d   :  { %6003 = vmatpush.bf16.msrb.mxu3 %v12426_v40 }
0x107e   :  { %5958 = vmatpush.bf16.msrb.mxu0 %v12329_v58  ;;  %5985 = vmatpush.bf16.msrb.mxu2 %v12365_v34 }
0x107f   :  { %5506 = vmatmul.bf16.gmra.mxu0 %v13343_v54  ;;  %5535 = vmatmul.bf16.gmra.mxu1 %v13344_v43 }
0x1080   :  { %5564 = vmatmul.bf16.gmra.mxu2 %v13343_v54  ;;  %5593 = vmatmul.bf16.gmra.mxu3 %v13344_v43  ;;  %v13347_v54 = vld [vmem:[#allocation21_spill] sm:$0xff] }
0x1081   :  { %5971 = vmatpush.bf16.msrb.mxu1 %v12333_v60  ;;  %v3543_v43 = vadd.f32 %v13347_v54, %v11588_v48 }
0x1082   :  { %5959 = vmatpush.bf16.msrb.mxu0 %v12347_v0  ;;  %5986 = vmatpush.bf16.msrb.mxu2 %v12382_v13 }
0x1083   :  { %v3572_v11 = vadd.f32 %v13349_v50, %v3543_v43 }
0x1085   :  { %5972 = vmatpush.bf16.msrb.mxu1 %v12349_v63 }
0x1086   :  { %5960 = vmatpush.bf16.msrb.mxu0 %v12358_v16  ;;  %5987 = vmatpush.bf16.msrb.mxu2 %v12395_v19 }
0x1089   :  { %5973 = vmatpush.bf16.msrb.mxu1 %v12360_v57 }
0x108a   :  { %5961 = vmatpush.bf16.msrb.mxu0 %v12375_v32  ;;  %5988 = vmatpush.bf16.msrb.mxu2 %v12402_v55 }
0x108c   :  { %v4866_v4 = vpop.f32.mrf.mxu0  ;;  %v4879_v1 = vpop.f32.mrf.mxu1 }
0x108d   :  { %v4909_v44 = vadd.f32 %v4866_v4, %v3572_v11  ;;  %v4910_v49 = vadd.f32 %v4879_v1, %v3630_v9  ;;  %5974 = vmatpush.bf16.msrb.mxu1 %v12377_v52  ;;  %v12483_v4 = vperm.slane %v12474_v59, 0 }
0x108e   :  { %5962 = vmatpush.bf16.msrb.mxu0 %v12386_v5  ;;  %5989 = vmatpush.bf16.msrb.mxu2 %v12413_v30 }
0x108f   :  { %v8112_v48 = vmul.f32 -1.442695, %v4909_v44  ;;  %v8113_v21 = vmul.f32 -1.442695, %v4910_v49  ;;  %5511 = vmatmul.bf16.gmra.mxu0 %v13345_v18  ;;  %5540 = vmatmul.bf16.gmra.mxu1 %v13346_v22 }
0x1090   :  { %5569 = vmatmul.bf16.gmra.mxu2 %v13345_v18  ;;  %5598 = vmatmul.bf16.gmra.mxu3 %v13346_v22 }
0x1091   :  { %9313 = vpow2.f32 %v8112_v48  ;;  %5975 = vmatpush.bf16.msrb.mxu1 %v12388_v26 }
0x1092   :  { %9315 = vpow2.f32 %v8113_v21  ;;  %5963 = vmatpush.bf16.msrb.mxu0 %v12406_v10  ;;  %5990 = vmatpush.bf16.msrb.mxu2 %v12423_v14 }
0x1093   :  { %v4892_v42 = vpop.f32.mrf.mxu2  ;;  %v4905_v37 = vpop.f32.mrf.mxu3 }
0x1094   :  { %v4911_v54 = vadd.f32 %v4892_v42, %v3688_v20  ;;  %v4912_v18 = vadd.f32 %v4905_v37, %v3746_v17  ;;  %v4868_v43 = vpop.f32.mrf.mxu0  ;;  %v4881_v22 = vpop.f32.mrf.mxu1  ;;  %v12505_v20 = vperm.slane %v12474_v59, 1 }
0x1095   :  { %5976 = vmatpush.bf16.msrb.mxu1 %v12408_v61 }
0x1096   :  { %v8114_v8 = vmul.f32 -1.442695, %v4912_v18  ;;  %5964 = vmatpush.bf16.msrb.mxu0 %v12417_v56  ;;  %13357 = vst [vmem:[#allocation53_spill] sm:$0xff] %v12505_v20 }
0x1097   :  { %v9314_v50 = vpop.eup %9313 }
0x1098   :  { %v9316_v11 = vpop.eup %9315  ;;  %v12478_v3 = vadd.f32 1.0, %v9314_v50  ;;  %9317 = vpow2.f32 %v8114_v8 }
0x1099   :  { %v12480_v9 = vadd.f32 1.0, %v9316_v11  ;;  %5977 = vmatpush.bf16.msrb.mxu1 %v12420_v29 }
0x109a   :  { %9319 = vrcp.f32 %v12478_v3  ;;  %v4928_v8 = vand.u32 2147483648, %v12478_v3  ;;  %vm4922_vm11 = vweird.f32 %v12478_v3 }
0x109b   :  { %9321 = vrcp.f32 %v12480_v9  ;;  %v4894_v1 = vpop.f32.mrf.mxu2  ;;  %v4907_v44 = vpop.f32.mrf.mxu3  ;;  %vm4941_vm12 = vweird.f32 %v12480_v9 }
0x109c   :  { %v5381_v49 = vpop.f32.mrf.mxu0  ;;  %v5410_v48 = vpop.f32.mrf.mxu1  ;;  %v4947_v44 = vand.u32 2147483648, %v12480_v9 }
0x109d   :  { %v5382_v21 = vadd.f32 %v5381_v49, %v12483_v4 }
0x109e   :  { %v9318_v2 = vpop.eup %9317 }
0x109f   :  { %v12496_v6 = vadd.f32 1.0, %v9318_v2  ;;  %v12498_v35 = vadd.f32 %v5410_v48, %v5382_v21  ;;  %5840 = vmatmul.bf16.vlgmr.msra.gmra.mxu0 %v13356_v47  ;;  %5853 = vmatmul.bf16.vlgmr.msra.gmra.mxu1 %v13356_v47  ;;  %v4926_v48 = vand.u32 2147483647, %v12478_v3  ;;  %v4945_v2 = vand.u32 2147483647, %v12480_v9 }
0x10a0   :  { %v9320_v51 = vpop.eup %9319  ;;  %5866 = vmatmul.bf16.vlgmr.msra.gmra.mxu2 %v13356_v47  ;;  %5879 = vmatmul.bf16.vlgmr.msra.gmra.mxu3 %v13356_v47 }
0x10a1   :  { %13355 = vst [vmem:[#allocation29_spill] sm:$0xff] %v12498_v35  ;;  %v9322_v24 = vpop.eup %9321  ;;  %v4918_v17 = vmul.f32 %v9320_v51, %v12478_v3  ;;  %9323 = vrcp.f32 %v12496_v6  ;;  %6082 = vmatpush.bf16.msra.mxu0 %v12322_v46  ;;  %6095 = vmatpush.bf16.msra.mxu1 %v12324_v36  ;;  %vm4923_vm0 = vweird.f32 %v9320_v51  ;;  %vm4927_vm15 = vcmp.eq.f32.partialorder %v4926_v48, 8.507059e+37 }
0x10a2   :  { %v4937_v42 = vmul.f32 %v9322_v24, %v12480_v9  ;;  %6108 = vmatpush.bf16.msra.mxu2 %v12337_v28  ;;  %6121 = vmatpush.bf16.msra.mxu3 %v12326_v31  ;;  %9325 = vtanh.f32 %v4911_v54  ;;  %vm4942_vm10 = vweird.f32 %v9322_v24  ;;  %vm4924_vm13 = vmor %vm4922_vm11, %vm4923_vm0  ;;  %vm4946_vm1 = vcmp.eq.f32.partialorder %v4945_v2, 8.507059e+37 }
0x10a3   :  { %v4919_v37 = vsub.f32 1.0, %v4918_v17  ;;  %v5439_v18 = vpop.f32.mrf.mxu2  ;;  %v5468_v43 = vpop.f32.mrf.mxu3  ;;  %vm4943_vm14 = vmor %vm4941_vm12, %vm4942_vm10  ;;  %vm4961_vm3 = vweird.f32 %v12496_v6 }
0x10a4   :  { %v4938_v22 = vsub.f32 1.0, %v4937_v42  ;;  %v5440_v50 = vadd.f32 %v5439_v18, %v12505_v20  ;;  %v12517_v11 = vpop.f32.mrf.mxu0  ;;  %v12519_v1 = vpop.f32.mrf.mxu1  ;;  %v4929_v42 = vor.u32 1.1754944e-38, %v4928_v8 }
0x10a5   :  { %13358 = vst [vmem:[#allocation47_spill] sm:$0xff] %v12517_v11  ;;  %v4920_v49 = vmul.f32 %v9320_v51, %v4919_v37  ;;  %6083 = vmatpush.bf16.msra.mxu0 %v12329_v58  ;;  %6096 = vmatpush.bf16.msra.mxu1 %v12333_v60 }
0x10a6   :  { %13359 = vst [vmem:[#allocation27_spill] sm:$0xff] %v12519_v1  ;;  %v4939_v21 = vmul.f32 %v9322_v24, %v4938_v22  ;;  %v12525_v47 = vadd.f32 %v5468_v43, %v5440_v50  ;;  %6109 = vmatpush.bf16.msra.mxu2 %v12354_v12  ;;  %6122 = vmatpush.bf16.msra.mxu3 %v12335_v25  ;;  %v4948_v43 = vor.u32 1.1754944e-38, %v4947_v44 }
0x10a7   :  { %v12529_v54 = vpop.eup %9323  ;;  %v4921_v17 = vadd.f32 %v9320_v51, %v4920_v49 }
0x10a8   :  { %13360 = vst [vmem:[#allocation22_spill] sm:$0xff] %v12525_v47  ;;  %v4940_v37 = vadd.f32 %v9322_v24, %v4939_v21  ;;  %v4957_v18 = vmul.f32 %v12529_v54, %v12496_v6  ;;  %v9326_v50 = vpop.eup %9325  ;;  %vm4962_vm2 = vweird.f32 %v12529_v54 }
0x10a9   :  { %v4925_v22 = vsel %vm4924_vm13, %v9320_v51, %v4921_v17  ;;  %6084 = vmatpush.bf16.msra.mxu0 %v12347_v0  ;;  %6097 = vmatpush.bf16.msra.mxu1 %v12349_v63  ;;  %vm12561_vm4 = vmor %vm4961_vm3, %vm4962_vm2 }
0x10aa   :  { %v4930_v49 = vsel %vm4927_vm15, %v4929_v42, %v4925_v22  ;;  %v4944_v15 = vsel %vm4943_vm14, %v9322_v24, %v4940_v37  ;;  %v4958_v3 = vsub.f32 1.0, %v4957_v18  ;;  %6110 = vmatpush.bf16.msra.mxu2 %v12365_v34  ;;  %6123 = vmatpush.bf16.msra.mxu3 %v12351_v41  ;;  %v4965_v37 = vand.u32 2147483647, %v12496_v6 }
0x10ab   :  { %v4949_v9 = vsel %vm4946_vm1, %v4948_v43, %v4944_v15  ;;  %v4972_v8 = vmul.f32 %v9326_v50, %v4930_v49  ;;  %v12539_v21 = vpop.f32.mrf.mxu2  ;;  %v12541_v47 = vpop.f32.mrf.mxu3 }
0x10ac   :  { %13361 = vst [vmem:[#allocation36_spill] sm:$0xff] %v12539_v21  ;;  %v4971_v51 = vmul.f32 %v4949_v9, %v12300_v23  ;;  %v5386_v44 = vpop.f32.mrf.mxu0  ;;  %v5415_v48 = vpop.f32.mrf.mxu1  ;;  %v4959_v24 = vmul.f32 %v12529_v54, %v4958_v3  ;;  %v4967_v23 = vand.u32 2147483648, %v12496_v6  ;;  %vm4966_vm5 = vcmp.eq.f32.partialorder %v4965_v37, 8.507059e+37 }
0x10ad   :  { %13362 = vst [vmem:[#allocation45_spill] sm:$0xff] %v12541_v47  ;;  %v5387_v2 = vadd.f32 %v5386_v44, %v12483_v4  ;;  %6085 = vmatpush.bf16.msra.mxu0 %v12358_v16  ;;  %6098 = vmatpush.bf16.msra.mxu1 %v12360_v57 }
0x10ae   :  { %v4973_v17 = vadd.f32 %v4972_v8, %v4971_v51  ;;  %6111 = vmatpush.bf16.msra.mxu2 %v12382_v13  ;;  %6124 = vmatpush.bf16.msra.mxu3 %v12363_v33  ;;  %v4960_v42 = vadd.f32 %v12529_v54, %v4959_v24  ;;  %v4968_v9 = vor.u32 1.1754944e-38, %v4967_v23 }
0x10af   :  { %v12550_v15 = vadd.f32 %v5415_v48, %v5387_v2 }
0x10b0   :  { %9327 = vtanh.f32 %v4973_v17  ;;  %v4964_v50 = vsel %vm12561_vm4, %v12529_v54, %v4960_v42 }
0x10b1   :  { %13363 = vst [vmem:[#allocation35_spill] sm:$0xff] %v12550_v15  ;;  %6086 = vmatpush.bf16.msra.mxu0 %v12375_v32  ;;  %6099 = vmatpush.bf16.msra.mxu1 %v12377_v52  ;;  %v4969_v44 = vsel %vm4966_vm5, %v4968_v9, %v4964_v50 }
0x10b2   :  { %6112 = vmatpush.bf16.msra.mxu2 %v12395_v19  ;;  %6125 = vmatpush.bf16.msra.mxu3 %v12379_v39 }
0x10b3   :  { %v5444_v43 = vpop.f32.mrf.mxu2  ;;  %v5473_v22 = vpop.f32.mrf.mxu3 }
0x10b4   :  { %v5445_v49 = vadd.f32 %v5444_v43, %v12505_v20  ;;  %v12570_v3 = vpop.f32.mrf.mxu0  ;;  %v12572_v6 = vpop.f32.mrf.mxu1 }
0x10b5   :  { %13366 = vst [vmem:[#allocation58_spill] sm:$0xff] %v12570_v3  ;;  %6087 = vmatpush.bf16.msra.mxu0 %v12386_v5  ;;  %6100 = vmatpush.bf16.msra.mxu1 %v12388_v26 }
0x10b6   :  { %13367 = vst [vmem:[#allocation32_spill] sm:$0xff] %v12572_v6  ;;  %v9328_v8 = vpop.eup %9327  ;;  %v12575_v51 = vadd.f32 %v5473_v22, %v5445_v49  ;;  %6113 = vmatpush.bf16.msra.mxu2 %v12402_v55  ;;  %6126 = vmatpush.bf16.msra.mxu3 %v12400_v7 }
0x10b7   :  { %v12580_v54 = vmul.f32 %v9328_v8, %v4969_v44 }
0x10b8   :  { %13368 = vst [vmem:[#allocation31_spill] sm:$0xff] %v12575_v51 }
0x10b9   :  { %13369 = vst [vmem:[#allocation60_spill] sm:$0xff] %v12580_v54  ;;  %6088 = vmatpush.bf16.msra.mxu0 %v12406_v10  ;;  %6101 = vmatpush.bf16.msra.mxu1 %v12408_v61 }
0x10ba   :  { %6114 = vmatpush.bf16.msra.mxu2 %v12413_v30  ;;  %6127 = vmatpush.bf16.msra.mxu3 %v12410_v62 }
0x10bb   :  { %v12585_v48 = vpop.f32.mrf.mxu2  ;;  %v12587_v24 = vpop.f32.mrf.mxu3 }
0x10bc   :  { %13370 = vst [vmem:[#allocation59_spill] sm:$0xff] %v12585_v48  ;;  %v5391_v2 = vpop.f32.mrf.mxu0  ;;  %v5420_v17 = vpop.f32.mrf.mxu1 }
0x10bd   :  { %13371 = vst [vmem:[#allocation48_spill] sm:$0xff] %v12587_v24  ;;  %v5392_v42 = vadd.f32 %v5391_v2, %v12483_v4  ;;  %6089 = vmatpush.bf16.msra.mxu0 %v12417_v56  ;;  %6102 = vmatpush.bf16.msra.mxu1 %v12420_v29 }
0x10be   :  { %6115 = vmatpush.bf16.msra.mxu2 %v12423_v14  ;;  %6128 = vmatpush.bf16.msra.mxu3 %v12426_v40 }
0x10bf   :  { %v12594_v23 = vadd.f32 %v5420_v17, %v5392_v42 }
0x10c1   :  { %13372 = vst [vmem:[#allocation20_spill] sm:$0xff] %v12594_v23 }
0x10c3   :  { %v5449_v37 = vpop.f32.mrf.mxu2  ;;  %v5478_v18 = vpop.f32.mrf.mxu3 }
0x10c4   :  { %v5450_v43 = vadd.f32 %v5449_v37, %v12505_v20  ;;  %v12598_v22 = vpop.f32.mrf.mxu0  ;;  %v12600_v50 = vpop.f32.mrf.mxu1 }
0x10c5   :  { %13373 = vst [vmem:[#allocation37_spill] sm:$0xff] %v12600_v50 }
0x10c6   :  { %v12602_v49 = vadd.f32 %v5478_v18, %v5450_v43  ;;  %v12619_v43 = vperm.slane %v12474_v59, 2 }
0x10c8   :  { %13374 = vst [vmem:[#allocation38_spill] sm:$0xff] %v12602_v49 }
0x10c9   :  { %13377 = vst [vmem:[#allocation40_spill] sm:$0xff] %v12619_v43 }
0x10cb   :  { %v12604_v9 = vpop.f32.mrf.mxu2  ;;  %v12606_v8 = vpop.f32.mrf.mxu3 }
0x10cc   :  { %13375 = vst [vmem:[#allocation39_spill] sm:$0xff] %v12604_v9  ;;  %v5396_v44 = vpop.f32.mrf.mxu0  ;;  %v5425_v2 = vpop.f32.mrf.mxu1 }
0x10cd   :  { %13376 = vst [vmem:[#allocation62_spill] sm:$0xff] %v12606_v8  ;;  %v5397_v17 = vadd.f32 %v5396_v44, %v12483_v4 }
0x10cf   :  { %v12609_v42 = vadd.f32 %v5425_v2, %v5397_v17  ;;  %v12625_v17 = vperm.slane %v12474_v59, 3 }
0x10d3   :  { %v5454_v35 = vpop.f32.mrf.mxu2  ;;  %v5483_v47 = vpop.f32.mrf.mxu3 }
0x10d4   :  { %v5455_v37 = vadd.f32 %v5454_v35, %v12505_v20  ;;  %v12612_v1 = vpop.f32.mrf.mxu0  ;;  %v12614_v21 = vpop.f32.mrf.mxu1 }
0x10d6   :  { %v12616_v18 = vadd.f32 %v5483_v47, %v5455_v37 }
0x10db   :  { %v5456_v11 = vpop.f32.mrf.mxu2  ;;  %v5485_v54 = vpop.f32.mrf.mxu3 }
0x10dc   :  { %v5497_v53 = vpop.f32.mrf.mxu0  ;;  %v5526_v51 = vpop.f32.mrf.mxu1 }
0x10dd   :  { %v5498_v44 = vadd.f32 %v5497_v53, %v12619_v43 }
0x10df   :  { %v12622_v2 = vadd.f32 %v5526_v51, %v5498_v44 }
0x10e1   :  { %13378 = vst [vmem:[#allocation61_spill] sm:$0xff] %v12622_v2 }
0x10e3   :  { %v5555_v35 = vpop.f32.mrf.mxu2  ;;  %v5584_v15 = vpop.f32.mrf.mxu3 }
0x10e4   :  { %v5556_v45 = vadd.f32 %v5555_v35, %v12625_v17  ;;  %v12628_v47 = vpop.f32.mrf.mxu0  ;;  %v12630_v37 = vpop.f32.mrf.mxu1 }
0x10e5   :  { %13379 = vst [vmem:[#allocation55_spill] sm:$0xff] %v12628_v47 }
0x10e6   :  { %13380 = vst [vmem:[#allocation54_spill] sm:$0xff] %v12630_v37  ;;  %v12632_v24 = vadd.f32 %v5584_v15, %v5556_v45 }
0x10e8   :  { %13381 = vst [vmem:[#allocation64_spill] sm:$0xff] %v12632_v24 }
0x10eb   :  { %v5557_v6 = vpop.f32.mrf.mxu2  ;;  %v5586_v48 = vpop.f32.mrf.mxu3 }
0x10ec   :  { %v5558_v3 = vadd.f32 %v5557_v6, %v12625_v17  ;;  %v5502_v53 = vpop.f32.mrf.mxu0  ;;  %v5531_v51 = vpop.f32.mrf.mxu1 }
0x10ed   :  { %v5503_v44 = vadd.f32 %v5502_v53, %v12619_v43 }
0x10ee   :  { %v12636_v59 = vadd.f32 %v5586_v48, %v5558_v3 }
0x10ef   :  { %v12638_v2 = vadd.f32 %v5531_v51, %v5503_v44 }
0x10f0   :  { %13382 = vst [vmem:[#allocation63_spill] sm:$0xff] %v12636_v59 }
0x10f1   :  { %13383 = vst [vmem:[#allocation30_spill] sm:$0xff] %v12638_v2 }
0x10f3   :  { %v5560_v27 = vpop.f32.mrf.mxu2  ;;  %v5589_v35 = vpop.f32.mrf.mxu3 }
0x10f4   :  { %v5561_v47 = vadd.f32 %v5560_v27, %v12625_v17  ;;  %v5504_v38 = vpop.f32.mrf.mxu0  ;;  %v5533_v37 = vpop.f32.mrf.mxu1 }
0x10f5   :  { %v5505_v45 = vadd.f32 %v5504_v38, %v12619_v43 }
0x10f6   :  { %v12642_v15 = vadd.f32 %v5589_v35, %v5561_v47 }
0x10f7   :  { %v12644_v24 = vadd.f32 %v5533_v37, %v5505_v45 }
0x10f8   :  { %13384 = vst [vmem:[#allocation46_spill] sm:$0xff] %v12642_v15 }
0x10f9   :  { %13385 = vst [vmem:[#allocation51_spill] sm:$0xff] %v12644_v24 }
0x10fb   :  { %v5562_v6 = vpop.f32.mrf.mxu2  ;;  %v5591_v49 = vpop.f32.mrf.mxu3 }
0x10fc   :  { %v5563_v53 = vadd.f32 %v5562_v6, %v12625_v17  ;;  %v5507_v3 = vpop.f32.mrf.mxu0  ;;  %v5536_v48 = vpop.f32.mrf.mxu1 }
0x10fd   :  { %v5508_v51 = vadd.f32 %v5507_v3, %v12619_v43 }
0x10fe   :  { %v12648_v44 = vadd.f32 %v5591_v49, %v5563_v53 }
0x10ff   :  { %v12650_v59 = vadd.f32 %v5536_v48, %v5508_v51 }
0x1100   :  { %13386 = vst [vmem:[#allocation50_spill] sm:$0xff] %v12648_v44 }
0x1101   :  { %13387 = vst [vmem:[#allocation33_spill] sm:$0xff] %v12650_v59 }
0x1103   :  { %v5565_v27 = vpop.f32.mrf.mxu2  ;;  %v5594_v2 = vpop.f32.mrf.mxu3 }
0x1104   :  { %v5566_v38 = vadd.f32 %v5565_v27, %v12625_v17  ;;  %v5509_v47 = vpop.f32.mrf.mxu0  ;;  %v5538_v35 = vpop.f32.mrf.mxu1 }
0x1105   :  { %v5510_v37 = vadd.f32 %v5509_v47, %v12619_v43 }
0x1106   :  { %v12654_v45 = vadd.f32 %v5594_v2, %v5566_v38 }
0x1107   :  { %v12656_v15 = vadd.f32 %v5538_v35, %v5510_v37  ;;  %v5399_v37 = vadd.f32 %v12612_v1, %v12483_v4 }
0x1108   :  { %13388 = vst [vmem:[#allocation23_spill] sm:$0xff] %v12654_v45 }
0x1109   :  { %13389 = vst [vmem:[#allocation52_spill] sm:$0xff] %v12656_v15  ;;  %v5428_v45 = vadd.f32 %v12614_v21, %v5399_v37 }
0x110b   :  { %v5567_v6 = vpop.f32.mrf.mxu2  ;;  %v5596_v24 = vpop.f32.mrf.mxu3 }
0x110c   :  { %v5568_v3 = vadd.f32 %v5567_v6, %v12625_v17  ;;  %v5512_v49 = vpop.f32.mrf.mxu0  ;;  %v5541_v53 = vpop.f32.mrf.mxu1  ;;  %v5457_v6 = vadd.f32 %v5456_v11, %v12505_v20 }
0x110d   :  { %v5513_v48 = vadd.f32 %v5512_v49, %v12619_v43 }
0x110e   :  { %v12660_v51 = vadd.f32 %v5596_v24, %v5568_v3  ;;  %v5486_v49 = vadd.f32 %v5485_v54, %v5457_v6 }
0x110f   :  { %v12662_v44 = vadd.f32 %v5541_v53, %v5513_v48 }
0x1110   :  { %13390 = vst [vmem:[#allocation42_spill] sm:$0xff] %v12660_v51 }
0x1113   :  { %v5570_v27 = vpop.f32.mrf.mxu2  ;;  %v5599_v59 = vpop.f32.mrf.mxu3 }
0x1114   :  { %v5571_v47 = vadd.f32 %v5570_v27, %v12625_v17  ;;  %v5514_v2 = vpop.f32.mrf.mxu0  ;;  %v5543_v38 = vpop.f32.mrf.mxu1 }
0x1116   :  { %v12665_v35 = vadd.f32 %v5599_v59, %v5571_v47 }
0x111b   :  { %v5572_v24 = vpop.f32.mrf.mxu2  ;;  %v5601_v3 = vpop.f32.mrf.mxu3 }
0x111c   :  { %v5841_v53 = vpop.f32.mrf.mxu0  ;;  %v5854_v48 = vpop.f32.mrf.mxu1  ;;  %v5573_v27 = vadd.f32 %v5572_v24, %v12625_v17 }
0x111d   :  { %v5884_v23 = vadd.f32 %v5841_v53, %v5428_v45  ;;  %v5885_v15 = vadd.f32 %v5854_v48, %v5486_v49  ;;  %v5515_v45 = vadd.f32 %v5514_v2, %v12619_v43 }
0x111e   :  { %v5602_v59 = vadd.f32 %v5601_v3, %v5573_v27 }
0x111f   :  { %v8499_v51 = vmul.f32 -1.442695, %v5884_v23  ;;  %v8500_v8 = vmul.f32 -1.442695, %v5885_v15 }
0x1121   :  { %9329 = vpow2.f32 %v8499_v51  ;;  %v5544_v51 = vadd.f32 %v5543_v38, %v5515_v45 }
0x1122   :  { %9331 = vpow2.f32 %v8500_v8 }
0x1123   :  { %v5867_v47 = vpop.f32.mrf.mxu2  ;;  %v5880_v1 = vpop.f32.mrf.mxu3 }
0x1124   :  { %v5887_v50 = vadd.f32 %v5880_v1, %v5602_v59  ;;  %v5843_v11 = vpop.f32.mrf.mxu0  ;;  %v5856_v9 = vpop.f32.mrf.mxu1  ;;  %v5886_v24 = vadd.f32 %v5867_v47, %v5544_v51 }
0x1126   :  { %v8501_v21 = vmul.f32 -1.442695, %v5887_v50 }
0x1127   :  { %v9330_v54 = vpop.eup %9329 }
0x1128   :  { %v9332_v37 = vpop.eup %9331  ;;  %v5891_v6 = vadd.f32 1.0, %v9330_v54  ;;  %9333 = vpow2.f32 %v8501_v21 }
0x1129   :  { %v5910_v20 = vadd.f32 1.0, %v9332_v37 }
0x112a   :  { %9335 = vrcp.f32 %v5891_v6  ;;  %v5903_v27 = vand.u32 2147483648, %v5891_v6  ;;  %v5901_v2 = vand.u32 2147483647, %v5891_v6  ;;  %vm5897_vm8 = vweird.f32 %v5891_v6 }
0x112b   :  { %9337 = vrcp.f32 %v5910_v20  ;;  %v5882_v23 = vpop.f32.mrf.mxu3  ;;  %v5869_v17 = vpop.f32.mrf.mxu2  ;;  %v5922_v59 = vand.u32 2147483648, %v5910_v20  ;;  %v5920_v21 = vand.u32 2147483647, %v5910_v20  ;;  %vm5916_vm9 = vweird.f32 %v5910_v20 }
0x112c   :  { %v5904_v47 = vor.u32 1.1754944e-38, %v5903_v27  ;;  %vm5902_vm10 = vcmp.eq.f32.partialorder %v5901_v2, 8.507059e+37 }
0x112d   :  { %v5923_v23 = vor.u32 1.1754944e-38, %v5922_v59  ;;  %vm5921_vm12 = vcmp.eq.f32.partialorder %v5920_v21, 8.507059e+37 }
0x112e   :  { %v9334_v15 = vpop.eup %9333 }
0x112f   :  { %v5930_v8 = vadd.f32 1.0, %v9334_v15 }
0x1130   :  { %v9336_v49 = vpop.eup %9335 }
0x1131   :  { %v9338_v3 = vpop.eup %9337  ;;  %v5893_v53 = vmul.f32 %v9336_v49, %v5891_v6  ;;  %9339 = vrcp.f32 %v5930_v8  ;;  %vm5898_vm6 = vweird.f32 %v9336_v49  ;;  %v5942_v6 = vand.u32 2147483648, %v5930_v8 }
0x1132   :  { %v5912_v50 = vmul.f32 %v9338_v3, %v5910_v20  ;;  %9341 = vtanh.f32 %v5886_v24  ;;  %vm5917_vm7 = vweird.f32 %v9338_v3  ;;  %vm5899_vm0 = vmor %vm5897_vm8, %vm5898_vm6  ;;  %vm5936_vm14 = vweird.f32 %v5930_v8 }
0x1133   :  { %v5894_v9 = vsub.f32 1.0, %v5893_v53  ;;  %vm5918_vm11 = vmor %vm5916_vm9, %vm5917_vm7  ;;  %v5943_v59 = vor.u32 1.1754944e-38, %v5942_v6 }
0x1134   :  { %v5913_v48 = vsub.f32 1.0, %v5912_v50 }
0x1135   :  { %v5895_v1 = vmul.f32 %v9336_v49, %v5894_v9 }
0x1136   :  { %v5914_v11 = vmul.f32 %v9338_v3, %v5913_v48 }
0x1137   :  { %v9340_v54 = vpop.eup %9339  ;;  %v5896_v38 = vadd.f32 %v9336_v49, %v5895_v1 }
0x1138   :  { %v5915_v37 = vadd.f32 %v9338_v3, %v5914_v11  ;;  %v5932_v45 = vmul.f32 %v9340_v54, %v5930_v8  ;;  %v9342_v15 = vpop.eup %9341  ;;  %vm5937_vm13 = vweird.f32 %v9340_v54 }
0x1139   :  { %v5900_v17 = vsel %vm5899_vm0, %v9336_v49, %v5896_v38  ;;  %v5940_v49 = vand.u32 2147483647, %v5930_v8  ;;  %vm5938_vm15 = vmor %vm5936_vm14, %vm5937_vm13 }
0x113a   :  { %v5905_v51 = vsel %vm5902_vm10, %v5904_v47, %v5900_v17  ;;  %v5919_v24 = vsel %vm5918_vm11, %v9338_v3, %v5915_v37  ;;  %v5933_v53 = vsub.f32 1.0, %v5932_v45 }
0x113b   :  { %v5924_v50 = vsel %vm5921_vm12, %v5923_v23, %v5919_v24  ;;  %v5947_v9 = vmul.f32 %v9342_v15, %v5905_v51  ;;  %vm5941_vm1 = vcmp.eq.f32.partialorder %v5940_v49, 8.507059e+37 }
0x113c   :  { %v5946_v48 = vmul.f32 0.0, %v5924_v50  ;;  %v5934_v43 = vmul.f32 %v9340_v54, %v5933_v53 }
0x113e   :  { %v12673_v1 = vadd.f32 %v5947_v9, %v5946_v48  ;;  %v5935_v20 = vadd.f32 %v9340_v54, %v5934_v43 }
0x1140   :  { %9343 = vtanh.f32 %v12673_v1  ;;  %v5939_v27 = vsel %vm5938_vm15, %v9340_v54, %v5935_v20 }
0x1141   :  { %v5944_v2 = vsel %vm5941_vm1, %v5943_v59, %v5939_v27 }
0x1146   :  { %v9344_v3 = vpop.eup %9343 }
0x1147   :  { %v12676_v11 = vmul.f32 %v9344_v3, %v5944_v2 }
0x1149   :  { %v5956_v21 = vpack.c.bf16 %v12676_v11, %v12676_v11 }
0x114b   :  { %5965 = vmatmul.bf16.vlgmr.msrb.gmra.mxu0 %v5956_v21  ;;  %5978 = vmatmul.bf16.vlgmr.msrb.gmra.mxu1 %v5956_v21 }
0x114c   :  { %5991 = vmatmul.bf16.vlgmr.msrb.gmra.mxu2 %v5956_v21  ;;  %6004 = vmatmul.bf16.vlgmr.msrb.gmra.mxu3 %v5956_v21 }
0x114d   :  { %6207 = vmatpush.bf16.msrb.mxu0 %v12322_v46  ;;  %6220 = vmatpush.bf16.msrb.mxu1 %v12324_v36 }
0x114e   :  { %6233 = vmatpush.bf16.msrb.mxu2 %v12337_v28  ;;  %6246 = vmatpush.bf16.msrb.mxu3 %v12326_v31 }
0x1151   :  { %6208 = vmatpush.bf16.msrb.mxu0 %v12329_v58  ;;  %6221 = vmatpush.bf16.msrb.mxu1 %v12333_v60 }
0x1152   :  { %6234 = vmatpush.bf16.msrb.mxu2 %v12354_v12  ;;  %6247 = vmatpush.bf16.msrb.mxu3 %v12335_v25 }
0x1155   :  { %6209 = vmatpush.bf16.msrb.mxu0 %v12347_v0  ;;  %6222 = vmatpush.bf16.msrb.mxu1 %v12349_v63 }
0x1156   :  { %6235 = vmatpush.bf16.msrb.mxu2 %v12365_v34  ;;  %6248 = vmatpush.bf16.msrb.mxu3 %v12351_v41 }
0x1159   :  { %6210 = vmatpush.bf16.msrb.mxu0 %v12358_v16  ;;  %6223 = vmatpush.bf16.msrb.mxu1 %v12360_v57 }
0x115a   :  { %6236 = vmatpush.bf16.msrb.mxu2 %v12382_v13  ;;  %6249 = vmatpush.bf16.msrb.mxu3 %v12363_v33 }
0x115d   :  { %6211 = vmatpush.bf16.msrb.mxu0 %v12375_v32  ;;  %6224 = vmatpush.bf16.msrb.mxu1 %v12377_v52 }
0x115e   :  { %6237 = vmatpush.bf16.msrb.mxu2 %v12395_v19  ;;  %6250 = vmatpush.bf16.msrb.mxu3 %v12379_v39 }
0x1161   :  { %6212 = vmatpush.bf16.msrb.mxu0 %v12386_v5  ;;  %6225 = vmatpush.bf16.msrb.mxu1 %v12388_v26 }
0x1162   :  { %6238 = vmatpush.bf16.msrb.mxu2 %v12402_v55  ;;  %6251 = vmatpush.bf16.msrb.mxu3 %v12400_v7 }
0x1165   :  { %6213 = vmatpush.bf16.msrb.mxu0 %v12406_v10  ;;  %6226 = vmatpush.bf16.msrb.mxu1 %v12408_v61 }
0x1166   :  { %6239 = vmatpush.bf16.msrb.mxu2 %v12413_v30  ;;  %6252 = vmatpush.bf16.msrb.mxu3 %v12410_v62 }
0x1169   :  { %6214 = vmatpush.bf16.msrb.mxu0 %v12417_v56  ;;  %6227 = vmatpush.bf16.msrb.mxu1 %v12420_v29 }
0x116a   :  { %6240 = vmatpush.bf16.msrb.mxu2 %v12423_v14  ;;  %6253 = vmatpush.bf16.msrb.mxu3 %v12426_v40 }
0x11c8   :  { %v5966_v43 = vpop.f32.mrf.mxu0  ;;  %v5979_v8 = vpop.f32.mrf.mxu1 }
0x11c9   :  { %v6009_v54 = vadd.f32 %v5966_v43, %v12609_v42  ;;  %v6010_v38 = vadd.f32 %v5979_v8, %v12616_v18 }
0x11cb   :  { %v8502_v47 = vmul.f32 -1.442695, %v6009_v54  ;;  %v8503_v37 = vmul.f32 -1.442695, %v6010_v38 }
0x11cd   :  { %9345 = vpow2.f32 %v8502_v47 }
0x11ce   :  { %9347 = vpow2.f32 %v8503_v37 }
0x11cf   :  { %v5992_v45 = vpop.f32.mrf.mxu2  ;;  %v6005_v23 = vpop.f32.mrf.mxu3 }
0x11d0   :  { %v6012_v17 = vadd.f32 %v6005_v23, %v12665_v35  ;;  %v5968_v15 = vpop.f32.mrf.mxu0  ;;  %v5981_v51 = vpop.f32.mrf.mxu1  ;;  %v6011_v27 = vadd.f32 %v5992_v45, %v12662_v44 }
0x11d2   :  { %v8504_v24 = vmul.f32 -1.442695, %v6012_v17 }
0x11d3   :  { %v9346_v53 = vpop.eup %9345 }
0x11d4   :  { %v9348_v50 = vpop.eup %9347  ;;  %v6016_v9 = vadd.f32 1.0, %v9346_v53  ;;  %9349 = vpow2.f32 %v8504_v24 }
0x11d5   :  { %v6035_v48 = vadd.f32 1.0, %v9348_v50 }
0x11d6   :  { %9351 = vrcp.f32 %v6016_v9  ;;  %v6028_v43 = vand.u32 2147483648, %v6016_v9  ;;  %v6026_v38 = vand.u32 2147483647, %v6016_v9  ;;  %vm6022_vm4 = vweird.f32 %v6016_v9 }
0x11d7   :  { %9353 = vrcp.f32 %v6035_v48  ;;  %v5994_v42 = vpop.f32.mrf.mxu2  ;;  %v6007_v18 = vpop.f32.mrf.mxu3  ;;  %v6047_v8 = vand.u32 2147483648, %v6035_v48  ;;  %v6045_v37 = vand.u32 2147483647, %v6035_v48  ;;  %vm6041_vm5 = vweird.f32 %v6035_v48 }
0x11d8   :  { %v6029_v44 = vor.u32 1.1754944e-38, %v6028_v43  ;;  %vm6027_vm8 = vcmp.eq.f32.partialorder %v6026_v38, 8.507059e+37  ;;  %v13391_v38 = vld [vmem:[#allocation53_spill] sm:$0xff] }
0x11d9   :  { %v6048_v51 = vor.u32 1.1754944e-38, %v6047_v8  ;;  %vm6046_vm9 = vcmp.eq.f32.partialorder %v6045_v37, 8.507059e+37 }
0x11da   :  { %v9350_v20 = vpop.eup %9349 }
0x11db   :  { %v6055_v6 = vadd.f32 1.0, %v9350_v20 }
0x11dc   :  { %v9352_v49 = vpop.eup %9351 }
0x11dd   :  { %v9354_v59 = vpop.eup %9353  ;;  %v6018_v3 = vmul.f32 %v9352_v49, %v6016_v9  ;;  %9355 = vrcp.f32 %v6055_v6  ;;  %vm6023_vm2 = vweird.f32 %v9352_v49  ;;  %vm6061_vm10 = vweird.f32 %v6055_v6 }
0x11de   :  { %v6037_v35 = vmul.f32 %v9354_v59, %v6035_v48  ;;  %9357 = vtanh.f32 %v6011_v27  ;;  %vm6042_vm3 = vweird.f32 %v9354_v59  ;;  %vm6024_vm6 = vmor %vm6022_vm4, %vm6023_vm2 }
0x11df   :  { %v6019_v2 = vsub.f32 1.0, %v6018_v3  ;;  %vm6043_vm7 = vmor %vm6041_vm5, %vm6042_vm3 }
0x11e0   :  { %v6038_v21 = vsub.f32 1.0, %v6037_v35 }
0x11e1   :  { %v6020_v54 = vmul.f32 %v9352_v49, %v6019_v2  ;;  %v6067_v2 = vand.u32 2147483648, %v6055_v6 }
0x11e2   :  { %v6039_v47 = vmul.f32 %v9354_v59, %v6038_v21 }
0x11e3   :  { %v9356_v23 = vpop.eup %9355  ;;  %v6021_v17 = vadd.f32 %v9352_v49, %v6020_v54  ;;  %v6068_v43 = vor.u32 1.1754944e-38, %v6067_v2 }
0x11e4   :  { %v6040_v45 = vadd.f32 %v9354_v59, %v6039_v47  ;;  %v6057_v15 = vmul.f32 %v9356_v23, %v6055_v6  ;;  %v9358_v53 = vpop.eup %9357  ;;  %vm6062_vm0 = vweird.f32 %v9356_v23  ;;  %v13392_v47 = vld [vmem:[#allocation39_spill] sm:$0xff] }
0x11e5   :  { %v6025_v24 = vsel %vm6024_vm6, %v9352_v49, %v6021_v17  ;;  %v6065_v49 = vand.u32 2147483647, %v6055_v6  ;;  %vm6063_vm11 = vmor %vm6061_vm10, %vm6062_vm0  ;;  %v5394_v6 = vadd.f32 %v12598_v22, %v12483_v4  ;;  %v5452_v37 = vadd.f32 %v13392_v47, %v13391_v38 }
0x11e6   :  { %v6030_v50 = vsel %vm6027_vm8, %v6029_v44, %v6025_v24  ;;  %v6044_v42 = vsel %vm6043_vm7, %v9354_v59, %v6040_v45  ;;  %v6058_v18 = vsub.f32 1.0, %v6057_v15  ;;  %v13394_v44 = vld [vmem:[#allocation62_spill] sm:$0xff] }
0x11e7   :  { %v6049_v20 = vsel %vm6046_vm9, %v6048_v51, %v6044_v42  ;;  %v6072_v27 = vmul.f32 %v9358_v53, %v6030_v50  ;;  %vm6066_vm12 = vcmp.eq.f32.partialorder %v6065_v49, 8.507059e+37  ;;  %v5481_v45 = vadd.f32 %v13394_v44, %v5452_v37  ;;  %v13396_v37 = vld [vmem:[#allocation52_spill] sm:$0xff] }
0x11e8   :  { %v6071_v3 = vmul.f32 %v6049_v20, %v12673_v1  ;;  %v6059_v35 = vmul.f32 %v9356_v23, %v6058_v18 }
0x11ea   :  { %v12717_v9 = vadd.f32 %v6072_v27, %v6071_v3  ;;  %v6060_v48 = vadd.f32 %v9356_v23, %v6059_v35  ;;  %v13395_v27 = vld [vmem:[#allocation42_spill] sm:$0xff] }
0x11ec   :  { %9359 = vtanh.f32 %v12717_v9  ;;  %v6064_v21 = vsel %vm6063_vm11, %v9356_v23, %v6060_v48  ;;  %v13393_v23 = vld [vmem:[#allocation37_spill] sm:$0xff] }
0x11ed   :  { %v6069_v8 = vsel %vm6066_vm12, %v6068_v43, %v6064_v21  ;;  %v5423_v17 = vadd.f32 %v13393_v23, %v5394_v6 }
0x11f2   :  { %v9360_v59 = vpop.eup %9359 }
0x11f3   :  { %v12720_v54 = vmul.f32 %v9360_v59, %v6069_v8 }
0x11f5   :  { %v6081_v1 = vpack.c.bf16 %v12720_v54, %v12720_v54 }
0x11f7   :  { %6090 = vmatmul.bf16.vlgmr.msra.gmra.mxu0 %v6081_v1  ;;  %6103 = vmatmul.bf16.vlgmr.msra.gmra.mxu1 %v6081_v1 }
0x11f8   :  { %6116 = vmatmul.bf16.vlgmr.msra.gmra.mxu2 %v6081_v1  ;;  %6129 = vmatmul.bf16.vlgmr.msra.gmra.mxu3 %v6081_v1 }
0x11f9   :  { %6332 = vmatpush.bf16.msra.mxu0 %v12322_v46  ;;  %6345 = vmatpush.bf16.msra.mxu1 %v12324_v36 }
0x11fa   :  { %6358 = vmatpush.bf16.msra.mxu2 %v12337_v28  ;;  %6371 = vmatpush.bf16.msra.mxu3 %v12326_v31 }
0x11fd   :  { %6333 = vmatpush.bf16.msra.mxu0 %v12329_v58  ;;  %6346 = vmatpush.bf16.msra.mxu1 %v12333_v60 }
0x11fe   :  { %6359 = vmatpush.bf16.msra.mxu2 %v12354_v12  ;;  %6372 = vmatpush.bf16.msra.mxu3 %v12335_v25 }
0x1201   :  { %6334 = vmatpush.bf16.msra.mxu0 %v12347_v0  ;;  %6347 = vmatpush.bf16.msra.mxu1 %v12349_v63 }
0x1202   :  { %6360 = vmatpush.bf16.msra.mxu2 %v12365_v34  ;;  %6373 = vmatpush.bf16.msra.mxu3 %v12351_v41 }
0x1205   :  { %6335 = vmatpush.bf16.msra.mxu0 %v12358_v16  ;;  %6348 = vmatpush.bf16.msra.mxu1 %v12360_v57 }
0x1206   :  { %6361 = vmatpush.bf16.msra.mxu2 %v12382_v13  ;;  %6374 = vmatpush.bf16.msra.mxu3 %v12363_v33 }
0x1209   :  { %6336 = vmatpush.bf16.msra.mxu0 %v12375_v32  ;;  %6349 = vmatpush.bf16.msra.mxu1 %v12377_v52 }
0x120a   :  { %6362 = vmatpush.bf16.msra.mxu2 %v12395_v19  ;;  %6375 = vmatpush.bf16.msra.mxu3 %v12379_v39 }
0x120d   :  { %6337 = vmatpush.bf16.msra.mxu0 %v12386_v5  ;;  %6350 = vmatpush.bf16.msra.mxu1 %v12388_v26 }
0x120e   :  { %6363 = vmatpush.bf16.msra.mxu2 %v12402_v55  ;;  %6376 = vmatpush.bf16.msra.mxu3 %v12400_v7 }
0x1211   :  { %6338 = vmatpush.bf16.msra.mxu0 %v12406_v10  ;;  %6351 = vmatpush.bf16.msra.mxu1 %v12408_v61 }
0x1212   :  { %6364 = vmatpush.bf16.msra.mxu2 %v12413_v30  ;;  %6377 = vmatpush.bf16.msra.mxu3 %v12410_v62 }
0x1215   :  { %6339 = vmatpush.bf16.msra.mxu0 %v12417_v56  ;;  %6352 = vmatpush.bf16.msra.mxu1 %v12420_v29 }
0x1216   :  { %6365 = vmatpush.bf16.msra.mxu2 %v12423_v14  ;;  %6378 = vmatpush.bf16.msra.mxu3 %v12426_v40 }
0x1274   :  { %v6091_v15 = vpop.f32.mrf.mxu0  ;;  %v6104_v51 = vpop.f32.mrf.mxu1 }
0x1275   :  { %v6134_v24 = vadd.f32 %v6091_v15, %v5423_v17  ;;  %v6135_v53 = vadd.f32 %v6104_v51, %v5481_v45 }
0x1277   :  { %v8505_v50 = vmul.f32 -1.442695, %v6134_v24  ;;  %v8506_v42 = vmul.f32 -1.442695, %v6135_v53 }
0x1279   :  { %9361 = vpow2.f32 %v8505_v50 }
0x127a   :  { %9363 = vpow2.f32 %v8506_v42 }
0x127b   :  { %v6117_v18 = vpop.f32.mrf.mxu2  ;;  %v6130_v20 = vpop.f32.mrf.mxu3 }
0x127c   :  { %v6137_v3 = vadd.f32 %v6130_v20, %v13395_v27  ;;  %v6093_v22 = vpop.f32.mrf.mxu0  ;;  %v6106_v35 = vpop.f32.mrf.mxu1  ;;  %v6136_v23 = vadd.f32 %v6117_v18, %v13396_v37 }
0x127e   :  { %v8507_v48 = vmul.f32 -1.442695, %v6137_v3 }
0x127f   :  { %v9362_v2 = vpop.eup %9361 }
0x1280   :  { %v9364_v49 = vpop.eup %9363  ;;  %v6141_v21 = vadd.f32 1.0, %v9362_v2  ;;  %9365 = vpow2.f32 %v8507_v48 }
0x1281   :  { %v6160_v43 = vadd.f32 1.0, %v9364_v49 }
0x1282   :  { %9367 = vrcp.f32 %v6141_v21  ;;  %v6153_v24 = vand.u32 2147483648, %v6141_v21  ;;  %v6151_v42 = vand.u32 2147483647, %v6141_v21  ;;  %vm6147_vm15 = vweird.f32 %v6141_v21 }
0x1283   :  { %9369 = vrcp.f32 %v6160_v43  ;;  %v6119_v59 = vpop.f32.mrf.mxu2  ;;  %v6132_v8 = vpop.f32.mrf.mxu3  ;;  %v6172_v53 = vand.u32 2147483648, %v6160_v43  ;;  %v6170_v27 = vand.u32 2147483647, %v6160_v43  ;;  %vm6166_vm1 = vweird.f32 %v6160_v43 }
0x1284   :  { %v6154_v18 = vor.u32 1.1754944e-38, %v6153_v24  ;;  %vm6152_vm4 = vcmp.eq.f32.partialorder %v6151_v42, 8.507059e+37 }
0x1285   :  { %v6173_v2 = vor.u32 1.1754944e-38, %v6172_v53  ;;  %vm6171_vm5 = vcmp.eq.f32.partialorder %v6170_v27, 8.507059e+37  ;;  %v13398_v27 = vld [vmem:[#allocation20_spill] sm:$0xff] }
0x1286   :  { %v9366_v1 = vpop.eup %9365 }
0x1287   :  { %v6180_v6 = vadd.f32 1.0, %v9366_v1 }
0x1288   :  { %v9368_v47 = vpop.eup %9367 }
0x1289   :  { %v9370_v17 = vpop.eup %9369  ;;  %v6143_v44 = vmul.f32 %v9368_v47, %v6141_v21  ;;  %9371 = vrcp.f32 %v6180_v6  ;;  %vm6148_vm13 = vweird.f32 %v9368_v47  ;;  %vm6186_vm7 = vweird.f32 %v6180_v6 }
0x128a   :  { %v6162_v45 = vmul.f32 %v9370_v17, %v6160_v43  ;;  %9373 = vtanh.f32 %v6136_v23  ;;  %vm6167_vm14 = vweird.f32 %v9370_v17  ;;  %vm6149_vm2 = vmor %vm6147_vm15, %vm6148_vm13 }
0x128b   :  { %v6144_v15 = vsub.f32 1.0, %v6143_v44  ;;  %vm6168_vm3 = vmor %vm6166_vm1, %vm6167_vm14 }
0x128c   :  { %v6163_v51 = vsub.f32 1.0, %v6162_v45 }
0x128d   :  { %v6145_v50 = vmul.f32 %v9368_v47, %v6144_v15 }
0x128e   :  { %v6164_v20 = vmul.f32 %v9370_v17, %v6163_v51  ;;  %v6192_v51 = vand.u32 2147483648, %v6180_v6 }
0x128f   :  { %v9372_v3 = vpop.eup %9371  ;;  %v6146_v22 = vadd.f32 %v9368_v47, %v6145_v50 }
0x1290   :  { %v6165_v35 = vadd.f32 %v9370_v17, %v6164_v20  ;;  %v6182_v48 = vmul.f32 %v9372_v3, %v6180_v6  ;;  %v9374_v59 = vpop.eup %9373  ;;  %vm6187_vm6 = vweird.f32 %v9372_v3  ;;  %v6193_v53 = vor.u32 1.1754944e-38, %v6192_v51 }
0x1291   :  { %v6150_v49 = vsel %vm6149_vm2, %v9368_v47, %v6146_v22  ;;  %v6190_v47 = vand.u32 2147483647, %v6180_v6  ;;  %vm6188_vm8 = vmor %vm6186_vm7, %vm6187_vm6  ;;  %v13399_v22 = vld [vmem:[#allocation38_spill] sm:$0xff] }
0x1292   :  { %v6155_v8 = vsel %vm6152_vm4, %v6154_v18, %v6150_v49  ;;  %v6169_v1 = vsel %vm6168_vm3, %v9370_v17, %v6165_v35  ;;  %v6183_v37 = vsub.f32 1.0, %v6182_v48 }
0x1293   :  { %v6174_v23 = vsel %vm6171_vm5, %v6173_v2, %v6169_v1  ;;  %v6197_v44 = vmul.f32 %v9374_v59, %v6155_v8  ;;  %vm6191_vm9 = vcmp.eq.f32.partialorder %v6190_v47, 8.507059e+37  ;;  %v13400_v59 = vld [vmem:[#allocation23_spill] sm:$0xff] }
0x1294   :  { %v6196_v45 = vmul.f32 %v6174_v23, %v12717_v9  ;;  %v6184_v15 = vmul.f32 %v9372_v3, %v6183_v37 }
0x1296   :  { %v12765_v21 = vadd.f32 %v6197_v44, %v6196_v45  ;;  %v6185_v43 = vadd.f32 %v9372_v3, %v6184_v15 }
0x1298   :  { %9375 = vtanh.f32 %v12765_v21  ;;  %v6189_v24 = vsel %vm6188_vm8, %v9372_v3, %v6185_v43 }
0x1299   :  { %v6194_v50 = vsel %vm6191_vm9, %v6193_v53, %v6189_v24 }
0x129e   :  { %v9376_v17 = vpop.eup %9375 }
0x129f   :  { %v12768_v42 = vmul.f32 %v9376_v17, %v6194_v50  ;;  %v13401_v50 = vld [vmem:[#allocation33_spill] sm:$0xff] }
0x12a1   :  { %13397 = vst [vmem:[#allocation21_spill] sm:$0xff] %v12768_v42  ;;  %v6206_v9 = vpack.c.bf16 %v12768_v42, %v12768_v42 }
0x12a3   :  { %6215 = vmatmul.bf16.vlgmr.msrb.gmra.mxu0 %v6206_v9  ;;  %6228 = vmatmul.bf16.vlgmr.msrb.gmra.mxu1 %v6206_v9 }
0x12a4   :  { %6241 = vmatmul.bf16.vlgmr.msrb.gmra.mxu2 %v6206_v9  ;;  %6254 = vmatmul.bf16.vlgmr.msrb.gmra.mxu3 %v6206_v9 }
0x12a5   :  { %6457 = vmatpush.bf16.msrb.mxu0 %v12322_v46  ;;  %6470 = vmatpush.bf16.msrb.mxu1 %v12324_v36 }
0x12a6   :  { %6483 = vmatpush.bf16.msrb.mxu2 %v12337_v28  ;;  %6496 = vmatpush.bf16.msrb.mxu3 %v12326_v31 }
0x12a9   :  { %6458 = vmatpush.bf16.msrb.mxu0 %v12329_v58  ;;  %6471 = vmatpush.bf16.msrb.mxu1 %v12333_v60 }
0x12aa   :  { %6484 = vmatpush.bf16.msrb.mxu2 %v12354_v12  ;;  %6497 = vmatpush.bf16.msrb.mxu3 %v12335_v25 }
0x12ad   :  { %6459 = vmatpush.bf16.msrb.mxu0 %v12347_v0  ;;  %6472 = vmatpush.bf16.msrb.mxu1 %v12349_v63 }
0x12ae   :  { %6485 = vmatpush.bf16.msrb.mxu2 %v12365_v34  ;;  %6498 = vmatpush.bf16.msrb.mxu3 %v12351_v41 }
0x12b1   :  { %6460 = vmatpush.bf16.msrb.mxu0 %v12358_v16  ;;  %6473 = vmatpush.bf16.msrb.mxu1 %v12360_v57 }
0x12b2   :  { %6486 = vmatpush.bf16.msrb.mxu2 %v12382_v13  ;;  %6499 = vmatpush.bf16.msrb.mxu3 %v12363_v33 }
0x12b5   :  { %6461 = vmatpush.bf16.msrb.mxu0 %v12375_v32  ;;  %6474 = vmatpush.bf16.msrb.mxu1 %v12377_v52 }
0x12b6   :  { %6487 = vmatpush.bf16.msrb.mxu2 %v12395_v19  ;;  %6500 = vmatpush.bf16.msrb.mxu3 %v12379_v39 }
0x12b9   :  { %6462 = vmatpush.bf16.msrb.mxu0 %v12386_v5  ;;  %6475 = vmatpush.bf16.msrb.mxu1 %v12388_v26 }
0x12ba   :  { %6488 = vmatpush.bf16.msrb.mxu2 %v12402_v55  ;;  %6501 = vmatpush.bf16.msrb.mxu3 %v12400_v7 }
0x12bd   :  { %6463 = vmatpush.bf16.msrb.mxu0 %v12406_v10  ;;  %6476 = vmatpush.bf16.msrb.mxu1 %v12408_v61 }
0x12be   :  { %6489 = vmatpush.bf16.msrb.mxu2 %v12413_v30  ;;  %6502 = vmatpush.bf16.msrb.mxu3 %v12410_v62 }
0x12c1   :  { %6464 = vmatpush.bf16.msrb.mxu0 %v12417_v56  ;;  %6477 = vmatpush.bf16.msrb.mxu1 %v12420_v29 }
0x12c2   :  { %6490 = vmatpush.bf16.msrb.mxu2 %v12423_v14  ;;  %6503 = vmatpush.bf16.msrb.mxu3 %v12426_v40 }
0x1320   :  { %v6216_v6 = vpop.f32.mrf.mxu0  ;;  %v6229_v20 = vpop.f32.mrf.mxu1 }
0x1321   :  { %v6259_v3 = vadd.f32 %v6216_v6, %v13398_v27  ;;  %v6260_v18 = vadd.f32 %v6229_v20, %v13399_v22 }
0x1323   :  { %v8508_v35 = vmul.f32 -1.442695, %v6259_v3  ;;  %v8509_v48 = vmul.f32 -1.442695, %v6260_v18 }
0x1325   :  { %9377 = vpow2.f32 %v8508_v35 }
0x1326   :  { %9379 = vpow2.f32 %v8509_v48 }
0x1327   :  { %v6242_v2 = vpop.f32.mrf.mxu2  ;;  %v6255_v49 = vpop.f32.mrf.mxu3 }
0x1328   :  { %v6262_v8 = vadd.f32 %v6255_v49, %v13400_v59  ;;  %v6218_v1 = vpop.f32.mrf.mxu0  ;;  %v6231_v37 = vpop.f32.mrf.mxu1  ;;  %v6261_v9 = vadd.f32 %v6242_v2, %v13401_v50 }
0x132a   :  { %v8510_v23 = vmul.f32 -1.442695, %v6262_v8 }
0x132b   :  { %v9378_v44 = vpop.eup %9377 }
0x132c   :  { %v9380_v45 = vpop.eup %9379  ;;  %v6266_v15 = vadd.f32 1.0, %v9378_v44  ;;  %9381 = vpow2.f32 %v8510_v23 }
0x132d   :  { %v6285_v43 = vadd.f32 1.0, %v9380_v45 }
0x132e   :  { %9383 = vrcp.f32 %v6266_v15  ;;  %v6278_v18 = vand.u32 2147483648, %v6266_v15  ;;  %v6276_v49 = vand.u32 2147483647, %v6266_v15  ;;  %vm6272_vm11 = vweird.f32 %v6266_v15 }
0x132f   :  { %9385 = vrcp.f32 %v6285_v43  ;;  %v6244_v51 = vpop.f32.mrf.mxu2  ;;  %v6257_v47 = vpop.f32.mrf.mxu3  ;;  %v6297_v35 = vand.u32 2147483648, %v6285_v43  ;;  %v6295_v8 = vand.u32 2147483647, %v6285_v43  ;;  %vm6291_vm12 = vweird.f32 %v6285_v43 }
0x1330   :  { %v6279_v2 = vor.u32 1.1754944e-38, %v6278_v18  ;;  %vm6277_vm15 = vcmp.eq.f32.partialorder %v6276_v49, 8.507059e+37 }
0x1331   :  { %v6298_v45 = vor.u32 1.1754944e-38, %v6297_v35  ;;  %vm6296_vm1 = vcmp.eq.f32.partialorder %v6295_v8, 8.507059e+37 }
0x1332   :  { %v9382_v24 = vpop.eup %9381 }
0x1333   :  { %v6305_v53 = vadd.f32 1.0, %v9382_v24 }
0x1334   :  { %v9384_v17 = vpop.eup %9383 }
0x1335   :  { %v9386_v6 = vpop.eup %9385  ;;  %v6268_v20 = vmul.f32 %v9384_v17, %v6266_v15  ;;  %9387 = vrcp.f32 %v6305_v53  ;;  %vm6273_vm0 = vweird.f32 %v9384_v17  ;;  %v6317_v18 = vand.u32 2147483648, %v6305_v53 }
0x1336   :  { %v6287_v27 = vmul.f32 %v9386_v6, %v6285_v43  ;;  %9389 = vtanh.f32 %v6261_v9  ;;  %vm6292_vm10 = vweird.f32 %v9386_v6  ;;  %vm6274_vm13 = vmor %vm6272_vm11, %vm6273_vm0  ;;  %vm6311_vm3 = vweird.f32 %v6305_v53 }
0x1337   :  { %v6269_v3 = vsub.f32 1.0, %v6268_v20  ;;  %vm6293_vm14 = vmor %vm6291_vm12, %vm6292_vm10 }
0x1338   :  { %v6288_v22 = vsub.f32 1.0, %v6287_v27 }
0x1339   :  { %v6270_v48 = vmul.f32 %v9384_v17, %v6269_v3 }
0x133a   :  { %v6289_v59 = vmul.f32 %v9386_v6, %v6288_v22 }
0x133b   :  { %v9388_v1 = vpop.eup %9387  ;;  %v6271_v37 = vadd.f32 %v9384_v17, %v6270_v48  ;;  %v6318_v48 = vor.u32 1.1754944e-38, %v6317_v18 }
0x133c   :  { %v6290_v23 = vadd.f32 %v9386_v6, %v6289_v59  ;;  %v6307_v44 = vmul.f32 %v9388_v1, %v6305_v53  ;;  %v9390_v47 = vpop.eup %9389  ;;  %vm6312_vm2 = vweird.f32 %v9388_v1 }
0x133d   :  { %v6275_v51 = vsel %vm6274_vm13, %v9384_v17, %v6271_v37  ;;  %v6315_v17 = vand.u32 2147483647, %v6305_v53  ;;  %vm6313_vm4 = vmor %vm6311_vm3, %vm6312_vm2  ;;  %v13403_v53 = vld [vmem:[#allocation43_spill] sm:$0xff] }
0x133e   :  { %v6280_v24 = vsel %vm6277_vm15, %v6279_v2, %v6275_v51  ;;  %v6294_v50 = vsel %vm6293_vm14, %v9386_v6, %v6290_v23  ;;  %v6308_v9 = vsub.f32 1.0, %v6307_v44  ;;  %v6843_v6 = vld [vmem:[%s13037_s13] sm:$0x3]  ;;  %v13404_v51 = vld [vmem:[#allocation41_spill] sm:$0xff] }
0x133f   :  { %v6299_v20 = vsel %vm6296_vm1, %v6298_v45, %v6294_v50  ;;  %v6322_v27 = vmul.f32 %v9390_v47, %v6280_v24  ;;  %vm6316_vm5 = vcmp.eq.f32.partialorder %v6315_v17, 8.507059e+37  ;;  %v12817_v8 = vperm.slane %v6843_v6, 0  ;;  %v13405_v50 = vld [vmem:[#allocation58_spill] sm:$0xff] }
0x1340   :  { %v6321_v3 = vmul.f32 %v6299_v20, %v12765_v21  ;;  %v6309_v22 = vmul.f32 %v9388_v1, %v6308_v9  ;;  %v12819_v37 = vperm.slane %v6843_v6, 1  ;;  %v5389_v9 = vadd.f32 %v13405_v50, %v12483_v4  ;;  %v13406_v20 = vld [vmem:[#allocation59_spill] sm:$0xff] }
0x1341   :  { %v6859_v47 = vmul.f32 %v12817_v8, %v13404_v51 }
0x1342   :  { %v12809_v15 = vadd.f32 %v6322_v27, %v6321_v3  ;;  %v6310_v43 = vadd.f32 %v9388_v1, %v6309_v22  ;;  %v6860_v45 = vmul.f32 %v12819_v37, %v12768_v42  ;;  %v5447_v27 = vadd.f32 %v13406_v20, %v13391_v38  ;;  %v13407_v3 = vld [vmem:[#allocation32_spill] sm:$0xff] }
0x1343   :  { %v5418_v22 = vadd.f32 %v13407_v3, %v5389_v9 }
0x1344   :  { %9391 = vtanh.f32 %v12809_v15  ;;  %v6314_v35 = vsel %vm6313_vm4, %v9388_v1, %v6310_v43  ;;  %v6857_v1 = vmul.f32 %v12817_v8, %v13403_v53  ;;  %v6880_v24 = vadd.f32 %v6860_v45, %v6859_v47  ;;  %v13408_v43 = vld [vmem:[#allocation48_spill] sm:$0xff] }
0x1345   :  { %v6319_v21 = vsel %vm6316_vm5, %v6318_v48, %v6314_v35  ;;  %v5476_v18 = vadd.f32 %v13408_v43, %v5447_v27 }
0x134a   :  { %v9392_v49 = vpop.eup %9391 }
0x134b   :  { %v12815_v59 = vmul.f32 %v9392_v49, %v6319_v21 }
0x134d   :  { %13402 = vst [vmem:[#allocation44_spill] sm:$0xff] %v12815_v59  ;;  %v6331_v2 = vpack.c.bf16 %v12815_v59, %v12815_v59  ;;  %v6858_v23 = vmul.f32 %v12819_v37, %v12815_v59 }
0x134f   :  { %6340 = vmatmul.bf16.vlgmr.msra.gmra.mxu0 %v6331_v2  ;;  %6353 = vmatmul.bf16.vlgmr.msra.gmra.mxu1 %v6331_v2  ;;  %v6877_v44 = vadd.f32 %v6858_v23, %v6857_v1  ;;  %v13409_v23 = vld [vmem:[#allocation50_spill] sm:$0xff] }
0x1350   :  { %6366 = vmatmul.bf16.vlgmr.msra.gmra.mxu2 %v6331_v2  ;;  %6379 = vmatmul.bf16.vlgmr.msra.gmra.mxu3 %v6331_v2 }
0x1351   :  { %6878 = vadd.xlane.f32.xlu2 %v6877_v44  ;;  %6582 = vmatpush.bf16.msra.mxu0 %v12322_v46 }
0x1352   :  { %6595 = vmatpush.bf16.msra.mxu1 %v12324_v36  ;;  %6608 = vmatpush.bf16.msra.mxu2 %v12337_v28 }
0x1353   :  { %6621 = vmatpush.bf16.msra.mxu3 %v12326_v31 }
0x1355   :  { %6583 = vmatpush.bf16.msra.mxu0 %v12329_v58 }
0x1356   :  { %6596 = vmatpush.bf16.msra.mxu1 %v12333_v60  ;;  %6609 = vmatpush.bf16.msra.mxu2 %v12354_v12 }
0x1357   :  { %6622 = vmatpush.bf16.msra.mxu3 %v12335_v25 }
0x1359   :  { %6881 = vadd.xlane.f32.xlu2 %v6880_v24  ;;  %6584 = vmatpush.bf16.msra.mxu0 %v12347_v0 }
0x135a   :  { %6597 = vmatpush.bf16.msra.mxu1 %v12349_v63  ;;  %6610 = vmatpush.bf16.msra.mxu2 %v12365_v34 }
0x135b   :  { %6623 = vmatpush.bf16.msra.mxu3 %v12351_v41 }
0x135d   :  { %6585 = vmatpush.bf16.msra.mxu0 %v12358_v16 }
0x135e   :  { %6598 = vmatpush.bf16.msra.mxu1 %v12360_v57  ;;  %6611 = vmatpush.bf16.msra.mxu2 %v12382_v13 }
0x135f   :  { %6624 = vmatpush.bf16.msra.mxu3 %v12363_v33 }
0x1361   :  { %6586 = vmatpush.bf16.msra.mxu0 %v12375_v32 }
0x1362   :  { %6599 = vmatpush.bf16.msra.mxu1 %v12377_v52  ;;  %6612 = vmatpush.bf16.msra.mxu2 %v12395_v19 }
0x1363   :  { %6625 = vmatpush.bf16.msra.mxu3 %v12379_v39 }
0x1365   :  { %6587 = vmatpush.bf16.msra.mxu0 %v12386_v5 }
0x1366   :  { %6600 = vmatpush.bf16.msra.mxu1 %v12388_v26  ;;  %6613 = vmatpush.bf16.msra.mxu2 %v12402_v55 }
0x1367   :  { %6626 = vmatpush.bf16.msra.mxu3 %v12400_v7 }
0x1369   :  { %6588 = vmatpush.bf16.msra.mxu0 %v12406_v10 }
0x136a   :  { %6601 = vmatpush.bf16.msra.mxu1 %v12408_v61  ;;  %6614 = vmatpush.bf16.msra.mxu2 %v12413_v30 }
0x136b   :  { %6627 = vmatpush.bf16.msra.mxu3 %v12410_v62 }
0x136d   :  { %6589 = vmatpush.bf16.msra.mxu0 %v12417_v56 }
0x136e   :  { %6602 = vmatpush.bf16.msra.mxu1 %v12420_v29  ;;  %6615 = vmatpush.bf16.msra.mxu2 %v12423_v14 }
0x136f   :  { %6628 = vmatpush.bf16.msra.mxu3 %v12426_v40 }
0x13cc   :  { %v6341_v17 = vpop.f32.mrf.mxu0  ;;  %v6354_v48 = vpop.f32.mrf.mxu1 }
0x13cd   :  { %v6384_v35 = vadd.f32 %v6341_v17, %v5418_v22  ;;  %v6385_v6 = vadd.f32 %v6354_v48, %v5476_v18 }
0x13cf   :  { %v8511_v49 = vmul.f32 -1.442695, %v6384_v35  ;;  %v8512_v21 = vmul.f32 -1.442695, %v6385_v6  ;;  %v13410_v35 = vld [vmem:[#allocation51_spill] sm:$0xff] }
0x13d1   :  { %9393 = vpow2.f32 %v8511_v49 }
0x13d2   :  { %9395 = vpow2.f32 %v8512_v21 }
0x13d3   :  { %v6367_v2 = vpop.f32.mrf.mxu2  ;;  %v6380_v1 = vpop.f32.mrf.mxu3 }
0x13d4   :  { %v6387_v44 = vadd.f32 %v6380_v1, %v13409_v23  ;;  %v6343_v45 = vpop.f32.mrf.mxu0  ;;  %v6356_v47 = vpop.f32.mrf.mxu1  ;;  %v6386_v48 = vadd.f32 %v6367_v2, %v13410_v35 }
0x13d6   :  { %v8513_v24 = vmul.f32 -1.442695, %v6387_v44 }
0x13d7   :  { %v9394_v50 = vpop.eup %9393 }
0x13d8   :  { %v9396_v20 = vpop.eup %9395  ;;  %v6391_v9 = vadd.f32 1.0, %v9394_v50  ;;  %9397 = vpow2.f32 %v8513_v24 }
0x13d9   :  { %v6410_v27 = vadd.f32 1.0, %v9396_v20 }
0x13da   :  { %9399 = vrcp.f32 %v6391_v9  ;;  %v6403_v44 = vand.u32 2147483648, %v6391_v9  ;;  %v6401_v24 = vand.u32 2147483647, %v6391_v9  ;;  %vm6397_vm8 = vweird.f32 %v6391_v9 }
0x13db   :  { %9401 = vrcp.f32 %v6410_v27  ;;  %v6369_v3 = vpop.f32.mrf.mxu2  ;;  %v6382_v22 = vpop.f32.mrf.mxu3  ;;  %v6422_v45 = vand.u32 2147483648, %v6410_v27  ;;  %v6420_v20 = vand.u32 2147483647, %v6410_v27  ;;  %vm6416_vm9 = vweird.f32 %v6410_v27 }
0x13dc   :  { %v6404_v2 = vor.u32 1.1754944e-38, %v6403_v44  ;;  %vm6402_vm11 = vcmp.eq.f32.partialorder %v6401_v24, 8.507059e+37 }
0x13dd   :  { %vm6421_vm12 = vcmp.eq.f32.partialorder %v6420_v20, 8.507059e+37 }
0x13de   :  { %v9398_v43 = vpop.eup %9397 }
0x13df   :  { %v6430_v18 = vadd.f32 1.0, %v9398_v43 }
0x13e0   :  { %v9400_v17 = vpop.eup %9399 }
0x13e1   :  { %v9402_v6 = vpop.eup %9401  ;;  %v6393_v49 = vmul.f32 %v9400_v17, %v6391_v9  ;;  %9403 = vrcp.f32 %v6430_v18  ;;  %vm6398_vm6 = vweird.f32 %v9400_v17  ;;  %v6442_v44 = vand.u32 2147483648, %v6430_v18 }
0x13e2   :  { %v6412_v21 = vmul.f32 %v9402_v6, %v6410_v27  ;;  %9405 = vtanh.f32 %v6386_v48  ;;  %vm6417_vm7 = vweird.f32 %v9402_v6  ;;  %vm6399_vm0 = vmor %vm6397_vm8, %vm6398_vm6  ;;  %vm6436_vm14 = vweird.f32 %v6430_v18 }
0x13e3   :  { %v6394_v1 = vsub.f32 1.0, %v6393_v49  ;;  %vm6418_vm10 = vmor %vm6416_vm9, %vm6417_vm7  ;;  %v6423_v49 = vor.u32 1.1754944e-38, %v6422_v45  ;;  %v6443_v24 = vor.u32 1.1754944e-38, %v6442_v44 }
0x13e4   :  { %v6413_v23 = vsub.f32 1.0, %v6412_v21 }
0x13e5   :  { %v6395_v47 = vmul.f32 %v9400_v17, %v6394_v1 }
0x13e6   :  { %v6414_v50 = vmul.f32 %v9402_v6, %v6413_v23 }
0x13e7   :  { %v9404_v3 = vpop.eup %9403  ;;  %v6396_v22 = vadd.f32 %v9400_v17, %v6395_v47 }
0x13e8   :  { %v6415_v43 = vadd.f32 %v9402_v6, %v6414_v50  ;;  %v6432_v35 = vmul.f32 %v9404_v3, %v6430_v18  ;;  %v9406_v48 = vpop.eup %9405  ;;  %vm6437_vm13 = vweird.f32 %v9404_v3 }
0x13e9   :  { %v6400_v21 = vsel %vm6399_vm0, %v9400_v17, %v6396_v22  ;;  %v6440_v17 = vand.u32 2147483647, %v6430_v18  ;;  %vm6438_vm15 = vmor %vm6436_vm14, %vm6437_vm13 }
0x13ea   :  { %v6405_v42 = vsel %vm6402_vm11, %v6404_v2, %v6400_v21  ;;  %v6419_v1 = vsel %vm6418_vm10, %v9402_v6, %v6415_v43  ;;  %v6433_v51 = vsub.f32 1.0, %v6432_v35 }
0x13eb   :  { %v6424_v23 = vsel %vm6421_vm12, %v6423_v49, %v6419_v1  ;;  %v6447_v59 = vmul.f32 %v9406_v48, %v6405_v42  ;;  %vm6441_vm1 = vcmp.eq.f32.partialorder %v6440_v17, 8.507059e+37 }
0x13ec   :  { %v6446_v53 = vmul.f32 %v6424_v23, %v12809_v15  ;;  %v6434_v47 = vmul.f32 %v9404_v3, %v6433_v51  ;;  %v13411_v15 = vld [vmem:[#allocation25_spill] sm:$0xff] }
0x13ee   :  { %v12872_v9 = vadd.f32 %v6447_v59, %v6446_v53  ;;  %v6435_v27 = vadd.f32 %v9404_v3, %v6434_v47  ;;  %v6855_v59 = vmul.f32 %v12817_v8, %v13411_v15 }
0x13f0   :  { %9407 = vtanh.f32 %v12872_v9  ;;  %v6439_v45 = vsel %vm6438_vm15, %v9404_v3, %v6435_v27 }
0x13f1   :  { %v6444_v50 = vsel %vm6441_vm1, %v6443_v24, %v6439_v45 }
0x13f6   :  { %v9408_v6 = vpop.eup %9407 }
0x13f7   :  { %v12875_v20 = vmul.f32 %v9408_v6, %v6444_v50 }
0x13f9   :  { %v6456_v42 = vpack.c.bf16 %v12875_v20, %v12875_v20  ;;  %v6856_v53 = vmul.f32 %v12819_v37, %v12875_v20 }
0x13fb   :  { %6465 = vmatmul.bf16.vlgmr.msrb.gmra.mxu0 %v6456_v42  ;;  %6478 = vmatmul.bf16.vlgmr.msrb.gmra.mxu1 %v6456_v42  ;;  %v6874_v51 = vadd.f32 %v6856_v53, %v6855_v59 }
0x13fc   :  { %6491 = vmatmul.bf16.vlgmr.msrb.gmra.mxu2 %v6456_v42  ;;  %6504 = vmatmul.bf16.vlgmr.msrb.gmra.mxu3 %v6456_v42 }
0x13fd   :  { %6875 = vadd.xlane.f32.xlu1 %v6874_v51  ;;  %6707 = vmatpush.bf16.msrb.mxu0 %v12322_v46 }
0x13fe   :  { %6720 = vmatpush.bf16.msrb.mxu1 %v12324_v36  ;;  %6733 = vmatpush.bf16.msrb.mxu2 %v12337_v28 }
0x13ff   :  { %6746 = vmatpush.bf16.msrb.mxu3 %v12326_v31  ;;  %v13412_v31 = vld [vmem:[#allocation35_spill] sm:$0xff] }
0x1401   :  { %6708 = vmatpush.bf16.msrb.mxu0 %v12329_v58 }
0x1402   :  { %6721 = vmatpush.bf16.msrb.mxu1 %v12333_v60  ;;  %6734 = vmatpush.bf16.msrb.mxu2 %v12354_v12  ;;  %v13413_v60 = vld [vmem:[#allocation31_spill] sm:$0xff]  ;;  %v13414_v12 = vld [vmem:[#allocation46_spill] sm:$0xff] }
0x1403   :  { %6747 = vmatpush.bf16.msrb.mxu3 %v12335_v25 }
0x1405   :  { %6709 = vmatpush.bf16.msrb.mxu0 %v12347_v0 }
0x1406   :  { %6722 = vmatpush.bf16.msrb.mxu1 %v12349_v63  ;;  %6735 = vmatpush.bf16.msrb.mxu2 %v12365_v34 }
0x1407   :  { %6748 = vmatpush.bf16.msrb.mxu3 %v12351_v41 }
0x1409   :  { %6710 = vmatpush.bf16.msrb.mxu0 %v12358_v16 }
0x140a   :  { %6723 = vmatpush.bf16.msrb.mxu1 %v12360_v57  ;;  %6736 = vmatpush.bf16.msrb.mxu2 %v12382_v13 }
0x140b   :  { %6749 = vmatpush.bf16.msrb.mxu3 %v12363_v33 }
0x140d   :  { %6711 = vmatpush.bf16.msrb.mxu0 %v12375_v32 }
0x140e   :  { %6724 = vmatpush.bf16.msrb.mxu1 %v12377_v52  ;;  %6737 = vmatpush.bf16.msrb.mxu2 %v12395_v19 }
0x140f   :  { %6750 = vmatpush.bf16.msrb.mxu3 %v12379_v39 }
0x1411   :  { %6712 = vmatpush.bf16.msrb.mxu0 %v12386_v5 }
0x1412   :  { %6725 = vmatpush.bf16.msrb.mxu1 %v12388_v26  ;;  %6738 = vmatpush.bf16.msrb.mxu2 %v12402_v55 }
0x1413   :  { %6751 = vmatpush.bf16.msrb.mxu3 %v12400_v7 }
0x1415   :  { %6713 = vmatpush.bf16.msrb.mxu0 %v12406_v10  ;;  %v13415_v10 = vld [vmem:[#allocation30_spill] sm:$0xff] }
0x1416   :  { %6726 = vmatpush.bf16.msrb.mxu1 %v12408_v61  ;;  %6739 = vmatpush.bf16.msrb.mxu2 %v12413_v30 }
0x1417   :  { %6752 = vmatpush.bf16.msrb.mxu3 %v12410_v62 }
0x1419   :  { %6714 = vmatpush.bf16.msrb.mxu0 %v12417_v56 }
0x141a   :  { %6727 = vmatpush.bf16.msrb.mxu1 %v12420_v29  ;;  %6740 = vmatpush.bf16.msrb.mxu2 %v12423_v14 }
0x141b   :  { %6753 = vmatpush.bf16.msrb.mxu3 %v12426_v40 }
0x1478   :  { %v6466_v46 = vpop.f32.mrf.mxu0  ;;  %v6479_v36 = vpop.f32.mrf.mxu1 }
0x1479   :  { %v6509_v58 = vadd.f32 %v6466_v46, %v13412_v31  ;;  %v6510_v25 = vadd.f32 %v6479_v36, %v13413_v60 }
0x147b   :  { %v8514_v28 = vmul.f32 -1.442695, %v6509_v58  ;;  %v8515_v0 = vmul.f32 -1.442695, %v6510_v25 }
0x147d   :  { %9409 = vpow2.f32 %v8514_v28  ;;  %v13416_v28 = vld [vmem:[#allocation24_spill] sm:$0xff] }
0x147e   :  { %9411 = vpow2.f32 %v8515_v0  ;;  %v6853_v0 = vmul.f32 %v12817_v8, %v13416_v28 }
0x147f   :  { %v6492_v63 = vpop.f32.mrf.mxu2  ;;  %v6505_v41 = vpop.f32.mrf.mxu3 }
0x1480   :  { %v6512_v16 = vadd.f32 %v6505_v41, %v13414_v12  ;;  %v6468_v57 = vpop.f32.mrf.mxu0  ;;  %v6481_v33 = vpop.f32.mrf.mxu1  ;;  %v6511_v61 = vadd.f32 %v6492_v63, %v13415_v10  ;;  %v6864_v12 = vmul.f32 %v12819_v37, %v12676_v11 }
0x1482   :  { %v8516_v34 = vmul.f32 -1.442695, %v6512_v16  ;;  %v13417_v16 = vld [vmem:[#allocation60_spill] sm:$0xff] }
0x1483   :  { %v9410_v32 = vpop.eup %9409  ;;  %v6863_v57 = vmul.f32 %v12817_v8, %v13417_v16 }
0x1484   :  { %v9412_v52 = vpop.eup %9411  ;;  %v6516_v39 = vadd.f32 1.0, %v9410_v32  ;;  %9413 = vpow2.f32 %v8516_v34  ;;  %v13418_v34 = vld [vmem:[#allocation47_spill] sm:$0xff] }
0x1485   :  { %v6535_v13 = vadd.f32 1.0, %v9412_v52  ;;  %v6886_v33 = vadd.f32 %v6864_v12, %v6863_v57  ;;  %v5384_v32 = vadd.f32 %v13418_v34, %v12483_v4  ;;  %v13419_v52 = vld [vmem:[#allocation36_spill] sm:$0xff] }
0x1486   :  { %9415 = vrcp.f32 %v6516_v39  ;;  %v6528_v40 = vand.u32 2147483648, %v6516_v39  ;;  %v6526_v22 = vand.u32 2147483647, %v6516_v39  ;;  %vm6522_vm4 = vweird.f32 %v6516_v39 }
0x1487   :  { %9417 = vrcp.f32 %v6535_v13  ;;  %v6494_v5 = vpop.f32.mrf.mxu2  ;;  %v6507_v26 = vpop.f32.mrf.mxu3  ;;  %v6547_v18 = vand.u32 2147483648, %v6535_v13  ;;  %v6545_v43 = vand.u32 2147483647, %v6535_v13  ;;  %vm6541_vm5 = vweird.f32 %v6535_v13 }
0x1488   :  { %v6529_v21 = vor.u32 1.1754944e-38, %v6528_v40  ;;  %vm6527_vm8 = vcmp.eq.f32.partialorder %v6526_v22, 8.507059e+37  ;;  %v13421_v26 = vld [vmem:[#allocation45_spill] sm:$0xff] }
0x1489   :  { %v6548_v23 = vor.u32 1.1754944e-38, %v6547_v18  ;;  %vm6546_vm9 = vcmp.eq.f32.partialorder %v6545_v43, 8.507059e+37 }
0x148a   :  { %v9414_v19 = vpop.eup %9413 }
0x148b   :  { %v6555_v7 = vadd.f32 1.0, %v9414_v19 }
0x148c   :  { %v9416_v55 = vpop.eup %9415 }
0x148d   :  { %v9418_v62 = vpop.eup %9417  ;;  %v6518_v30 = vmul.f32 %v9416_v55, %v6516_v39  ;;  %9419 = vrcp.f32 %v6555_v7  ;;  %vm6523_vm2 = vweird.f32 %v9416_v55  ;;  %v6567_v51 = vand.u32 2147483648, %v6555_v7 }
0x148e   :  { %v6537_v56 = vmul.f32 %v9418_v62, %v6535_v13  ;;  %9421 = vtanh.f32 %v6511_v61  ;;  %vm6542_vm3 = vweird.f32 %v9418_v62  ;;  %vm6524_vm6 = vmor %vm6522_vm4, %vm6523_vm2  ;;  %vm6561_vm10 = vweird.f32 %v6555_v7  ;;  %v13420_v13 = vld [vmem:[#allocation27_spill] sm:$0xff] }
0x148f   :  { %v6519_v29 = vsub.f32 1.0, %v6518_v30  ;;  %vm6543_vm7 = vmor %vm6541_vm5, %vm6542_vm3  ;;  %v6565_v46 = vand.u32 2147483647, %v6555_v7  ;;  %v6568_v31 = vor.u32 1.1754944e-38, %v6567_v51  ;;  %v5442_v39 = vadd.f32 %v13419_v52, %v13391_v38 }
0x1490   :  { %v6538_v14 = vsub.f32 1.0, %v6537_v56  ;;  %v5413_v5 = vadd.f32 %v13420_v13, %v5384_v32 }
0x1491   :  { %v6520_v3 = vmul.f32 %v9416_v55, %v6519_v29  ;;  %vm6566_vm12 = vcmp.eq.f32.partialorder %v6565_v46, 8.507059e+37  ;;  %v5471_v19 = vadd.f32 %v13421_v26, %v5442_v39 }
0x1492   :  { %v6539_v2 = vmul.f32 %v9418_v62, %v6538_v14  ;;  %v13422_v14 = vld [vmem:[#allocation63_spill] sm:$0xff] }
0x1493   :  { %v9420_v35 = vpop.eup %9419  ;;  %v6521_v49 = vadd.f32 %v9416_v55, %v6520_v3 }
0x1494   :  { %v6540_v48 = vadd.f32 %v9418_v62, %v6539_v2  ;;  %v6557_v1 = vmul.f32 %v9420_v35, %v6555_v7  ;;  %v9422_v27 = vpop.eup %9421  ;;  %vm6562_vm0 = vweird.f32 %v9420_v35 }
0x1495   :  { %v6525_v47 = vsel %vm6524_vm6, %v9416_v55, %v6521_v49  ;;  %vm6563_vm11 = vmor %vm6561_vm10, %vm6562_vm0  ;;  %v13424_v49 = vld [vmem:[#allocation55_spill] sm:$0xff] }
0x1496   :  { %v6530_v44 = vsel %vm6527_vm8, %v6529_v21, %v6525_v47  ;;  %v6544_v17 = vsel %vm6543_vm7, %v9418_v62, %v6540_v48  ;;  %v6558_v45 = vsub.f32 1.0, %v6557_v1  ;;  %v13425_v47 = vld [vmem:[#allocation54_spill] sm:$0xff] }
0x1497   :  { %v6549_v24 = vsel %vm6546_vm9, %v6548_v23, %v6544_v17  ;;  %v6572_v6 = vmul.f32 %v9422_v27, %v6530_v44 }
0x1498   :  { %v6571_v50 = vmul.f32 %v6549_v24, %v12872_v9  ;;  %v6559_v42 = vmul.f32 %v9420_v35, %v6558_v45 }
0x149a   :  { %v12920_v59 = vadd.f32 %v6572_v6, %v6571_v50  ;;  %v6560_v53 = vadd.f32 %v9420_v35, %v6559_v42 }
0x149c   :  { %9423 = vtanh.f32 %v12920_v59  ;;  %v6564_v36 = vsel %vm6563_vm11, %v9420_v35, %v6560_v53  ;;  %v13423_v35 = vld [vmem:[#allocation40_spill] sm:$0xff] }
0x149d   :  { %v6569_v60 = vsel %vm6566_vm12, %v6568_v31, %v6564_v36  ;;  %v5500_v21 = vadd.f32 %v13424_v49, %v13423_v35  ;;  %v13428_v35 = vld [vmem:[#allocation22_spill] sm:$0xff] }
0x149f   :  { %v5529_v27 = vadd.f32 %v13425_v47, %v5500_v21  ;;  %v13429_v47 = vld [vmem:[#allocation64_spill] sm:$0xff] }
0x14a2   :  { %v9424_v58 = vpop.eup %9423 }
0x14a3   :  { %v12923_v25 = vmul.f32 %v9424_v58, %v6569_v60 }
0x14a5   :  { %v6581_v9 = vpack.c.bf16 %v12923_v25, %v12923_v25  ;;  %v6854_v63 = vmul.f32 %v12819_v37, %v12923_v25 }
0x14a7   :  { %6590 = vmatmul.bf16.vlgmr.msra.gmra.mxu0 %v6581_v9  ;;  %6603 = vmatmul.bf16.vlgmr.msra.gmra.mxu1 %v6581_v9  ;;  %v6871_v41 = vadd.f32 %v6854_v63, %v6853_v0 }
0x14a8   :  { %6616 = vmatmul.bf16.vlgmr.msra.gmra.mxu2 %v6581_v9  ;;  %6629 = vmatmul.bf16.vlgmr.msra.gmra.mxu3 %v6581_v9 }
0x14a9   :  { %6872 = vadd.xlane.f32.xlu1 %v6871_v41 }
0x14b1   :  { %6887 = vadd.xlane.f32.xlu1 %v6886_v33 }
0x1524   :  { %v6591_v7 = vpop.f32.mrf.mxu0  ;;  %v6604_v10 = vpop.f32.mrf.mxu1 }
0x1525   :  { %v6634_v55 = vadd.f32 %v6591_v7, %v5413_v5  ;;  %v6635_v61 = vadd.f32 %v6604_v10, %v5471_v19 }
0x1527   :  { %v8517_v62 = vmul.f32 -1.442695, %v6634_v55  ;;  %v8518_v30 = vmul.f32 -1.442695, %v6635_v61 }
0x1529   :  { %9425 = vpow2.f32 %v8517_v62 }
0x152a   :  { %9427 = vpow2.f32 %v8518_v30 }
0x152b   :  { %v6617_v56 = vpop.f32.mrf.mxu2  ;;  %v6630_v29 = vpop.f32.mrf.mxu3 }
0x152c   :  { %v6637_v40 = vadd.f32 %v6630_v29, %v13422_v14  ;;  %v6593_v4 = vpop.f32.mrf.mxu0  ;;  %v6606_v18 = vpop.f32.mrf.mxu1  ;;  %v6636_v45 = vadd.f32 %v6617_v56, %v5529_v27 }
0x152e   :  { %v8519_v3 = vmul.f32 -1.442695, %v6637_v40  ;;  %v13426_v40 = vld [vmem:[#allocation34_spill] sm:$0xff] }
0x152f   :  { %v9426_v38 = vpop.eup %9425  ;;  %v6851_v4 = vmul.f32 %v12817_v8, %v13426_v40 }
0x1530   :  { %v9428_v22 = vpop.eup %9427  ;;  %v6641_v2 = vadd.f32 1.0, %v9426_v38  ;;  %9429 = vpow2.f32 %v8519_v3 }
0x1531   :  { %v6660_v43 = vadd.f32 1.0, %v9428_v22 }
0x1532   :  { %9431 = vrcp.f32 %v6641_v2  ;;  %v6653_v51 = vand.u32 2147483648, %v6641_v2  ;;  %v6651_v31 = vand.u32 2147483647, %v6641_v2  ;;  %vm6647_vm15 = vweird.f32 %v6641_v2 }
0x1533   :  { %9433 = vrcp.f32 %v6660_v43  ;;  %v6619_v48 = vpop.f32.mrf.mxu2  ;;  %v6632_v1 = vpop.f32.mrf.mxu3  ;;  %v6672_v46 = vand.u32 2147483648, %v6660_v43  ;;  %v6670_v60 = vand.u32 2147483647, %v6660_v43  ;;  %vm6666_vm1 = vweird.f32 %v6660_v43 }
0x1534   :  { %v6654_v63 = vor.u32 1.1754944e-38, %v6653_v51  ;;  %vm6652_vm4 = vcmp.eq.f32.partialorder %v6651_v31, 8.507059e+37 }
0x1535   :  { %v6673_v57 = vor.u32 1.1754944e-38, %v6672_v46  ;;  %vm6671_vm5 = vcmp.eq.f32.partialorder %v6670_v60, 8.507059e+37 }
0x1536   :  { %v9430_v23 = vpop.eup %9429 }
0x1537   :  { %v6680_v44 = vadd.f32 1.0, %v9430_v23 }
0x1538   :  { %v9432_v17 = vpop.eup %9431 }
0x1539   :  { %v9434_v24 = vpop.eup %9433  ;;  %v6643_v6 = vmul.f32 %v9432_v17, %v6641_v2  ;;  %9435 = vrcp.f32 %v6680_v44  ;;  %vm6648_vm13 = vweird.f32 %v9432_v17  ;;  %v6692_v10 = vand.u32 2147483648, %v6680_v44  ;;  %v13427_v2 = vld [vmem:[#allocation29_spill] sm:$0xff] }
0x153a   :  { %v6662_v50 = vmul.f32 %v9434_v24, %v6660_v43  ;;  %9437 = vtanh.f32 %v6636_v45  ;;  %vm6667_vm14 = vweird.f32 %v9434_v24  ;;  %vm6649_vm2 = vmor %vm6647_vm15, %vm6648_vm13  ;;  %vm6686_vm7 = vweird.f32 %v6680_v44 }
0x153b   :  { %v6644_v42 = vsub.f32 1.0, %v6643_v6  ;;  %vm6668_vm3 = vmor %vm6666_vm1, %vm6667_vm14  ;;  %v6690_v61 = vand.u32 2147483647, %v6680_v44  ;;  %v6693_v30 = vor.u32 1.1754944e-38, %v6692_v10 }
0x153c   :  { %v6663_v53 = vsub.f32 1.0, %v6662_v50 }
0x153d   :  { %v6645_v36 = vmul.f32 %v9432_v17, %v6644_v42  ;;  %vm6691_vm9 = vcmp.eq.f32.partialorder %v6690_v61, 8.507059e+37 }
0x153e   :  { %v6664_v58 = vmul.f32 %v9434_v24, %v6663_v53 }
0x153f   :  { %v9436_v9 = vpop.eup %9435  ;;  %v6646_v0 = vadd.f32 %v9432_v17, %v6645_v36 }
0x1540   :  { %v6665_v41 = vadd.f32 %v9434_v24, %v6664_v58  ;;  %v6682_v12 = vmul.f32 %v9436_v9, %v6680_v44  ;;  %v9438_v34 = vpop.eup %9437  ;;  %vm6687_vm6 = vweird.f32 %v9436_v9  ;;  %v13430_v58 = vld [vmem:[#allocation61_spill] sm:$0xff] }
0x1541   :  { %v6650_v33 = vsel %vm6649_vm2, %v9432_v17, %v6646_v0  ;;  %vm6688_vm8 = vmor %vm6686_vm7, %vm6687_vm6  ;;  %vm7209_vm6 = vcmask 15360  }
0x1542   :  { %v6655_v32 = vsel %vm6652_vm4, %v6654_v63, %v6650_v33  ;;  %v6669_v52 = vsel %vm6668_vm3, %v9434_v24, %v6665_v41  ;;  %v6683_v39 = vsub.f32 1.0, %v6682_v12 }
0x1543   :  { %v6674_v13 = vsel %vm6671_vm5, %v6673_v57, %v6669_v52  ;;  %v6697_v5 = vmul.f32 %v9438_v34, %v6655_v32 }
0x1544   :  { %v6696_v26 = vmul.f32 %v6674_v13, %v12920_v59  ;;  %v6684_v19 = vmul.f32 %v9436_v9, %v6683_v39 }
0x1546   :  { %v12946_v7 = vadd.f32 %v6697_v5, %v6696_v26  ;;  %v6685_v55 = vadd.f32 %v9436_v9, %v6684_v19 }
0x1548   :  { %9439 = vtanh.f32 %v12946_v7  ;;  %v6689_v62 = vsel %vm6688_vm8, %v9436_v9, %v6685_v55 }
0x1549   :  { %v6694_v29 = vsel %vm6691_vm9, %v6693_v30, %v6689_v62 }
0x154e   :  { %v9440_v56 = vpop.eup %9439 }
0x154f   :  { %v12949_v14 = vmul.f32 %v9440_v56, %v6694_v29 }
0x1551   :  { %v6706_v59 = vpack.c.bf16 %v12949_v14, %v12949_v14  ;;  %v6852_v18 = vmul.f32 %v12819_v37, %v12949_v14 }
0x1553   :  { %6715 = vmatmul.bf16.vlgmr.msrb.gmra.mxu0 %v6706_v59  ;;  %6728 = vmatmul.bf16.vlgmr.msrb.gmra.mxu1 %v6706_v59  ;;  %v6868_v3 = vadd.f32 %v6852_v18, %v6851_v4 }
0x1554   :  { %6741 = vmatmul.bf16.vlgmr.msrb.gmra.mxu2 %v6706_v59  ;;  %6754 = vmatmul.bf16.vlgmr.msrb.gmra.mxu3 %v6706_v59 }
0x1555   :  { %6869 = vadd.xlane.f32.xlu0 %v6868_v3 }
0x15d0   :  { %v6716_v38 = vpop.f32.mrf.mxu0  ;;  %v6729_v22 = vpop.f32.mrf.mxu1 }
0x15d1   :  { %v6759_v43 = vadd.f32 %v6716_v38, %v13427_v2  ;;  %v6760_v49 = vadd.f32 %v6729_v22, %v13428_v35 }
0x15d3   :  { %v8520_v21 = vmul.f32 -1.442695, %v6759_v43  ;;  %v8521_v48 = vmul.f32 -1.442695, %v6760_v49 }
0x15d5   :  { %9441 = vpow2.f32 %v8520_v21 }
0x15d6   :  { %9443 = vpow2.f32 %v8521_v48 }
0x15d7   :  { %v6742_v1 = vpop.f32.mrf.mxu2  ;;  %v6755_v23 = vpop.f32.mrf.mxu3 }
0x15d8   :  { %v6762_v27 = vadd.f32 %v6755_v23, %v13429_v47  ;;  %v6718_v44 = vpop.f32.mrf.mxu0  ;;  %v6731_v17 = vpop.f32.mrf.mxu1  ;;  %v6761_v60 = vadd.f32 %v6742_v1, %v13430_v58  ;;  %v13431_v23 = vld [vmem:[#allocation67_spill] sm:$0xff] }
0x15d9   :  { %v6849_v47 = vmul.f32 %v12817_v8, %v13431_v23  ;;  %v6862_v44 = vmul.f32 %v12819_v37, %v12720_v54  ;;  %v13432_v17 = vld [vmem:[#allocation26_spill] sm:$0xff] }
0x15da   :  { %v8522_v45 = vmul.f32 -1.442695, %v6762_v27 }
0x15db   :  { %v9442_v24 = vpop.eup %9441 }
0x15dc   :  { %v9444_v6 = vpop.eup %9443  ;;  %v6766_v50 = vadd.f32 1.0, %v9442_v24  ;;  %9445 = vpow2.f32 %v8522_v45  ;;  %v6861_v45 = vmul.f32 %v12817_v8, %v13432_v17 }
0x15dd   :  { %v6785_v42 = vadd.f32 1.0, %v9444_v6  ;;  %v6876_v6 = vpop.xlane.xlu1 %6875 }
0x15de   :  { %9447 = vrcp.f32 %v6766_v50  ;;  %v6778_v57 = vand.u32 2147483648, %v6766_v50  ;;  %v6776_v32 = vand.u32 2147483647, %v6766_v50  ;;  %vm6772_vm11 = vweird.f32 %v6766_v50 }
0x15df   :  { %9449 = vrcp.f32 %v6785_v42  ;;  %v6744_v53 = vpop.f32.mrf.mxu2  ;;  %v6757_v51 = vpop.f32.mrf.mxu3  ;;  %v6797_v33 = vand.u32 2147483648, %v6785_v42  ;;  %v6795_v39 = vand.u32 2147483647, %v6785_v42  ;;  %vm6791_vm12 = vweird.f32 %v6785_v42 }
0x15e0   :  { %v6779_v26 = vor.u32 1.1754944e-38, %v6778_v57  ;;  %vm6777_vm15 = vcmp.eq.f32.partialorder %v6776_v32, 8.507059e+37  ;;  %v6883_v24 = vadd.f32 %v6862_v44, %v6861_v45  ;;  %v6879_v53 = vpop.xlane.xlu2 %6878  ;;  %v8913_v57 = vld [vmem:[#allocation15 + $0x30] sm:$0xff] }
0x15e1   :  { %v6798_v10 = vor.u32 1.1754944e-38, %v6797_v33  ;;  %vm6796_vm1 = vcmp.eq.f32.partialorder %v6795_v39, 8.507059e+37  ;;  %v8921_v33 = vld [vmem:[#allocation15 + $0x70] sm:$0xff] }
0x15e2   :  { %v9446_v46 = vpop.eup %9445 }
0x15e3   :  { %v6805_v36 = vadd.f32 1.0, %v9446_v46 }
0x15e4   :  { %v9448_v31 = vpop.eup %9447 }
0x15e5   :  { %v9450_v9 = vpop.eup %9449  ;;  %v6768_v0 = vmul.f32 %v9448_v31, %v6766_v50  ;;  %9451 = vrcp.f32 %v6805_v36  ;;  %vm6773_vm0 = vweird.f32 %v9448_v31  ;;  %v6817_v2 = vand.u32 2147483648, %v6805_v36  ;;  %v6870_v50 = vpop.xlane.xlu0 %6869 }
0x15e6   :  { %v6787_v63 = vmul.f32 %v9450_v9, %v6785_v42  ;;  %9453 = vtanh.f32 %v6761_v60  ;;  %vm6792_vm10 = vweird.f32 %v9450_v9  ;;  %vm6774_vm13 = vmor %vm6772_vm11, %vm6773_vm0  ;;  %vm6811_vm3 = vweird.f32 %v6805_v36  ;;  %v6873_v42 = vpop.xlane.xlu1 %6872 }
0x15e7   :  { %v6769_v41 = vsub.f32 1.0, %v6768_v0  ;;  %vm6793_vm14 = vmor %vm6791_vm12, %vm6792_vm10  ;;  %v6815_v43 = vand.u32 2147483647, %v6805_v36  ;;  %v6818_v49 = vor.u32 1.1754944e-38, %v6817_v2 }
0x15e8   :  { %v6788_v12 = vsub.f32 1.0, %v6787_v63  ;;  %v8914_v63 = vld [vmem:[#allocation15 + $0x38] sm:$0xff] }
0x15e9   :  { %v6770_v34 = vmul.f32 %v9448_v31, %v6769_v41  ;;  %vm6816_vm5 = vcmp.eq.f32.partialorder %v6815_v43, 8.507059e+37  ;;  %v8922_v41 = vld [vmem:[#allocation15 + $0x78] sm:$0xff]  ;;  %7100 = vmatpush.bf16.msra.mxu0 %v8914_v63  ;;  %v8928_v63 = vld [vmem:[%s13040_s16 + $0x28] sm:$0xff] }
0x15ea   :  { %v6789_v52 = vmul.f32 %v9450_v9, %v6788_v12  ;;  %7113 = vmatpush.bf16.msra.mxu1 %v8922_v41 }
0x15eb   :  { %v9452_v13 = vpop.eup %9451  ;;  %v6771_v5 = vadd.f32 %v9448_v31, %v6770_v34 }
0x15ec   :  { %v6790_v19 = vadd.f32 %v9450_v9, %v6789_v52  ;;  %v6807_v55 = vmul.f32 %v9452_v13, %v6805_v36  ;;  %v9454_v62 = vpop.eup %9453  ;;  %vm6812_vm2 = vweird.f32 %v9452_v13 }
0x15ed   :  { %v6775_v61 = vsel %vm6774_vm13, %v9448_v31, %v6771_v5  ;;  %vm6813_vm4 = vmor %vm6811_vm3, %vm6812_vm2  ;;  %v6882_v31 = vpop.xlane.xlu2 %6881  ;;  %7101 = vmatpush.bf16.msra.mxu0 %v8913_v57 }
0x15ee   :  { %v6780_v30 = vsel %vm6777_vm15, %v6779_v26, %v6775_v61  ;;  %v6794_v56 = vsel %vm6793_vm14, %v9450_v9, %v6790_v19  ;;  %v6808_v29 = vsub.f32 1.0, %v6807_v55  ;;  %v6888_v46 = vpop.xlane.xlu1 %6887  ;;  %v6890_v9 = vmax.f32 %v6870_v50, %v6882_v31  ;;  %7114 = vmatpush.bf16.msra.mxu1 %v8921_v33  ;;  %v8912_v55 = vld [vmem:[#allocation15 + $0x28] sm:$0xff] }
0x15ef   :  { %v6799_v59 = vsel %vm6796_vm1, %v6798_v10, %v6794_v56  ;;  %v6822_v4 = vmul.f32 %v9454_v62, %v6780_v30  ;;  %v6892_v60 = vmax.f32 %v6876_v6, %v6888_v46  ;;  %v8920_v10 = vld [vmem:[#allocation15 + $0x68] sm:$0xff]  ;;  %v8911_v30 = vld [vmem:[#allocation15 + $0x20] sm:$0xff] }
0x15f0   :  { %v6821_v18 = vmul.f32 %v6799_v59, %v12946_v7  ;;  %v6809_v3 = vmul.f32 %v9452_v13, %v6808_v29  ;;  %v8919_v56 = vld [vmem:[#allocation15 + $0x60] sm:$0xff] }
0x15f1   :  { %7102 = vmatpush.bf16.msra.mxu0 %v8912_v55 }
0x15f2   :  { %v6823_v38 = vadd.f32 %v6822_v4, %v6821_v18  ;;  %v6810_v22 = vadd.f32 %v9452_v13, %v6809_v3  ;;  %7115 = vmatpush.bf16.msra.mxu1 %v8920_v10 }
0x15f4   :  { %9455 = vtanh.f32 %v6823_v38  ;;  %v6814_v35 = vsel %vm6813_vm4, %v9452_v13, %v6810_v22  ;;  %v8910_v38 = vld [vmem:[#allocation15 + $0x18] sm:$0xff] }
0x15f5   :  { %v6819_v48 = vsel %vm6816_vm5, %v6818_v49, %v6814_v35  ;;  %7103 = vmatpush.bf16.msra.mxu0 %v8911_v30  ;;  %v8918_v22 = vld [vmem:[#allocation15 + $0x58] sm:$0xff] }
0x15f6   :  { %7116 = vmatpush.bf16.msra.mxu1 %v8919_v56  ;;  %v13433_v56 = vld [vmem:[#allocation43_spill] sm:$0xff] }
0x15f9   :  { %7104 = vmatpush.bf16.msra.mxu0 %v8910_v38 }
0x15fa   :  { %v9456_v21 = vpop.eup %9455  ;;  %7117 = vmatpush.bf16.msra.mxu1 %v8918_v22 }
0x15fb   :  { %v12962_v1 = vmul.f32 %v9456_v21, %v6819_v48 }
0x15fd   :  { %v6850_v7 = vmul.f32 %v12819_v37, %v12962_v1 }
0x15ff   :  { %v6865_v27 = vadd.f32 %v6850_v7, %v6849_v47  ;;  %v8909_v47 = vld [vmem:[#allocation15 + $0x10] sm:$0xff] }
0x1600   :  { %v8917_v7 = vld [vmem:[#allocation15 + $0x50] sm:$0xff]  ;;  %7105 = vmatpush.bf16.msra.mxu0 %v8909_v47 }
0x1601   :  { %6866 = vadd.xlane.f32.xlu0 %v6865_v27  ;;  %7118 = vmatpush.bf16.msra.mxu1 %v8917_v7 }
0x1609   :  { %6884 = vadd.xlane.f32.xlu0 %v6883_v24 }
0x1674   :  { %v6867_v51 = vpop.xlane.xlu0 %6866 }
0x1675   :  { %v6889_v36 = vmax.f32 %v6867_v51, %v6879_v53 }
0x1677   :  { %v6893_v37 = vmax.f32 %v6889_v36, %v6890_v9  ;;  %v8907_v36 = vld [vmem:[#allocation15] sm:$0xff] }
0x167c   :  { %v6885_v58 = vpop.xlane.xlu0 %6884 }
0x167d   :  { %v6891_v0 = vmax.f32 %v6873_v42, %v6885_v58 }
0x167f   :  { %v6894_v12 = vmax.f32 %v6891_v0, %v6892_v60  ;;  %v8929_v0 = vld [vmem:[%s13040_s16 + $0x30] sm:$0xff] }
0x1681   :  { %v6895_v8 = vmax.f32 %v6893_v37, %v6894_v12  ;;  %v8927_v37 = vld [vmem:[%s13040_s16 + $0x20] sm:$0xff] }
0x1683   :  { %v6896_v34 = vsub.f32 %v6867_v51, %v6895_v8  ;;  %v6897_v32 = vsub.f32 %v6870_v50, %v6895_v8  ;;  %v6898_v52 = vsub.f32 %v6873_v42, %v6895_v8  ;;  %v6899_v39 = vsub.f32 %v6876_v6, %v6895_v8  ;;  %v8908_v6 = vld [vmem:[#allocation15 + $0x8] sm:$0xff] }
0x1684   :  { %v6900_v26 = vsub.f32 %v6879_v53, %v6895_v8  ;;  %v6901_v61 = vsub.f32 %v6882_v31, %v6895_v8  ;;  %v6902_v29 = vsub.f32 %v6885_v58, %v6895_v8  ;;  %v6903_v4 = vsub.f32 %v6888_v46, %v6895_v8  ;;  %v8916_v50 = vld [vmem:[#allocation15 + $0x48] sm:$0xff]  ;;  %7106 = vmatpush.bf16.msra.mxu0 %v8908_v6  ;;  %v8915_v31 = vld [vmem:[#allocation15 + $0x40] sm:$0xff]  ;;  %v8930_v58 = vld [vmem:[%s13040_s16 + $0x38] sm:$0xff] }
0x1685   :  { %v6904_v13 = vmul.f32 1.442695, %v6896_v34  ;;  %v6906_v5 = vmul.f32 1.442695, %v6897_v32  ;;  %v6908_v19 = vmul.f32 1.442695, %v6898_v52  ;;  %7119 = vmatpush.bf16.msra.mxu1 %v8916_v50  ;;  %7196 = vmatpush.bf16.msra.mxu2 %v8930_v58 }
0x1686   :  { %v6910_v62 = vmul.f32 1.442695, %v6899_v39  ;;  %v6912_v59 = vmul.f32 1.442695, %v6900_v26  ;;  %v6914_v18 = vmul.f32 1.442695, %v6901_v61 }
0x1687   :  { %9457 = vpow2.f32 %v6904_v13  ;;  %v6916_v43 = vmul.f32 1.442695, %v6902_v29  ;;  %v6918_v21 = vmul.f32 1.442695, %v6903_v4  ;;  %v8926_v13 = vld [vmem:[%s13040_s16 + $0x18] sm:$0xff] }
0x1688   :  { %9459 = vpow2.f32 %v6906_v5  ;;  %7107 = vmatpush.bf16.msra.mxu0 %v8907_v36  ;;  %v8944_v58 = vld [vmem:[%s13041_s17] ss:$0 sm:$0xff] }
0x1689   :  { %9461 = vpow2.f32 %v6908_v19  ;;  %7120 = vmatpush.bf16.msra.mxu1 %v8915_v31  ;;  %7197 = vmatpush.bf16.msra.mxu2 %v8929_v0 }
0x168a   :  { %9463 = vpow2.f32 %v6910_v62  ;;  %v8925_v62 = vld [vmem:[%s13040_s16 + $0x10] sm:$0xff] }
0x168b   :  { %9465 = vpow2.f32 %v6912_v59 }
0x168c   :  { %9467 = vpow2.f32 %v6914_v18 }
0x168d   :  { %v9458_v3 = vpop.eup %9457  ;;  %9469 = vpow2.f32 %v6916_v43  ;;  %7198 = vmatpush.bf16.msra.mxu2 %v8928_v63 }
0x168e   :  { %v9460_v2 = vpop.eup %9459  ;;  %9471 = vpow2.f32 %v6918_v21 }
0x168f   :  { %v6920_v35 = vadd.f32 %v9460_v2, %v9458_v3  ;;  %v9462_v49 = vpop.eup %9461 }
0x1690   :  { %v9464_v27 = vpop.eup %9463 }
0x1691   :  { %v6921_v48 = vadd.f32 %v9462_v49, %v6920_v35  ;;  %v9466_v45 = vpop.eup %9465  ;;  %7199 = vmatpush.bf16.msra.mxu2 %v8927_v37 }
0x1692   :  { %v9468_v42 = vpop.eup %9467 }
0x1693   :  { %v6922_v44 = vadd.f32 %v9464_v27, %v6921_v48  ;;  %v9470_v51 = vpop.eup %9469 }
0x1694   :  { %v9472_v60 = vpop.eup %9471 }
0x1695   :  { %v6923_v24 = vadd.f32 %v9466_v45, %v6922_v44  ;;  %7200 = vmatpush.bf16.msra.mxu2 %v8926_v13 }
0x1697   :  { %v6924_v53 = vadd.f32 %v9468_v42, %v6923_v24 }
0x1699   :  { %v6925_v46 = vadd.f32 %v9470_v51, %v6924_v53  ;;  %7201 = vmatpush.bf16.msra.mxu2 %v8925_v62 }
0x169b   :  { %v6926_v9 = vadd.f32 %v9472_v60, %v6925_v46 }
0x169d   :  { %9473 = vrcp.f32 %v6926_v9 }
0x16a3   :  { %v9474_v41 = vpop.eup %9473 }
0x16a4   :  { %v6928_v12 = vmul.f32 %v9474_v41, %v9458_v3  ;;  %v6929_v8 = vmul.f32 %v9474_v41, %v9460_v2  ;;  %v6930_v57 = vmul.f32 %v9474_v41, %v9462_v49  ;;  %v6931_v39 = vmul.f32 %v9474_v41, %v9464_v27  ;;  %v13435_v3 = vld [vmem:[#allocation41_spill] sm:$0xff] }
0x16a5   :  { %v6932_v5 = vmul.f32 %v9474_v41, %v9466_v45  ;;  %v6934_v30 = vmul.f32 %v9474_v41, %v9470_v51  ;;  %v6935_v18 = vmul.f32 %v9474_v41, %v9472_v60 }
0x16a6   :  { %v6936_v33 = vmul.f32 %v6928_v12, %v13431_v23  ;;  %v6937_v34 = vmul.f32 %v6928_v12, %v12962_v1  ;;  %v6938_v32 = vmul.f32 %v6929_v8, %v13426_v40  ;;  %v6939_v52 = vmul.f32 %v6929_v8, %v12949_v14 }
0x16a7   :  { %v6940_v26 = vmul.f32 %v6930_v57, %v13416_v28  ;;  %v6941_v19 = vmul.f32 %v6930_v57, %v12923_v25  ;;  %v6933_v23 = vmul.f32 %v9474_v41, %v9468_v42  ;;  %v6942_v1 = vmul.f32 %v6931_v39, %v13411_v15  ;;  %v13434_v28 = vld [vmem:[#allocation44_spill] sm:$0xff]  ;;  %v13436_v15 = vld [vmem:[#allocation21_spill] sm:$0xff] }
0x16a8   :  { %v6952_v55 = vadd.f32 %v6938_v32, %v6936_v33  ;;  %v6959_v10 = vadd.f32 %v6939_v52, %v6937_v34  ;;  %v6943_v40 = vmul.f32 %v6931_v39, %v12875_v20  ;;  %v6944_v29 = vmul.f32 %v6932_v5, %v13433_v56 }
0x16a9   :  { %v6945_v59 = vmul.f32 %v6932_v5, %v13434_v28  ;;  %v6946_v38 = vmul.f32 %v6933_v23, %v13435_v3  ;;  %v6947_v22 = vmul.f32 %v6933_v23, %v13436_v15  ;;  %v6948_v43 = vmul.f32 %v6934_v30, %v13432_v17  ;;  %v8924_v17 = vld [vmem:[%s13040_s16 + $0x8] sm:$0xff] }
0x16aa   :  { %v6953_v61 = vadd.f32 %v6952_v55, %v6940_v26  ;;  %v6960_v14 = vadd.f32 %v6959_v10, %v6941_v19  ;;  %v6949_v35 = vmul.f32 %v6934_v30, %v12720_v54  ;;  %v6950_v7 = vmul.f32 %v6935_v18, %v13417_v16  ;;  %7202 = vmatpush.bf16.msra.mxu2 %v8924_v17  ;;  %v8923_v54 = vld [vmem:[%s13040_s16] sm:$0xff] }
0x16ab   :  { %v6951_v27 = vmul.f32 %v6935_v18, %v12676_v11  ;;  %v8943_v11 = vld [vmem:[%s13039_s15] ss:$0 sm:$0xff] }
0x16ac   :  { %v6954_v25 = vadd.f32 %v6953_v61, %v6942_v1  ;;  %v6961_v4 = vadd.f32 %v6960_v14, %v6943_v40 }
0x16ae   :  { %v6955_v20 = vadd.f32 %v6954_v25, %v6944_v29  ;;  %v6962_v2 = vadd.f32 %v6961_v4, %v6945_v59  ;;  %7203 = vmatpush.bf16.msra.mxu2 %v8923_v54 }
0x16b0   :  { %v6956_v49 = vadd.f32 %v6955_v20, %v6946_v38  ;;  %v6963_v21 = vadd.f32 %v6962_v2, %v6947_v22 }
0x16b2   :  { %v6957_v48 = vadd.f32 %v6956_v49, %v6948_v43  ;;  %v6964_v47 = vadd.f32 %v6963_v21, %v6949_v35 }
0x16b4   :  { %v6958_v44 = vadd.f32 %v6957_v48, %v6950_v7  ;;  %v6965_v45 = vadd.f32 %v6964_v47, %v6951_v27 }
0x16b6   :  { %v6966_v24 = vpack.c.bf16 %v6958_v44, %v6958_v44  ;;  %v6967_v6 = vpack.c.bf16 %v6965_v45, %v6965_v45 }
0x16b8   :  { %7108 = vmatmul.bf16.vlgmr.msra.gmra.mxu0 %v6966_v24  ;;  %7121 = vmatmul.bf16.vlgmr.msra.gmra.mxu1 %v6967_v6 }
0x1735   :  { %v7109_v16 = vpop.f32.mrf.mxu0  ;;  %v7122_v50 = vpop.f32.mrf.mxu1 }
0x1736   :  { %v7110_v42 = vadd.f32 %v8943_v11, %v7109_v16 }
0x1738   :  { %v7123_v53 = vadd.f32 %v7122_v50, %v7110_v42 }
0x173a   :  { %v7126_v51 = vmax.f32 %v7123_v53, 0.0 }
0x173c   :  { %v7127_v46 = vpack.c.bf16 %v7126_v51, %v7126_v51 }
0x173d   :  { %v7111_v36 = vpop.f32.mrf.mxu0  ;;  %v7124_v31 = vpop.f32.mrf.mxu1 }
0x173e   :  { %7204 = vmatmul.bf16.vlgmr.msra.gmra.mxu2 %v7127_v46 }
0x17c1   :  { %v7205_v60 = vpop.f32.mrf.mxu2 }
0x17c2   :  { %v7206_v9 = vadd.f32 %v8944_v58, %v7205_v60 }
0x17c4   :  { %v7210_v0 = vsel %vm7209_vm6, %v7206_v9, -inf }
0x17c5   :  { %7211 = vmax.xlane.f32.xlu2 %v7210_v0 }
0x17c9   :  { %v7207_v63 = vpop.f32.mrf.mxu2 }
0x1838   :  { %v7212_v41 = vpop.xlane.xlu2 %7211 }
0x1839   :  { %v7213_v37 = vsub.f32 %v7206_v9, %v7212_v41 }
0x183b   :  { %v7214_v12 = vmul.f32 1.442695, %v7213_v37 }
0x183d   :  { %9475 = vpow2.f32 %v7214_v12 }
0x1843   :  { %v9476_v8 = vpop.eup %9475 }
0x1844   :  { %v7216_v57 = vsel %vm7209_vm6, %v9476_v8, 0.0 }
0x1845   :  { %7217 = vadd.xlane.f32.xlu0 %v7216_v57 }
0x18b8   :  { %v7218_v33 = vpop.xlane.xlu0 %7217 }
0x18b9   :  { %9477 = vrcp.f32 %v7218_v33  ;;  %v7230_v39 = vand.u32 2147483648, %v7218_v33  ;;  %v7228_v5 = vand.u32 2147483647, %v7218_v33  ;;  %vm7224_vm8 = vweird.f32 %v7218_v33 }
0x18bb   :  { %v7231_v19 = vor.u32 1.1754944e-38, %v7230_v39  ;;  %vm7229_vm0 = vcmp.eq.f32.partialorder %v7228_v5, 8.507059e+37 }
0x18bf   :  { %v9478_v34 = vpop.eup %9477 }
0x18c0   :  { %v7220_v32 = vmul.f32 %v9478_v34, %v7218_v33  ;;  %vm7225_vm7 = vweird.f32 %v9478_v34 }
0x18c1   :  { %vm7226_vm9 = vmor %vm7224_vm8, %vm7225_vm7 }
0x18c2   :  { %v7221_v52 = vsub.f32 1.0, %v7220_v32 }
0x18c4   :  { %v7222_v13 = vmul.f32 %v9478_v34, %v7221_v52 }
0x18c6   :  { %v7223_v26 = vadd.f32 %v9478_v34, %v7222_v13 }
0x18c8   :  { %v7227_v55 = vsel %vm7226_vm9, %v9478_v34, %v7223_v26 }
0x18c9   :  { %v7232_v10 = vsel %vm7229_vm0, %v7231_v19, %v7227_v55 }
0x18ca   :  { %v7233_v23 = vmul.f32 %v9476_v8, %v7232_v10 }
0x18cc   :  { %7234 = vst.msk [vmem:[%s13042_s18] sm:$0xff] %vm7209_vm6, %v7233_v23 }
0x18cd   :  { %7239 = vsyncpa [#allocation6], 1 }
0x18ce   :  { %7240 = vsyncpa [#allocation8], 1 }
0x18cf   :  { %7241 = vsyncpa [#allocation11], 1 }
0x18d0   :  { %7242 = vsyncpa [#allocation14], 1 }

</bundles_post_ra>
